<compile_context>
chip_gen: v5e
topology: v5e:2x2
jax: 0.10.0
libtpu: 0.0.40
codegen_flags: <defaults>
</compile_context>

<pallas_src>
import numpy as np
import jax
import jax.numpy as jnp
from jax import lax
from jax.experimental import pallas as pl
from jax.experimental.pallas import tpu as pltpu


def _round_up(x, m):
    return ((x + m - 1) // m) * m


# ----------------------------- fused Pallas kernel ----------------------------

def _make_upstyle_kernel(H, W, C, CT, HP, WP):
    """One grid step == one image.  Scratch `buf` is a zero-framed (HP, WP, C) pad
    buffer; the current activation always lives at rows [2, 2+H), cols [0, W)."""

    M = H * WP  # rows of the flattened padded image == matmul M dimension

    def kernel(x_ref, w11_ref, b11_ref, w12_ref, b12_ref,
               w21_ref, b21_ref, w22_ref, b22_ref,
               pw_ref, pb_ref, o_ref, buf):
        # zero the frame once; only the interior block is ever rewritten below, so the
        # surrounding zeros provide all conv / conv-transpose padding in VMEM.
        buf[...] = jnp.zeros((HP, WP, C), jnp.float32)

        def conv3x3_same(xin, w_ref, b_ref, relu, residual):
            # 9 accumulating (M, C)@(C, C) bf16 MXU matmuls; the (kh, kw) tap shift is
            # a static row offset into the flattened padded image (left-pad reads wrap
            # into the always-zero tail columns of the previous row).
            buf[2:2 + H, 0:W, :] = xin
            xf = buf[...].reshape(HP * WP, C)
            acc = jnp.zeros((M, C), jnp.float32)
            for kh in range(3):
                for kw in range(3):
                    off = (kh + 1) * WP + (kw - 1)
                    a = xf[off:off + M, :].astype(jnp.bfloat16)
                    acc = acc + jnp.dot(a, w_ref[kh, kw],
                                        preferred_element_type=jnp.float32)
            acc = acc + b_ref[...]
            if relu:
                acc = jnp.maximum(acc, 0.0)
            out = acc.reshape(H, WP, C)[:, :W, :]
            if residual is not None:
                out = out + residual
            return out

        x0 = x_ref[0]                                           # (H, W, C) f32
        # DEC block 1:  r = relu(conv1(x)) + x ; x1 = conv2(r) + x
        r = conv3x3_same(x0, w11_ref, b11_ref, True, x0)
        x1 = conv3x3_same(r, w12_ref, b12_ref, False, x0)
        # DEC block 2
        r = conv3x3_same(x1, w21_ref, b21_ref, True, x1)
        x2 = conv3x3_same(r, w22_ref, b22_ref, False, x1)

        # ConvTranspose2d(C->CT, 3, stride=2, padding=1, output_padding=1) + ReLU,
        # 4-phase decomposition:  v[m, n, (2a+b)*CT + c] = relu(convT(x2))[2m+a, 2n+b, c]
        buf[2:2 + H, 0:W, :] = x2
        xf = buf[...].reshape(HP * WP, C)
        acc = jnp.zeros((M, 4 * CT), jnp.float32)
        for t, (dh, dw) in enumerate(((0, 0), (0, 1), (1, 0), (1, 1))):
            off = (dh + 2) * WP + dw
            a = xf[off:off + M, :].astype(jnp.bfloat16)
            acc = acc + jnp.dot(a, pw_ref[t], preferred_element_type=jnp.float32)
        acc = jnp.maximum(acc + pb_ref[...], 0.0)
        v = acc.reshape(H, WP, 4 * CT)[:, :W, :]                # (H, W, 4*CT) lane dense

        # bilinear x2 (align_corners=False) as shift-and-blend:
        #   H axis in row-interleaved space (leading-dim shifts), W axis in
        #   column-phase space; channels/phases never leave the lane axis.
        u0 = v[:, :, :2 * CT]                                   # row phase a = 0
        u1 = v[:, :, 2 * CT:]                                   # row phase a = 1
        zc = jnp.stack([u0, u1], axis=1).reshape(2 * H, W, 2 * CT)
        zp = jnp.concatenate([zc[:1], zc[:-1]], axis=0)         # z[p-1], edge clamped
        zn = jnp.concatenate([zc[1:], zc[-1:]], axis=0)         # z[p+1], edge clamped
        ev = 0.25 * zp + 0.75 * zc                              # output rows 2p
        od = 0.75 * zc + 0.25 * zn                              # output rows 2p+1
        r4 = jnp.stack([ev, od], axis=1).reshape(4 * H, W, 2 * CT)

        r0 = r4[:, :, :CT]                                      # z columns q = 2n
        r1 = r4[:, :, CT:]                                      # z columns q = 2n+1
        qm1 = jnp.concatenate([r0[:, :1], r1[:, :-1]], axis=1)  # z[q-1], edge clamped
        qp1 = jnp.concatenate([r0[:, 1:], r1[:, -1:]], axis=1)  # z[q+1], edge clamped
        y0 = 0.25 * qm1 + 0.75 * r0                             # output cols 4n
        y1 = 0.75 * r0 + 0.25 * r1                              # output cols 4n+1
        y2 = 0.25 * r0 + 0.75 * r1                              # output cols 4n+2
        y3 = 0.75 * r1 + 0.25 * qp1                             # output cols 4n+3
        # lane-dense packed output: o[P, n, psi*CT + c] = Y[P, 4n+psi, c]
        o_ref[0] = jnp.concatenate([y0, y1, y2, y3], axis=-1).astype(o_ref.dtype)

    return kernel


# ----------------------------- wrappers ---------------------------------------

def _pack_deconv_weights(wt, bt):
    """Pack ConvTranspose2d weights (Cin, Cout, 3, 3) into per-tap (Cin, 4*Cout)
    matrices for the 4-phase (sub-pixel) decomposition (taps (dh, dw) in {0,1}^2)."""
    Cin, Cout = wt.shape[0], wt.shape[1]
    Wk = lambda kh, kw: wt[:, :, kh, kw]
    Z = jnp.zeros((Cin, Cout), wt.dtype)
    pw = jnp.stack([
        jnp.concatenate([Wk(1, 1), Wk(1, 2), Wk(2, 1), Wk(2, 2)], axis=1),  # (dh,dw)=(0,0)
        jnp.concatenate([Z,        Wk(1, 0), Z,        Wk(2, 0)], axis=1),  # (0,1)
        jnp.concatenate([Z,        Z,        Wk(0, 1), Wk(0, 2)], axis=1),  # (1,0)
        jnp.concatenate([Z,        Z,        Z,        Wk(0, 0)], axis=1),  # (1,1)
    ], axis=0)                                    # (4, Cin, 4*Cout)
    pb = jnp.tile(bt, 4).reshape(1, 4 * Cout)
    return pw, pb


def up_style_forward(params, x_nchw):
    N, C, H, W = x_nchw.shape
    CT = params["up_b"].shape[0]
    assert C == 128 and params["up_w"].shape == (C, CT, 3, 3)
    for k in ("deb1_w1", "deb1_w2", "deb2_w1", "deb2_w2"):
        assert params[k].shape == (3, 3, C, C)

    HP = H + 4                    # padded rows + one spare row for the flat-offset reads
    WP = _round_up(W + 2, 8)      # padded cols rounded to the sublane tile

    x = jnp.transpose(x_nchw, (0, 2, 3, 1)).astype(jnp.float32)   # NCHW -> NHWC
    wb = lambda w: w.astype(jnp.bfloat16)                         # bf16 MXU operands
    bf = lambda b: b.reshape(1, -1).astype(jnp.float32)
    pw, pb = _pack_deconv_weights(params["up_w"], params["up_b"])
    pw = pw.astype(jnp.bfloat16)
    pb = pb.astype(jnp.float32)

    kernel = _make_upstyle_kernel(H, W, C, CT, HP, WP)
    w_spec = pl.BlockSpec((3, 3, C, C), lambda n: (0, 0, 0, 0))
    b_spec = pl.BlockSpec((1, C), lambda n: (0, 0))

    out = pl.pallas_call(
        kernel,
        out_shape=jax.ShapeDtypeStruct((N, 4 * H, W, 4 * CT), jnp.float32),
        grid=(N,),
        in_specs=[
            pl.BlockSpec((1, H, W, C), lambda n: (n, 0, 0, 0)),
            w_spec, b_spec, w_spec, b_spec, w_spec, b_spec, w_spec, b_spec,
            pl.BlockSpec((4, C, 4 * CT), lambda n: (0, 0, 0)),
            pl.BlockSpec((1, 4 * CT), lambda n: (0, 0)),
        ],
        out_specs=pl.BlockSpec((1, 4 * H, W, 4 * CT), lambda n: (n, 0, 0, 0)),
        scratch_shapes=[pltpu.VMEM((HP, WP, C), jnp.float32)],
        compiler_params=pltpu.CompilerParams(
            dimension_semantics=("parallel",),
            vmem_limit_bytes=32 * 1024 * 1024),
    )(x,
      wb(params["deb1_w1"]), bf(params["deb1_b1"]),
      wb(params["deb1_w2"]), bf(params["deb1_b2"]),
      wb(params["deb2_w1"]), bf(params["deb2_b1"]),
      wb(params["deb2_w2"]), bf(params["deb2_b2"]),
      pw, pb)

    # unpack the lane-packed column phases ((W, 4*CT) -> (4W, CT) is a pure reshape)
    y = out.reshape(N, 4 * H, 4 * W, CT)
    return jnp.transpose(y, (0, 3, 1, 2))                          # NHWC -> NCHW


# ----------------------------- pure-JAX reference ------------------------------

def _bilinear_matrix(n_in, n_out):
    scale = n_in / n_out
    src = np.clip((np.arange(n_out) + 0.5) * scale - 0.5, 0.0, n_in - 1)
    lo = np.floor(src).astype(np.int64)
    hi = np.minimum(lo + 1, n_in - 1)
    frac = src - lo
    U = np.zeros((n_out, n_in), np.float32)
    U[np.arange(n_out), lo] += 1.0 - frac
    U[np.arange(n_out), hi] += frac
    return jnp.asarray(U, jnp.float32)


def ref_forward(params, x_nchw):
    # f32 reference using the same bf16-rounded weights the kernel consumes.
    r = lambda a: a.astype(jnp.bfloat16).astype(jnp.float32)
    dn = ("NHWC", "HWIO", "NHWC")
    x = jnp.transpose(x_nchw, (0, 2, 3, 1)).astype(jnp.float32)

    def conv(t, w, b):
        return lax.conv_general_dilated(t, r(w), (1, 1), "SAME",
                                        dimension_numbers=dn) + b.astype(jnp.float32)

    def dec(t, w1, b1, w2, b2):
        res = jnp.maximum(conv(t, w1, b1), 0.0) + t
        return conv(res, w2, b2) + t

    x = dec(x, params["deb1_w1"], params["deb1_b1"], params["deb1_w2"], params["deb1_b2"])
    x = dec(x, params["deb2_w1"], params["deb2_b1"], params["deb2_w2"], params["deb2_b2"])

    # ConvTranspose2d(128->32, 3, stride=2, padding=1, output_padding=1) + ReLU
    wt = r(params["up_w"])
    wflip = jnp.transpose(wt[:, :, ::-1, ::-1], (2, 3, 0, 1))       # flipped, HWIO
    z = lax.conv_general_dilated(x, wflip, (1, 1), ((1, 2), (1, 2)),
                                 lhs_dilation=(2, 2), dimension_numbers=dn)
    z = jnp.maximum(z + params["up_b"].astype(jnp.float32), 0.0)

    Nn, H2, W2, CT = z.shape
    Uh = _bilinear_matrix(H2, 2 * H2)
    Uw = _bilinear_matrix(W2, 2 * W2)
    z = jnp.einsum("ph,nhwc->npwc", Uh, z)
    z = jnp.einsum("qw,npwc->npqc", Uw, z)
    return jnp.transpose(z, (0, 3, 1, 2))


# ----------------------------- params & main -----------------------------------

def init_params(key, dim, ksize):
    ks = jax.random.split(key, 10)
    s = 0.02
    nrm = lambda k, shp: s * jax.random.normal(k, shp, jnp.float32)
    return {
        # deb1: DEConv (re-parameterized 3x3) + default_conv(ksize)   (HWIO layout)
        "deb1_w1": nrm(ks[0], (3, 3, dim, dim)),        "deb1_b1": nrm(ks[1], (dim,)),
        "deb1_w2": nrm(ks[2], (ksize, ksize, dim, dim)), "deb1_b2": nrm(ks[3], (dim,)),
        # deb2
        "deb2_w1": nrm(ks[4], (3, 3, dim, dim)),        "deb2_b1": nrm(ks[5], (dim,)),
        "deb2_w2": nrm(ks[6], (ksize, ksize, dim, dim)), "deb2_b2": nrm(ks[7], (dim,)),
        # ConvTranspose2d(128, 32, 3, stride=2, padding=1, output_padding=1), PT layout
        "up_w": nrm(ks[8], (dim, 32, 3, 3)),            "up_b": nrm(ks[9], (32,)),
    }


if __name__ == "__main__":
    dim, ksize = 128, 3          # the module hard-codes ConvTranspose2d(128, 32, ...)
    N, H, W = 2, 8, 8

    key = jax.random.PRNGKey(0)
    kx, kp = jax.random.split(key)
    x = jax.random.normal(kx, (N, dim, H, W), jnp.float32)
    params = init_params(kp, dim, ksize)

    y = jax.jit(up_style_forward)(params, x)
    jax.block_until_ready(y)
    assert y.shape == (N, 32, 4 * H, 4 * W), y.shape
    assert bool(jnp.all(jnp.isfinite(y)))

    # correctness check vs a pure-JAX f32 reference (relaxed tolerance: bf16 MXU inputs)
    y_ref = jax.jit(ref_forward)(params, x)
    err = float(jnp.max(jnp.abs(y - y_ref)))
    ref_mag = float(jnp.max(jnp.abs(y_ref)))
    assert err <= 0.08 * max(1.0, ref_mag), (err, ref_mag)

    print("KERNEL_OK")
</pallas_src>

<mosaic_0001>
module attributes {stable_mosaic.version = 11 : i64} {
  func.func @kernel(%arg0: i32, %arg1: memref<1x8x8x128xf32, #tpu.memory_space<vmem>>, %arg2: memref<3x3x128x128xbf16, #tpu.memory_space<vmem>>, %arg3: memref<1x128xf32, #tpu.memory_space<vmem>>, %arg4: memref<3x3x128x128xbf16, #tpu.memory_space<vmem>>, %arg5: memref<1x128xf32, #tpu.memory_space<vmem>>, %arg6: memref<3x3x128x128xbf16, #tpu.memory_space<vmem>>, %arg7: memref<1x128xf32, #tpu.memory_space<vmem>>, %arg8: memref<3x3x128x128xbf16, #tpu.memory_space<vmem>>, %arg9: memref<1x128xf32, #tpu.memory_space<vmem>>, %arg10: memref<4x128x128xbf16, #tpu.memory_space<vmem>>, %arg11: memref<1x128xf32, #tpu.memory_space<vmem>>, %arg12: memref<1x32x8x128xf32, #tpu.memory_space<vmem>>, %arg13: memref<12x16x128xf32, #tpu.memory_space<vmem>>) attributes {dimension_semantics = [#tpu.dimension_semantics<parallel>], iteration_bounds = array<i64: 2>, scalar_prefetch = 0 : i64, scratch_operands = 1 : i64, tpu.core_type = #tpu.core_type<tc>, window_params = [{transform_indices = @transform_0, window_bounds = array<i64: 1, 8, 8, 128>}, {pipeline_mode = #tpu.pipeline_mode<synchronous>, transform_indices = @transform_1, window_bounds = array<i64: 3, 3, 128, 128>}, {pipeline_mode = #tpu.pipeline_mode<synchronous>, transform_indices = @transform_2, window_bounds = array<i64: 1, 128>}, {pipeline_mode = #tpu.pipeline_mode<synchronous>, transform_indices = @transform_3, window_bounds = array<i64: 3, 3, 128, 128>}, {pipeline_mode = #tpu.pipeline_mode<synchronous>, transform_indices = @transform_4, window_bounds = array<i64: 1, 128>}, {pipeline_mode = #tpu.pipeline_mode<synchronous>, transform_indices = @transform_5, window_bounds = array<i64: 3, 3, 128, 128>}, {pipeline_mode = #tpu.pipeline_mode<synchronous>, transform_indices = @transform_6, window_bounds = array<i64: 1, 128>}, {pipeline_mode = #tpu.pipeline_mode<synchronous>, transform_indices = @transform_7, window_bounds = array<i64: 3, 3, 128, 128>}, {pipeline_mode = #tpu.pipeline_mode<synchronous>, transform_indices = @transform_8, window_bounds = array<i64: 1, 128>}, {pipeline_mode = #tpu.pipeline_mode<synchronous>, transform_indices = @transform_9, window_bounds = array<i64: 4, 128, 128>}, {pipeline_mode = #tpu.pipeline_mode<synchronous>, transform_indices = @transform_10, window_bounds = array<i64: 1, 128>}, {transform_indices = @transform_11, window_bounds = array<i64: 1, 32, 8, 128>}]} {
    %cst = arith.constant 0.000000e+00 : f32
    %0 = vector.broadcast %cst : f32 to vector<12x16x128xf32>
    %c0 = arith.constant 0 : index
    %c0_0 = arith.constant 0 : index
    %c0_1 = arith.constant 0 : index
    %1 = vector.load %arg13[%c0, %c0_0, %c0_1] : memref<12x16x128xf32, #tpu.memory_space<vmem>>, vector<12x16x128xf32>
    tpu.vector_store %arg13[%c0, %c0_0, %c0_1], %0 {strides = array<i32>} : memref<12x16x128xf32, #tpu.memory_space<vmem>>, vector<12x16x128xf32>,
    %c0_2 = arith.constant 0 : index
    %c0_3 = arith.constant 0 : index
    %c0_4 = arith.constant 0 : index
    %c0_5 = arith.constant 0 : index
    %2 = vector.load %arg1[%c0_2, %c0_3, %c0_4, %c0_5] : memref<1x8x8x128xf32, #tpu.memory_space<vmem>>, vector<1x8x8x128xf32>
    %3 = vector.shape_cast %2 : vector<1x8x8x128xf32> to vector<8x8x128xf32>
    %c2 = arith.constant 2 : index
    %c0_6 = arith.constant 0 : index
    %c0_7 = arith.constant 0 : index
    %4 = vector.load %arg13[%c2, %c0_6, %c0_7] : memref<12x16x128xf32, #tpu.memory_space<vmem>>, vector<8x8x128xf32>
    tpu.vector_store %arg13[%c2, %c0_6, %c0_7], %3 {strides = array<i32>} : memref<12x16x128xf32, #tpu.memory_space<vmem>>, vector<8x8x128xf32>,
    %c0_8 = arith.constant 0 : index
    %c0_9 = arith.constant 0 : index
    %c0_10 = arith.constant 0 : index
    %5 = vector.load %arg13[%c0_8, %c0_9, %c0_10] : memref<12x16x128xf32, #tpu.memory_space<vmem>>, vector<12x16x128xf32>
    %6 = vector.shape_cast %5 : vector<12x16x128xf32> to vector<192x128xf32>
    %cst_11 = arith.constant 0.000000e+00 : f32
    %7 = vector.broadcast %cst_11 : f32 to vector<128x128xf32>
    %8 = vector.extract_strided_slice %6 {offsets = [15, 0], sizes = [128, 128], strides = [1, 1]} : vector<192x128xf32> to vector<128x128xf32>
    %9 = arith.truncf %8 : vector<128x128xf32> to vector<128x128xbf16>
    %c0_12 = arith.constant 0 : index
    %c0_13 = arith.constant 0 : index
    %c0_14 = arith.constant 0 : index
    %c0_15 = arith.constant 0 : index
    %10 = vector.load %arg2[%c0_12, %c0_13, %c0_14, %c0_15] : memref<3x3x128x128xbf16, #tpu.memory_space<vmem>>, vector<1x1x128x128xbf16>
    %11 = vector.shape_cast %10 : vector<1x1x128x128xbf16> to vector<128x128xbf16>
    %cst_16 = arith.constant dense<0.000000e+00> : vector<128x128xf32>
    %12 = tpu.matmul %9, %11, %cst_16 {dimension_numbers = #tpu.dot_dimension_numbers<[1], [0], [0], [1], [0, 0, 1, 1], [], []>} : vector<128x128xbf16>, vector<128x128xbf16>, vector<128x128xf32> -> vector<128x128xf32>
    %13 = arith.addf %7, %12 : vector<128x128xf32>
    %14 = vector.extract_strided_slice %6 {offsets = [16, 0], sizes = [128, 128], strides = [1, 1]} : vector<192x128xf32> to vector<128x128xf32>
    %15 = arith.truncf %14 : vector<128x128xf32> to vector<128x128xbf16>
    %c0_17 = arith.constant 0 : index
    %c1 = arith.constant 1 : index
    %c0_18 = arith.constant 0 : index
    %c0_19 = arith.constant 0 : index
    %16 = vector.load %arg2[%c0_17, %c1, %c0_18, %c0_19] : memref<3x3x128x128xbf16, #tpu.memory_space<vmem>>, vector<1x1x128x128xbf16>
    %17 = vector.shape_cast %16 : vector<1x1x128x128xbf16> to vector<128x128xbf16>
    %cst_20 = arith.constant dense<0.000000e+00> : vector<128x128xf32>
    %18 = tpu.matmul %15, %17, %cst_20 {dimension_numbers = #tpu.dot_dimension_numbers<[1], [0], [0], [1], [0, 0, 1, 1], [], []>} : vector<128x128xbf16>, vector<128x128xbf16>, vector<128x128xf32> -> vector<128x128xf32>
    %19 = arith.addf %13, %18 : vector<128x128xf32>
    %20 = vector.extract_strided_slice %6 {offsets = [17, 0], sizes = [128, 128], strides = [1, 1]} : vector<192x128xf32> to vector<128x128xf32>
    %21 = arith.truncf %20 : vector<128x128xf32> to vector<128x128xbf16>
    %c0_21 = arith.constant 0 : index
    %c2_22 = arith.constant 2 : index
    %c0_23 = arith.constant 0 : index
    %c0_24 = arith.constant 0 : index
    %22 = vector.load %arg2[%c0_21, %c2_22, %c0_23, %c0_24] : memref<3x3x128x128xbf16, #tpu.memory_space<vmem>>, vector<1x1x128x128xbf16>
    %23 = vector.shape_cast %22 : vector<1x1x128x128xbf16> to vector<128x128xbf16>
    %cst_25 = arith.constant dense<0.000000e+00> : vector<128x128xf32>
    %24 = tpu.matmul %21, %23, %cst_25 {dimension_numbers = #tpu.dot_dimension_numbers<[1], [0], [0], [1], [0, 0, 1, 1], [], []>} : vector<128x128xbf16>, vector<128x128xbf16>, vector<128x128xf32> -> vector<128x128xf32>
    %25 = arith.addf %19, %24 : vector<128x128xf32>
    %26 = vector.extract_strided_slice %6 {offsets = [31, 0], sizes = [128, 128], strides = [1, 1]} : vector<192x128xf32> to vector<128x128xf32>
    %27 = arith.truncf %26 : vector<128x128xf32> to vector<128x128xbf16>
    %c1_26 = arith.constant 1 : index
    %c0_27 = arith.constant 0 : index
    %c0_28 = arith.constant 0 : index
    %c0_29 = arith.constant 0 : index
    %28 = vector.load %arg2[%c1_26, %c0_27, %c0_28, %c0_29] : memref<3x3x128x128xbf16, #tpu.memory_space<vmem>>, vector<1x1x128x128xbf16>
    %29 = vector.shape_cast %28 : vector<1x1x128x128xbf16> to vector<128x128xbf16>
    %cst_30 = arith.constant dense<0.000000e+00> : vector<128x128xf32>
    %30 = tpu.matmul %27, %29, %cst_30 {dimension_numbers = #tpu.dot_dimension_numbers<[1], [0], [0], [1], [0, 0, 1, 1], [], []>} : vector<128x128xbf16>, vector<128x128xbf16>, vector<128x128xf32> -> vector<128x128xf32>
    %31 = arith.addf %25, %30 : vector<128x128xf32>
    %32 = vector.extract_strided_slice %6 {offsets = [32, 0], sizes = [128, 128], strides = [1, 1]} : vector<192x128xf32> to vector<128x128xf32>
    %33 = arith.truncf %32 : vector<128x128xf32> to vector<128x128xbf16>
    %c1_31 = arith.constant 1 : index
    %c1_32 = arith.constant 1 : index
    %c0_33 = arith.constant 0 : index
    %c0_34 = arith.constant 0 : index
    %34 = vector.load %arg2[%c1_31, %c1_32, %c0_33, %c0_34] : memref<3x3x128x128xbf16, #tpu.memory_space<vmem>>, vector<1x1x128x128xbf16>
    %35 = vector.shape_cast %34 : vector<1x1x128x128xbf16> to vector<128x128xbf16>
    %cst_35 = arith.constant dense<0.000000e+00> : vector<128x128xf32>
    %36 = tpu.matmul %33, %35, %cst_35 {dimension_numbers = #tpu.dot_dimension_numbers<[1], [0], [0], [1], [0, 0, 1, 1], [], []>} : vector<128x128xbf16>, vector<128x128xbf16>, vector<128x128xf32> -> vector<128x128xf32>
    %37 = arith.addf %31, %36 : vector<128x128xf32>
    %38 = vector.extract_strided_slice %6 {offsets = [33, 0], sizes = [128, 128], strides = [1, 1]} : vector<192x128xf32> to vector<128x128xf32>
    %39 = arith.truncf %38 : vector<128x128xf32> to vector<128x128xbf16>
    %c1_36 = arith.constant 1 : index
    %c2_37 = arith.constant 2 : index
    %c0_38 = arith.constant 0 : index
    %c0_39 = arith.constant 0 : index
    %40 = vector.load %arg2[%c1_36, %c2_37, %c0_38, %c0_39] : memref<3x3x128x128xbf16, #tpu.memory_space<vmem>>, vector<1x1x128x128xbf16>
    %41 = vector.shape_cast %40 : vector<1x1x128x128xbf16> to vector<128x128xbf16>
    %cst_40 = arith.constant dense<0.000000e+00> : vector<128x128xf32>
    %42 = tpu.matmul %39, %41, %cst_40 {dimension_numbers = #tpu.dot_dimension_numbers<[1], [0], [0], [1], [0, 0, 1, 1], [], []>} : vector<128x128xbf16>, vector<128x128xbf16>, vector<128x128xf32> -> vector<128x128xf32>
    %43 = arith.addf %37, %42 : vector<128x128xf32>
    %44 = vector.extract_strided_slice %6 {offsets = [47, 0], sizes = [128, 128], strides = [1, 1]} : vector<192x128xf32> to vector<128x128xf32>
    %45 = arith.truncf %44 : vector<128x128xf32> to vector<128x128xbf16>
    %c2_41 = arith.constant 2 : index
    %c0_42 = arith.constant 0 : index
    %c0_43 = arith.constant 0 : index
    %c0_44 = arith.constant 0 : index
    %46 = vector.load %arg2[%c2_41, %c0_42, %c0_43, %c0_44] : memref<3x3x128x128xbf16, #tpu.memory_space<vmem>>, vector<1x1x128x128xbf16>
    %47 = vector.shape_cast %46 : vector<1x1x128x128xbf16> to vector<128x128xbf16>
    %cst_45 = arith.constant dense<0.000000e+00> : vector<128x128xf32>
    %48 = tpu.matmul %45, %47, %cst_45 {dimension_numbers = #tpu.dot_dimension_numbers<[1], [0], [0], [1], [0, 0, 1, 1], [], []>} : vector<128x128xbf16>, vector<128x128xbf16>, vector<128x128xf32> -> vector<128x128xf32>
    %49 = arith.addf %43, %48 : vector<128x128xf32>
    %50 = vector.extract_strided_slice %6 {offsets = [48, 0], sizes = [128, 128], strides = [1, 1]} : vector<192x128xf32> to vector<128x128xf32>
    %51 = arith.truncf %50 : vector<128x128xf32> to vector<128x128xbf16>
    %c2_46 = arith.constant 2 : index
    %c1_47 = arith.constant 1 : index
    %c0_48 = arith.constant 0 : index
    %c0_49 = arith.constant 0 : index
    %52 = vector.load %arg2[%c2_46, %c1_47, %c0_48, %c0_49] : memref<3x3x128x128xbf16, #tpu.memory_space<vmem>>, vector<1x1x128x128xbf16>
    %53 = vector.shape_cast %52 : vector<1x1x128x128xbf16> to vector<128x128xbf16>
    %cst_50 = arith.constant dense<0.000000e+00> : vector<128x128xf32>
    %54 = tpu.matmul %51, %53, %cst_50 {dimension_numbers = #tpu.dot_dimension_numbers<[1], [0], [0], [1], [0, 0, 1, 1], [], []>} : vector<128x128xbf16>, vector<128x128xbf16>, vector<128x128xf32> -> vector<128x128xf32>
    %55 = arith.addf %49, %54 : vector<128x128xf32>
    %56 = vector.extract_strided_slice %6 {offsets = [49, 0], sizes = [128, 128], strides = [1, 1]} : vector<192x128xf32> to vector<128x128xf32>
    %57 = arith.truncf %56 : vector<128x128xf32> to vector<128x128xbf16>
    %c2_51 = arith.constant 2 : index
    %c2_52 = arith.constant 2 : index
    %c0_53 = arith.constant 0 : index
    %c0_54 = arith.constant 0 : index
    %58 = vector.load %arg2[%c2_51, %c2_52, %c0_53, %c0_54] : memref<3x3x128x128xbf16, #tpu.memory_space<vmem>>, vector<1x1x128x128xbf16>
    %59 = vector.shape_cast %58 : vector<1x1x128x128xbf16> to vector<128x128xbf16>
    %cst_55 = arith.constant dense<0.000000e+00> : vector<128x128xf32>
    %60 = tpu.matmul %57, %59, %cst_55 {dimension_numbers = #tpu.dot_dimension_numbers<[1], [0], [0], [1], [0, 0, 1, 1], [], []>} : vector<128x128xbf16>, vector<128x128xbf16>, vector<128x128xf32> -> vector<128x128xf32>
    %61 = arith.addf %55, %60 : vector<128x128xf32>
    %c0_56 = arith.constant 0 : index
    %c0_57 = arith.constant 0 : index
    %62 = vector.load %arg3[%c0_56, %c0_57] : memref<1x128xf32, #tpu.memory_space<vmem>>, vector<1x128xf32>
    %63 = vector.broadcast %62 : vector<1x128xf32> to vector<128x128xf32>
    %64 = arith.addf %61, %63 : vector<128x128xf32>
    %cst_58 = arith.constant 0.000000e+00 : f32
    %65 = vector.broadcast %cst_58 : f32 to vector<128x128xf32>
    %66 = arith.maximumf %64, %65 : vector<128x128xf32>
    %67 = vector.shape_cast %66 : vector<128x128xf32> to vector<8x16x128xf32>
    %68 = vector.extract_strided_slice %67 {offsets = [0, 0, 0], sizes = [8, 8, 128], strides = [1, 1, 1]} : vector<8x16x128xf32> to vector<8x8x128xf32>
    %69 = arith.addf %68, %3 : vector<8x8x128xf32>
    %c2_59 = arith.constant 2 : index
    %c0_60 = arith.constant 0 : index
    %c0_61 = arith.constant 0 : index
    %70 = vector.load %arg13[%c2_59, %c0_60, %c0_61] : memref<12x16x128xf32, #tpu.memory_space<vmem>>, vector<8x8x128xf32>
    tpu.vector_store %arg13[%c2_59, %c0_60, %c0_61], %69 {strides = array<i32>} : memref<12x16x128xf32, #tpu.memory_space<vmem>>, vector<8x8x128xf32>,
    %c0_62 = arith.constant 0 : index
    %c0_63 = arith.constant 0 : index
    %c0_64 = arith.constant 0 : index
    %71 = vector.load %arg13[%c0_62, %c0_63, %c0_64] : memref<12x16x128xf32, #tpu.memory_space<vmem>>, vector<12x16x128xf32>
    %72 = vector.shape_cast %71 : vector<12x16x128xf32> to vector<192x128xf32>
    %cst_65 = arith.constant 0.000000e+00 : f32
    %73 = vector.broadcast %cst_65 : f32 to vector<128x128xf32>
    %74 = vector.extract_strided_slice %72 {offsets = [15, 0], sizes = [128, 128], strides = [1, 1]} : vector<192x128xf32> to vector<128x128xf32>
    %75 = arith.truncf %74 : vector<128x128xf32> to vector<128x128xbf16>
    %c0_66 = arith.constant 0 : index
    %c0_67 = arith.constant 0 : index
    %c0_68 = arith.constant 0 : index
    %c0_69 = arith.constant 0 : index
    %76 = vector.load %arg4[%c0_66, %c0_67, %c0_68, %c0_69] : memref<3x3x128x128xbf16, #tpu.memory_space<vmem>>, vector<1x1x128x128xbf16>
    %77 = vector.shape_cast %76 : vector<1x1x128x128xbf16> to vector<128x128xbf16>
    %cst_70 = arith.constant dense<0.000000e+00> : vector<128x128xf32>
    %78 = tpu.matmul %75, %77, %cst_70 {dimension_numbers = #tpu.dot_dimension_numbers<[1], [0], [0], [1], [0, 0, 1, 1], [], []>} : vector<128x128xbf16>, vector<128x128xbf16>, vector<128x128xf32> -> vector<128x128xf32>
    %79 = arith.addf %73, %78 : vector<128x128xf32>
    %80 = vector.extract_strided_slice %72 {offsets = [16, 0], sizes = [128, 128], strides = [1, 1]} : vector<192x128xf32> to vector<128x128xf32>
    %81 = arith.truncf %80 : vector<128x128xf32> to vector<128x128xbf16>
    %c0_71 = arith.constant 0 : index
    %c1_72 = arith.constant 1 : index
    %c0_73 = arith.constant 0 : index
    %c0_74 = arith.constant 0 : index
    %82 = vector.load %arg4[%c0_71, %c1_72, %c0_73, %c0_74] : memref<3x3x128x128xbf16, #tpu.memory_space<vmem>>, vector<1x1x128x128xbf16>
    %83 = vector.shape_cast %82 : vector<1x1x128x128xbf16> to vector<128x128xbf16>
    %cst_75 = arith.constant dense<0.000000e+00> : vector<128x128xf32>
    %84 = tpu.matmul %81, %83, %cst_75 {dimension_numbers = #tpu.dot_dimension_numbers<[1], [0], [0], [1], [0, 0, 1, 1], [], []>} : vector<128x128xbf16>, vector<128x128xbf16>, vector<128x128xf32> -> vector<128x128xf32>
    %85 = arith.addf %79, %84 : vector<128x128xf32>
    %86 = vector.extract_strided_slice %72 {offsets = [17, 0], sizes = [128, 128], strides = [1, 1]} : vector<192x128xf32> to vector<128x128xf32>
    %87 = arith.truncf %86 : vector<128x128xf32> to vector<128x128xbf16>
    %c0_76 = arith.constant 0 : index
    %c2_77 = arith.constant 2 : index
    %c0_78 = arith.constant 0 : index
    %c0_79 = arith.constant 0 : index
    %88 = vector.load %arg4[%c0_76, %c2_77, %c0_78, %c0_79] : memref<3x3x128x128xbf16, #tpu.memory_space<vmem>>, vector<1x1x128x128xbf16>
    %89 = vector.shape_cast %88 : vector<1x1x128x128xbf16> to vector<128x128xbf16>
    %cst_80 = arith.constant dense<0.000000e+00> : vector<128x128xf32>
    %90 = tpu.matmul %87, %89, %cst_80 {dimension_numbers = #tpu.dot_dimension_numbers<[1], [0], [0], [1], [0, 0, 1, 1], [], []>} : vector<128x128xbf16>, vector<128x128xbf16>, vector<128x128xf32> -> vector<128x128xf32>
    %91 = arith.addf %85, %90 : vector<128x128xf32>
    %92 = vector.extract_strided_slice %72 {offsets = [31, 0], sizes = [128, 128], strides = [1, 1]} : vector<192x128xf32> to vector<128x128xf32>
    %93 = arith.truncf %92 : vector<128x128xf32> to vector<128x128xbf16>
    %c1_81 = arith.constant 1 : index
    %c0_82 = arith.constant 0 : index
    %c0_83 = arith.constant 0 : index
    %c0_84 = arith.constant 0 : index
    %94 = vector.load %arg4[%c1_81, %c0_82, %c0_83, %c0_84] : memref<3x3x128x128xbf16, #tpu.memory_space<vmem>>, vector<1x1x128x128xbf16>
    %95 = vector.shape_cast %94 : vector<1x1x128x128xbf16> to vector<128x128xbf16>
    %cst_85 = arith.constant dense<0.000000e+00> : vector<128x128xf32>
    %96 = tpu.matmul %93, %95, %cst_85 {dimension_numbers = #tpu.dot_dimension_numbers<[1], [0], [0], [1], [0, 0, 1, 1], [], []>} : vector<128x128xbf16>, vector<128x128xbf16>, vector<128x128xf32> -> vector<128x128xf32>
    %97 = arith.addf %91, %96 : vector<128x128xf32>
    %98 = vector.extract_strided_slice %72 {offsets = [32, 0], sizes = [128, 128], strides = [1, 1]} : vector<192x128xf32> to vector<128x128xf32>
    %99 = arith.truncf %98 : vector<128x128xf32> to vector<128x128xbf16>
    %c1_86 = arith.constant 1 : index
    %c1_87 = arith.constant 1 : index
    %c0_88 = arith.constant 0 : index
    %c0_89 = arith.constant 0 : index
    %100 = vector.load %arg4[%c1_86, %c1_87, %c0_88, %c0_89] : memref<3x3x128x128xbf16, #tpu.memory_space<vmem>>, vector<1x1x128x128xbf16>
    %101 = vector.shape_cast %100 : vector<1x1x128x128xbf16> to vector<128x128xbf16>
    %cst_90 = arith.constant dense<0.000000e+00> : vector<128x128xf32>
    %102 = tpu.matmul %99, %101, %cst_90 {dimension_numbers = #tpu.dot_dimension_numbers<[1], [0], [0], [1], [0, 0, 1, 1], [], []>} : vector<128x128xbf16>, vector<128x128xbf16>, vector<128x128xf32> -> vector<128x128xf32>
    %103 = arith.addf %97, %102 : vector<128x128xf32>
    %104 = vector.extract_strided_slice %72 {offsets = [33, 0], sizes = [128, 128], strides = [1, 1]} : vector<192x128xf32> to vector<128x128xf32>
    %105 = arith.truncf %104 : vector<128x128xf32> to vector<128x128xbf16>
    %c1_91 = arith.constant 1 : index
    %c2_92 = arith.constant 2 : index
    %c0_93 = arith.constant 0 : index
    %c0_94 = arith.constant 0 : index
    %106 = vector.load %arg4[%c1_91, %c2_92, %c0_93, %c0_94] : memref<3x3x128x128xbf16, #tpu.memory_space<vmem>>, vector<1x1x128x128xbf16>
    %107 = vector.shape_cast %106 : vector<1x1x128x128xbf16> to vector<128x128xbf16>
    %cst_95 = arith.constant dense<0.000000e+00> : vector<128x128xf32>
    %108 = tpu.matmul %105, %107, %cst_95 {dimension_numbers = #tpu.dot_dimension_numbers<[1], [0], [0], [1], [0, 0, 1, 1], [], []>} : vector<128x128xbf16>, vector<128x128xbf16>, vector<128x128xf32> -> vector<128x128xf32>
    %109 = arith.addf %103, %108 : vector<128x128xf32>
    %110 = vector.extract_strided_slice %72 {offsets = [47, 0], sizes = [128, 128], strides = [1, 1]} : vector<192x128xf32> to vector<128x128xf32>
    %111 = arith.truncf %110 : vector<128x128xf32> to vector<128x128xbf16>
    %c2_96 = arith.constant 2 : index
    %c0_97 = arith.constant 0 : index
    %c0_98 = arith.constant 0 : index
    %c0_99 = arith.constant 0 : index
    %112 = vector.load %arg4[%c2_96, %c0_97, %c0_98, %c0_99] : memref<3x3x128x128xbf16, #tpu.memory_space<vmem>>, vector<1x1x128x128xbf16>
    %113 = vector.shape_cast %112 : vector<1x1x128x128xbf16> to vector<128x128xbf16>
    %cst_100 = arith.constant dense<0.000000e+00> : vector<128x128xf32>
    %114 = tpu.matmul %111, %113, %cst_100 {dimension_numbers = #tpu.dot_dimension_numbers<[1], [0], [0], [1], [0, 0, 1, 1], [], []>} : vector<128x128xbf16>, vector<128x128xbf16>, vector<128x128xf32> -> vector<128x128xf32>
    %115 = arith.addf %109, %114 : vector<128x128xf32>
    %116 = vector.extract_strided_slice %72 {offsets = [48, 0], sizes = [128, 128], strides = [1, 1]} : vector<192x128xf32> to vector<128x128xf32>
    %117 = arith.truncf %116 : vector<128x128xf32> to vector<128x128xbf16>
    %c2_101 = arith.constant 2 : index
    %c1_102 = arith.constant 1 : index
    %c0_103 = arith.constant 0 : index
    %c0_104 = arith.constant 0 : index
    %118 = vector.load %arg4[%c2_101, %c1_102, %c0_103, %c0_104] : memref<3x3x128x128xbf16, #tpu.memory_space<vmem>>, vector<1x1x128x128xbf16>
    %119 = vector.shape_cast %118 : vector<1x1x128x128xbf16> to vector<128x128xbf16>
    %cst_105 = arith.constant dense<0.000000e+00> : vector<128x128xf32>
    %120 = tpu.matmul %117, %119, %cst_105 {dimension_numbers = #tpu.dot_dimension_numbers<[1], [0], [0], [1], [0, 0, 1, 1], [], []>} : vector<128x128xbf16>, vector<128x128xbf16>, vector<128x128xf32> -> vector<128x128xf32>
    %121 = arith.addf %115, %120 : vector<128x128xf32>
    %122 = vector.extract_strided_slice %72 {offsets = [49, 0], sizes = [128, 128], strides = [1, 1]} : vector<192x128xf32> to vector<128x128xf32>
    %123 = arith.truncf %122 : vector<128x128xf32> to vector<128x128xbf16>
    %c2_106 = arith.constant 2 : index
    %c2_107 = arith.constant 2 : index
    %c0_108 = arith.constant 0 : index
    %c0_109 = arith.constant 0 : index
    %124 = vector.load %arg4[%c2_106, %c2_107, %c0_108, %c0_109] : memref<3x3x128x128xbf16, #tpu.memory_space<vmem>>, vector<1x1x128x128xbf16>
    %125 = vector.shape_cast %124 : vector<1x1x128x128xbf16> to vector<128x128xbf16>
    %cst_110 = arith.constant dense<0.000000e+00> : vector<128x128xf32>
    %126 = tpu.matmul %123, %125, %cst_110 {dimension_numbers = #tpu.dot_dimension_numbers<[1], [0], [0], [1], [0, 0, 1, 1], [], []>} : vector<128x128xbf16>, vector<128x128xbf16>, vector<128x128xf32> -> vector<128x128xf32>
    %127 = arith.addf %121, %126 : vector<128x128xf32>
    %c0_111 = arith.constant 0 : index
    %c0_112 = arith.constant 0 : index
    %128 = vector.load %arg5[%c0_111, %c0_112] : memref<1x128xf32, #tpu.memory_space<vmem>>, vector<1x128xf32>
    %129 = vector.broadcast %128 : vector<1x128xf32> to vector<128x128xf32>
    %130 = arith.addf %127, %129 : vector<128x128xf32>
    %131 = vector.shape_cast %130 : vector<128x128xf32> to vector<8x16x128xf32>
    %132 = vector.extract_strided_slice %131 {offsets = [0, 0, 0], sizes = [8, 8, 128], strides = [1, 1, 1]} : vector<8x16x128xf32> to vector<8x8x128xf32>
    %133 = arith.addf %132, %3 : vector<8x8x128xf32>
    %c2_113 = arith.constant 2 : index
    %c0_114 = arith.constant 0 : index
    %c0_115 = arith.constant 0 : index
    %134 = vector.load %arg13[%c2_113, %c0_114, %c0_115] : memref<12x16x128xf32, #tpu.memory_space<vmem>>, vector<8x8x128xf32>
    tpu.vector_store %arg13[%c2_113, %c0_114, %c0_115], %133 {strides = array<i32>} : memref<12x16x128xf32, #tpu.memory_space<vmem>>, vector<8x8x128xf32>,
    %c0_116 = arith.constant 0 : index
    %c0_117 = arith.constant 0 : index
    %c0_118 = arith.constant 0 : index
    %135 = vector.load %arg13[%c0_116, %c0_117, %c0_118] : memref<12x16x128xf32, #tpu.memory_space<vmem>>, vector<12x16x128xf32>
    %136 = vector.shape_cast %135 : vector<12x16x128xf32> to vector<192x128xf32>
    %cst_119 = arith.constant 0.000000e+00 : f32
    %137 = vector.broadcast %cst_119 : f32 to vector<128x128xf32>
    %138 = vector.extract_strided_slice %136 {offsets = [15, 0], sizes = [128, 128], strides = [1, 1]} : vector<192x128xf32> to vector<128x128xf32>
    %139 = arith.truncf %138 : vector<128x128xf32> to vector<128x128xbf16>
    %c0_120 = arith.constant 0 : index
    %c0_121 = arith.constant 0 : index
    %c0_122 = arith.constant 0 : index
    %c0_123 = arith.constant 0 : index
    %140 = vector.load %arg6[%c0_120, %c0_121, %c0_122, %c0_123] : memref<3x3x128x128xbf16, #tpu.memory_space<vmem>>, vector<1x1x128x128xbf16>
    %141 = vector.shape_cast %140 : vector<1x1x128x128xbf16> to vector<128x128xbf16>
    %cst_124 = arith.constant dense<0.000000e+00> : vector<128x128xf32>
    %142 = tpu.matmul %139, %141, %cst_124 {dimension_numbers = #tpu.dot_dimension_numbers<[1], [0], [0], [1], [0, 0, 1, 1], [], []>} : vector<128x128xbf16>, vector<128x128xbf16>, vector<128x128xf32> -> vector<128x128xf32>
    %143 = arith.addf %137, %142 : vector<128x128xf32>
    %144 = vector.extract_strided_slice %136 {offsets = [16, 0], sizes = [128, 128], strides = [1, 1]} : vector<192x128xf32> to vector<128x128xf32>
    %145 = arith.truncf %144 : vector<128x128xf32> to vector<128x128xbf16>
    %c0_125 = arith.constant 0 : index
    %c1_126 = arith.constant 1 : index
    %c0_127 = arith.constant 0 : index
    %c0_128 = arith.constant 0 : index
    %146 = vector.load %arg6[%c0_125, %c1_126, %c0_127, %c0_128] : memref<3x3x128x128xbf16, #tpu.memory_space<vmem>>, vector<1x1x128x128xbf16>
    %147 = vector.shape_cast %146 : vector<1x1x128x128xbf16> to vector<128x128xbf16>
    %cst_129 = arith.constant dense<0.000000e+00> : vector<128x128xf32>
    %148 = tpu.matmul %145, %147, %cst_129 {dimension_numbers = #tpu.dot_dimension_numbers<[1], [0], [0], [1], [0, 0, 1, 1], [], []>} : vector<128x128xbf16>, vector<128x128xbf16>, vector<128x128xf32> -> vector<128x128xf32>
    %149 = arith.addf %143, %148 : vector<128x128xf32>
    %150 = vector.extract_strided_slice %136 {offsets = [17, 0], sizes = [128, 128], strides = [1, 1]} : vector<192x128xf32> to vector<128x128xf32>
    %151 = arith.truncf %150 : vector<128x128xf32> to vector<128x128xbf16>
    %c0_130 = arith.constant 0 : index
    %c2_131 = arith.constant 2 : index
    %c0_132 = arith.constant 0 : index
    %c0_133 = arith.constant 0 : index
    %152 = vector.load %arg6[%c0_130, %c2_131, %c0_132, %c0_133] : memref<3x3x128x128xbf16, #tpu.memory_space<vmem>>, vector<1x1x128x128xbf16>
    %153 = vector.shape_cast %152 : vector<1x1x128x128xbf16> to vector<128x128xbf16>
    %cst_134 = arith.constant dense<0.000000e+00> : vector<128x128xf32>
    %154 = tpu.matmul %151, %153, %cst_134 {dimension_numbers = #tpu.dot_dimension_numbers<[1], [0], [0], [1], [0, 0, 1, 1], [], []>} : vector<128x128xbf16>, vector<128x128xbf16>, vector<128x128xf32> -> vector<128x128xf32>
    %155 = arith.addf %149, %154 : vector<128x128xf32>
    %156 = vector.extract_strided_slice %136 {offsets = [31, 0], sizes = [128, 128], strides = [1, 1]} : vector<192x128xf32> to vector<128x128xf32>
    %157 = arith.truncf %156 : vector<128x128xf32> to vector<128x128xbf16>
    %c1_135 = arith.constant 1 : index
    %c0_136 = arith.constant 0 : index
    %c0_137 = arith.constant 0 : index
    %c0_138 = arith.constant 0 : index
    %158 = vector.load %arg6[%c1_135, %c0_136, %c0_137, %c0_138] : memref<3x3x128x128xbf16, #tpu.memory_space<vmem>>, vector<1x1x128x128xbf16>
    %159 = vector.shape_cast %158 : vector<1x1x128x128xbf16> to vector<128x128xbf16>
    %cst_139 = arith.constant dense<0.000000e+00> : vector<128x128xf32>
    %160 = tpu.matmul %157, %159, %cst_139 {dimension_numbers = #tpu.dot_dimension_numbers<[1], [0], [0], [1], [0, 0, 1, 1], [], []>} : vector<128x128xbf16>, vector<128x128xbf16>, vector<128x128xf32> -> vector<128x128xf32>
    %161 = arith.addf %155, %160 : vector<128x128xf32>
    %162 = vector.extract_strided_slice %136 {offsets = [32, 0], sizes = [128, 128], strides = [1, 1]} : vector<192x128xf32> to vector<128x128xf32>
    %163 = arith.truncf %162 : vector<128x128xf32> to vector<128x128xbf16>
    %c1_140 = arith.constant 1 : index
    %c1_141 = arith.constant 1 : index
    %c0_142 = arith.constant 0 : index
    %c0_143 = arith.constant 0 : index
    %164 = vector.load %arg6[%c1_140, %c1_141, %c0_142, %c0_143] : memref<3x3x128x128xbf16, #tpu.memory_space<vmem>>, vector<1x1x128x128xbf16>
    %165 = vector.shape_cast %164 : vector<1x1x128x128xbf16> to vector<128x128xbf16>
    %cst_144 = arith.constant dense<0.000000e+00> : vector<128x128xf32>
    %166 = tpu.matmul %163, %165, %cst_144 {dimension_numbers = #tpu.dot_dimension_numbers<[1], [0], [0], [1], [0, 0, 1, 1], [], []>} : vector<128x128xbf16>, vector<128x128xbf16>, vector<128x128xf32> -> vector<128x128xf32>
    %167 = arith.addf %161, %166 : vector<128x128xf32>
    %168 = vector.extract_strided_slice %136 {offsets = [33, 0], sizes = [128, 128], strides = [1, 1]} : vector<192x128xf32> to vector<128x128xf32>
    %169 = arith.truncf %168 : vector<128x128xf32> to vector<128x128xbf16>
    %c1_145 = arith.constant 1 : index
    %c2_146 = arith.constant 2 : index
    %c0_147 = arith.constant 0 : index
    %c0_148 = arith.constant 0 : index
    %170 = vector.load %arg6[%c1_145, %c2_146, %c0_147, %c0_148] : memref<3x3x128x128xbf16, #tpu.memory_space<vmem>>, vector<1x1x128x128xbf16>
    %171 = vector.shape_cast %170 : vector<1x1x128x128xbf16> to vector<128x128xbf16>
    %cst_149 = arith.constant dense<0.000000e+00> : vector<128x128xf32>
    %172 = tpu.matmul %169, %171, %cst_149 {dimension_numbers = #tpu.dot_dimension_numbers<[1], [0], [0], [1], [0, 0, 1, 1], [], []>} : vector<128x128xbf16>, vector<128x128xbf16>, vector<128x128xf32> -> vector<128x128xf32>
    %173 = arith.addf %167, %172 : vector<128x128xf32>
    %174 = vector.extract_strided_slice %136 {offsets = [47, 0], sizes = [128, 128], strides = [1, 1]} : vector<192x128xf32> to vector<128x128xf32>
    %175 = arith.truncf %174 : vector<128x128xf32> to vector<128x128xbf16>
    %c2_150 = arith.constant 2 : index
    %c0_151 = arith.constant 0 : index
    %c0_152 = arith.constant 0 : index
    %c0_153 = arith.constant 0 : index
    %176 = vector.load %arg6[%c2_150, %c0_151, %c0_152, %c0_153] : memref<3x3x128x128xbf16, #tpu.memory_space<vmem>>, vector<1x1x128x128xbf16>
    %177 = vector.shape_cast %176 : vector<1x1x128x128xbf16> to vector<128x128xbf16>
    %cst_154 = arith.constant dense<0.000000e+00> : vector<128x128xf32>
    %178 = tpu.matmul %175, %177, %cst_154 {dimension_numbers = #tpu.dot_dimension_numbers<[1], [0], [0], [1], [0, 0, 1, 1], [], []>} : vector<128x128xbf16>, vector<128x128xbf16>, vector<128x128xf32> -> vector<128x128xf32>
    %179 = arith.addf %173, %178 : vector<128x128xf32>
    %180 = vector.extract_strided_slice %136 {offsets = [48, 0], sizes = [128, 128], strides = [1, 1]} : vector<192x128xf32> to vector<128x128xf32>
    %181 = arith.truncf %180 : vector<128x128xf32> to vector<128x128xbf16>
    %c2_155 = arith.constant 2 : index
    %c1_156 = arith.constant 1 : index
    %c0_157 = arith.constant 0 : index
    %c0_158 = arith.constant 0 : index
    %182 = vector.load %arg6[%c2_155, %c1_156, %c0_157, %c0_158] : memref<3x3x128x128xbf16, #tpu.memory_space<vmem>>, vector<1x1x128x128xbf16>
    %183 = vector.shape_cast %182 : vector<1x1x128x128xbf16> to vector<128x128xbf16>
    %cst_159 = arith.constant dense<0.000000e+00> : vector<128x128xf32>
    %184 = tpu.matmul %181, %183, %cst_159 {dimension_numbers = #tpu.dot_dimension_numbers<[1], [0], [0], [1], [0, 0, 1, 1], [], []>} : vector<128x128xbf16>, vector<128x128xbf16>, vector<128x128xf32> -> vector<128x128xf32>
    %185 = arith.addf %179, %184 : vector<128x128xf32>
    %186 = vector.extract_strided_slice %136 {offsets = [49, 0], sizes = [128, 128], strides = [1, 1]} : vector<192x128xf32> to vector<128x128xf32>
    %187 = arith.truncf %186 : vector<128x128xf32> to vector<128x128xbf16>
    %c2_160 = arith.constant 2 : index
    %c2_161 = arith.constant 2 : index
    %c0_162 = arith.constant 0 : index
    %c0_163 = arith.constant 0 : index
    %188 = vector.load %arg6[%c2_160, %c2_161, %c0_162, %c0_163] : memref<3x3x128x128xbf16, #tpu.memory_space<vmem>>, vector<1x1x128x128xbf16>
    %189 = vector.shape_cast %188 : vector<1x1x128x128xbf16> to vector<128x128xbf16>
    %cst_164 = arith.constant dense<0.000000e+00> : vector<128x128xf32>
    %190 = tpu.matmul %187, %189, %cst_164 {dimension_numbers = #tpu.dot_dimension_numbers<[1], [0], [0], [1], [0, 0, 1, 1], [], []>} : vector<128x128xbf16>, vector<128x128xbf16>, vector<128x128xf32> -> vector<128x128xf32>
    %191 = arith.addf %185, %190 : vector<128x128xf32>
    %c0_165 = arith.constant 0 : index
    %c0_166 = arith.constant 0 : index
    %192 = vector.load %arg7[%c0_165, %c0_166] : memref<1x128xf32, #tpu.memory_space<vmem>>, vector<1x128xf32>
    %193 = vector.broadcast %192 : vector<1x128xf32> to vector<128x128xf32>
    %194 = arith.addf %191, %193 : vector<128x128xf32>
    %cst_167 = arith.constant 0.000000e+00 : f32
    %195 = vector.broadcast %cst_167 : f32 to vector<128x128xf32>
    %196 = arith.maximumf %194, %195 : vector<128x128xf32>
    %197 = vector.shape_cast %196 : vector<128x128xf32> to vector<8x16x128xf32>
    %198 = vector.extract_strided_slice %197 {offsets = [0, 0, 0], sizes = [8, 8, 128], strides = [1, 1, 1]} : vector<8x16x128xf32> to vector<8x8x128xf32>
    %199 = arith.addf %198, %133 : vector<8x8x128xf32>
    %c2_168 = arith.constant 2 : index
    %c0_169 = arith.constant 0 : index
    %c0_170 = arith.constant 0 : index
    %200 = vector.load %arg13[%c2_168, %c0_169, %c0_170] : memref<12x16x128xf32, #tpu.memory_space<vmem>>, vector<8x8x128xf32>
    tpu.vector_store %arg13[%c2_168, %c0_169, %c0_170], %199 {strides = array<i32>} : memref<12x16x128xf32, #tpu.memory_space<vmem>>, vector<8x8x128xf32>,
    %c0_171 = arith.constant 0 : index
    %c0_172 = arith.constant 0 : index
    %c0_173 = arith.constant 0 : index
    %201 = vector.load %arg13[%c0_171, %c0_172, %c0_173] : memref<12x16x128xf32, #tpu.memory_space<vmem>>, vector<12x16x128xf32>
    %202 = vector.shape_cast %201 : vector<12x16x128xf32> to vector<192x128xf32>
    %cst_174 = arith.constant 0.000000e+00 : f32
    %203 = vector.broadcast %cst_174 : f32 to vector<128x128xf32>
    %204 = vector.extract_strided_slice %202 {offsets = [15, 0], sizes = [128, 128], strides = [1, 1]} : vector<192x128xf32> to vector<128x128xf32>
    %205 = arith.truncf %204 : vector<128x128xf32> to vector<128x128xbf16>
    %c0_175 = arith.constant 0 : index
    %c0_176 = arith.constant 0 : index
    %c0_177 = arith.constant 0 : index
    %c0_178 = arith.constant 0 : index
    %206 = vector.load %arg8[%c0_175, %c0_176, %c0_177, %c0_178] : memref<3x3x128x128xbf16, #tpu.memory_space<vmem>>, vector<1x1x128x128xbf16>
    %207 = vector.shape_cast %206 : vector<1x1x128x128xbf16> to vector<128x128xbf16>
    %cst_179 = arith.constant dense<0.000000e+00> : vector<128x128xf32>
    %208 = tpu.matmul %205, %207, %cst_179 {dimension_numbers = #tpu.dot_dimension_numbers<[1], [0], [0], [1], [0, 0, 1, 1], [], []>} : vector<128x128xbf16>, vector<128x128xbf16>, vector<128x128xf32> -> vector<128x128xf32>
    %209 = arith.addf %203, %208 : vector<128x128xf32>
    %210 = vector.extract_strided_slice %202 {offsets = [16, 0], sizes = [128, 128], strides = [1, 1]} : vector<192x128xf32> to vector<128x128xf32>
    %211 = arith.truncf %210 : vector<128x128xf32> to vector<128x128xbf16>
    %c0_180 = arith.constant 0 : index
    %c1_181 = arith.constant 1 : index
    %c0_182 = arith.constant 0 : index
    %c0_183 = arith.constant 0 : index
    %212 = vector.load %arg8[%c0_180, %c1_181, %c0_182, %c0_183] : memref<3x3x128x128xbf16, #tpu.memory_space<vmem>>, vector<1x1x128x128xbf16>
    %213 = vector.shape_cast %212 : vector<1x1x128x128xbf16> to vector<128x128xbf16>
    %cst_184 = arith.constant dense<0.000000e+00> : vector<128x128xf32>
    %214 = tpu.matmul %211, %213, %cst_184 {dimension_numbers = #tpu.dot_dimension_numbers<[1], [0], [0], [1], [0, 0, 1, 1], [], []>} : vector<128x128xbf16>, vector<128x128xbf16>, vector<128x128xf32> -> vector<128x128xf32>
    %215 = arith.addf %209, %214 : vector<128x128xf32>
    %216 = vector.extract_strided_slice %202 {offsets = [17, 0], sizes = [128, 128], strides = [1, 1]} : vector<192x128xf32> to vector<128x128xf32>
    %217 = arith.truncf %216 : vector<128x128xf32> to vector<128x128xbf16>
    %c0_185 = arith.constant 0 : index
    %c2_186 = arith.constant 2 : index
    %c0_187 = arith.constant 0 : index
    %c0_188 = arith.constant 0 : index
    %218 = vector.load %arg8[%c0_185, %c2_186, %c0_187, %c0_188] : memref<3x3x128x128xbf16, #tpu.memory_space<vmem>>, vector<1x1x128x128xbf16>
    %219 = vector.shape_cast %218 : vector<1x1x128x128xbf16> to vector<128x128xbf16>
    %cst_189 = arith.constant dense<0.000000e+00> : vector<128x128xf32>
    %220 = tpu.matmul %217, %219, %cst_189 {dimension_numbers = #tpu.dot_dimension_numbers<[1], [0], [0], [1], [0, 0, 1, 1], [], []>} : vector<128x128xbf16>, vector<128x128xbf16>, vector<128x128xf32> -> vector<128x128xf32>
    %221 = arith.addf %215, %220 : vector<128x128xf32>
    %222 = vector.extract_strided_slice %202 {offsets = [31, 0], sizes = [128, 128], strides = [1, 1]} : vector<192x128xf32> to vector<128x128xf32>
    %223 = arith.truncf %222 : vector<128x128xf32> to vector<128x128xbf16>
    %c1_190 = arith.constant 1 : index
    %c0_191 = arith.constant 0 : index
    %c0_192 = arith.constant 0 : index
    %c0_193 = arith.constant 0 : index
    %224 = vector.load %arg8[%c1_190, %c0_191, %c0_192, %c0_193] : memref<3x3x128x128xbf16, #tpu.memory_space<vmem>>, vector<1x1x128x128xbf16>
    %225 = vector.shape_cast %224 : vector<1x1x128x128xbf16> to vector<128x128xbf16>
    %cst_194 = arith.constant dense<0.000000e+00> : vector<128x128xf32>
    %226 = tpu.matmul %223, %225, %cst_194 {dimension_numbers = #tpu.dot_dimension_numbers<[1], [0], [0], [1], [0, 0, 1, 1], [], []>} : vector<128x128xbf16>, vector<128x128xbf16>, vector<128x128xf32> -> vector<128x128xf32>
    %227 = arith.addf %221, %226 : vector<128x128xf32>
    %228 = vector.extract_strided_slice %202 {offsets = [32, 0], sizes = [128, 128], strides = [1, 1]} : vector<192x128xf32> to vector<128x128xf32>
    %229 = arith.truncf %228 : vector<128x128xf32> to vector<128x128xbf16>
    %c1_195 = arith.constant 1 : index
    %c1_196 = arith.constant 1 : index
    %c0_197 = arith.constant 0 : index
    %c0_198 = arith.constant 0 : index
    %230 = vector.load %arg8[%c1_195, %c1_196, %c0_197, %c0_198] : memref<3x3x128x128xbf16, #tpu.memory_space<vmem>>, vector<1x1x128x128xbf16>
    %231 = vector.shape_cast %230 : vector<1x1x128x128xbf16> to vector<128x128xbf16>
    %cst_199 = arith.constant dense<0.000000e+00> : vector<128x128xf32>
    %232 = tpu.matmul %229, %231, %cst_199 {dimension_numbers = #tpu.dot_dimension_numbers<[1], [0], [0], [1], [0, 0, 1, 1], [], []>} : vector<128x128xbf16>, vector<128x128xbf16>, vector<128x128xf32> -> vector<128x128xf32>
    %233 = arith.addf %227, %232 : vector<128x128xf32>
    %234 = vector.extract_strided_slice %202 {offsets = [33, 0], sizes = [128, 128], strides = [1, 1]} : vector<192x128xf32> to vector<128x128xf32>
    %235 = arith.truncf %234 : vector<128x128xf32> to vector<128x128xbf16>
    %c1_200 = arith.constant 1 : index
    %c2_201 = arith.constant 2 : index
    %c0_202 = arith.constant 0 : index
    %c0_203 = arith.constant 0 : index
    %236 = vector.load %arg8[%c1_200, %c2_201, %c0_202, %c0_203] : memref<3x3x128x128xbf16, #tpu.memory_space<vmem>>, vector<1x1x128x128xbf16>
    %237 = vector.shape_cast %236 : vector<1x1x128x128xbf16> to vector<128x128xbf16>
    %cst_204 = arith.constant dense<0.000000e+00> : vector<128x128xf32>
    %238 = tpu.matmul %235, %237, %cst_204 {dimension_numbers = #tpu.dot_dimension_numbers<[1], [0], [0], [1], [0, 0, 1, 1], [], []>} : vector<128x128xbf16>, vector<128x128xbf16>, vector<128x128xf32> -> vector<128x128xf32>
    %239 = arith.addf %233, %238 : vector<128x128xf32>
    %240 = vector.extract_strided_slice %202 {offsets = [47, 0], sizes = [128, 128], strides = [1, 1]} : vector<192x128xf32> to vector<128x128xf32>
    %241 = arith.truncf %240 : vector<128x128xf32> to vector<128x128xbf16>
    %c2_205 = arith.constant 2 : index
    %c0_206 = arith.constant 0 : index
    %c0_207 = arith.constant 0 : index
    %c0_208 = arith.constant 0 : index
    %242 = vector.load %arg8[%c2_205, %c0_206, %c0_207, %c0_208] : memref<3x3x128x128xbf16, #tpu.memory_space<vmem>>, vector<1x1x128x128xbf16>
    %243 = vector.shape_cast %242 : vector<1x1x128x128xbf16> to vector<128x128xbf16>
    %cst_209 = arith.constant dense<0.000000e+00> : vector<128x128xf32>
    %244 = tpu.matmul %241, %243, %cst_209 {dimension_numbers = #tpu.dot_dimension_numbers<[1], [0], [0], [1], [0, 0, 1, 1], [], []>} : vector<128x128xbf16>, vector<128x128xbf16>, vector<128x128xf32> -> vector<128x128xf32>
    %245 = arith.addf %239, %244 : vector<128x128xf32>
    %246 = vector.extract_strided_slice %202 {offsets = [48, 0], sizes = [128, 128], strides = [1, 1]} : vector<192x128xf32> to vector<128x128xf32>
    %247 = arith.truncf %246 : vector<128x128xf32> to vector<128x128xbf16>
    %c2_210 = arith.constant 2 : index
    %c1_211 = arith.constant 1 : index
    %c0_212 = arith.constant 0 : index
    %c0_213 = arith.constant 0 : index
    %248 = vector.load %arg8[%c2_210, %c1_211, %c0_212, %c0_213] : memref<3x3x128x128xbf16, #tpu.memory_space<vmem>>, vector<1x1x128x128xbf16>
    %249 = vector.shape_cast %248 : vector<1x1x128x128xbf16> to vector<128x128xbf16>
    %cst_214 = arith.constant dense<0.000000e+00> : vector<128x128xf32>
    %250 = tpu.matmul %247, %249, %cst_214 {dimension_numbers = #tpu.dot_dimension_numbers<[1], [0], [0], [1], [0, 0, 1, 1], [], []>} : vector<128x128xbf16>, vector<128x128xbf16>, vector<128x128xf32> -> vector<128x128xf32>
    %251 = arith.addf %245, %250 : vector<128x128xf32>
    %252 = vector.extract_strided_slice %202 {offsets = [49, 0], sizes = [128, 128], strides = [1, 1]} : vector<192x128xf32> to vector<128x128xf32>
    %253 = arith.truncf %252 : vector<128x128xf32> to vector<128x128xbf16>
    %c2_215 = arith.constant 2 : index
    %c2_216 = arith.constant 2 : index
    %c0_217 = arith.constant 0 : index
    %c0_218 = arith.constant 0 : index
    %254 = vector.load %arg8[%c2_215, %c2_216, %c0_217, %c0_218] : memref<3x3x128x128xbf16, #tpu.memory_space<vmem>>, vector<1x1x128x128xbf16>
    %255 = vector.shape_cast %254 : vector<1x1x128x128xbf16> to vector<128x128xbf16>
    %cst_219 = arith.constant dense<0.000000e+00> : vector<128x128xf32>
    %256 = tpu.matmul %253, %255, %cst_219 {dimension_numbers = #tpu.dot_dimension_numbers<[1], [0], [0], [1], [0, 0, 1, 1], [], []>} : vector<128x128xbf16>, vector<128x128xbf16>, vector<128x128xf32> -> vector<128x128xf32>
    %257 = arith.addf %251, %256 : vector<128x128xf32>
    %c0_220 = arith.constant 0 : index
    %c0_221 = arith.constant 0 : index
    %258 = vector.load %arg9[%c0_220, %c0_221] : memref<1x128xf32, #tpu.memory_space<vmem>>, vector<1x128xf32>
    %259 = vector.broadcast %258 : vector<1x128xf32> to vector<128x128xf32>
    %260 = arith.addf %257, %259 : vector<128x128xf32>
    %261 = vector.shape_cast %260 : vector<128x128xf32> to vector<8x16x128xf32>
    %262 = vector.extract_strided_slice %261 {offsets = [0, 0, 0], sizes = [8, 8, 128], strides = [1, 1, 1]} : vector<8x16x128xf32> to vector<8x8x128xf32>
    %263 = arith.addf %262, %133 : vector<8x8x128xf32>
    %c2_222 = arith.constant 2 : index
    %c0_223 = arith.constant 0 : index
    %c0_224 = arith.constant 0 : index
    %264 = vector.load %arg13[%c2_222, %c0_223, %c0_224] : memref<12x16x128xf32, #tpu.memory_space<vmem>>, vector<8x8x128xf32>
    tpu.vector_store %arg13[%c2_222, %c0_223, %c0_224], %263 {strides = array<i32>} : memref<12x16x128xf32, #tpu.memory_space<vmem>>, vector<8x8x128xf32>,
    %c0_225 = arith.constant 0 : index
    %c0_226 = arith.constant 0 : index
    %c0_227 = arith.constant 0 : index
    %265 = vector.load %arg13[%c0_225, %c0_226, %c0_227] : memref<12x16x128xf32, #tpu.memory_space<vmem>>, vector<12x16x128xf32>
    %266 = vector.shape_cast %265 : vector<12x16x128xf32> to vector<192x128xf32>
    %cst_228 = arith.constant 0.000000e+00 : f32
    %267 = vector.broadcast %cst_228 : f32 to vector<128x128xf32>
    %268 = vector.extract_strided_slice %266 {offsets = [32, 0], sizes = [128, 128], strides = [1, 1]} : vector<192x128xf32> to vector<128x128xf32>
    %269 = arith.truncf %268 : vector<128x128xf32> to vector<128x128xbf16>
    %c0_229 = arith.constant 0 : index
    %c0_230 = arith.constant 0 : index
    %c0_231 = arith.constant 0 : index
    %270 = vector.load %arg10[%c0_229, %c0_230, %c0_231] : memref<4x128x128xbf16, #tpu.memory_space<vmem>>, vector<1x128x128xbf16>
    %271 = vector.shape_cast %270 : vector<1x128x128xbf16> to vector<128x128xbf16>
    %cst_232 = arith.constant dense<0.000000e+00> : vector<128x128xf32>
    %272 = tpu.matmul %269, %271, %cst_232 {dimension_numbers = #tpu.dot_dimension_numbers<[1], [0], [0], [1], [0, 0, 1, 1], [], []>} : vector<128x128xbf16>, vector<128x128xbf16>, vector<128x128xf32> -> vector<128x128xf32>
    %273 = arith.addf %267, %272 : vector<128x128xf32>
    %274 = vector.extract_strided_slice %266 {offsets = [33, 0], sizes = [128, 128], strides = [1, 1]} : vector<192x128xf32> to vector<128x128xf32>
    %275 = arith.truncf %274 : vector<128x128xf32> to vector<128x128xbf16>
    %c1_233 = arith.constant 1 : index
    %c0_234 = arith.constant 0 : index
    %c0_235 = arith.constant 0 : index
    %276 = vector.load %arg10[%c1_233, %c0_234, %c0_235] : memref<4x128x128xbf16, #tpu.memory_space<vmem>>, vector<1x128x128xbf16>
    %277 = vector.shape_cast %276 : vector<1x128x128xbf16> to vector<128x128xbf16>
    %cst_236 = arith.constant dense<0.000000e+00> : vector<128x128xf32>
    %278 = tpu.matmul %275, %277, %cst_236 {dimension_numbers = #tpu.dot_dimension_numbers<[1], [0], [0], [1], [0, 0, 1, 1], [], []>} : vector<128x128xbf16>, vector<128x128xbf16>, vector<128x128xf32> -> vector<128x128xf32>
    %279 = arith.addf %273, %278 : vector<128x128xf32>
    %280 = vector.extract_strided_slice %266 {offsets = [48, 0], sizes = [128, 128], strides = [1, 1]} : vector<192x128xf32> to vector<128x128xf32>
    %281 = arith.truncf %280 : vector<128x128xf32> to vector<128x128xbf16>
    %c2_237 = arith.constant 2 : index
    %c0_238 = arith.constant 0 : index
    %c0_239 = arith.constant 0 : index
    %282 = vector.load %arg10[%c2_237, %c0_238, %c0_239] : memref<4x128x128xbf16, #tpu.memory_space<vmem>>, vector<1x128x128xbf16>
    %283 = vector.shape_cast %282 : vector<1x128x128xbf16> to vector<128x128xbf16>
    %cst_240 = arith.constant dense<0.000000e+00> : vector<128x128xf32>
    %284 = tpu.matmul %281, %283, %cst_240 {dimension_numbers = #tpu.dot_dimension_numbers<[1], [0], [0], [1], [0, 0, 1, 1], [], []>} : vector<128x128xbf16>, vector<128x128xbf16>, vector<128x128xf32> -> vector<128x128xf32>
    %285 = arith.addf %279, %284 : vector<128x128xf32>
    %286 = vector.extract_strided_slice %266 {offsets = [49, 0], sizes = [128, 128], strides = [1, 1]} : vector<192x128xf32> to vector<128x128xf32>
    %287 = arith.truncf %286 : vector<128x128xf32> to vector<128x128xbf16>
    %c3 = arith.constant 3 : index
    %c0_241 = arith.constant 0 : index
    %c0_242 = arith.constant 0 : index
    %288 = vector.load %arg10[%c3, %c0_241, %c0_242] : memref<4x128x128xbf16, #tpu.memory_space<vmem>>, vector<1x128x128xbf16>
    %289 = vector.shape_cast %288 : vector<1x128x128xbf16> to vector<128x128xbf16>
    %cst_243 = arith.constant dense<0.000000e+00> : vector<128x128xf32>
    %290 = tpu.matmul %287, %289, %cst_243 {dimension_numbers = #tpu.dot_dimension_numbers<[1], [0], [0], [1], [0, 0, 1, 1], [], []>} : vector<128x128xbf16>, vector<128x128xbf16>, vector<128x128xf32> -> vector<128x128xf32>
    %291 = arith.addf %285, %290 : vector<128x128xf32>
    %c0_244 = arith.constant 0 : index
    %c0_245 = arith.constant 0 : index
    %292 = vector.load %arg11[%c0_244, %c0_245] : memref<1x128xf32, #tpu.memory_space<vmem>>, vector<1x128xf32>
    %293 = vector.broadcast %292 : vector<1x128xf32> to vector<128x128xf32>
    %294 = arith.addf %291, %293 : vector<128x128xf32>
    %cst_246 = arith.constant 0.000000e+00 : f32
    %295 = vector.broadcast %cst_246 : f32 to vector<128x128xf32>
    %296 = arith.maximumf %294, %295 : vector<128x128xf32>
    %297 = vector.shape_cast %296 : vector<128x128xf32> to vector<8x16x128xf32>
    %298 = vector.extract_strided_slice %297 {offsets = [0, 0, 0], sizes = [8, 8, 128], strides = [1, 1, 1]} : vector<8x16x128xf32> to vector<8x8x128xf32>
    %299 = vector.extract_strided_slice %298 {offsets = [0, 0, 0], sizes = [8, 8, 64], strides = [1, 1, 1]} : vector<8x8x128xf32> to vector<8x8x64xf32>
    %300 = vector.extract_strided_slice %298 {offsets = [0, 0, 64], sizes = [8, 8, 64], strides = [1, 1, 1]} : vector<8x8x128xf32> to vector<8x8x64xf32>
    %301 = vector.shape_cast %299 : vector<8x8x64xf32> to vector<8x1x8x64xf32>
    %302 = vector.shape_cast %300 : vector<8x8x64xf32> to vector<8x1x8x64xf32>
    %303 = tpu.concatenate %301, %302 in 1 : vector<8x1x8x64xf32>, vector<8x1x8x64xf32> -> vector<8x2x8x64xf32>
    %304 = vector.shape_cast %303 : vector<8x2x8x64xf32> to vector<16x8x64xf32>
    %305 = vector.extract_strided_slice %304 {offsets = [0, 0, 0], sizes = [1, 8, 64], strides = [1, 1, 1]} : vector<16x8x64xf32> to vector<1x8x64xf32>
    %306 = vector.extract_strided_slice %304 {offsets = [0, 0, 0], sizes = [15, 8, 64], strides = [1, 1, 1]} : vector<16x8x64xf32> to vector<15x8x64xf32>
    %307 = tpu.concatenate %305, %306 in 0 : vector<1x8x64xf32>, vector<15x8x64xf32> -> vector<16x8x64xf32>
    %308 = vector.extract_strided_slice %304 {offsets = [1, 0, 0], sizes = [15, 8, 64], strides = [1, 1, 1]} : vector<16x8x64xf32> to vector<15x8x64xf32>
    %309 = vector.extract_strided_slice %304 {offsets = [15, 0, 0], sizes = [1, 8, 64], strides = [1, 1, 1]} : vector<16x8x64xf32> to vector<1x8x64xf32>
    %310 = tpu.concatenate %308, %309 in 0 : vector<15x8x64xf32>, vector<1x8x64xf32> -> vector<16x8x64xf32>
    %cst_247 = arith.constant 2.500000e-01 : f32
    %311 = vector.broadcast %cst_247 : f32 to vector<16x8x64xf32>
    %312 = arith.mulf %311, %307 : vector<16x8x64xf32>
    %cst_248 = arith.constant 7.500000e-01 : f32
    %313 = vector.broadcast %cst_248 : f32 to vector<16x8x64xf32>
    %314 = arith.mulf %313, %304 : vector<16x8x64xf32>
    %315 = arith.addf %312, %314 : vector<16x8x64xf32>
    %cst_249 = arith.constant 7.500000e-01 : f32
    %316 = vector.broadcast %cst_249 : f32 to vector<16x8x64xf32>
    %317 = arith.mulf %316, %304 : vector<16x8x64xf32>
    %cst_250 = arith.constant 2.500000e-01 : f32
    %318 = vector.broadcast %cst_250 : f32 to vector<16x8x64xf32>
    %319 = arith.mulf %318, %310 : vector<16x8x64xf32>
    %320 = arith.addf %317, %319 : vector<16x8x64xf32>
    %321 = vector.shape_cast %315 : vector<16x8x64xf32> to vector<16x1x8x64xf32>
    %322 = vector.shape_cast %320 : vector<16x8x64xf32> to vector<16x1x8x64xf32>
    %323 = tpu.concatenate %321, %322 in 1 : vector<16x1x8x64xf32>, vector<16x1x8x64xf32> -> vector<16x2x8x64xf32>
    %324 = vector.shape_cast %323 : vector<16x2x8x64xf32> to vector<32x8x64xf32>
    %325 = vector.extract_strided_slice %324 {offsets = [0, 0, 0], sizes = [32, 8, 32], strides = [1, 1, 1]} : vector<32x8x64xf32> to vector<32x8x32xf32>
    %326 = vector.extract_strided_slice %324 {offsets = [0, 0, 32], sizes = [32, 8, 32], strides = [1, 1, 1]} : vector<32x8x64xf32> to vector<32x8x32xf32>
    %327 = vector.extract_strided_slice %325 {offsets = [0, 0, 0], sizes = [32, 1, 32], strides = [1, 1, 1]} : vector<32x8x32xf32> to vector<32x1x32xf32>
    %328 = vector.extract_strided_slice %326 {offsets = [0, 0, 0], sizes = [32, 7, 32], strides = [1, 1, 1]} : vector<32x8x32xf32> to vector<32x7x32xf32>
    %329 = tpu.concatenate %327, %328 in 1 : vector<32x1x32xf32>, vector<32x7x32xf32> -> vector<32x8x32xf32>
    %330 = vector.extract_strided_slice %325 {offsets = [0, 1, 0], sizes = [32, 7, 32], strides = [1, 1, 1]} : vector<32x8x32xf32> to vector<32x7x32xf32>
    %331 = vector.extract_strided_slice %326 {offsets = [0, 7, 0], sizes = [32, 1, 32], strides = [1, 1, 1]} : vector<32x8x32xf32> to vector<32x1x32xf32>
    %332 = tpu.concatenate %330, %331 in 1 : vector<32x7x32xf32>, vector<32x1x32xf32> -> vector<32x8x32xf32>
    %cst_251 = arith.constant 2.500000e-01 : f32
    %333 = vector.broadcast %cst_251 : f32 to vector<32x8x32xf32>
    %334 = arith.mulf %333, %329 : vector<32x8x32xf32>
    %cst_252 = arith.constant 7.500000e-01 : f32
    %335 = vector.broadcast %cst_252 : f32 to vector<32x8x32xf32>
    %336 = arith.mulf %335, %325 : vector<32x8x32xf32>
    %337 = arith.addf %334, %336 : vector<32x8x32xf32>
    %cst_253 = arith.constant 7.500000e-01 : f32
    %338 = vector.broadcast %cst_253 : f32 to vector<32x8x32xf32>
    %339 = arith.mulf %338, %325 : vector<32x8x32xf32>
    %cst_254 = arith.constant 2.500000e-01 : f32
    %340 = vector.broadcast %cst_254 : f32 to vector<32x8x32xf32>
    %341 = arith.mulf %340, %326 : vector<32x8x32xf32>
    %342 = arith.addf %339, %341 : vector<32x8x32xf32>
    %cst_255 = arith.constant 2.500000e-01 : f32
    %343 = vector.broadcast %cst_255 : f32 to vector<32x8x32xf32>
    %344 = arith.mulf %343, %325 : vector<32x8x32xf32>
    %cst_256 = arith.constant 7.500000e-01 : f32
    %345 = vector.broadcast %cst_256 : f32 to vector<32x8x32xf32>
    %346 = arith.mulf %345, %326 : vector<32x8x32xf32>
    %347 = arith.addf %344, %346 : vector<32x8x32xf32>
    %cst_257 = arith.constant 7.500000e-01 : f32
    %348 = vector.broadcast %cst_257 : f32 to vector<32x8x32xf32>
    %349 = arith.mulf %348, %326 : vector<32x8x32xf32>
    %cst_258 = arith.constant 2.500000e-01 : f32
    %350 = vector.broadcast %cst_258 : f32 to vector<32x8x32xf32>
    %351 = arith.mulf %350, %332 : vector<32x8x32xf32>
    %352 = arith.addf %349, %351 : vector<32x8x32xf32>
    %353 = tpu.concatenate %337, %342, %347, %352 in 2 : vector<32x8x32xf32>, vector<32x8x32xf32>, vector<32x8x32xf32>, vector<32x8x32xf32> -> vector<32x8x128xf32>
    %c0_259 = arith.constant 0 : index
    %c0_260 = arith.constant 0 : index
    %c0_261 = arith.constant 0 : index
    %c0_262 = arith.constant 0 : index
    %354 = vector.load %arg12[%c0_259, %c0_260, %c0_261, %c0_262] : memref<1x32x8x128xf32, #tpu.memory_space<vmem>>, vector<1x32x8x128xf32>
    %355 = vector.shape_cast %354 : vector<1x32x8x128xf32> to vector<32x8x128xf32>
    %356 = vector.shape_cast %353 : vector<32x8x128xf32> to vector<1x32x8x128xf32>
    tpu.vector_store %arg12[%c0_259, %c0_260, %c0_261, %c0_262], %356 {strides = array<i32>} : memref<1x32x8x128xf32, #tpu.memory_space<vmem>>, vector<1x32x8x128xf32>,
    return
  }
  func.func @transform_0(%arg0: i32) -> (i32, i32, i32, i32) {
    %c0_i32 = arith.constant 0 : i32
    %c0_i32_0 = arith.constant 0 : i32
    %c0_i32_1 = arith.constant 0 : i32
    %c0_i32_2 = arith.constant 0 : i32
    return %arg0, %c0_i32, %c0_i32_0, %c0_i32_1 : i32, i32, i32, i32
  }
  func.func @transform_1(%arg0: i32) -> (i32, i32, i32, i32) {
    %c0_i32 = arith.constant 0 : i32
    %c0_i32_0 = arith.constant 0 : i32
    %c0_i32_1 = arith.constant 0 : i32
    %c0_i32_2 = arith.constant 0 : i32
    %c0_i32_3 = arith.constant 0 : i32
    return %c0_i32, %c0_i32_0, %c0_i32_1, %c0_i32_2 : i32, i32, i32, i32
  }
  func.func @transform_2(%arg0: i32) -> (i32, i32) {
    %c0_i32 = arith.constant 0 : i32
    %c0_i32_0 = arith.constant 0 : i32
    %c0_i32_1 = arith.constant 0 : i32
    return %c0_i32, %c0_i32_0 : i32, i32
  }
  func.func @transform_3(%arg0: i32) -> (i32, i32, i32, i32) {
    %c0_i32 = arith.constant 0 : i32
    %c0_i32_0 = arith.constant 0 : i32
    %c0_i32_1 = arith.constant 0 : i32
    %c0_i32_2 = arith.constant 0 : i32
    %c0_i32_3 = arith.constant 0 : i32
    return %c0_i32, %c0_i32_0, %c0_i32_1, %c0_i32_2 : i32, i32, i32, i32
  }
  func.func @transform_4(%arg0: i32) -> (i32, i32) {
    %c0_i32 = arith.constant 0 : i32
    %c0_i32_0 = arith.constant 0 : i32
    %c0_i32_1 = arith.constant 0 : i32
    return %c0_i32, %c0_i32_0 : i32, i32
  }
  func.func @transform_5(%arg0: i32) -> (i32, i32, i32, i32) {
    %c0_i32 = arith.constant 0 : i32
    %c0_i32_0 = arith.constant 0 : i32
    %c0_i32_1 = arith.constant 0 : i32
    %c0_i32_2 = arith.constant 0 : i32
    %c0_i32_3 = arith.constant 0 : i32
    return %c0_i32, %c0_i32_0, %c0_i32_1, %c0_i32_2 : i32, i32, i32, i32
  }
  func.func @transform_6(%arg0: i32) -> (i32, i32) {
    %c0_i32 = arith.constant 0 : i32
    %c0_i32_0 = arith.constant 0 : i32
    %c0_i32_1 = arith.constant 0 : i32
    return %c0_i32, %c0_i32_0 : i32, i32
  }
  func.func @transform_7(%arg0: i32) -> (i32, i32, i32, i32) {
    %c0_i32 = arith.constant 0 : i32
    %c0_i32_0 = arith.constant 0 : i32
    %c0_i32_1 = arith.constant 0 : i32
    %c0_i32_2 = arith.constant 0 : i32
    %c0_i32_3 = arith.constant 0 : i32
    return %c0_i32, %c0_i32_0, %c0_i32_1, %c0_i32_2 : i32, i32, i32, i32
  }
  func.func @transform_8(%arg0: i32) -> (i32, i32) {
    %c0_i32 = arith.constant 0 : i32
    %c0_i32_0 = arith.constant 0 : i32
    %c0_i32_1 = arith.constant 0 : i32
    return %c0_i32, %c0_i32_0 : i32, i32
  }
  func.func @transform_9(%arg0: i32) -> (i32, i32, i32) {
    %c0_i32 = arith.constant 0 : i32
    %c0_i32_0 = arith.constant 0 : i32
    %c0_i32_1 = arith.constant 0 : i32
    %c0_i32_2 = arith.constant 0 : i32
    return %c0_i32, %c0_i32_0, %c0_i32_1 : i32, i32, i32
  }
  func.func @transform_10(%arg0: i32) -> (i32, i32) {
    %c0_i32 = arith.constant 0 : i32
    %c0_i32_0 = arith.constant 0 : i32
    %c0_i32_1 = arith.constant 0 : i32
    return %c0_i32, %c0_i32_0 : i32, i32
  }
  func.func @transform_11(%arg0: i32) -> (i32, i32, i32, i32) {
    %c0_i32 = arith.constant 0 : i32
    %c0_i32_0 = arith.constant 0 : i32
    %c0_i32_1 = arith.constant 0 : i32
    %c0_i32_2 = arith.constant 0 : i32
    return %arg0, %c0_i32, %c0_i32_0, %c0_i32_1 : i32, i32, i32, i32
  }
}

</mosaic_0001>

<bundles_post_ra>
// kernel: tile.8
= control target key start
LH: loop header
LB: loop body
LE: loop exit
PB: predicated region body
PF: predicated region fallthrough
CT: control target
= control target key end

     0   :  { %s22_s0 = inlined_call_operand.vmem [shape: f32[32], index: 0, kind: input, shape index: {}]   ;;  %s23_s1 = inlined_call_operand.vmem [shape: f32[4,32], index: 1, kind: output, shape index: {}]  }
   0x1   :  { %v4_v0 = vld [vmem:[%s22_s0] ss:$0 sm:$0xff] }
   0x2   :  { %5 = vst [vmem:[%s23_s1] sm:$0xf] %v4_v0 }

// kernel: tile.9
= control target key start
LH: loop header
LB: loop body
LE: loop exit
PB: predicated region body
PF: predicated region fallthrough
CT: control target
= control target key end

     0   :  { %s37_s8 = smov 32   ;;  %s38_s9 = smov 64   ;;  %vm7_vm0 = vcmask 261120   ;;  %vm13_vm1 = vcmask 1048320   ;;  %vm19_vm2 = vcmask 785920   ;;  %vm25_vm3 = vcmask 523520   ;;  %s55_s0 = inlined_call_operand.vmem [shape: f32[4,32], index: 0, kind: input, shape index: {}]   ;;  %s56_s1 = inlined_call_operand.vmem [shape: f32[1,128], index: 1, kind: output, shape index: {}]  }
   0x1   :  { %v4_v0 = vld [vmem:[%s55_s0] sm:$0xf]  ;;  %s36_s0 = smov 96  }
   0x2   :  { %5 = vst [vmem:[#allocation1] sm:$0xf] %v4_v0 }
   0x9   :  { %v10_v1 = vld [vmem:[#allocation1 + $0x3] sm:$0x1]   ;;  %v22_v2 = vld [vmem:[#allocation1 + $0x1] sm:$0x1]   ;;  %v16_v3 = vld [vmem:[#allocation1 + $0x2] sm:$0x1]  }
   0xa   :  { %11 = vrot.lane.b32.xlu0 %v10_v1, %s36_s0  ;;  %23 = vrot.lane.b32.xlu1 %v22_v2, %s37_s8  ;;  %v6_v4 = vld [vmem:[#allocation1] sm:$0x1]  }
   0xb   :  { %8 = vst.msk [vmem:[#allocation0] sm:$0x1] %vm7_vm0, %v6_v4  }
  0x12   :  { %17 = vrot.lane.b32.xlu0 %v16_v3, %s38_s9 }
  0x7c   :  { %v12_v5 = vpop.permute.xlu0 %11   ;;  %v24_v6 = vpop.permute.xlu1 %23  }
  0x7d   :  { %14 = vst.msk [vmem:[#allocation0] sm:$0x1] %vm13_vm1, %v12_v5  }
  0x84   :  { %v18_v7 = vpop.permute.xlu0 %17  }
  0x85   :  { %20 = vst.msk [vmem:[#allocation0] sm:$0x1] %vm19_vm2, %v18_v7  }
  0x86   :  { %26 = vst.msk [vmem:[#allocation0] sm:$0x1] %vm25_vm3, %v24_v6  }
  0x8d   :  { %v29_v8 = vld [vmem:[#allocation0] sm:$0x1] }
  0x8e   :  { %32 = vst [vmem:[%s56_s1] sm:$0x1] %v29_v8 }

// kernel: up_style_forward.1
= control target key start
LH: loop header
LB: loop body
LE: loop exit
PB: predicated region body
PF: predicated region fallthrough
CT: control target
= control target key end

     0   :  { %s10276_s17 = smov 0   ;;  %s13940_s0 = inlined_call_operand.vmem [shape: f32[2,8,8,128], index: 0, kind: input, shape index: {}]   ;;  %s13941_s1 = inlined_call_operand.vmem [shape: bf16[3,3,128,128], index: 1, kind: input, shape index: {}]   ;;  %s13942_s2 = inlined_call_operand.vmem [shape: f32[1,128], index: 2, kind: input, shape index: {}]   ;;  %s13943_s3 = inlined_call_operand.vmem [shape: bf16[3,3,128,128], index: 3, kind: input, shape index: {}]   ;;  %s13944_s4 = inlined_call_operand.vmem [shape: f32[1,128], index: 4, kind: input, shape index: {}]   ;;  %s13945_s5 = inlined_call_operand.vmem [shape: bf16[3,3,128,128], index: 5, kind: input, shape index: {}]   ;;  %s13946_s6 = inlined_call_operand.vmem [shape: f32[1,128], index: 6, kind: input, shape index: {}]   ;;  %s13947_s7 = inlined_call_operand.vmem [shape: bf16[3,3,128,128], index: 7, kind: input, shape index: {}]   ;;  %s13948_s8 = inlined_call_operand.vmem [shape: f32[1,128], index: 8, kind: input, shape index: {}]   ;;  %s13949_s9 = inlined_call_operand.vmem [shape: bf16[4,128,128], index: 9, kind: input, shape index: {}]   ;;  %s13950_s10 = inlined_call_operand.vmem [shape: f32[1,128], index: 10, kind: input, shape index: {}]   ;;  %s13951_s11 = inlined_call_operand.vmem [shape: f32[2,32,8,128], index: 11, kind: output, shape index: {}]  }
   0x1 LB: > { %s7994_s18 = sadd.s32 4294967295, %s10208_s17   ;;  %p7998_p0 = scmp.ge.s32.totalorder %s10208_s17, 1  ;;  %s10208_s17 = sphi %s10276_s17, %s21_s17  }
   0x2   : > { %p337_p1 = scmp.lt.s32.totalorder %s10208_s17, 3 }
   0x4   : > { %p338_p2 = pnand %p7998_p0, %p337_p1 }
   0x6   : > { %341 = sbr.rel (%p338_p2) target bundleno = 2668 (0xa6c), region = 64 }
   0xb   : > { %v9862_v0 = vld [vmem:[%s13941_s1 + $0x78] sm:$0xff]  ;;  %p377_p3 = scmp.lt.s32.totalorder %s7994_s18, 1  ;;  %v9861_v4 = vld [vmem:[%s13941_s1 + $0x70] sm:$0xff]  ;;  %v9860_v8 = vld [vmem:[%s13941_s1 + $0x68] sm:$0xff]  ;;  %v10210_v20 = vmov 0.0   ;;  %v10211_v36 = vmov 0  }
   0xc   : > { %v9854_v1 = vld [vmem:[%s13941_s1 + $0x38] sm:$0xff]  ;;  %548 = vmatpush.bf16.msra.mxu0 %v9862_v0  ;;  %v9853_v5 = vld [vmem:[%s13941_s1 + $0x30] sm:$0xff]  ;;  %v9852_v9 = vld [vmem:[%s13941_s1 + $0x28] sm:$0xff]  ;;  %v593_v37 = vrot.slane %v10211_v36, 3  ;;  %v596_v38 = vrot.slane %v10211_v36, 4  ;;  %v10400_v52 = vrot.slane %v10211_v36, 1 }
   0xd   : > { %v9870_v2 = vld [vmem:[%s13941_s1 + $0xb8] sm:$0xff]  ;;  %726 = vmatpush.bf16.msra.mxu1 %v9854_v1  ;;  %s14439_s18 = smov (!%p377_p3, %s7994_s18), 1  ;;  %v9869_v6 = vld [vmem:[%s13941_s1 + $0xb0] sm:$0xff]  ;;  %v9868_v10 = vld [vmem:[%s13941_s1 + $0xa8] sm:$0xff]  ;;  %vm589_vm0 = vsmask.f32 4352 }
   0xe   : > { %v9878_v3 = vld [vmem:[%s13941_s1 + $0xf8] sm:$0xff]  ;;  %910 = vmatpush.bf16.msra.mxu2 %v9870_v2  ;;  %v9877_v7 = vld [vmem:[%s13941_s1 + $0xf0] sm:$0xff]  ;;  %s9845_s16 = sshll.u32 %s14439_s18, 6  ;;  %v9876_v11 = vld [vmem:[%s13941_s1 + $0xe8] sm:$0xff]  ;;  %v10392_v48 = vor.u32 %v596_v38, %v593_v37  ;;  %vm785_vm1 = vsmask.f32 7424 }
   0xf   : > { %1046 = vmatpush.bf16.msra.mxu3 %v9878_v3  ;;  %s10326_s29 = scalar_lea.vmem %s13940_s0, %s9845_s16  ;;  %v9859_v12 = vld [vmem:[%s13941_s1 + $0x60] sm:$0xff]  ;;  %v9858_v18 = vld [vmem:[%s13941_s1 + $0x58] sm:$0xff]  ;;  %v9857_v25 = vld [vmem:[%s13941_s1 + $0x50] sm:$0xff]  ;;  %v10212_v62 = vmov 0.0|0.0   ;;  %s10213_s15 = smov 64   ;;  %vm6751_vm2 = vcmask 1046528  }
  0x10   : > { %549 = vmatpush.bf16.msra.mxu0 %v9861_v4  ;;  %v9851_v13 = vld [vmem:[%s13941_s1 + $0x20] sm:$0xff]  ;;  %v10342_v17 = vld [vmem:[%s10326_s29 + $0x8] sm:$0xff]  ;;  %v9850_v19 = vld [vmem:[%s13941_s1 + $0x18] sm:$0xff]  ;;  %s10214_s19 = smov 96   ;;  %s10215_s16 = smov 32   ;;  %vm6558_vm3 = vcmask 1040384  }
  0x11   : > { %727 = vmatpush.bf16.msra.mxu1 %v9853_v5  ;;  %v9867_v14 = vld [vmem:[%s13941_s1 + $0xa0] sm:$0xff]  ;;  %v9866_v22 = vld [vmem:[%s13941_s1 + $0x98] sm:$0xff]  ;;  %v452_v24 = vpack.c.bf16 %v10342_v17, %v10210_v20  ;;  %v9849_v26 = vld [vmem:[%s13941_s1 + $0x10] sm:$0xff]  ;;  %v10417_v63 = vpack.c.bf16 0.0, %v10342_v17  ;;  %vm7808_vm4 = vcmask 261120   ;;  %vm7841_vm5 = vcmask 523264  }
  0x12   : > { %911 = vmatpush.bf16.msra.mxu2 %v9869_v6  ;;  %v9875_v15 = vld [vmem:[%s13941_s1 + $0xe0] sm:$0xff]  ;;  %v9874_v23 = vld [vmem:[%s13941_s1 + $0xd8] sm:$0xff]  ;;  %v9865_v29 = vld [vmem:[%s13941_s1 + $0x90] sm:$0xff]  ;;  %s9846_s20 = sshll.u32 %s14439_s18, 8  ;;  %vm7874_vm6 = vcmask 785408  }
  0x13   : > { %1047 = vmatpush.bf16.msra.mxu3 %v9877_v7  ;;  %v411_v16 = vld [vmem:[%s10326_s29] sm:$0xff]  ;;  %v9873_v30 = vld [vmem:[%s13941_s1 + $0xd0] sm:$0xff]  ;;  %v608_v32 = vshrl.u32 %v452_v24, 16  ;;  %v611_v33 = vshll.u32 %v452_v24, 16  ;;  %v9856_v34 = vld [vmem:[%s13941_s1 + $0x48] sm:$0xff]  ;;  %v802_v4 = vshll.u32 %v10417_v63, 16  ;;  %s13355_s23 = scalar_lea.vmem %s13951_s11, %s9846_s20 }
  0x14   : > { %550 = vmatpush.bf16.msra.mxu0 %v9860_v8  ;;  %v451_v21 = vpack.c.bf16 %v411_v16, %v10210_v20  ;;  %v10371_v31 = vpack.c.bf16 0.0, %v411_v16  ;;  %v9848_v35 = vld [vmem:[%s13941_s1 + $0x8] sm:$0xff]  ;;  %v9855_v46 = vld [vmem:[%s13941_s1 + $0x40] sm:$0xff]  ;;  %v9886_v55 = vld [vmem:[%s13941_s1 + $0x138] sm:$0xff] }
  0x15   : > { %728 = vmatpush.bf16.msra.mxu1 %v9852_v9  ;;  %v9864_v41 = vld [vmem:[%s13941_s1 + $0x88] sm:$0xff]  ;;  %v610_v44 = vrot.slane %v608_v32, 3  ;;  %v613_v45 = vrot.slane %v611_v33, 4  ;;  %v9847_v47 = vld [vmem:[%s13941_s1] sm:$0xff]  ;;  %v413_v56 = vld [vmem:[%s10326_s29 + $0x10] sm:$0xff]  ;;  %v804_v8 = vrot.slane %v802_v4, 1 }
  0x16   : > { %912 = vmatpush.bf16.msra.mxu2 %v9868_v10  ;;  %v599_v27 = vshrl.u32 %v451_v21, 16  ;;  %v602_v28 = vshll.u32 %v451_v21, 16  ;;  %v9872_v42 = vld [vmem:[%s13941_s1 + $0xc8] sm:$0xff]  ;;  %v794_v43 = vshll.u32 %v10371_v31, 16  ;;  %v9863_v50 = vld [vmem:[%s13941_s1 + $0x80] sm:$0xff]  ;;  %v453_v60 = vpack.c.bf16 %v413_v56, %v10210_v20  ;;  %v9885_v61 = vld [vmem:[%s13941_s1 + $0x130] sm:$0xff] }
  0x17   : > { %1048 = vmatpush.bf16.msra.mxu3 %v9876_v11  ;;  %v9871_v51 = vld [vmem:[%s13941_s1 + $0xc0] sm:$0xff]  ;;  %v614_v54 = vor.u32 %v613_v45, %v610_v44  ;;  %v9884_v2 = vld [vmem:[%s13941_s1 + $0x128] sm:$0xff]  ;;  %v798_v3 = vshrl.u32 %v10371_v31, 16  ;;  %v414_v10 = vld [vmem:[%s10326_s29 + $0x18] sm:$0xff] }
  0x18   : > { %551 = vmatpush.bf16.msra.mxu0 %v9859_v12  ;;  %v601_v39 = vrot.slane %v599_v27, 3  ;;  %v604_v40 = vrot.slane %v602_v28, 4  ;;  %v796_v53 = vrot.slane %v794_v43, 1  ;;  %v617_v0 = vshrl.u32 %v453_v60, 16  ;;  %v9910_v4 = vld [vmem:[%s13941_s1 + $0x1f8] sm:$0xff] }
  0x19   : > { %729 = vmatpush.bf16.msra.mxu1 %v9851_v13  ;;  %v620_v1 = vshll.u32 %v453_v60, 16  ;;  %v454_v13 = vpack.c.bf16 %v414_v10, %v10210_v20  ;;  %v10457_v32 = vpack.c.bf16 0.0, %v414_v10  ;;  %v9909_v10 = vld [vmem:[%s13941_s1 + $0x1f0] sm:$0xff] }
  0x1a   : > { %913 = vmatpush.bf16.msra.mxu2 %v9867_v14  ;;  %v605_v49 = vor.u32 %v604_v40, %v601_v39  ;;  %v797_v58 = vsel %vm785_vm1, %v10400_v52, %v796_v53  ;;  %v619_v5 = vrot.slane %v617_v0, 3  ;;  %v800_v7 = vor.u32 %v798_v3, %v796_v53  ;;  %v9883_v14 = vld [vmem:[%s13941_s1 + $0x120] sm:$0xff]  ;;  %v9894_v3 = vld [vmem:[%s13941_s1 + $0x178] sm:$0xff] }
  0x1b   : > { %1049 = vmatpush.bf16.msra.mxu3 %v9875_v15  ;;  %v622_v6 = vrot.slane %v620_v1, 4  ;;  %v10438_v15 = vpack.c.bf16 0.0, %v413_v56  ;;  %v626_v16 = vshrl.u32 %v454_v13, 16  ;;  %v629_v17 = vshll.u32 %v454_v13, 16  ;;  %v9902_v1 = vld [vmem:[%s13941_s1 + $0x1b8] sm:$0xff] }
  0x1c   : > { %552 = vmatpush.bf16.msra.mxu0 %v9858_v18  ;;  %v606_v57 = vsel %vm589_vm0, %v10392_v48, %v605_v49  ;;  %v615_v59 = vsel %vm589_vm0, %v605_v49, %v614_v54  ;;  %v10426_v11 = vsel %vm785_vm1, %v800_v7, %v804_v8  ;;  %v806_v18 = vshrl.u32 %v10417_v63, 16 }
  0x1d   : > { %730 = vmatpush.bf16.msra.mxu1 %v9850_v19  ;;  %v623_v9 = vor.u32 %v622_v6, %v619_v5  ;;  %v810_v19 = vshll.u32 %v10438_v15, 16  ;;  %v628_v21 = vrot.slane %v626_v16, 3  ;;  %v818_v36 = vshll.u32 %v10457_v32, 16 }
  0x1e   : > { %914 = vmatpush.bf16.msra.mxu2 %v9866_v22  ;;  %v631_v22 = vrot.slane %v629_v17, 4 }
  0x1f   : > { %1050 = vmatpush.bf16.msra.mxu3 %v9874_v23  ;;  %v10429_v12 = vsel %vm589_vm0, %v614_v54, %v623_v9  ;;  %v808_v23 = vor.u32 %v806_v18, %v804_v8  ;;  %v812_v24 = vrot.slane %v810_v19, 1  ;;  %v820_v40 = vrot.slane %v818_v36, 1  ;;  %v9901_v8 = vld [vmem:[%s13941_s1 + $0x1b0] sm:$0xff]  ;;  %v9900_v18 = vld [vmem:[%s13941_s1 + $0x1a8] sm:$0xff]  ;;  %v9898_v36 = vld [vmem:[%s13941_s1 + $0x198] sm:$0xff] }
  0x20   : > { %553 = vmatpush.bf16.msra.mxu0 %v9857_v25  ;;  %v632_v25 = vor.u32 %v631_v22, %v628_v21  ;;  %v9892_v19 = vld [vmem:[%s13941_s1 + $0x168] sm:$0xff] }
  0x21   : > { %731 = vmatpush.bf16.msra.mxu1 %v9849_v26  ;;  %v415_v26 = vld [vmem:[%s10326_s29 + $0x20] sm:$0xff]  ;;  %v10444_v27 = vsel %vm785_vm1, %v808_v23, %v812_v24  ;;  %v9908_v21 = vld [vmem:[%s13941_s1 + $0x1e8] sm:$0xff] }
  0x22   : > { %915 = vmatpush.bf16.msra.mxu2 %v9865_v29  ;;  %v10447_v28 = vsel %vm589_vm0, %v623_v9, %v632_v25  ;;  %v455_v29 = vpack.c.bf16 %v415_v26, %v10210_v20  ;;  %v9893_v9 = vld [vmem:[%s13941_s1 + $0x170] sm:$0xff] }
  0x23   : > { %1051 = vmatpush.bf16.msra.mxu3 %v9873_v30  ;;  %v9882_v30 = vld [vmem:[%s13941_s1 + $0x118] sm:$0xff] }
  0x24   : > { %554 = vmatpush.bf16.msra.mxu0 %v9856_v34  ;;  %v635_v33 = vshrl.u32 %v455_v29, 16  ;;  %v638_v34 = vshll.u32 %v455_v29, 16  ;;  %v9891_v29 = vld [vmem:[%s13941_s1 + $0x160] sm:$0xff] }
  0x25   : > { %732 = vmatpush.bf16.msra.mxu1 %v9848_v35  ;;  %v814_v35 = vshrl.u32 %v10438_v15, 16 }
  0x26   : > { %916 = vmatpush.bf16.msra.mxu2 %v9864_v41  ;;  %v637_v37 = vrot.slane %v635_v33, 3  ;;  %v640_v38 = vrot.slane %v638_v34, 4 }
  0x27   : > { %1052 = vmatpush.bf16.msra.mxu3 %v9872_v42  ;;  %v816_v39 = vor.u32 %v814_v35, %v812_v24  ;;  %v416_v42 = vld [vmem:[%s10326_s29 + $0x28] sm:$0xff]  ;;  %v9907_v35 = vld [vmem:[%s13941_s1 + $0x1e0] sm:$0xff] }
  0x28   : > { %555 = vmatpush.bf16.msra.mxu0 %v9855_v46  ;;  %v641_v41 = vor.u32 %v640_v38, %v637_v37  ;;  %v456_v45 = vpack.c.bf16 %v416_v42, %v10210_v20  ;;  %v9881_v46 = vld [vmem:[%s13941_s1 + $0x110] sm:$0xff]  ;;  %v10504_v5 = vpack.c.bf16 0.0, %v416_v42  ;;  %v9879_v37 = vld [vmem:[%s13941_s1 + $0x100] sm:$0xff]  ;;  %v9890_v38 = vld [vmem:[%s13941_s1 + $0x158] sm:$0xff] }
  0x29   : > { %733 = vmatpush.bf16.msra.mxu1 %v9847_v47  ;;  %v10463_v43 = vsel %vm785_vm1, %v816_v39, %v820_v40  ;;  %v10476_v47 = vpack.c.bf16 0.0, %v415_v26  ;;  %v10532_v26 = vld [vmem:[%s10326_s29 + $0x38] sm:$0xff] }
  0x2a   : > { %917 = vmatpush.bf16.msra.mxu2 %v9863_v50  ;;  %v10466_v44 = vsel %vm589_vm0, %v632_v25, %v641_v41  ;;  %v644_v49 = vshrl.u32 %v456_v45, 16  ;;  %v647_v50 = vshll.u32 %v456_v45, 16  ;;  %v9899_v25 = vld [vmem:[%s13941_s1 + $0x1a0] sm:$0xff]  ;;  %v959_v34 = vpack.c.bf16 %v10532_v26, %v10210_v20  ;;  %v9906_v42 = vld [vmem:[%s13941_s1 + $0x1d8] sm:$0xff]  ;;  %v9897_v45 = vld [vmem:[%s13941_s1 + $0x190] sm:$0xff] }
  0x2b   : > { %1053 = vmatpush.bf16.msra.mxu3 %v9871_v51  ;;  %556 = vmatmul.bf16.vlgmr.msra.gmra.mxu0 %v10212_v62  ;;  %v822_v51 = vshrl.u32 %v10457_v32, 16  ;;  %v826_v53 = vshll.u32 %v10476_v47, 16  ;;  %v830_v13 = vshrl.u32 %v10476_v47, 16 }
  0x2c   : > { %1161 = vmatpush.bf16.msrb.mxu0 %v9886_v55  ;;  %734 = vmatmul.bf16.vlgmr.msra.gmra.mxu1 %v606_v57  ;;  %v646_v54 = vrot.slane %v644_v49, 3  ;;  %v649_v55 = vrot.slane %v647_v50, 4  ;;  %v838_v49 = vshrl.u32 %v10504_v5, 16 }
  0x2d   : > { %918 = vmatmul.bf16.vlgmr.msra.gmra.mxu2 %v797_v58  ;;  %v824_v56 = vor.u32 %v822_v51, %v820_v40  ;;  %v828_v57 = vrot.slane %v826_v53, 1  ;;  %1291 = vmatpush.bf16.msrb.mxu1 %v9894_v3  ;;  %v979_v40 = vshrl.u32 %v959_v34, 16 }
  0x2e   : > { %1054 = vmatmul.bf16.vlgmr.msra.gmra.mxu3 %v615_v59  ;;  %v650_v58 = vor.u32 %v649_v55, %v646_v54  ;;  %1427 = vmatpush.bf16.msrb.mxu2 %v9902_v1  ;;  %v9905_v54 = vld [vmem:[%s13941_s1 + $0x1d0] sm:$0xff]  ;;  %v9896_v55 = vld [vmem:[%s13941_s1 + $0x188] sm:$0xff]  ;;  %v9895_v1 = vld [vmem:[%s13941_s1 + $0x180] sm:$0xff] }
  0x2f   : > { %v10482_v60 = vsel %vm785_vm1, %v824_v56, %v828_v57  ;;  %1542 = vmatpush.bf16.msrb.mxu3 %v9910_v4  ;;  %v832_v22 = vor.u32 %v830_v13, %v828_v57  ;;  %v981_v51 = vrot.slane %v979_v40, 3  ;;  %v9888_v56 = vld [vmem:[%s13941_s1 + $0x148] sm:$0xff]  ;;  %v9887_v4 = vld [vmem:[%s13941_s1 + $0x140] sm:$0xff] }
  0x30   : > { %1162 = vmatpush.bf16.msrb.mxu0 %v9885_v61  ;;  %v10485_v61 = vsel %vm589_vm0, %v641_v41, %v650_v58  ;;  %v982_v41 = vshll.u32 %v959_v34, 16 }
  0x31   : > { %1292 = vmatpush.bf16.msrb.mxu1 %v9893_v9 }
  0x32   : > { %1428 = vmatpush.bf16.msrb.mxu2 %v9901_v8  ;;  %v984_v53 = vrot.slane %v982_v41, 4  ;;  %v767_v8 = vpack.c.bf16 %v10532_v26, %v10532_v26 }
  0x33   : > { %1543 = vmatpush.bf16.msrb.mxu3 %v9909_v10 }
  0x34   : > { %1163 = vmatpush.bf16.msrb.mxu0 %v9884_v2  ;;  %v9880_v2 = vld [vmem:[%s13941_s1 + $0x108] sm:$0xff]  ;;  %v850_v10 = vshll.u32 %v767_v8, 16 }
  0x35   : > { %1293 = vmatpush.bf16.msrb.mxu1 %v9892_v19  ;;  %v9917_v19 = vld [vmem:[%s13941_s1 + $0x230] sm:$0xff] }
  0x36   : > { %1429 = vmatpush.bf16.msrb.mxu2 %v9900_v18 }
  0x37   : > { %1544 = vmatpush.bf16.msrb.mxu3 %v9908_v21 }
  0x38   : > { %1164 = vmatpush.bf16.msrb.mxu0 %v9883_v14  ;;  %v834_v14 = vshll.u32 %v10504_v5, 16 }
  0x39   : > { %1294 = vmatpush.bf16.msrb.mxu1 %v9891_v29 }
  0x3a   : > { %v836_v23 = vrot.slane %v834_v14, 1  ;;  %1430 = vmatpush.bf16.msrb.mxu2 %v9899_v25  ;;  %v852_v14 = vrot.slane %v850_v10, 1 }
  0x3b   : > { %560 = vmatmul.bf16.gmra.mxu0 %v10371_v31  ;;  %1545 = vmatpush.bf16.msrb.mxu3 %v9907_v35 }
  0x3c   : > { %738 = vmatmul.bf16.gmra.mxu1 %v615_v59  ;;  %1165 = vmatpush.bf16.msrb.mxu0 %v9882_v30  ;;  %v417_v59 = vld [vmem:[%s10326_s29 + $0x30] sm:$0xff]  ;;  %v10538_v30 = vsel %vm785_vm1, %v832_v22, %v836_v23  ;;  %v840_v57 = vor.u32 %v838_v49, %v836_v23 }
  0x3d   : > { %922 = vmatmul.bf16.gmra.mxu2 %v10426_v11  ;;  %v457_v0 = vpack.c.bf16 %v417_v59, %v10210_v20  ;;  %v10562_v39 = vpack.c.bf16 0.0, %v417_v59  ;;  %1295 = vmatpush.bf16.msrb.mxu1 %v9890_v38  ;;  %v985_v59 = vor.u32 %v984_v53, %v981_v51 }
  0x3e   : > { %1058 = vmatmul.bf16.gmra.mxu3 %v10429_v12  ;;  %1431 = vmatpush.bf16.msrb.mxu2 %v9898_v36 }
  0x3f   : > { %v653_v6 = vshrl.u32 %v457_v0, 16  ;;  %v656_v7 = vshll.u32 %v457_v0, 16  ;;  %v842_v50 = vshll.u32 %v10562_v39, 16  ;;  %1546 = vmatpush.bf16.msrb.mxu3 %v9906_v42  ;;  %v9904_v0 = vld [vmem:[%s13941_s1 + $0x1c8] sm:$0xff]  ;;  %v846_v9 = vshrl.u32 %v10562_v39, 16 }
  0x40   : > { %1166 = vmatpush.bf16.msrb.mxu0 %v9881_v46  ;;  %v9889_v46 = vld [vmem:[%s13941_s1 + $0x150] sm:$0xff]  ;;  %v10622_v18 = vsel %vm589_vm0, %v985_v59, %v10392_v48 }
  0x41   : > { %v655_v16 = vrot.slane %v653_v6, 3  ;;  %v658_v17 = vrot.slane %v656_v7, 4  ;;  %1296 = vmatpush.bf16.msrb.mxu1 %v9889_v46  ;;  %v9903_v6 = vld [vmem:[%s13941_s1 + $0x1c0] sm:$0xff]  ;;  %v9918_v7 = vld [vmem:[%s13941_s1 + $0x238] sm:$0xff] }
  0x42   : > { %1432 = vmatpush.bf16.msrb.mxu2 %v9897_v45 }
  0x43   : > { %v10526_v24 = vor.u32 %v658_v17, %v655_v16  ;;  %1547 = vmatpush.bf16.msrb.mxu3 %v9905_v54 }
  0x44   : > { %1167 = vmatpush.bf16.msrb.mxu0 %v9880_v2 }
  0x45   : > { %v10542_v33 = vsel %vm589_vm0, %v650_v58, %v10526_v24  ;;  %v844_v58 = vrot.slane %v842_v50, 1  ;;  %1297 = vmatpush.bf16.msrb.mxu1 %v9888_v56  ;;  %v10595_v3 = vsel %vm589_vm0, %v10526_v24, %v985_v59  ;;  %v669_v16 = vsel %vm589_vm0, %v10526_v24, %v10392_v48  ;;  %v9916_v24 = vld [vmem:[%s13941_s1 + $0x228] sm:$0xff] }
  0x46   : > { %1433 = vmatpush.bf16.msrb.mxu2 %v9896_v55 }
  0x47   : > { %v10591_v2 = vsel %vm785_vm1, %v840_v57, %v844_v58  ;;  %1548 = vmatpush.bf16.msrb.mxu3 %v9904_v0  ;;  %v10613_v13 = vor.u32 %v846_v9, %v844_v58 }
  0x48   : > { %1168 = vmatpush.bf16.msrb.mxu0 %v9879_v37 }
  0x49   : > { %1298 = vmatpush.bf16.msrb.mxu1 %v9887_v4  ;;  %v853_v17 = vsel %vm785_vm1, %v10613_v13, %v852_v14 }
  0x4a   : > { %1434 = vmatpush.bf16.msrb.mxu2 %v9895_v1 }
  0x4b   : > { %564 = vmatmul.bf16.gmra.mxu0 %v10417_v63  ;;  %1549 = vmatpush.bf16.msrb.mxu3 %v9903_v6 }
  0x4c   : > { %742 = vmatmul.bf16.gmra.mxu1 %v10429_v12  ;;  %1672 = vmatpush.bf16.msra.mxu0 %v9918_v7 }
  0x4d   : > { %926 = vmatmul.bf16.gmra.mxu2 %v10444_v27 }
  0x4e   : > { %1062 = vmatmul.bf16.gmra.mxu3 %v10447_v28 }
  0x50   : > { %1673 = vmatpush.bf16.msra.mxu0 %v9917_v19 }
  0x54   : > { %1674 = vmatpush.bf16.msra.mxu0 %v9916_v24 }
  0x5b   : > { %568 = vmatmul.bf16.gmra.mxu0 %v10438_v15 }
  0x5c   : > { %746 = vmatmul.bf16.gmra.mxu1 %v10447_v28 }
  0x5d   : > { %930 = vmatmul.bf16.gmra.mxu2 %v10463_v43 }
  0x5e   : > { %1066 = vmatmul.bf16.gmra.mxu3 %v10466_v44 }
  0x6b   : > { %572 = vmatmul.bf16.gmra.mxu0 %v10457_v32 }
  0x6c   : > { %750 = vmatmul.bf16.gmra.mxu1 %v10466_v44 }
  0x6d   : > { %934 = vmatmul.bf16.gmra.mxu2 %v10482_v60 }
  0x6e   : > { %1070 = vmatmul.bf16.gmra.mxu3 %v10485_v61 }
  0x7b   : > { %576 = vmatmul.bf16.gmra.mxu0 %v10476_v47 }
  0x7c   : > { %754 = vmatmul.bf16.gmra.mxu1 %v10485_v61 }
  0x7d   : > { %938 = vmatmul.bf16.gmra.mxu2 %v10538_v30 }
  0x7e   : > { %1074 = vmatmul.bf16.gmra.mxu3 %v10542_v33 }
  0x8b   : > { %580 = vmatmul.bf16.gmra.mxu0 %v10504_v5 }
  0x8c   : > { %758 = vmatmul.bf16.gmra.mxu1 %v10542_v33 }
  0x8d   : > { %942 = vmatmul.bf16.gmra.mxu2 %v10591_v2 }
  0x8e   : > { %1078 = vmatmul.bf16.gmra.mxu3 %v10595_v3 }
  0x9b   : > { %584 = vmatmul.bf16.gmra.mxu0 %v10562_v39 }
  0x9c   : > { %762 = vmatmul.bf16.gmra.mxu1 %v669_v16 }
  0x9d   : > { %946 = vmatmul.bf16.gmra.mxu2 %v853_v17 }
  0x9e   : > { %1082 = vmatmul.bf16.gmra.mxu3 %v10622_v18 }
  0xa8   : > { %v557_v21 = vpop.f32.mrf.mxu0 }
  0xa9   : > { %v735_v22 = vpop.f32.mrf.mxu1 }
  0xaa   : > { %v736_v23 = vadd.f32 %v735_v22, %v557_v21 }
  0xab   : > { %1169 = vmatmul.bf16.vlgmr.msrb.gmra.mxu0 %v10371_v31 }
  0xac   : > { %1299 = vmatmul.bf16.vlgmr.msrb.gmra.mxu1 %v10426_v11 }
  0xad   : > { %1435 = vmatmul.bf16.vlgmr.msrb.gmra.mxu2 %v10429_v12  ;;  %v9915_v12 = vld [vmem:[%s13941_s1 + $0x220] sm:$0xff] }
  0xae   : > { %1550 = vmatmul.bf16.vlgmr.msrb.gmra.mxu3 %v10417_v63  ;;  %1675 = vmatpush.bf16.msra.mxu0 %v9915_v12 }
  0xb0   : > { %v919_v25 = vpop.f32.mrf.mxu2  ;;  %v559_v35 = vpop.f32.mrf.mxu0 }
  0xb1   : > { %v1055_v29 = vpop.f32.mrf.mxu3  ;;  %v951_v34 = vadd.f32 %v919_v25, %v736_v23  ;;  %v737_v36 = vpop.f32.mrf.mxu1 }
  0xb3   : > { %v10636_v37 = vadd.f32 %v1055_v29, %v951_v34 }
  0xb8   : > { %v921_v38 = vpop.f32.mrf.mxu2  ;;  %v561_v40 = vpop.f32.mrf.mxu0 }
  0xb9   : > { %v1057_v31 = vpop.f32.mrf.mxu3  ;;  %v739_v11 = vpop.f32.mrf.mxu1 }
  0xba   : > { %v740_v41 = vadd.f32 %v739_v11, %v561_v40 }
  0xbb   : > { %1173 = vmatmul.bf16.gmra.mxu0 %v10417_v63 }
  0xbc   : > { %1303 = vmatmul.bf16.gmra.mxu1 %v10444_v27 }
  0xbd   : > { %1439 = vmatmul.bf16.gmra.mxu2 %v10447_v28  ;;  %v9914_v28 = vld [vmem:[%s13941_s1 + $0x218] sm:$0xff] }
  0xbe   : > { %1554 = vmatmul.bf16.gmra.mxu3 %v10438_v15  ;;  %1676 = vmatpush.bf16.msra.mxu0 %v9914_v28 }
  0xc0   : > { %v923_v42 = vpop.f32.mrf.mxu2  ;;  %v563_v49 = vpop.f32.mrf.mxu0 }
  0xc1   : > { %v1059_v45 = vpop.f32.mrf.mxu3  ;;  %v952_v46 = vadd.f32 %v923_v42, %v740_v41  ;;  %v741_v50 = vpop.f32.mrf.mxu1  ;;  %v9911_v42 = vld [vmem:[%s13941_s1 + $0x200] sm:$0xff] }
  0xc3   : > { %v10645_v51 = vadd.f32 %v1059_v45, %v952_v46 }
  0xc8   : > { %v925_v53 = vpop.f32.mrf.mxu2  ;;  %v565_v54 = vpop.f32.mrf.mxu0 }
  0xc9   : > { %v1061_v63 = vpop.f32.mrf.mxu3  ;;  %v743_v55 = vpop.f32.mrf.mxu1 }
  0xca   : > { %v744_v56 = vadd.f32 %v743_v55, %v565_v54 }
  0xcb   : > { %1177 = vmatmul.bf16.gmra.mxu0 %v10438_v15 }
  0xcc   : > { %1307 = vmatmul.bf16.gmra.mxu1 %v10463_v43 }
  0xcd   : > { %1443 = vmatmul.bf16.gmra.mxu2 %v10466_v44  ;;  %v9913_v44 = vld [vmem:[%s13941_s1 + $0x210] sm:$0xff] }
  0xce   : > { %1558 = vmatmul.bf16.gmra.mxu3 %v10457_v32  ;;  %1677 = vmatpush.bf16.msra.mxu0 %v9913_v44 }
  0xd0   : > { %v927_v57 = vpop.f32.mrf.mxu2  ;;  %v567_v0 = vpop.f32.mrf.mxu0 }
  0xd1   : > { %v1063_v58 = vpop.f32.mrf.mxu3  ;;  %v953_v59 = vadd.f32 %v927_v57, %v744_v56  ;;  %v745_v1 = vpop.f32.mrf.mxu1 }
  0xd3   : > { %v10654_v4 = vadd.f32 %v1063_v58, %v953_v59 }
  0xd8   : > { %v929_v6 = vpop.f32.mrf.mxu2  ;;  %v569_v7 = vpop.f32.mrf.mxu0 }
  0xd9   : > { %v1065_v15 = vpop.f32.mrf.mxu3  ;;  %v747_v8 = vpop.f32.mrf.mxu1 }
  0xda   : > { %v748_v9 = vadd.f32 %v747_v8, %v569_v7 }
  0xdb   : > { %1181 = vmatmul.bf16.gmra.mxu0 %v10457_v32 }
  0xdc   : > { %1311 = vmatmul.bf16.gmra.mxu1 %v10482_v60 }
  0xdd   : > { %1447 = vmatmul.bf16.gmra.mxu2 %v10485_v61  ;;  %v9912_v61 = vld [vmem:[%s13941_s1 + $0x208] sm:$0xff] }
  0xde   : > { %1562 = vmatmul.bf16.gmra.mxu3 %v10476_v47  ;;  %1678 = vmatpush.bf16.msra.mxu0 %v9912_v61 }
  0xe0   : > { %v931_v10 = vpop.f32.mrf.mxu2  ;;  %v571_v17 = vpop.f32.mrf.mxu0 }
  0xe1   : > { %v1067_v14 = vpop.f32.mrf.mxu3  ;;  %v954_v16 = vadd.f32 %v931_v10, %v748_v9  ;;  %v749_v19 = vpop.f32.mrf.mxu1 }
  0xe2   : > { %1679 = vmatpush.bf16.msra.mxu0 %v9911_v42  ;;  %v9931_v42 = vld [vmem:[%s13943_s3 + $0x60] sm:$0xff] }
  0xe3   : > { %v10663_v21 = vadd.f32 %v1067_v14, %v954_v16 }
  0xe8   : > { %v933_v22 = vpop.f32.mrf.mxu2  ;;  %v573_v23 = vpop.f32.mrf.mxu0 }
  0xe9   : > { %v1069_v32 = vpop.f32.mrf.mxu3  ;;  %v751_v24 = vpop.f32.mrf.mxu1 }
  0xea   : > { %v752_v25 = vadd.f32 %v751_v24, %v573_v23 }
  0xeb   : > { %1185 = vmatmul.bf16.gmra.mxu0 %v10476_v47 }
  0xec   : > { %1315 = vmatmul.bf16.gmra.mxu1 %v10538_v30 }
  0xed   : > { %1451 = vmatmul.bf16.gmra.mxu2 %v10542_v33  ;;  %v1095_v33 = vpack.c.bf16 0.0, %v10532_v26 }
  0xee   : > { %1566 = vmatmul.bf16.gmra.mxu3 %v10504_v5 }
  0xef   : > { %v1229_v63 = vshll.u32 %v1095_v33, 16  ;;  %v1233_v7 = vshrl.u32 %v1095_v33, 16 }
  0xf0   : > { %v935_v29 = vpop.f32.mrf.mxu2  ;;  %v575_v36 = vpop.f32.mrf.mxu0 }
  0xf1   : > { %v1071_v34 = vpop.f32.mrf.mxu3  ;;  %v955_v35 = vadd.f32 %v935_v29, %v752_v25  ;;  %v753_v38 = vpop.f32.mrf.mxu1  ;;  %v1231_v54 = vrot.slane %v1229_v63, 1  ;;  %v9932_v25 = vld [vmem:[%s13943_s3 + $0x68] sm:$0xff] }
  0xf3   : > { %v10672_v31 = vadd.f32 %v1071_v34, %v955_v35  ;;  %v10689_v57 = vsel %vm785_vm1, %v10613_v13, %v1231_v54  ;;  %v9933_v13 = vld [vmem:[%s13943_s3 + $0x70] sm:$0xff]  ;;  %v1235_v9 = vor.u32 %v1233_v7, %v1231_v54 }
  0xf8   : > { %v937_v40 = vpop.f32.mrf.mxu2  ;;  %v577_v11 = vpop.f32.mrf.mxu0 }
  0xf9   : > { %v1073_v47 = vpop.f32.mrf.mxu3  ;;  %v755_v41 = vpop.f32.mrf.mxu1 }
  0xfa   : > { %v756_v12 = vadd.f32 %v755_v41, %v577_v11 }
  0xfb   : > { %1189 = vmatmul.bf16.gmra.mxu0 %v10504_v5 }
  0xfc   : > { %1319 = vmatmul.bf16.gmra.mxu1 %v10591_v2 }
  0xfd   : > { %1455 = vmatmul.bf16.gmra.mxu2 %v10595_v3  ;;  %v9934_v3 = vld [vmem:[%s13943_s3 + $0x78] sm:$0xff] }
  0xfe   : > { %1570 = vmatmul.bf16.gmra.mxu3 %v10562_v39  ;;  %1877 = vmatpush.bf16.msra.mxu1 %v9934_v3 }
 0x100   : > { %v939_v45 = vpop.f32.mrf.mxu2  ;;  %v579_v50 = vpop.f32.mrf.mxu0 }
 0x101   : > { %v1075_v46 = vpop.f32.mrf.mxu3  ;;  %v956_v49 = vadd.f32 %v939_v45, %v756_v12  ;;  %v757_v53 = vpop.f32.mrf.mxu1 }
 0x102   : > { %1878 = vmatpush.bf16.msra.mxu1 %v9933_v13 }
 0x103   : > { %v10682_v5 = vadd.f32 %v1075_v46, %v956_v49 }
 0x106   : > { %1879 = vmatpush.bf16.msra.mxu1 %v9932_v25 }
 0x108   : > { %v941_v26 = vpop.f32.mrf.mxu2  ;;  %v581_v56 = vpop.f32.mrf.mxu0 }
 0x109   : > { %v1077_v55 = vpop.f32.mrf.mxu3  ;;  %v759_v28 = vpop.f32.mrf.mxu1 }
 0x10a   : > { %v760_v58 = vadd.f32 %v759_v28, %v581_v56  ;;  %1880 = vmatpush.bf16.msra.mxu1 %v9931_v42  ;;  %v9930_v56 = vld [vmem:[%s13943_s3 + $0x58] sm:$0xff]  ;;  %v9927_v42 = vld [vmem:[%s13943_s3 + $0x40] sm:$0xff] }
 0x10b   : > { %1193 = vmatmul.bf16.gmra.mxu0 %v10562_v39 }
 0x10c   : > { %1323 = vmatmul.bf16.gmra.mxu1 %v10689_v57 }
 0x10d   : > { %1459 = vmatmul.bf16.gmra.mxu2 %v10622_v18  ;;  %v10701_v18 = vsel %vm785_vm1, %v1235_v9, %v10400_v52 }
 0x10e   : > { %1574 = vmatmul.bf16.gmra.mxu3 %v1095_v33  ;;  %1881 = vmatpush.bf16.msra.mxu1 %v9930_v56 }
 0x110   : > { %v943_v59 = vpop.f32.mrf.mxu2  ;;  %v583_v6 = vpop.f32.mrf.mxu0 }
 0x111   : > { %v1079_v0 = vpop.f32.mrf.mxu3  ;;  %v957_v1 = vadd.f32 %v943_v59, %v760_v58  ;;  %v761_v15 = vpop.f32.mrf.mxu1 }
 0x113   : > { %v10694_v8 = vadd.f32 %v1079_v0, %v957_v1 }
 0x118   : > { %v945_v39 = vpop.f32.mrf.mxu2  ;;  %v585_v10 = vpop.f32.mrf.mxu0 }
 0x119   : > { %v1081_v44 = vpop.f32.mrf.mxu3  ;;  %v763_v14 = vpop.f32.mrf.mxu1  ;;  %v9929_v39 = vld [vmem:[%s13943_s3 + $0x50] sm:$0xff] }
 0x11a   : > { %v764_v16 = vadd.f32 %v763_v14, %v585_v10  ;;  %1882 = vmatpush.bf16.msra.mxu1 %v9929_v39 }
 0x11b   : > { %1197 = vmatmul.bf16.gmra.mxu0 %v1095_v33 }
 0x11c   : > { %1327 = vmatmul.bf16.gmra.mxu1 %v10701_v18 }
 0x11d   : > { %1463 = vmatmul.bf16.gmra.mxu2 %v10392_v48 }
 0x11e   : > { %1578 = vmatmul.bf16.gmra.mxu3 %v10212_v62 }
 0x120   : > { %v947_v17 = vpop.f32.mrf.mxu2  ;;  %v587_v32 = vpop.f32.mrf.mxu0 }
 0x121   : > { %v1083_v19 = vpop.f32.mrf.mxu3  ;;  %v958_v22 = vadd.f32 %v947_v17, %v764_v16  ;;  %v765_v23 = vpop.f32.mrf.mxu1 }
 0x123   : > { %v10706_v24 = vadd.f32 %v1083_v19, %v958_v22 }
 0x128   : > { %v949_v61 = vpop.f32.mrf.mxu2  ;;  %v1170_v34 = vpop.f32.mrf.mxu0 }
 0x129   : > { %v1085_v29 = vpop.f32.mrf.mxu3  ;;  %v1300_v35 = vpop.f32.mrf.mxu1  ;;  %v1202_v36 = vadd.f32 %v1170_v34, %v10636_v37  ;;  %v9928_v61 = vld [vmem:[%s13943_s3 + $0x48] sm:$0xff] }
 0x12a   : > { %1883 = vmatpush.bf16.msra.mxu1 %v9928_v61  ;;  %v9948_v61 = vld [vmem:[%s13943_s3 + $0xe8] sm:$0xff] }
 0x12b   : > { %v1332_v38 = vadd.f32 %v1300_v35, %v1202_v36  ;;  %1680 = vmatmul.bf16.vlgmr.msra.gmra.mxu0 %v10444_v27 }
 0x12e   : > { %1884 = vmatpush.bf16.msra.mxu1 %v9927_v42  ;;  %v9945_v42 = vld [vmem:[%s13943_s3 + $0xd0] sm:$0xff] }
 0x130   : > { %v1436_v40 = vpop.f32.mrf.mxu2  ;;  %v1172_v41 = vpop.f32.mrf.mxu0 }
 0x131   : > { %v1551_v47 = vpop.f32.mrf.mxu3  ;;  %v1468_v11 = vadd.f32 %v1436_v40, %v1332_v38  ;;  %v1302_v12 = vpop.f32.mrf.mxu1  ;;  %1885 = vmatmul.bf16.vlgmr.msra.gmra.mxu1 %v10212_v62 }
 0x133   : > { %v10713_v33 = vadd.f32 %v1551_v47, %v1468_v11 }
 0x138   : > { %v1438_v45 = vpop.f32.mrf.mxu2  ;;  %v1174_v49 = vpop.f32.mrf.mxu0 }
 0x139   : > { %v1553_v46 = vpop.f32.mrf.mxu3  ;;  %v1304_v50 = vpop.f32.mrf.mxu1  ;;  %v1203_v37 = vadd.f32 %v1174_v49, %v10645_v51 }
 0x13b   : > { %v1333_v53 = vadd.f32 %v1304_v50, %v1203_v37  ;;  %1684 = vmatmul.bf16.gmra.mxu0 %v10463_v43  ;;  %v9942_v50 = vld [vmem:[%s13943_s3 + $0xb8] sm:$0xff] }
 0x13c   : > { %2237 = vmatpush.bf16.msra.mxu3 %v9942_v50  ;;  %v9944_v50 = vld [vmem:[%s13943_s3 + $0xc8] sm:$0xff] }
 0x140   : > { %v1440_v27 = vpop.f32.mrf.mxu2  ;;  %v1176_v54 = vpop.f32.mrf.mxu0 }
 0x141   : > { %v1555_v63 = vpop.f32.mrf.mxu3  ;;  %v1469_v3 = vadd.f32 %v1440_v27, %v1333_v53  ;;  %v1306_v26 = vpop.f32.mrf.mxu1  ;;  %v9941_v27 = vld [vmem:[%s13943_s3 + $0xb0] sm:$0xff] }
 0x142   : > { %2238 = vmatpush.bf16.msra.mxu3 %v9941_v27  ;;  %v10843_v27 = vld [vmem:[%s13942_s2] ss:$0 sm:$0xff] }
 0x143   : > { %v10720_v55 = vadd.f32 %v1555_v63, %v1469_v3  ;;  %v9925_v63 = vld [vmem:[%s13943_s3 + $0x30] sm:$0xff] }
 0x148   : > { %v1442_v28 = vpop.f32.mrf.mxu2  ;;  %v1178_v59 = vpop.f32.mrf.mxu0 }
 0x149   : > { %v1557_v58 = vpop.f32.mrf.mxu3  ;;  %v1308_v0 = vpop.f32.mrf.mxu1  ;;  %v1204_v51 = vadd.f32 %v1178_v59, %v10654_v4  ;;  %v9924_v59 = vld [vmem:[%s13943_s3 + $0x28] sm:$0xff] }
 0x14a   : > { %v9950_v58 = vld [vmem:[%s13943_s3 + $0xf8] sm:$0xff] }
 0x14b   : > { %v1334_v1 = vadd.f32 %v1308_v0, %v1204_v51  ;;  %1688 = vmatmul.bf16.gmra.mxu0 %v10482_v60  ;;  %v9958_v0 = vld [vmem:[%s13943_s3 + $0x138] sm:$0xff]  ;;  %v9939_v51 = vld [vmem:[%s13943_s3 + $0xa0] sm:$0xff] }
 0x14c   : > { %2373 = vmatpush.bf16.msrb.mxu0 %v9950_v58  ;;  %2488 = vmatpush.bf16.msrb.mxu1 %v9958_v0 }
 0x150   : > { %v1444_v43 = vpop.f32.mrf.mxu2  ;;  %v1180_v7 = vpop.f32.mrf.mxu0 }
 0x151   : > { %v1559_v6 = vpop.f32.mrf.mxu3  ;;  %v1470_v15 = vadd.f32 %v1444_v43, %v1334_v1  ;;  %v1310_v13 = vpop.f32.mrf.mxu1  ;;  %v9923_v1 = vld [vmem:[%s13943_s3 + $0x20] sm:$0xff] }
 0x152   : > { %v9938_v13 = vld [vmem:[%s13943_s3 + $0x98] sm:$0xff] }
 0x153   : > { %v10727_v9 = vadd.f32 %v1559_v6, %v1470_v15 }
 0x158   : > { %v1446_v44 = vpop.f32.mrf.mxu2  ;;  %v1182_v14 = vpop.f32.mrf.mxu0 }
 0x159   : > { %v1561_v10 = vpop.f32.mrf.mxu3  ;;  %v1312_v16 = vpop.f32.mrf.mxu1  ;;  %v1205_v4 = vadd.f32 %v1182_v14, %v10663_v21  ;;  %v9922_v44 = vld [vmem:[%s13943_s3 + $0x18] sm:$0xff]  ;;  %v9937_v14 = vld [vmem:[%s13943_s3 + $0x90] sm:$0xff] }
 0x15b   : > { %v1335_v17 = vadd.f32 %v1312_v16, %v1205_v4  ;;  %1692 = vmatmul.bf16.gmra.mxu0 %v10538_v30  ;;  %v9921_v16 = vld [vmem:[%s13943_s3 + $0x10] sm:$0xff] }
 0x160   : > { %v1448_v60 = vpop.f32.mrf.mxu2  ;;  %v1184_v32 = vpop.f32.mrf.mxu0 }
 0x161   : > { %v1563_v19 = vpop.f32.mrf.mxu3  ;;  %v1471_v22 = vadd.f32 %v1448_v60, %v1335_v17  ;;  %v1314_v23 = vpop.f32.mrf.mxu1 }
 0x162   : > { %v9920_v23 = vld [vmem:[%s13943_s3 + $0x8] sm:$0xff] }
 0x163   : > { %v10734_v25 = vadd.f32 %v1563_v19, %v1471_v22 }
 0x168   : > { %v1450_v29 = vpop.f32.mrf.mxu2  ;;  %v1186_v35 = vpop.f32.mrf.mxu0 }
 0x169   : > { %v1565_v34 = vpop.f32.mrf.mxu3  ;;  %v1316_v36 = vpop.f32.mrf.mxu1  ;;  %v1206_v21 = vadd.f32 %v1186_v35, %v10672_v31  ;;  %v9926_v31 = vld [vmem:[%s13943_s3 + $0x38] sm:$0xff]  ;;  %v9935_v29 = vld [vmem:[%s13943_s3 + $0x80] sm:$0xff] }
 0x16a   : > { %2054 = vmatpush.bf16.msra.mxu2 %v9926_v31  ;;  %v9957_v34 = vld [vmem:[%s13943_s3 + $0x130] sm:$0xff]  ;;  %v9919_v35 = vld [vmem:[%s13943_s3] sm:$0xff] }
 0x16b   : > { %v1336_v38 = vadd.f32 %v1316_v36, %v1206_v21  ;;  %1696 = vmatmul.bf16.gmra.mxu0 %v10591_v2  ;;  %v9947_v36 = vld [vmem:[%s13943_s3 + $0xe0] sm:$0xff]  ;;  %2489 = vmatpush.bf16.msrb.mxu1 %v9957_v34  ;;  %v9954_v34 = vld [vmem:[%s13943_s3 + $0x118] sm:$0xff] }
 0x16e   : > { %2055 = vmatpush.bf16.msra.mxu2 %v9925_v63 }
 0x170   : > { %v1452_v30 = vpop.f32.mrf.mxu2  ;;  %v1188_v11 = vpop.f32.mrf.mxu0 }
 0x171   : > { %v1567_v40 = vpop.f32.mrf.mxu3  ;;  %v1472_v47 = vadd.f32 %v1452_v30, %v1336_v38  ;;  %v1318_v41 = vpop.f32.mrf.mxu1  ;;  %v9946_v11 = vld [vmem:[%s13943_s3 + $0xd8] sm:$0xff] }
 0x172   : > { %2056 = vmatpush.bf16.msra.mxu2 %v9924_v59 }
 0x173   : > { %v10741_v12 = vadd.f32 %v1567_v40, %v1472_v47 }
 0x176   : > { %2057 = vmatpush.bf16.msra.mxu2 %v9923_v1 }
 0x178   : > { %v1454_v45 = vpop.f32.mrf.mxu2  ;;  %v1190_v2 = vpop.f32.mrf.mxu0 }
 0x179   : > { %v1569_v46 = vpop.f32.mrf.mxu3  ;;  %v1320_v49 = vpop.f32.mrf.mxu1  ;;  %v1207_v37 = vadd.f32 %v1190_v2, %v10682_v5  ;;  %v9940_v5 = vld [vmem:[%s13943_s3 + $0xa8] sm:$0xff] }
 0x17a   : > { %2239 = vmatpush.bf16.msra.mxu3 %v9940_v5  ;;  %2058 = vmatpush.bf16.msra.mxu2 %v9922_v44  ;;  %v10186_v5 = vld [vmem:[%s10326_s29] sm:$0xff] }
 0x17b   : > { %v1337_v53 = vadd.f32 %v1320_v49, %v1207_v37  ;;  %1700 = vmatmul.bf16.gmra.mxu0 %v10689_v57  ;;  %v9956_v37 = vld [vmem:[%s13943_s3 + $0x128] sm:$0xff] }
 0x17c   : > { %2490 = vmatpush.bf16.msrb.mxu1 %v9956_v37 }
 0x17e   : > { %2240 = vmatpush.bf16.msra.mxu3 %v9939_v51  ;;  %2059 = vmatpush.bf16.msra.mxu2 %v9921_v16 }
 0x180   : > { %v1456_v3 = vpop.f32.mrf.mxu2  ;;  %v1192_v56 = vpop.f32.mrf.mxu0 }
 0x181   : > { %v1571_v54 = vpop.f32.mrf.mxu3  ;;  %v1473_v26 = vadd.f32 %v1456_v3, %v1337_v53  ;;  %v1322_v28 = vpop.f32.mrf.mxu1  ;;  %v9943_v53 = vld [vmem:[%s13943_s3 + $0xc0] sm:$0xff] }
 0x182   : > { %2241 = vmatpush.bf16.msra.mxu3 %v9938_v13  ;;  %2060 = vmatpush.bf16.msra.mxu2 %v9920_v23 }
 0x183   : > { %v10764_v57 = vadd.f32 %v1571_v54, %v1473_v26 }
 0x186   : > { %2242 = vmatpush.bf16.msra.mxu3 %v9937_v14  ;;  %2061 = vmatpush.bf16.msra.mxu2 %v9919_v35 }
 0x188   : > { %v1458_v43 = vpop.f32.mrf.mxu2  ;;  %v1194_v15 = vpop.f32.mrf.mxu0 }
 0x189   : > { %v1573_v6 = vpop.f32.mrf.mxu3  ;;  %v1324_v7 = vpop.f32.mrf.mxu1  ;;  %v1208_v39 = vadd.f32 %v1194_v15, %v10694_v8  ;;  %v9949_v8 = vld [vmem:[%s13943_s3 + $0xf0] sm:$0xff] }
 0x18a   : > { %2374 = vmatpush.bf16.msrb.mxu0 %v9949_v8 }
 0x18b   : > { %v1338_v10 = vadd.f32 %v1324_v7, %v1208_v39  ;;  %1704 = vmatmul.bf16.gmra.mxu0 %v10701_v18  ;;  %v9936_v18 = vld [vmem:[%s13943_s3 + $0x88] sm:$0xff] }
 0x18c   : > { %2243 = vmatpush.bf16.msra.mxu3 %v9936_v18 }
 0x18e   : > { %2375 = vmatpush.bf16.msrb.mxu0 %v9948_v61 }
 0x190   : > { %v1460_v4 = vpop.f32.mrf.mxu2  ;;  %v1196_v19 = vpop.f32.mrf.mxu0  ;;  %2244 = vmatpush.bf16.msra.mxu3 %v9935_v29 }
 0x191   : > { %v1575_v17 = vpop.f32.mrf.mxu3  ;;  %v1474_v60 = vadd.f32 %v1460_v4, %v1338_v10  ;;  %v1326_v22 = vpop.f32.mrf.mxu1 }
 0x192   : > { %2376 = vmatpush.bf16.msrb.mxu0 %v9947_v36 }
 0x193   : > { %v10801_v32 = vadd.f32 %v1575_v17, %v1474_v60  ;;  %v10187_v17 = vld [vmem:[%s10326_s29 + $0x8] sm:$0xff] }
 0x196   : > { %2377 = vmatpush.bf16.msrb.mxu0 %v9946_v11 }
 0x198   : > { %v1462_v21 = vpop.f32.mrf.mxu2  ;;  %v1198_v30 = vpop.f32.mrf.mxu0 }
 0x199   : > { %v1577_v38 = vpop.f32.mrf.mxu3  ;;  %v1328_v40 = vpop.f32.mrf.mxu1  ;;  %v1209_v47 = vadd.f32 %v1198_v30, %v10706_v24 }
 0x19a   : > { %2378 = vmatpush.bf16.msrb.mxu0 %v9945_v42 }
 0x19b   : > { %v1339_v41 = vadd.f32 %v1328_v40, %v1209_v47  ;;  %1708 = vmatmul.bf16.gmra.mxu0 %v10400_v52 }
 0x19e   : > { %2379 = vmatpush.bf16.msrb.mxu0 %v9944_v50 }
 0x1a0   : > { %v1464_v45 = vpop.f32.mrf.mxu2  ;;  %v1200_v2 = vpop.f32.mrf.mxu0 }
 0x1a1   : > { %v1579_v46 = vpop.f32.mrf.mxu3  ;;  %v1475_v31 = vadd.f32 %v1464_v45, %v1339_v41  ;;  %v1330_v49 = vpop.f32.mrf.mxu1 }
 0x1a2   : > { %2380 = vmatpush.bf16.msrb.mxu0 %v9943_v53 }
 0x1a3   : > { %v10829_v24 = vadd.f32 %v1579_v46, %v1475_v31  ;;  %v10188_v46 = vld [vmem:[%s10326_s29 + $0x10] sm:$0xff] }
 0x1a8   : > { %v1466_v3 = vpop.f32.mrf.mxu2  ;;  %v1681_v54 = vpop.f32.mrf.mxu0 }
 0x1a9   : > { %v1581_v63 = vpop.f32.mrf.mxu3  ;;  %v1713_v26 = vadd.f32 %v1681_v54, %v10713_v33  ;;  %v9955_v33 = vld [vmem:[%s13943_s3 + $0x120] sm:$0xff]  ;;  %v9953_v3 = vld [vmem:[%s13943_s3 + $0x110] sm:$0xff] }
 0x1aa   : > { %2491 = vmatpush.bf16.msrb.mxu1 %v9955_v33  ;;  %v10189_v33 = vld [vmem:[%s10326_s29 + $0x18] sm:$0xff] }
 0x1ab   : > { %v1725_v56 = vadd.f32 %v10843_v27, %v1713_v26 }
 0x1ad   : > { %v1733_v28 = vmax.f32 %v1725_v56, 0.0 }
 0x1ae   : > { %2492 = vmatpush.bf16.msrb.mxu1 %v9954_v34 }
 0x1af   : > { %v1741_v58 = vadd.f32 %v10186_v5, %v1733_v28 }
 0x1b0   : > { %v1683_v59 = vpop.f32.mrf.mxu0 }
 0x1b1   : > { %v1780_v0 = vpack.c.bf16 %v1741_v58, %v10210_v20  ;;  %v10849_v51 = vpack.c.bf16 0.0, %v1741_v58 }
 0x1b2   : > { %2493 = vmatpush.bf16.msrb.mxu1 %v9953_v3 }
 0x1b3   : > { %v1927_v1 = vshrl.u32 %v1780_v0, 16  ;;  %v1930_v43 = vshll.u32 %v1780_v0, 16  ;;  %1889 = vmatmul.bf16.gmra.mxu1 %v10849_v51  ;;  %v2121_v6 = vshll.u32 %v10849_v51, 16  ;;  %v2125_v23 = vshrl.u32 %v10849_v51, 16 }
 0x1b5   : > { %v1929_v15 = vrot.slane %v1927_v1, 3  ;;  %v1932_v7 = vrot.slane %v1930_v43, 4  ;;  %v2123_v13 = vrot.slane %v2121_v6, 1 }
 0x1b7   : > { %v2124_v39 = vsel %vm785_vm1, %v10400_v52, %v2123_v13  ;;  %v1933_v44 = vor.u32 %v1932_v7, %v1929_v15  ;;  %v2127_v35 = vor.u32 %v2125_v23, %v2123_v13 }
 0x1b8   : > { %v1685_v10 = vpop.f32.mrf.mxu0  ;;  %2245 = vmatmul.bf16.vlgmr.msra.gmra.mxu3 %v2124_v39 }
 0x1b9   : > { %v1714_v14 = vadd.f32 %v1685_v10, %v10720_v55  ;;  %v1934_v16 = vsel %vm589_vm0, %v10392_v48, %v1933_v44 }
 0x1ba   : > { %2062 = vmatmul.bf16.vlgmr.msra.gmra.mxu2 %v1934_v16  ;;  %v9952_v16 = vld [vmem:[%s13943_s3 + $0x108] sm:$0xff] }
 0x1bb   : > { %v1726_v8 = vadd.f32 %v10843_v27, %v1714_v14  ;;  %2494 = vmatpush.bf16.msrb.mxu1 %v9952_v16 }
 0x1bd   : > { %v1734_v4 = vmax.f32 %v1726_v8, 0.0 }
 0x1bf   : > { %v1742_v60 = vadd.f32 %v10187_v17, %v1734_v4 }
 0x1c0   : > { %v1687_v19 = vpop.f32.mrf.mxu0 }
 0x1c1   : > { %v1781_v22 = vpack.c.bf16 %v1742_v60, %v10210_v20  ;;  %v10864_v18 = vpack.c.bf16 0.0, %v1742_v60 }
 0x1c3   : > { %1893 = vmatmul.bf16.gmra.mxu1 %v10864_v18  ;;  %v2129_v55 = vshll.u32 %v10864_v18, 16  ;;  %v1936_v61 = vshrl.u32 %v1781_v22, 16  ;;  %v1939_v29 = vshll.u32 %v1781_v22, 16  ;;  %v2133_v37 = vshrl.u32 %v10864_v18, 16 }
 0x1c5   : > { %v2131_v36 = vrot.slane %v2129_v55, 1  ;;  %v1938_v21 = vrot.slane %v1936_v61, 3  ;;  %v1941_v38 = vrot.slane %v1939_v29, 4 }
 0x1c7   : > { %v10873_v30 = vsel %vm785_vm1, %v2127_v35, %v2131_v36  ;;  %v1942_v40 = vor.u32 %v1941_v38, %v1938_v21  ;;  %v2135_v54 = vor.u32 %v2133_v37, %v2131_v36  ;;  %v10190_v35 = vld [vmem:[%s10326_s29 + $0x20] sm:$0xff] }
 0x1c8   : > { %v1689_v47 = vpop.f32.mrf.mxu0  ;;  %2249 = vmatmul.bf16.gmra.mxu3 %v10873_v30 }
 0x1c9   : > { %v1715_v11 = vadd.f32 %v1689_v47, %v10727_v9  ;;  %v1943_v41 = vsel %vm589_vm0, %v1933_v44, %v1942_v40 }
 0x1ca   : > { %2066 = vmatmul.bf16.gmra.mxu2 %v1943_v41  ;;  %2381 = vmatmul.bf16.vlgmr.msrb.gmra.mxu0 %v1943_v41 }
 0x1cb   : > { %v1727_v42 = vadd.f32 %v10843_v27, %v1715_v11 }
 0x1cd   : > { %v1735_v45 = vmax.f32 %v1727_v42, 0.0  ;;  %v9951_v42 = vld [vmem:[%s13943_s3 + $0x100] sm:$0xff] }
 0x1ce   : > { %2495 = vmatpush.bf16.msrb.mxu1 %v9951_v42 }
 0x1cf   : > { %v1743_v31 = vadd.f32 %v10188_v46, %v1735_v45  ;;  %v9966_v45 = vld [vmem:[%s13943_s3 + $0x178] sm:$0xff] }
 0x1d0   : > { %v1691_v2 = vpop.f32.mrf.mxu0  ;;  %2618 = vmatpush.bf16.msrb.mxu2 %v9966_v45  ;;  %v10192_v45 = vld [vmem:[%s10326_s29 + $0x30] sm:$0xff] }
 0x1d1   : > { %v1782_v49 = vpack.c.bf16 %v1743_v31, %v10210_v20  ;;  %v10881_v50 = vpack.c.bf16 0.0, %v1743_v31 }
 0x1d3   : > { %1897 = vmatmul.bf16.gmra.mxu1 %v10881_v50  ;;  %v2137_v9 = vshll.u32 %v10881_v50, 16  ;;  %v1945_v53 = vshrl.u32 %v1782_v49, 16  ;;  %v1948_v63 = vshll.u32 %v1782_v49, 16 }
 0x1d5   : > { %v2139_v26 = vrot.slane %v2137_v9, 1  ;;  %v1947_v56 = vrot.slane %v1945_v53, 3  ;;  %v1950_v28 = vrot.slane %v1948_v63, 4  ;;  %v9974_v63 = vld [vmem:[%s13943_s3 + $0x1b8] sm:$0xff] }
 0x1d6   : > { %2754 = vmatpush.bf16.msrb.mxu3 %v9974_v63  ;;  %v9980_v63 = vld [vmem:[%s13943_s3 + $0x1e8] sm:$0xff] }
 0x1d7   : > { %v10890_v5 = vsel %vm785_vm1, %v2135_v54, %v2139_v26  ;;  %v1951_v58 = vor.u32 %v1950_v28, %v1947_v56  ;;  %v9973_v28 = vld [vmem:[%s13943_s3 + $0x1b0] sm:$0xff] }
 0x1d8   : > { %v1693_v59 = vpop.f32.mrf.mxu0  ;;  %2253 = vmatmul.bf16.gmra.mxu3 %v10890_v5 }
 0x1d9   : > { %v1716_v0 = vadd.f32 %v1693_v59, %v10734_v25  ;;  %v10895_v1 = vsel %vm589_vm0, %v1942_v40, %v1951_v58  ;;  %v2141_v25 = vshrl.u32 %v10881_v50, 16  ;;  %v10191_v59 = vld [vmem:[%s10326_s29 + $0x28] sm:$0xff] }
 0x1da   : > { %2070 = vmatmul.bf16.gmra.mxu2 %v10895_v1  ;;  %2385 = vmatmul.bf16.gmra.mxu0 %v10895_v1 }
 0x1db   : > { %v1728_v43 = vadd.f32 %v10843_v27, %v1716_v0  ;;  %v2143_v8 = vor.u32 %v2141_v25, %v2139_v26  ;;  %v10945_v26 = vpop.f32.mrf.mxu1  ;;  %2755 = vmatpush.bf16.msrb.mxu3 %v9973_v28  ;;  %v9964_v25 = vld [vmem:[%s13943_s3 + $0x168] sm:$0xff] }
 0x1dd   : > { %v1736_v6 = vmax.f32 %v1728_v43, 0.0 }
 0x1df   : > { %v1744_v15 = vadd.f32 %v10189_v33, %v1736_v6  ;;  %v9972_v6 = vld [vmem:[%s13943_s3 + $0x1a8] sm:$0xff] }
 0x1e0   : > { %v1695_v7 = vpop.f32.mrf.mxu0  ;;  %2756 = vmatpush.bf16.msrb.mxu3 %v9972_v6 }
 0x1e1   : > { %v1783_v13 = vpack.c.bf16 %v1744_v15, %v10210_v20  ;;  %v10902_v39 = vpack.c.bf16 0.0, %v1744_v15 }
 0x1e3   : > { %1901 = vmatmul.bf16.gmra.mxu1 %v10902_v39  ;;  %v2145_v44 = vshll.u32 %v10902_v39, 16  ;;  %v1954_v10 = vshrl.u32 %v1783_v13, 16  ;;  %v1957_v14 = vshll.u32 %v1783_v13, 16  ;;  %v1888_v7 = vpop.f32.mrf.mxu1  ;;  %v9982_v13 = vld [vmem:[%s13943_s3 + $0x1f8] sm:$0xff] }
 0x1e4   : > { %2869 = vmatpush.bf16.msra.mxu0 %v9982_v13  ;;  %v9979_v13 = vld [vmem:[%s13943_s3 + $0x1e0] sm:$0xff] }
 0x1e5   : > { %v2147_v4 = vrot.slane %v2145_v44, 1  ;;  %v1956_v17 = vrot.slane %v1954_v10, 3  ;;  %v1959_v60 = vrot.slane %v1957_v14, 4 }
 0x1e7   : > { %v10911_v19 = vsel %vm785_vm1, %v2143_v8, %v2147_v4  ;;  %v1960_v22 = vor.u32 %v1959_v60, %v1956_v17  ;;  %v9990_v8 = vld [vmem:[%s13943_s3 + $0x238] sm:$0xff]  ;;  %v9963_v17 = vld [vmem:[%s13943_s3 + $0x160] sm:$0xff] }
 0x1e8   : > { %v1697_v23 = vpop.f32.mrf.mxu0  ;;  %2257 = vmatmul.bf16.gmra.mxu3 %v10911_v19  ;;  %2999 = vmatpush.bf16.msra.mxu1 %v9990_v8  ;;  %v9978_v8 = vld [vmem:[%s13943_s3 + $0x1d8] sm:$0xff] }
 0x1e9   : > { %v1717_v55 = vadd.f32 %v1697_v23, %v10741_v12  ;;  %v10916_v61 = vsel %vm589_vm0, %v1951_v58, %v1960_v22  ;;  %v2149_v12 = vshrl.u32 %v10902_v39, 16 }
 0x1ea   : > { %2074 = vmatmul.bf16.gmra.mxu2 %v10916_v61  ;;  %2389 = vmatmul.bf16.gmra.mxu0 %v10916_v61 }
 0x1eb   : > { %v1729_v29 = vadd.f32 %v10843_v27, %v1717_v55  ;;  %v2151_v46 = vor.u32 %v2149_v12, %v2147_v4  ;;  %v9971_v4 = vld [vmem:[%s13943_s3 + $0x1a0] sm:$0xff]  ;;  %v9962_v12 = vld [vmem:[%s13943_s3 + $0x158] sm:$0xff] }
 0x1ec   : > { %2757 = vmatpush.bf16.msrb.mxu3 %v9971_v4 }
 0x1ed   : > { %v1737_v34 = vmax.f32 %v1729_v29, 0.0 }
 0x1ef   : > { %v1745_v36 = vadd.f32 %v10190_v35, %v1737_v34 }
 0x1f0   : > { %v1699_v21 = vpop.f32.mrf.mxu0 }
 0x1f1   : > { %v1784_v38 = vpack.c.bf16 %v1745_v36, %v10210_v20  ;;  %v10923_v40 = vpack.c.bf16 0.0, %v1745_v36  ;;  %v9970_v36 = vld [vmem:[%s13943_s3 + $0x198] sm:$0xff] }
 0x1f2   : > { %2758 = vmatpush.bf16.msrb.mxu3 %v9970_v36 }
 0x1f3   : > { %1905 = vmatmul.bf16.gmra.mxu1 %v10923_v40  ;;  %v2153_v47 = vshll.u32 %v10923_v40, 16  ;;  %v1963_v11 = vshrl.u32 %v1784_v38, 16  ;;  %v1966_v41 = vshll.u32 %v1784_v38, 16  ;;  %v2157_v44 = vshrl.u32 %v10923_v40, 16 }
 0x1f5   : > { %v2155_v31 = vrot.slane %v2153_v47, 1  ;;  %v1965_v2 = vrot.slane %v1963_v11, 3  ;;  %v1968_v49 = vrot.slane %v1966_v41, 4  ;;  %v9969_v11 = vld [vmem:[%s13943_s3 + $0x190] sm:$0xff] }
 0x1f6   : > { %v9961_v41 = vld [vmem:[%s13943_s3 + $0x150] sm:$0xff]  ;;  %2759 = vmatpush.bf16.msrb.mxu3 %v9969_v11  ;;  %v9988_v11 = vld [vmem:[%s13943_s3 + $0x228] sm:$0xff] }
 0x1f7   : > { %v10935_v37 = vsel %vm785_vm1, %v2151_v46, %v2155_v31  ;;  %v1969_v9 = vor.u32 %v1968_v49, %v1965_v2  ;;  %v2159_v60 = vor.u32 %v2157_v44, %v2155_v31  ;;  %v9968_v2 = vld [vmem:[%s13943_s3 + $0x188] sm:$0xff] }
 0x1f8   : > { %v1701_v53 = vpop.f32.mrf.mxu0  ;;  %2261 = vmatmul.bf16.gmra.mxu3 %v10935_v37 }
 0x1f9   : > { %v1718_v3 = vadd.f32 %v1701_v53, %v10764_v57  ;;  %v10943_v54 = vsel %vm589_vm0, %v1960_v22, %v1969_v9  ;;  %v9965_v57 = vld [vmem:[%s13943_s3 + $0x170] sm:$0xff]  ;;  %v9960_v53 = vld [vmem:[%s13943_s3 + $0x148] sm:$0xff] }
 0x1fa   : > { %2078 = vmatmul.bf16.gmra.mxu2 %v10943_v54  ;;  %2393 = vmatmul.bf16.gmra.mxu0 %v10943_v54 }
 0x1fb   : > { %v1730_v56 = vadd.f32 %v10843_v27, %v1718_v3  ;;  %2619 = vmatpush.bf16.msrb.mxu2 %v9965_v57  ;;  %2760 = vmatpush.bf16.msrb.mxu3 %v9968_v2  ;;  %v9989_v57 = vld [vmem:[%s13943_s3 + $0x230] sm:$0xff] }
 0x1fc   : > { %3000 = vmatpush.bf16.msra.mxu1 %v9989_v57 }
 0x1fd   : > { %v1738_v58 = vmax.f32 %v1730_v56, 0.0 }
 0x1ff   : > { %v1746_v0 = vadd.f32 %v10191_v59, %v1738_v58  ;;  %2620 = vmatpush.bf16.msrb.mxu2 %v9964_v25  ;;  %v9967_v59 = vld [vmem:[%s13943_s3 + $0x180] sm:$0xff] }
 0x200   : > { %v1703_v43 = vpop.f32.mrf.mxu0  ;;  %2761 = vmatpush.bf16.msrb.mxu3 %v9967_v59  ;;  %3001 = vmatpush.bf16.msra.mxu1 %v9988_v11 }
 0x201   : > { %v1785_v33 = vpack.c.bf16 %v1746_v0, %v10210_v20  ;;  %v10961_v15 = vpack.c.bf16 0.0, %v1746_v0  ;;  %v9959_v0 = vld [vmem:[%s13943_s3 + $0x140] sm:$0xff] }
 0x203   : > { %1909 = vmatmul.bf16.gmra.mxu1 %v10961_v15  ;;  %v2161_v10 = vshll.u32 %v10961_v15, 16  ;;  %v1972_v14 = vshrl.u32 %v1785_v33, 16  ;;  %v1975_v16 = vshll.u32 %v1785_v33, 16  ;;  %2621 = vmatpush.bf16.msrb.mxu2 %v9963_v17  ;;  %v2165_v3 = vshrl.u32 %v10961_v15, 16 }
 0x205   : > { %v2163_v22 = vrot.slane %v2161_v10, 1  ;;  %v1974_v23 = vrot.slane %v1972_v14, 3  ;;  %v1977_v55 = vrot.slane %v1975_v16, 4 }
 0x207   : > { %v10982_v29 = vsel %vm785_vm1, %v2159_v60, %v2163_v22  ;;  %v1978_v34 = vor.u32 %v1977_v55, %v1974_v23  ;;  %2622 = vmatpush.bf16.msrb.mxu2 %v9962_v12  ;;  %v2167_v43 = vor.u32 %v2165_v3, %v2163_v22  ;;  %v10193_v60 = vld [vmem:[%s10326_s29 + $0x38] sm:$0xff] }
 0x208   : > { %v1705_v35 = vpop.f32.mrf.mxu0  ;;  %2265 = vmatmul.bf16.gmra.mxu3 %v10982_v29 }
 0x209   : > { %v1719_v21 = vadd.f32 %v1705_v35, %v10801_v32  ;;  %v10990_v38 = vsel %vm589_vm0, %v1969_v9, %v1978_v34  ;;  %v9981_v32 = vld [vmem:[%s13943_s3 + $0x1f0] sm:$0xff] }
 0x20a   : > { %2082 = vmatmul.bf16.gmra.mxu2 %v10990_v38  ;;  %2397 = vmatmul.bf16.gmra.mxu0 %v10990_v38 }
 0x20b   : > { %v1731_v47 = vadd.f32 %v10843_v27, %v1719_v21  ;;  %2870 = vmatpush.bf16.msra.mxu0 %v9981_v32  ;;  %2623 = vmatpush.bf16.msrb.mxu2 %v9961_v41 }
 0x20d   : > { %v1739_v42 = vmax.f32 %v1731_v47, 0.0 }
 0x20f   : > { %v1747_v46 = vadd.f32 %v10192_v45, %v1739_v42  ;;  %2624 = vmatpush.bf16.msrb.mxu2 %v9960_v53  ;;  %2871 = vmatpush.bf16.msra.mxu0 %v9980_v63 }
 0x210   : > { %v1707_v31 = vpop.f32.mrf.mxu0 }
 0x211   : > { %v1786_v49 = vpack.c.bf16 %v1747_v46, %v10210_v20  ;;  %v11012_v9 = vpack.c.bf16 0.0, %v1747_v46 }
 0x213   : > { %1913 = vmatmul.bf16.gmra.mxu1 %v11012_v9  ;;  %v2169_v56 = vshll.u32 %v11012_v9, 16  ;;  %v1981_v28 = vshrl.u32 %v1786_v49, 16  ;;  %v1984_v58 = vshll.u32 %v1786_v49, 16  ;;  %2625 = vmatpush.bf16.msrb.mxu2 %v9959_v0  ;;  %v2173_v36 = vshrl.u32 %v11012_v9, 16 }
 0x214   : > { %2872 = vmatpush.bf16.msra.mxu0 %v9979_v13 }
 0x215   : > { %v2171_v6 = vrot.slane %v2169_v56, 1  ;;  %v1983_v33 = vrot.slane %v1981_v28, 3  ;;  %v1986_v7 = vrot.slane %v1984_v58, 4  ;;  %v9987_v28 = vld [vmem:[%s13943_s3 + $0x220] sm:$0xff] }
 0x216   : > { %3002 = vmatpush.bf16.msra.mxu1 %v9987_v28  ;;  %v9983_v28 = vld [vmem:[%s13943_s3 + $0x200] sm:$0xff] }
 0x217   : > { %v11036_v25 = vsel %vm785_vm1, %v2167_v43, %v2171_v6  ;;  %v1987_v44 = vor.u32 %v1986_v7, %v1983_v33  ;;  %v2175_v41 = vor.u32 %v2173_v36, %v2171_v6 }
 0x218   : > { %v1709_v10 = vpop.f32.mrf.mxu0  ;;  %2269 = vmatmul.bf16.gmra.mxu3 %v11036_v25  ;;  %2873 = vmatpush.bf16.msra.mxu0 %v9978_v8 }
 0x219   : > { %v1720_v14 = vadd.f32 %v1709_v10, %v10829_v24  ;;  %v11041_v16 = vsel %vm589_vm0, %v1978_v34, %v1987_v44  ;;  %v9977_v24 = vld [vmem:[%s13943_s3 + $0x1d0] sm:$0xff]  ;;  %v1997_v63 = vsel %vm589_vm0, %v1987_v44, %v10392_v48 }
 0x21a   : > { %2086 = vmatmul.bf16.gmra.mxu2 %v11041_v16  ;;  %2401 = vmatmul.bf16.gmra.mxu0 %v11041_v16 }
 0x21b   : > { %v1732_v4 = vadd.f32 %v10843_v27, %v1720_v14  ;;  %v9976_v27 = vld [vmem:[%s13943_s3 + $0x1c8] sm:$0xff] }
 0x21c   : > { %2874 = vmatpush.bf16.msra.mxu0 %v9977_v24 }
 0x21d   : > { %v1740_v17 = vmax.f32 %v1732_v4, 0.0 }
 0x21f   : > { %v1748_v22 = vadd.f32 %v10193_v60, %v1740_v17 }
 0x220   : > { %v1711_v23 = vpop.f32.mrf.mxu0  ;;  %2875 = vmatpush.bf16.msra.mxu0 %v9976_v27 }
 0x221   : > { %v2286_v55 = vpack.c.bf16 %v1748_v22, %v10210_v20  ;;  %v2095_v34 = vpack.c.bf16 %v1748_v22, %v1748_v22  ;;  %v11054_v35 = vpack.c.bf16 0.0, %v1748_v22  ;;  %v9985_v22 = vld [vmem:[%s13943_s3 + $0x210] sm:$0xff] }
 0x223   : > { %2496 = vmatmul.bf16.vlgmr.msrb.gmra.mxu1 %v10849_v51  ;;  %v2177_v21 = vshll.u32 %v2095_v34, 16  ;;  %v2306_v12 = vshrl.u32 %v2286_v55, 16  ;;  %v2309_v47 = vshll.u32 %v2286_v55, 16  ;;  %v2556_v32 = vshll.u32 %v11054_v35, 16  ;;  %v9975_v51 = vld [vmem:[%s13943_s3 + $0x1c0] sm:$0xff] }
 0x224   : > { %2876 = vmatpush.bf16.msra.mxu0 %v9975_v51 }
 0x225   : > { %v2179_v42 = vrot.slane %v2177_v21, 1  ;;  %v2308_v45 = vrot.slane %v2306_v12, 3  ;;  %v2311_v46 = vrot.slane %v2309_v47, 4  ;;  %v11065_v31 = vrot.slane %v2556_v32, 1  ;;  %v9984_v32 = vld [vmem:[%s13943_s3 + $0x208] sm:$0xff] }
 0x227   : > { %v2180_v2 = vsel %vm785_vm1, %v2175_v41, %v2179_v42  ;;  %v2312_v49 = vor.u32 %v2311_v46, %v2308_v45  ;;  %v11073_v53 = vsel %vm785_vm1, %v2175_v41, %v11065_v31 }
 0x228   : > { %2273 = vmatmul.bf16.gmra.mxu3 %v2180_v2 }
 0x229   : > { %v11078_v3 = vsel %vm589_vm0, %v1987_v44, %v2312_v49  ;;  %v11088_v57 = vsel %vm589_vm0, %v2312_v49, %v10392_v48 }
 0x22a   : > { %2090 = vmatmul.bf16.gmra.mxu2 %v1997_v63  ;;  %2405 = vmatmul.bf16.gmra.mxu0 %v11078_v3 }
 0x230   : > { %v1890_v56 = vpop.f32.mrf.mxu1 }
 0x233   : > { %2500 = vmatmul.bf16.gmra.mxu1 %v10864_v18 }
 0x238   : > { %v1892_v58 = vpop.f32.mrf.mxu1  ;;  %2762 = vmatmul.bf16.vlgmr.msrb.gmra.mxu3 %v10895_v1  ;;  %v9986_v1 = vld [vmem:[%s13943_s3 + $0x218] sm:$0xff] }
 0x239   : > { %3003 = vmatpush.bf16.msra.mxu1 %v9986_v1 }
 0x23a   : > { %2409 = vmatmul.bf16.gmra.mxu0 %v11088_v57  ;;  %2626 = vmatmul.bf16.vlgmr.msrb.gmra.mxu2 %v10873_v30 }
 0x23b   : > { %v2246_v59 = vpop.f32.mrf.mxu3 }
 0x23d   : > { %v2063_v0 = vpop.f32.mrf.mxu2  ;;  %3004 = vmatpush.bf16.msra.mxu1 %v9985_v22 }
 0x23e   : > { %v2064_v43 = vadd.f32 %v2063_v0, %v10945_v26 }
 0x240   : > { %v1894_v6 = vpop.f32.mrf.mxu1  ;;  %v2278_v33 = vadd.f32 %v2246_v59, %v2064_v43 }
 0x241   : > { %3005 = vmatpush.bf16.msra.mxu1 %v9984_v32 }
 0x243   : > { %v2248_v7 = vpop.f32.mrf.mxu3  ;;  %2504 = vmatmul.bf16.gmra.mxu1 %v10881_v50 }
 0x245   : > { %v2065_v13 = vpop.f32.mrf.mxu2  ;;  %3006 = vmatpush.bf16.msra.mxu1 %v9983_v28 }
 0x247   : > { %v2382_v44 = vpop.f32.mrf.mxu0 }
 0x248   : > { %v11097_v10 = vadd.f32 %v2382_v44, %v2278_v33  ;;  %v1896_v14 = vpop.f32.mrf.mxu1  ;;  %2766 = vmatmul.bf16.gmra.mxu3 %v10916_v61 }
 0x24a   : > { %2630 = vmatmul.bf16.gmra.mxu2 %v10890_v5  ;;  %2877 = vmatmul.bf16.vlgmr.msra.gmra.mxu0 %v10864_v18 }
 0x24b   : > { %v2250_v30 = vpop.f32.mrf.mxu3 }
 0x24d   : > { %v2067_v26 = vpop.f32.mrf.mxu2 }
 0x24e   : > { %v2068_v8 = vadd.f32 %v2067_v26, %v1890_v56 }
 0x24f   : > { %v2384_v4 = vpop.f32.mrf.mxu0 }
 0x250   : > { %v1898_v17 = vpop.f32.mrf.mxu1  ;;  %v2279_v24 = vadd.f32 %v2250_v30, %v2068_v8 }
 0x253   : > { %v2252_v60 = vpop.f32.mrf.mxu3  ;;  %2508 = vmatmul.bf16.gmra.mxu1 %v10902_v39 }
 0x255   : > { %v2069_v23 = vpop.f32.mrf.mxu2 }
 0x257   : > { %v2386_v61 = vpop.f32.mrf.mxu0 }
 0x258   : > { %v11106_v55 = vadd.f32 %v2386_v61, %v2279_v24  ;;  %v1900_v34 = vpop.f32.mrf.mxu1  ;;  %2770 = vmatmul.bf16.gmra.mxu3 %v10943_v54 }
 0x25a   : > { %2634 = vmatmul.bf16.gmra.mxu2 %v10911_v19  ;;  %2881 = vmatmul.bf16.gmra.mxu0 %v10881_v50 }
 0x25b   : > { %v2254_v18 = vpop.f32.mrf.mxu3 }
 0x25d   : > { %v2071_v36 = vpop.f32.mrf.mxu2 }
 0x25e   : > { %v2072_v27 = vadd.f32 %v2071_v36, %v1894_v6 }
 0x25f   : > { %v2388_v21 = vpop.f32.mrf.mxu0 }
 0x260   : > { %v1902_v12 = vpop.f32.mrf.mxu1  ;;  %v2280_v47 = vadd.f32 %v2254_v18, %v2072_v27 }
 0x263   : > { %v2256_v11 = vpop.f32.mrf.mxu3  ;;  %2512 = vmatmul.bf16.gmra.mxu1 %v10923_v40 }
 0x265   : > { %v2073_v41 = vpop.f32.mrf.mxu2 }
 0x267   : > { %v2390_v54 = vpop.f32.mrf.mxu0 }
 0x268   : > { %v11115_v42 = vadd.f32 %v2390_v54, %v2280_v47  ;;  %v1904_v45 = vpop.f32.mrf.mxu1  ;;  %2774 = vmatmul.bf16.gmra.mxu3 %v10990_v38 }
 0x26a   : > { %2638 = vmatmul.bf16.gmra.mxu2 %v10935_v37  ;;  %2885 = vmatmul.bf16.gmra.mxu0 %v10902_v39  ;;  %v10006_v39 = vld [vmem:[%s13945_s5 + $0x78] sm:$0xff] }
 0x26b   : > { %v2258_v50 = vpop.f32.mrf.mxu3  ;;  %3196 = vmatpush.bf16.msra.mxu2 %v10006_v39 }
 0x26d   : > { %v2075_v46 = vpop.f32.mrf.mxu2 }
 0x26e   : > { %v2076_v51 = vadd.f32 %v2075_v46, %v1898_v17 }
 0x26f   : > { %v2392_v2 = vpop.f32.mrf.mxu0 }
 0x270   : > { %v1906_v49 = vpop.f32.mrf.mxu1  ;;  %v2281_v63 = vadd.f32 %v2258_v50, %v2076_v51  ;;  %v10003_v51 = vld [vmem:[%s13945_s5 + $0x60] sm:$0xff] }
 0x273   : > { %v2260_v56 = vpop.f32.mrf.mxu3  ;;  %2516 = vmatmul.bf16.gmra.mxu1 %v10961_v15 }
 0x275   : > { %v2077_v58 = vpop.f32.mrf.mxu2 }
 0x277   : > { %v2394_v38 = vpop.f32.mrf.mxu0 }
 0x278   : > { %v11124_v59 = vadd.f32 %v2394_v38, %v2281_v63  ;;  %v1908_v0 = vpop.f32.mrf.mxu1  ;;  %2778 = vmatmul.bf16.gmra.mxu3 %v11041_v16 }
 0x27a   : > { %2642 = vmatmul.bf16.gmra.mxu2 %v10982_v29  ;;  %2889 = vmatmul.bf16.gmra.mxu0 %v10923_v40  ;;  %v10005_v40 = vld [vmem:[%s13945_s5 + $0x70] sm:$0xff] }
 0x27b   : > { %v2262_v43 = vpop.f32.mrf.mxu3  ;;  %3197 = vmatpush.bf16.msra.mxu2 %v10005_v40 }
 0x27d   : > { %v2079_v6 = vpop.f32.mrf.mxu2 }
 0x27e   : > { %v2080_v33 = vadd.f32 %v2079_v6, %v1902_v12 }
 0x27f   : > { %v2396_v7 = vpop.f32.mrf.mxu0 }
 0x280   : > { %v1910_v1 = vpop.f32.mrf.mxu1  ;;  %v2282_v13 = vadd.f32 %v2262_v43, %v2080_v33 }
 0x283   : > { %v2264_v44 = vpop.f32.mrf.mxu3  ;;  %2520 = vmatmul.bf16.gmra.mxu1 %v11012_v9 }
 0x285   : > { %v2081_v14 = vpop.f32.mrf.mxu2 }
 0x287   : > { %v2398_v16 = vpop.f32.mrf.mxu0 }
 0x288   : > { %v11133_v30 = vadd.f32 %v2398_v16, %v2282_v13  ;;  %v1912_v26 = vpop.f32.mrf.mxu1  ;;  %2782 = vmatmul.bf16.gmra.mxu3 %v11078_v3 }
 0x28a   : > { %2646 = vmatmul.bf16.gmra.mxu2 %v11036_v25  ;;  %2893 = vmatmul.bf16.gmra.mxu0 %v10961_v15  ;;  %v10004_v15 = vld [vmem:[%s13945_s5 + $0x68] sm:$0xff] }
 0x28b   : > { %v2266_v8 = vpop.f32.mrf.mxu3  ;;  %3198 = vmatpush.bf16.msra.mxu2 %v10004_v15 }
 0x28d   : > { %v2083_v4 = vpop.f32.mrf.mxu2 }
 0x28e   : > { %v2084_v17 = vadd.f32 %v2083_v4, %v1906_v49 }
 0x28f   : > { %v2400_v24 = vpop.f32.mrf.mxu0  ;;  %3199 = vmatpush.bf16.msra.mxu2 %v10003_v51 }
 0x290   : > { %v1914_v60 = vpop.f32.mrf.mxu1  ;;  %v2283_v22 = vadd.f32 %v2266_v8, %v2084_v17  ;;  %v10001_v8 = vld [vmem:[%s13945_s5 + $0x50] sm:$0xff] }
 0x293   : > { %v2268_v23 = vpop.f32.mrf.mxu3  ;;  %2524 = vmatmul.bf16.gmra.mxu1 %v11054_v35 }
 0x295   : > { %v2085_v61 = vpop.f32.mrf.mxu2 }
 0x297   : > { %v2402_v3 = vpop.f32.mrf.mxu0 }
 0x298   : > { %v11142_v34 = vadd.f32 %v2402_v3, %v2283_v22  ;;  %v1916_v18 = vpop.f32.mrf.mxu1  ;;  %2786 = vmatmul.bf16.gmra.mxu3 %v11088_v57  ;;  %v2560_v57 = vshrl.u32 %v11054_v35, 16 }
 0x29a   : > { %2650 = vmatmul.bf16.gmra.mxu2 %v11073_v53  ;;  %2897 = vmatmul.bf16.gmra.mxu0 %v11012_v9  ;;  %v2562_v45 = vor.u32 %v2560_v57, %v11065_v31 }
 0x29b   : > { %v2270_v36 = vpop.f32.mrf.mxu3 }
 0x29d   : > { %v2087_v27 = vpop.f32.mrf.mxu2 }
 0x29e   : > { %v2088_v21 = vadd.f32 %v2087_v27, %v1910_v1 }
 0x29f   : > { %v2404_v12 = vpop.f32.mrf.mxu0 }
 0x2a0   : > { %v2497_v47 = vpop.f32.mrf.mxu1  ;;  %v2284_v11 = vadd.f32 %v2270_v36, %v2088_v21  ;;  %v10000_v36 = vld [vmem:[%s13945_s5 + $0x48] sm:$0xff] }
 0x2a1   : > { %v2529_v32 = vadd.f32 %v2497_v47, %v11097_v10  ;;  %v11162_v10 = vsel %vm785_vm1, %v2562_v45, %v10400_v52 }
 0x2a3   : > { %v2272_v41 = vpop.f32.mrf.mxu3  ;;  %3007 = vmatmul.bf16.vlgmr.msra.gmra.mxu1 %v10890_v5 }
 0x2a5   : > { %v2089_v54 = vpop.f32.mrf.mxu2 }
 0x2a7   : > { %v2406_v50 = vpop.f32.mrf.mxu0 }
 0x2a8   : > { %v11154_v46 = vadd.f32 %v2406_v50, %v2284_v11  ;;  %v2499_v9 = vpop.f32.mrf.mxu1  ;;  %2790 = vmatmul.bf16.gmra.mxu3 %v10392_v48  ;;  %v9999_v50 = vld [vmem:[%s13945_s5 + $0x40] sm:$0xff] }
 0x2aa   : > { %2654 = vmatmul.bf16.gmra.mxu2 %v11162_v10  ;;  %2901 = vmatmul.bf16.gmra.mxu0 %v11054_v35  ;;  %v10002_v35 = vld [vmem:[%s13945_s5 + $0x58] sm:$0xff] }
 0x2ab   : > { %v2274_v5 = vpop.f32.mrf.mxu3  ;;  %3200 = vmatpush.bf16.msra.mxu2 %v10002_v35 }
 0x2ad   : > { %v2091_v31 = vpop.f32.mrf.mxu2 }
 0x2ae   : > { %v2092_v2 = vadd.f32 %v2091_v31, %v1914_v60 }
 0x2af   : > { %v2408_v49 = vpop.f32.mrf.mxu0  ;;  %3201 = vmatpush.bf16.msra.mxu2 %v10001_v8  ;;  %v9994_v8 = vld [vmem:[%s13945_s5 + $0x18] sm:$0xff] }
 0x2b0   : > { %v2501_v63 = vpop.f32.mrf.mxu1  ;;  %v2285_v56 = vadd.f32 %v2274_v5, %v2092_v2  ;;  %v9998_v49 = vld [vmem:[%s13945_s5 + $0x38] sm:$0xff] }
 0x2b1   : > { %v2530_v28 = vadd.f32 %v2501_v63, %v11106_v55  ;;  %3373 = vmatpush.bf16.msra.mxu3 %v9998_v49 }
 0x2b3   : > { %v2276_v58 = vpop.f32.mrf.mxu3  ;;  %3011 = vmatmul.bf16.gmra.mxu1 %v10911_v19  ;;  %3202 = vmatpush.bf16.msra.mxu2 %v10000_v36  ;;  %v10007_v36 = vld [vmem:[%s13945_s5 + $0x80] sm:$0xff] }
 0x2b4   : > { %v9997_v58 = vld [vmem:[%s13945_s5 + $0x30] sm:$0xff] }
 0x2b5   : > { %v2093_v38 = vpop.f32.mrf.mxu2  ;;  %3374 = vmatpush.bf16.msra.mxu3 %v9997_v58 }
 0x2b7   : > { %v2410_v0 = vpop.f32.mrf.mxu0  ;;  %3203 = vmatpush.bf16.msra.mxu2 %v9999_v50  ;;  %v10017_v50 = vld [vmem:[%s13945_s5 + $0xd0] sm:$0xff] }
 0x2b8   : > { %v11168_v39 = vadd.f32 %v2410_v0, %v2285_v56  ;;  %v2503_v43 = vpop.f32.mrf.mxu1  ;;  %v10013_v56 = vld [vmem:[%s13945_s5 + $0xb0] sm:$0xff]  ;;  %v10012_v0 = vld [vmem:[%s13945_s5 + $0xa8] sm:$0xff] }
 0x2ba   : > { %2905 = vmatmul.bf16.gmra.mxu0 %v10212_v62  ;;  %3204 = vmatmul.bf16.vlgmr.msra.gmra.mxu2 %v10212_v62 }
 0x2bb   : > { %v2763_v6 = vpop.f32.mrf.mxu3 }
 0x2bd   : > { %v2627_v33 = vpop.f32.mrf.mxu2 }
 0x2be   : > { %v2659_v7 = vadd.f32 %v2627_v33, %v2529_v32  ;;  %v10011_v33 = vld [vmem:[%s13945_s5 + $0xa0] sm:$0xff] }
 0x2bf   : > { %v2412_v1 = vpop.f32.mrf.mxu0 }
 0x2c0   : > { %v2505_v55 = vpop.f32.mrf.mxu1  ;;  %v2795_v13 = vadd.f32 %v2763_v6, %v2659_v7  ;;  %v10030_v6 = vld [vmem:[%s13945_s5 + $0x138] sm:$0xff]  ;;  %v9995_v1 = vld [vmem:[%s13945_s5 + $0x20] sm:$0xff] }
 0x2c1   : > { %v2531_v19 = vadd.f32 %v2505_v55, %v11115_v42  ;;  %3807 = vmatpush.bf16.msrb.mxu2 %v10030_v6 }
 0x2c3   : > { %v2765_v44 = vpop.f32.mrf.mxu3  ;;  %3015 = vmatmul.bf16.gmra.mxu1 %v10935_v37 }
 0x2c4   : > { %v10010_v44 = vld [vmem:[%s13945_s5 + $0x98] sm:$0xff] }
 0x2c5   : > { %v2629_v14 = vpop.f32.mrf.mxu2 }
 0x2c7   : > { %v2878_v16 = vpop.f32.mrf.mxu0 }
 0x2c8   : > { %v11176_v26 = vadd.f32 %v2878_v16, %v2795_v13  ;;  %v2507_v40 = vpop.f32.mrf.mxu1 }
 0x2cb   : > { %v2767_v4 = vpop.f32.mrf.mxu3 }
 0x2cd   : > { %v2631_v17 = vpop.f32.mrf.mxu2 }
 0x2ce   : > { %v2660_v24 = vadd.f32 %v2631_v17, %v2530_v28  ;;  %v10009_v17 = vld [vmem:[%s13945_s5 + $0x90] sm:$0xff] }
 0x2cf   : > { %v2880_v60 = vpop.f32.mrf.mxu0 }
 0x2d0   : > { %v2509_v22 = vpop.f32.mrf.mxu1  ;;  %v2796_v23 = vadd.f32 %v2767_v4, %v2660_v24  ;;  %v9993_v60 = vld [vmem:[%s13945_s5 + $0x10] sm:$0xff] }
 0x2d1   : > { %v2532_v42 = vadd.f32 %v2509_v22, %v11124_v59  ;;  %v10021_v22 = vld [vmem:[%s13945_s5 + $0xf0] sm:$0xff] }
 0x2d3   : > { %v2769_v61 = vpop.f32.mrf.mxu3  ;;  %3019 = vmatmul.bf16.gmra.mxu1 %v10982_v29 }
 0x2d5   : > { %v2633_v37 = vpop.f32.mrf.mxu2 }
 0x2d6   : > { %v9992_v37 = vld [vmem:[%s13945_s5 + $0x8] sm:$0xff] }
 0x2d7   : > { %v2882_v3 = vpop.f32.mrf.mxu0 }
 0x2d8   : > { %v11183_v18 = vadd.f32 %v2882_v3, %v2796_v23  ;;  %v2511_v15 = vpop.f32.mrf.mxu1  ;;  %v10020_v3 = vld [vmem:[%s13945_s5 + $0xe8] sm:$0xff] }
 0x2d9   : > { %v10029_v15 = vld [vmem:[%s13945_s5 + $0x130] sm:$0xff] }
 0x2da   : > { %3808 = vmatpush.bf16.msrb.mxu2 %v10029_v15 }
 0x2db   : > { %v2771_v27 = vpop.f32.mrf.mxu3 }
 0x2dd   : > { %v2635_v21 = vpop.f32.mrf.mxu2 }
 0x2de   : > { %v2661_v12 = vadd.f32 %v2635_v21, %v2531_v19  ;;  %v10022_v19 = vld [vmem:[%s13945_s5 + $0xf8] sm:$0xff]  ;;  %v9991_v21 = vld [vmem:[%s13945_s5] sm:$0xff] }
 0x2df   : > { %v2884_v47 = vpop.f32.mrf.mxu0  ;;  %3692 = vmatpush.bf16.msrb.mxu1 %v10022_v19 }
 0x2e0   : > { %v2513_v11 = vpop.f32.mrf.mxu1  ;;  %v2797_v32 = vadd.f32 %v2771_v27, %v2661_v12  ;;  %v10019_v12 = vld [vmem:[%s13945_s5 + $0xe0] sm:$0xff] }
 0x2e1   : > { %v2533_v59 = vadd.f32 %v2513_v11, %v11133_v30  ;;  %v10014_v30 = vld [vmem:[%s13945_s5 + $0xb8] sm:$0xff] }
 0x2e2   : > { %3556 = vmatpush.bf16.msrb.mxu0 %v10014_v30 }
 0x2e3   : > { %v2773_v41 = vpop.f32.mrf.mxu3  ;;  %3023 = vmatmul.bf16.gmra.mxu1 %v11036_v25 }
 0x2e4   : > { %3693 = vmatpush.bf16.msrb.mxu1 %v10021_v22 }
 0x2e5   : > { %v2637_v29 = vpop.f32.mrf.mxu2 }
 0x2e6   : > { %3557 = vmatpush.bf16.msrb.mxu0 %v10013_v56  ;;  %v10018_v29 = vld [vmem:[%s13945_s5 + $0xd8] sm:$0xff] }
 0x2e7   : > { %v2886_v57 = vpop.f32.mrf.mxu0 }
 0x2e8   : > { %v11190_v54 = vadd.f32 %v2886_v57, %v2797_v32  ;;  %v2515_v45 = vpop.f32.mrf.mxu1  ;;  %3694 = vmatpush.bf16.msrb.mxu1 %v10020_v3 }
 0x2ea   : > { %3558 = vmatpush.bf16.msrb.mxu0 %v10012_v0 }
 0x2eb   : > { %v2775_v9 = vpop.f32.mrf.mxu3 }
 0x2ec   : > { %3695 = vmatpush.bf16.msrb.mxu1 %v10019_v12 }
 0x2ed   : > { %v2639_v51 = vpop.f32.mrf.mxu2 }
 0x2ee   : > { %v2662_v5 = vadd.f32 %v2639_v51, %v2532_v42  ;;  %3559 = vmatpush.bf16.msrb.mxu0 %v10011_v33 }
 0x2ef   : > { %v2888_v25 = vpop.f32.mrf.mxu0 }
 0x2f0   : > { %v2517_v31 = vpop.f32.mrf.mxu1  ;;  %v2798_v2 = vadd.f32 %v2775_v9, %v2662_v5  ;;  %3696 = vmatpush.bf16.msrb.mxu1 %v10018_v29  ;;  %v10016_v25 = vld [vmem:[%s13945_s5 + $0xc8] sm:$0xff] }
 0x2f1   : > { %v2534_v63 = vadd.f32 %v2517_v31, %v11142_v34  ;;  %v10015_v31 = vld [vmem:[%s13945_s5 + $0xc0] sm:$0xff] }
 0x2f2   : > { %3560 = vmatpush.bf16.msrb.mxu0 %v10010_v44 }
 0x2f3   : > { %v2777_v28 = vpop.f32.mrf.mxu3  ;;  %3027 = vmatmul.bf16.gmra.mxu1 %v11073_v53  ;;  %v9996_v53 = vld [vmem:[%s13945_s5 + $0x28] sm:$0xff] }
 0x2f4   : > { %3375 = vmatpush.bf16.msra.mxu3 %v9996_v53  ;;  %3697 = vmatpush.bf16.msrb.mxu1 %v10017_v50  ;;  %v11292_v28 = vld [vmem:[%s13944_s4] ss:$0 sm:$0xff]  ;;  %v10026_v50 = vld [vmem:[%s13945_s5 + $0x118] sm:$0xff] }
 0x2f5   : > { %v2641_v38 = vpop.f32.mrf.mxu2  ;;  %v10194_v53 = vld [vmem:[%s10326_s29] sm:$0xff] }
 0x2f6   : > { %3561 = vmatpush.bf16.msrb.mxu0 %v10009_v17 }
 0x2f7   : > { %v2890_v34 = vpop.f32.mrf.mxu0 }
 0x2f8   : > { %v11213_v43 = vadd.f32 %v2890_v34, %v2798_v2  ;;  %v2519_v35 = vpop.f32.mrf.mxu1  ;;  %3376 = vmatpush.bf16.msra.mxu3 %v9995_v1  ;;  %3698 = vmatpush.bf16.msrb.mxu1 %v10016_v25 }
 0x2fb   : > { %v2779_v7 = vpop.f32.mrf.mxu3 }
 0x2fc   : > { %3377 = vmatpush.bf16.msra.mxu3 %v9994_v8  ;;  %3699 = vmatpush.bf16.msrb.mxu1 %v10015_v31 }
 0x2fd   : > { %v2643_v55 = vpop.f32.mrf.mxu2 }
 0x2fe   : > { %v2663_v13 = vadd.f32 %v2643_v55, %v2533_v59 }
 0x2ff   : > { %v2892_v14 = vpop.f32.mrf.mxu0 }
 0x300   : > { %v2521_v16 = vpop.f32.mrf.mxu1  ;;  %v2799_v40 = vadd.f32 %v2779_v7, %v2663_v13  ;;  %3378 = vmatpush.bf16.msra.mxu3 %v9993_v60 }
 0x301   : > { %v2535_v4 = vadd.f32 %v2521_v16, %v11154_v46  ;;  %v10008_v46 = vld [vmem:[%s13945_s5 + $0x88] sm:$0xff]  ;;  %v10027_v16 = vld [vmem:[%s13945_s5 + $0x120] sm:$0xff] }
 0x302   : > { %3562 = vmatpush.bf16.msrb.mxu0 %v10008_v46 }
 0x303   : > { %v2781_v24 = vpop.f32.mrf.mxu3  ;;  %3031 = vmatmul.bf16.gmra.mxu1 %v11162_v10 }
 0x304   : > { %3379 = vmatpush.bf16.msra.mxu3 %v9992_v37 }
 0x305   : > { %v2645_v23 = vpop.f32.mrf.mxu2 }
 0x306   : > { %3563 = vmatpush.bf16.msrb.mxu0 %v10007_v36 }
 0x307   : > { %v2894_v42 = vpop.f32.mrf.mxu0 }
 0x308   : > { %v11250_v61 = vadd.f32 %v2894_v42, %v2799_v40  ;;  %v2523_v10 = vpop.f32.mrf.mxu1  ;;  %3380 = vmatpush.bf16.msra.mxu3 %v9991_v21 }
 0x30b   : > { %v2783_v27 = vpop.f32.mrf.mxu3 }
 0x30d   : > { %v2647_v47 = vpop.f32.mrf.mxu2 }
 0x30e   : > { %v2664_v11 = vadd.f32 %v2647_v47, %v2534_v63 }
 0x30f   : > { %v2896_v32 = vpop.f32.mrf.mxu0 }
 0x310   : > { %v2525_v59 = vpop.f32.mrf.mxu1  ;;  %v2800_v41 = vadd.f32 %v2783_v27, %v2664_v11  ;;  %v10195_v27 = vld [vmem:[%s10326_s29 + $0x8] sm:$0xff] }
 0x311   : > { %v2536_v57 = vadd.f32 %v2525_v59, %v11168_v39  ;;  %v10028_v39 = vld [vmem:[%s13945_s5 + $0x128] sm:$0xff] }
 0x312   : > { %3809 = vmatpush.bf16.msrb.mxu2 %v10028_v39 }
 0x313   : > { %v2785_v45 = vpop.f32.mrf.mxu3  ;;  %3035 = vmatmul.bf16.gmra.mxu1 %v10400_v52 }
 0x315   : > { %v2649_v9 = vpop.f32.mrf.mxu2 }
 0x316   : > { %3810 = vmatpush.bf16.msrb.mxu2 %v10027_v16 }
 0x317   : > { %v2898_v51 = vpop.f32.mrf.mxu0 }
 0x318   : > { %v11278_v5 = vadd.f32 %v2898_v51, %v2800_v41  ;;  %v2527_v30 = vpop.f32.mrf.mxu1 }
 0x31a   : > { %3811 = vmatpush.bf16.msrb.mxu2 %v10026_v50 }
 0x31b   : > { %v2787_v2 = vpop.f32.mrf.mxu3 }
 0x31d   : > { %v2651_v49 = vpop.f32.mrf.mxu2 }
 0x31e   : > { %v2665_v63 = vadd.f32 %v2651_v49, %v2535_v4 }
 0x31f   : > { %v2900_v56 = vpop.f32.mrf.mxu0 }
 0x320   : > { %v3008_v58 = vpop.f32.mrf.mxu1  ;;  %v2801_v38 = vadd.f32 %v2787_v2, %v2665_v63 }
 0x321   : > { %v3040_v0 = vadd.f32 %v3008_v58, %v11176_v26 }
 0x323   : > { %v3052_v34 = vadd.f32 %v11292_v28, %v3040_v0  ;;  %v2789_v35 = vpop.f32.mrf.mxu3 }
 0x325   : > { %v11297_v6 = vadd.f32 %v10194_v53, %v3052_v34  ;;  %v2653_v33 = vpop.f32.mrf.mxu2 }
 0x327   : > { %v3099_v7 = vpack.c.bf16 %v11297_v6, %v10210_v20  ;;  %v2902_v1 = vpop.f32.mrf.mxu0  ;;  %v11302_v55 = vpack.c.bf16 0.0, %v11297_v6 }
 0x328   : > { %v11304_v13 = vadd.f32 %v2902_v1, %v2801_v38  ;;  %v3010_v19 = vpop.f32.mrf.mxu1  ;;  %v10196_v38 = vld [vmem:[%s10326_s29 + $0x10] sm:$0xff] }
 0x329   : > { %3208 = vmatmul.bf16.gmra.mxu2 %v11302_v55  ;;  %v3440_v26 = vshll.u32 %v11302_v55, 16  ;;  %v3246_v44 = vshrl.u32 %v3099_v7, 16  ;;  %v3249_v14 = vshll.u32 %v3099_v7, 16  ;;  %v10025_v19 = vld [vmem:[%s13945_s5 + $0x110] sm:$0xff] }
 0x32a   : > { %3812 = vmatpush.bf16.msrb.mxu2 %v10025_v19 }
 0x32b   : > { %v3442_v40 = vrot.slane %v3440_v26, 1  ;;  %v2791_v8 = vpop.f32.mrf.mxu3  ;;  %v3248_v4 = vrot.slane %v3246_v44, 3  ;;  %v3251_v17 = vrot.slane %v3249_v14, 4 }
 0x32d   : > { %v2655_v24 = vpop.f32.mrf.mxu2  ;;  %v3443_v60 = vsel %vm785_vm1, %v10400_v52, %v3442_v40  ;;  %v3252_v22 = vor.u32 %v3251_v17, %v3248_v4 }
 0x32e   : > { %v2666_v23 = vadd.f32 %v2655_v24, %v2536_v57  ;;  %3564 = vmatmul.bf16.vlgmr.msrb.gmra.mxu0 %v3443_v60 }
 0x32f   : > { %v2904_v46 = vpop.f32.mrf.mxu0  ;;  %v3253_v42 = vsel %vm589_vm0, %v10392_v48, %v3252_v22 }
 0x330   : > { %v2802_v10 = vadd.f32 %v2791_v8, %v2666_v23  ;;  %v3012_v37 = vpop.f32.mrf.mxu1  ;;  %3381 = vmatmul.bf16.vlgmr.msra.gmra.mxu3 %v3253_v42 }
 0x331   : > { %v3041_v3 = vadd.f32 %v3012_v37, %v11183_v18  ;;  %v3444_v18 = vshrl.u32 %v11302_v55, 16 }
 0x333   : > { %v3053_v15 = vadd.f32 %v11292_v28, %v3041_v3  ;;  %v2793_v36 = vpop.f32.mrf.mxu3  ;;  %v3446_v9 = vor.u32 %v3444_v18, %v3442_v40 }
 0x334   : > { %v10024_v36 = vld [vmem:[%s13945_s5 + $0x108] sm:$0xff] }
 0x335   : > { %v11318_v21 = vadd.f32 %v10195_v27, %v3053_v15  ;;  %v2657_v12 = vpop.f32.mrf.mxu2  ;;  %3813 = vmatpush.bf16.msrb.mxu2 %v10024_v36 }
 0x337   : > { %v2906_v47 = vpop.f32.mrf.mxu0  ;;  %v11321_v11 = vpack.c.bf16 0.0, %v11318_v21  ;;  %v3100_v32 = vpack.c.bf16 %v11318_v21, %v10210_v20 }
 0x338   : > { %v11325_v59 = vadd.f32 %v2906_v47, %v2802_v10  ;;  %v3014_v41 = vpop.f32.mrf.mxu1 }
 0x339   : > { %3212 = vmatmul.bf16.gmra.mxu2 %v11321_v11  ;;  %v3448_v29 = vshll.u32 %v11321_v11, 16  ;;  %v3255_v57 = vshrl.u32 %v3100_v32, 16  ;;  %v3258_v45 = vshll.u32 %v3100_v32, 16  ;;  %v3452_v33 = vshrl.u32 %v11321_v11, 16 }
 0x33b   : > { %v3450_v51 = vrot.slane %v3448_v29, 1  ;;  %v3257_v30 = vrot.slane %v3255_v57, 3  ;;  %v3260_v25 = vrot.slane %v3258_v45, 4 }
 0x33d   : > { %v11334_v39 = vsel %vm785_vm1, %v3446_v9, %v3450_v51  ;;  %v3261_v31 = vor.u32 %v3260_v25, %v3257_v30  ;;  %v3454_v26 = vor.u32 %v3452_v33, %v3450_v51  ;;  %v10198_v9 = vld [vmem:[%s10326_s29 + $0x20] sm:$0xff] }
 0x33e   : > { %3568 = vmatmul.bf16.gmra.mxu0 %v11334_v39 }
 0x33f   : > { %v3262_v2 = vsel %vm589_vm0, %v3252_v22, %v3261_v31  ;;  %v2908_v49 = vpop.f32.mrf.mxu0  ;;  %v10197_v22 = vld [vmem:[%s10326_s29 + $0x18] sm:$0xff] }
 0x340   : > { %v3016_v63 = vpop.f32.mrf.mxu1  ;;  %3385 = vmatmul.bf16.gmra.mxu3 %v3262_v2  ;;  %3700 = vmatmul.bf16.vlgmr.msrb.gmra.mxu1 %v3262_v2 }
 0x341   : > { %v3042_v56 = vadd.f32 %v3016_v63, %v11190_v54 }
 0x343   : > { %v3054_v58 = vadd.f32 %v11292_v28, %v3042_v56  ;;  %v10023_v56 = vld [vmem:[%s13945_s5 + $0x100] sm:$0xff] }
 0x344   : > { %3814 = vmatpush.bf16.msrb.mxu2 %v10023_v56 }
 0x345   : > { %v11341_v0 = vadd.f32 %v10196_v38, %v3054_v58 }
 0x347   : > { %v11344_v34 = vpack.c.bf16 0.0, %v11341_v0  ;;  %v3101_v35 = vpack.c.bf16 %v11341_v0, %v10210_v20 }
 0x348   : > { %v3018_v53 = vpop.f32.mrf.mxu1 }
 0x349   : > { %3216 = vmatmul.bf16.gmra.mxu2 %v11344_v34  ;;  %v3456_v7 = vshll.u32 %v11344_v34, 16  ;;  %v3264_v1 = vshrl.u32 %v3101_v35, 16  ;;  %v3267_v54 = vshll.u32 %v3101_v35, 16  ;;  %v3460_v37 = vshrl.u32 %v11344_v34, 16 }
 0x34b   : > { %v3458_v44 = vrot.slane %v3456_v7, 1  ;;  %v3266_v14 = vrot.slane %v3264_v1, 3  ;;  %v3269_v16 = vrot.slane %v3267_v54, 4  ;;  %v10046_v1 = vld [vmem:[%s13945_s5 + $0x1b8] sm:$0xff] }
 0x34c   : > { %4073 = vmatpush.bf16.msra.mxu0 %v10046_v1 }
 0x34d   : > { %v11355_v40 = vsel %vm785_vm1, %v3454_v26, %v3458_v44  ;;  %v3270_v8 = vor.u32 %v3269_v16, %v3266_v14  ;;  %v3462_v27 = vor.u32 %v3460_v37, %v3458_v44  ;;  %v10038_v26 = vld [vmem:[%s13945_s5 + $0x178] sm:$0xff]  ;;  %v10045_v14 = vld [vmem:[%s13945_s5 + $0x1b0] sm:$0xff]  ;;  %v10036_v37 = vld [vmem:[%s13945_s5 + $0x168] sm:$0xff] }
 0x34e   : > { %3572 = vmatmul.bf16.gmra.mxu0 %v11355_v40  ;;  %3937 = vmatpush.bf16.msrb.mxu3 %v10038_v26 }
 0x34f   : > { %v11359_v4 = vsel %vm589_vm0, %v3261_v31, %v3270_v8 }
 0x350   : > { %v3020_v17 = vpop.f32.mrf.mxu1  ;;  %3389 = vmatmul.bf16.gmra.mxu3 %v11359_v4  ;;  %3704 = vmatmul.bf16.gmra.mxu1 %v11359_v4 }
 0x351   : > { %v3043_v24 = vadd.f32 %v3020_v17, %v11213_v43  ;;  %v10199_v17 = vld [vmem:[%s10326_s29 + $0x28] sm:$0xff]  ;;  %4074 = vmatpush.bf16.msra.mxu0 %v10045_v14 }
 0x352   : > { %v10032_v14 = vld [vmem:[%s13945_s5 + $0x148] sm:$0xff] }
 0x353   : > { %v3055_v60 = vadd.f32 %v11292_v28, %v3043_v24 }
 0x355   : > { %v11366_v23 = vadd.f32 %v10197_v22, %v3055_v60  ;;  %v11430_v60 = vpop.f32.mrf.mxu2 }
 0x357   : > { %v11369_v46 = vpack.c.bf16 0.0, %v11366_v23  ;;  %v3102_v42 = vpack.c.bf16 %v11366_v23, %v10210_v20 }
 0x358   : > { %v3022_v10 = vpop.f32.mrf.mxu1 }
 0x359   : > { %3220 = vmatmul.bf16.gmra.mxu2 %v11369_v46  ;;  %v3464_v3 = vshll.u32 %v11369_v46, 16  ;;  %v3273_v15 = vshrl.u32 %v3102_v42, 16  ;;  %v3276_v43 = vshll.u32 %v3102_v42, 16  ;;  %v3468_v2 = vshrl.u32 %v11369_v46, 16 }
 0x35b   : > { %v3466_v12 = vrot.slane %v3464_v3, 1  ;;  %v3275_v47 = vrot.slane %v3273_v15, 3  ;;  %v3278_v32 = vrot.slane %v3276_v43, 4 }
 0x35d   : > { %v11380_v41 = vsel %vm785_vm1, %v3462_v27, %v3466_v12  ;;  %v3279_v18 = vor.u32 %v3278_v32, %v3275_v47  ;;  %v3470_v58 = vor.u32 %v3468_v2, %v3466_v12  ;;  %v10062_v27 = vld [vmem:[%s13945_s5 + $0x238] sm:$0xff]  ;;  %v10043_v12 = vld [vmem:[%s13945_s5 + $0x1a0] sm:$0xff] }
 0x35e   : > { %3576 = vmatmul.bf16.gmra.mxu0 %v11380_v41  ;;  %v10035_v47 = vld [vmem:[%s13945_s5 + $0x160] sm:$0xff]  ;;  %v10054_v32 = vld [vmem:[%s13945_s5 + $0x1f8] sm:$0xff]  ;;  %4318 = vmatpush.bf16.msra.mxu2 %v10062_v27 }
 0x35f   : > { %v11384_v29 = vsel %vm589_vm0, %v3270_v8, %v3279_v18  ;;  %v10037_v8 = vld [vmem:[%s13945_s5 + $0x170] sm:$0xff]  ;;  %4188 = vmatpush.bf16.msra.mxu1 %v10054_v32  ;;  %v10042_v2 = vld [vmem:[%s13945_s5 + $0x198] sm:$0xff]  ;;  %v10031_v27 = vld [vmem:[%s13945_s5 + $0x140] sm:$0xff] }
 0x360   : > { %v3024_v57 = vpop.f32.mrf.mxu1  ;;  %3393 = vmatmul.bf16.gmra.mxu3 %v11384_v29  ;;  %3708 = vmatmul.bf16.gmra.mxu1 %v11384_v29 }
 0x361   : > { %v3044_v45 = vadd.f32 %v3024_v57, %v11250_v61  ;;  %3938 = vmatpush.bf16.msrb.mxu3 %v10037_v8 }
 0x363   : > { %v3056_v50 = vadd.f32 %v11292_v28, %v3044_v45 }
 0x365   : > { %v11391_v51 = vadd.f32 %v10198_v9, %v3056_v50  ;;  %3939 = vmatpush.bf16.msrb.mxu3 %v10036_v37  ;;  %v10039_v37 = vld [vmem:[%s13945_s5 + $0x180] sm:$0xff] }
 0x367   : > { %v11394_v30 = vpack.c.bf16 0.0, %v11391_v51  ;;  %v3103_v25 = vpack.c.bf16 %v11391_v51, %v10210_v20 }
 0x368   : > { %v3026_v31 = vpop.f32.mrf.mxu1 }
 0x369   : > { %3224 = vmatmul.bf16.gmra.mxu2 %v11394_v30  ;;  %v3472_v49 = vshll.u32 %v11394_v30, 16  ;;  %v3282_v63 = vshrl.u32 %v3103_v25, 16  ;;  %v3285_v61 = vshll.u32 %v3103_v25, 16  ;;  %v3476_v3 = vshrl.u32 %v11394_v30, 16  ;;  %v3207_v31 = vpop.f32.mrf.mxu2  ;;  %3940 = vmatpush.bf16.msrb.mxu3 %v10035_v47 }
 0x36b   : > { %v3474_v38 = vrot.slane %v3472_v49, 1  ;;  %v3284_v35 = vrot.slane %v3282_v63, 3  ;;  %v3287_v53 = vrot.slane %v3285_v61, 4  ;;  %v10034_v61 = vld [vmem:[%s13945_s5 + $0x158] sm:$0xff] }
 0x36d   : > { %v11405_v33 = vsel %vm785_vm1, %v3470_v58, %v3474_v38  ;;  %v3288_v7 = vor.u32 %v3287_v53, %v3284_v35  ;;  %v10041_v58 = vld [vmem:[%s13945_s5 + $0x190] sm:$0xff]  ;;  %3941 = vmatpush.bf16.msrb.mxu3 %v10034_v61 }
 0x36e   : > { %3580 = vmatmul.bf16.gmra.mxu0 %v11405_v33  ;;  %v10033_v35 = vld [vmem:[%s13945_s5 + $0x150] sm:$0xff] }
 0x36f   : > { %v11412_v54 = vsel %vm589_vm0, %v3279_v18, %v3288_v7  ;;  %v3478_v18 = vor.u32 %v3476_v3, %v3474_v38  ;;  %v10053_v38 = vld [vmem:[%s13945_s5 + $0x1f0] sm:$0xff] }
 0x370   : > { %v3028_v19 = vpop.f32.mrf.mxu1  ;;  %3397 = vmatmul.bf16.gmra.mxu3 %v11412_v54  ;;  %3712 = vmatmul.bf16.gmra.mxu1 %v11412_v54 }
 0x371   : > { %v3045_v44 = vadd.f32 %v3028_v19, %v11278_v5  ;;  %v10044_v5 = vld [vmem:[%s13945_s5 + $0x1a8] sm:$0xff]  ;;  %4189 = vmatpush.bf16.msra.mxu1 %v10053_v38  ;;  %3942 = vmatpush.bf16.msrb.mxu3 %v10033_v35 }
 0x372   : > { %4075 = vmatpush.bf16.msra.mxu0 %v10044_v5 }
 0x373   : > { %v3057_v16 = vadd.f32 %v11292_v28, %v3045_v44 }
 0x375   : > { %v11428_v24 = vadd.f32 %v10199_v17, %v3057_v16  ;;  %v10052_v16 = vld [vmem:[%s13945_s5 + $0x1e8] sm:$0xff]  ;;  %3943 = vmatpush.bf16.msrb.mxu3 %v10032_v14 }
 0x376   : > { %4076 = vmatpush.bf16.msra.mxu0 %v10043_v12  ;;  %4190 = vmatpush.bf16.msra.mxu1 %v10052_v16  ;;  %v10051_v12 = vld [vmem:[%s13945_s5 + $0x1e0] sm:$0xff] }
 0x377   : > { %v11436_v22 = vpack.c.bf16 0.0, %v11428_v24  ;;  %v3104_v42 = vpack.c.bf16 %v11428_v24, %v10210_v20 }
 0x378   : > { %v3030_v10 = vpop.f32.mrf.mxu1 }
 0x379   : > { %3228 = vmatmul.bf16.gmra.mxu2 %v11436_v22  ;;  %v3480_v15 = vshll.u32 %v11436_v22, 16  ;;  %v3291_v43 = vshrl.u32 %v3104_v42, 16  ;;  %v3294_v36 = vshll.u32 %v3104_v42, 16  ;;  %v3484_v8 = vshrl.u32 %v11436_v22, 16  ;;  %v10061_v10 = vld [vmem:[%s13945_s5 + $0x230] sm:$0xff]  ;;  %3944 = vmatpush.bf16.msrb.mxu3 %v10031_v27 }
 0x37a   : > { %4077 = vmatpush.bf16.msra.mxu0 %v10042_v2  ;;  %4319 = vmatpush.bf16.msra.mxu2 %v10061_v10  ;;  %v10201_v2 = vld [vmem:[%s10326_s29 + $0x38] sm:$0xff] }
 0x37b   : > { %v3482_v57 = vrot.slane %v3480_v15, 1  ;;  %v3293_v45 = vrot.slane %v3291_v43, 3  ;;  %v3296_v50 = vrot.slane %v3294_v36, 4  ;;  %4191 = vmatpush.bf16.msra.mxu1 %v10051_v12 }
 0x37d   : > { %v11459_v9 = vsel %vm785_vm1, %v3478_v18, %v3482_v57  ;;  %v3297_v25 = vor.u32 %v3296_v50, %v3293_v45  ;;  %v3486_v3 = vor.u32 %v3484_v8, %v3482_v57  ;;  %v10050_v45 = vld [vmem:[%s13945_s5 + $0x1d8] sm:$0xff] }
 0x37e   : > { %3584 = vmatmul.bf16.gmra.mxu0 %v11459_v9 }
 0x37f   : > { %v11466_v49 = vsel %vm589_vm0, %v3288_v7, %v3297_v25  ;;  %v10200_v7 = vld [vmem:[%s10326_s29 + $0x30] sm:$0xff]  ;;  %4078 = vmatpush.bf16.msra.mxu0 %v10041_v58  ;;  %4192 = vmatpush.bf16.msra.mxu1 %v10050_v45 }
 0x380   : > { %v3032_v63 = vpop.f32.mrf.mxu1  ;;  %3401 = vmatmul.bf16.gmra.mxu3 %v11466_v49  ;;  %3716 = vmatmul.bf16.gmra.mxu1 %v11466_v49 }
 0x381   : > { %v3046_v56 = vadd.f32 %v3032_v63, %v11304_v13  ;;  %v10040_v13 = vld [vmem:[%s13945_s5 + $0x188] sm:$0xff] }
 0x383   : > { %v3058_v53 = vadd.f32 %v11292_v28, %v3046_v56  ;;  %4079 = vmatpush.bf16.msra.mxu0 %v10040_v13 }
 0x385   : > { %v11485_v1 = vadd.f32 %v10200_v7, %v3058_v53  ;;  %v10060_v7 = vld [vmem:[%s13945_s5 + $0x228] sm:$0xff] }
 0x386   : > { %4320 = vmatpush.bf16.msra.mxu2 %v10060_v7 }
 0x387   : > { %v11491_v19 = vpack.c.bf16 0.0, %v11485_v1  ;;  %v3105_v26 = vpack.c.bf16 %v11485_v1, %v10210_v20  ;;  %4080 = vmatpush.bf16.msra.mxu0 %v10039_v37 }
 0x388   : > { %v3034_v44 = vpop.f32.mrf.mxu1 }
 0x389   : > { %3232 = vmatmul.bf16.gmra.mxu2 %v11491_v19  ;;  %v3488_v17 = vshll.u32 %v11491_v19, 16  ;;  %v3300_v5 = vshrl.u32 %v3105_v26, 16  ;;  %v3303_v42 = vshll.u32 %v3105_v26, 16 }
 0x38b   : > { %v3490_v15 = vrot.slane %v3488_v17, 1  ;;  %v3302_v43 = vrot.slane %v3300_v5, 3  ;;  %v3305_v36 = vrot.slane %v3303_v42, 4  ;;  %v10059_v42 = vld [vmem:[%s13945_s5 + $0x220] sm:$0xff] }
 0x38c   : > { %4321 = vmatpush.bf16.msra.mxu2 %v10059_v42 }
 0x38d   : > { %v11517_v47 = vsel %vm785_vm1, %v3486_v3, %v3490_v15  ;;  %v3306_v32 = vor.u32 %v3305_v36, %v3302_v43 }
 0x38e   : > { %3588 = vmatmul.bf16.gmra.mxu0 %v11517_v47 }
 0x38f   : > { %v11521_v18 = vsel %vm589_vm0, %v3297_v25, %v3306_v32  ;;  %v10049_v25 = vld [vmem:[%s13945_s5 + $0x1d0] sm:$0xff]  ;;  %v3316_v17 = vsel %vm589_vm0, %v3306_v32, %v10392_v48 }
 0x390   : > { %v3036_v57 = vpop.f32.mrf.mxu1  ;;  %3405 = vmatmul.bf16.gmra.mxu3 %v11521_v18  ;;  %3720 = vmatmul.bf16.gmra.mxu1 %v11521_v18 }
 0x391   : > { %v3047_v50 = vadd.f32 %v3036_v57, %v11325_v59  ;;  %4193 = vmatpush.bf16.msra.mxu1 %v10049_v25  ;;  %v3492_v59 = vshrl.u32 %v11491_v19, 16 }
 0x393   : > { %v3059_v31 = vadd.f32 %v11292_v28, %v3047_v50  ;;  %v10048_v28 = vld [vmem:[%s13945_s5 + $0x1c8] sm:$0xff]  ;;  %v11548_v13 = vor.u32 %v3492_v59, %v3490_v15 }
 0x395   : > { %v11534_v63 = vadd.f32 %v10201_v2, %v3059_v31  ;;  %4194 = vmatpush.bf16.msra.mxu1 %v10048_v28 }
 0x397   : > { %v3414_v61 = vpack.c.bf16 %v11534_v63, %v11534_v63  ;;  %v3605_v56 = vpack.c.bf16 %v11534_v63, %v10210_v20 }
 0x398   : > { %v3038_v58 = vpop.f32.mrf.mxu1 }
 0x399   : > { %3815 = vmatmul.bf16.vlgmr.msrb.gmra.mxu2 %v11302_v55  ;;  %v3496_v38 = vshll.u32 %v3414_v61, 16  ;;  %v3625_v35 = vshrl.u32 %v3605_v56, 16  ;;  %v3628_v53 = vshll.u32 %v3605_v56, 16  ;;  %v10047_v55 = vld [vmem:[%s13945_s5 + $0x1c0] sm:$0xff]  ;;  %v10057_v58 = vld [vmem:[%s13945_s5 + $0x210] sm:$0xff] }
 0x39a   : > { %4195 = vmatpush.bf16.msra.mxu1 %v10047_v55  ;;  %v10056_v55 = vld [vmem:[%s13945_s5 + $0x208] sm:$0xff] }
 0x39b   : > { %v3498_v26 = vrot.slane %v3496_v38, 1  ;;  %v3627_v44 = vrot.slane %v3625_v35, 3  ;;  %v3630_v14 = vrot.slane %v3628_v53, 4 }
 0x39d   : > { %v3499_v16 = vsel %vm785_vm1, %v11548_v13, %v3498_v26  ;;  %v3631_v8 = vor.u32 %v3630_v14, %v3627_v44 }
 0x39e   : > { %3592 = vmatmul.bf16.gmra.mxu0 %v3499_v16 }
 0x39f   : > { %v11558_v5 = vsel %vm589_vm0, %v3306_v32, %v3631_v8  ;;  %v11568_v3 = vsel %vm589_vm0, %v3631_v8, %v10392_v48 }
 0x3a0   : > { %3409 = vmatmul.bf16.gmra.mxu3 %v3316_v17  ;;  %3724 = vmatmul.bf16.gmra.mxu1 %v11558_v5 }
 0x3a9   : > { %3819 = vmatmul.bf16.gmra.mxu2 %v11321_v11 }
 0x3ab   : > { %v3565_v10 = vpop.f32.mrf.mxu0 }
 0x3ac   : > { %v3209_v37 = vpop.f32.mrf.mxu2 }
 0x3ae   : > { %4081 = vmatmul.bf16.vlgmr.msra.gmra.mxu0 %v11359_v4  ;;  %v10058_v4 = vld [vmem:[%s13945_s5 + $0x218] sm:$0xff] }
 0x3af   : > { %4322 = vmatpush.bf16.msra.mxu2 %v10058_v4 }
 0x3b0   : > { %3728 = vmatmul.bf16.gmra.mxu1 %v11568_v3  ;;  %3945 = vmatmul.bf16.vlgmr.msrb.gmra.mxu3 %v11334_v39 }
 0x3b3   : > { %v3382_v15 = vpop.f32.mrf.mxu3  ;;  %v3567_v43 = vpop.f32.mrf.mxu0  ;;  %4323 = vmatpush.bf16.msra.mxu2 %v10057_v58 }
 0x3b4   : > { %v3383_v36 = vadd.f32 %v3382_v15, %v11430_v60  ;;  %v3211_v27 = vpop.f32.mrf.mxu2 }
 0x3b5   : > { %v10055_v27 = vld [vmem:[%s13945_s5 + $0x200] sm:$0xff] }
 0x3b6   : > { %v3597_v12 = vadd.f32 %v3565_v10, %v3383_v36 }
 0x3b7   : > { %4324 = vmatpush.bf16.msra.mxu2 %v10056_v55 }
 0x3b9   : > { %3823 = vmatmul.bf16.gmra.mxu2 %v11344_v34 }
 0x3bb   : > { %v3384_v32 = vpop.f32.mrf.mxu3  ;;  %v3569_v57 = vpop.f32.mrf.mxu0  ;;  %4325 = vmatpush.bf16.msra.mxu2 %v10055_v27 }
 0x3bc   : > { %v3213_v45 = vpop.f32.mrf.mxu2 }
 0x3bd   : > { %v3701_v50 = vpop.f32.mrf.mxu1 }
 0x3be   : > { %v11577_v31 = vadd.f32 %v3701_v50, %v3597_v12  ;;  %4085 = vmatmul.bf16.gmra.mxu0 %v11384_v29 }
 0x3c0   : > { %3949 = vmatmul.bf16.gmra.mxu3 %v11355_v40  ;;  %4196 = vmatmul.bf16.vlgmr.msra.gmra.mxu1 %v11321_v11 }
 0x3c3   : > { %v3386_v39 = vpop.f32.mrf.mxu3  ;;  %v3571_v60 = vpop.f32.mrf.mxu0 }
 0x3c4   : > { %v3387_v25 = vadd.f32 %v3386_v39, %v3209_v37  ;;  %v3215_v2 = vpop.f32.mrf.mxu2 }
 0x3c5   : > { %v3703_v61 = vpop.f32.mrf.mxu1 }
 0x3c6   : > { %v3598_v56 = vadd.f32 %v3569_v57, %v3387_v25  ;;  %v10078_v25 = vld [vmem:[%s13947_s7 + $0x78] sm:$0xff] }
 0x3c7   : > { %4523 = vmatpush.bf16.msra.mxu3 %v10078_v25 }
 0x3c9   : > { %3827 = vmatmul.bf16.gmra.mxu2 %v11369_v46 }
 0x3cb   : > { %v3388_v28 = vpop.f32.mrf.mxu3  ;;  %v3573_v59 = vpop.f32.mrf.mxu0 }
 0x3cc   : > { %v3217_v29 = vpop.f32.mrf.mxu2 }
 0x3cd   : > { %v3705_v38 = vpop.f32.mrf.mxu1 }
 0x3ce   : > { %v11586_v35 = vadd.f32 %v3705_v38, %v3598_v56  ;;  %4089 = vmatmul.bf16.gmra.mxu0 %v11412_v54 }
 0x3d0   : > { %3953 = vmatmul.bf16.gmra.mxu3 %v11380_v41  ;;  %4200 = vmatmul.bf16.gmra.mxu1 %v11344_v34 }
 0x3d3   : > { %v3390_v11 = vpop.f32.mrf.mxu3  ;;  %v3575_v53 = vpop.f32.mrf.mxu0 }
 0x3d4   : > { %v3391_v7 = vadd.f32 %v3390_v11, %v3213_v45  ;;  %v3219_v26 = vpop.f32.mrf.mxu2 }
 0x3d5   : > { %v3707_v44 = vpop.f32.mrf.mxu1 }
 0x3d6   : > { %v3599_v14 = vadd.f32 %v3573_v59, %v3391_v7  ;;  %v10077_v7 = vld [vmem:[%s13947_s7 + $0x70] sm:$0xff] }
 0x3d7   : > { %4524 = vmatpush.bf16.msra.mxu3 %v10077_v7  ;;  %v10074_v7 = vld [vmem:[%s13947_s7 + $0x58] sm:$0xff] }
 0x3d9   : > { %3831 = vmatmul.bf16.gmra.mxu2 %v11394_v30 }
 0x3db   : > { %v3392_v16 = vpop.f32.mrf.mxu3  ;;  %v3577_v8 = vpop.f32.mrf.mxu0 }
 0x3dc   : > { %v3221_v54 = vpop.f32.mrf.mxu2 }
 0x3dd   : > { %v3709_v17 = vpop.f32.mrf.mxu1 }
 0x3de   : > { %v11595_v42 = vadd.f32 %v3709_v17, %v3599_v14  ;;  %4093 = vmatmul.bf16.gmra.mxu0 %v11466_v49 }
 0x3e0   : > { %3957 = vmatmul.bf16.gmra.mxu3 %v11405_v33  ;;  %4204 = vmatmul.bf16.gmra.mxu1 %v11369_v46 }
 0x3e3   : > { %v3394_v34 = vpop.f32.mrf.mxu3  ;;  %v3579_v10 = vpop.f32.mrf.mxu0 }
 0x3e4   : > { %v3395_v37 = vadd.f32 %v3394_v34, %v3217_v29  ;;  %v3223_v15 = vpop.f32.mrf.mxu2  ;;  %v3741_v29 = vpack.c.bf16 0.0, %v11534_v63 }
 0x3e5   : > { %v3711_v43 = vpop.f32.mrf.mxu1 }
 0x3e6   : > { %v3600_v36 = vadd.f32 %v3577_v8, %v3395_v37  ;;  %v3875_v44 = vshll.u32 %v3741_v29, 16  ;;  %v10076_v43 = vld [vmem:[%s13947_s7 + $0x68] sm:$0xff] }
 0x3e7   : > { %4525 = vmatpush.bf16.msra.mxu3 %v10076_v43 }
 0x3e8   : > { %v3877_v55 = vrot.slane %v3875_v44, 1 }
 0x3e9   : > { %3835 = vmatmul.bf16.gmra.mxu2 %v11436_v22 }
 0x3eb   : > { %v3396_v12 = vpop.f32.mrf.mxu3  ;;  %v3581_v4 = vpop.f32.mrf.mxu0 }
 0x3ec   : > { %v3225_v49 = vpop.f32.mrf.mxu2 }
 0x3ed   : > { %v3713_v32 = vpop.f32.mrf.mxu1 }
 0x3ee   : > { %v11604_v57 = vadd.f32 %v3713_v32, %v3600_v36  ;;  %4097 = vmatmul.bf16.gmra.mxu0 %v11521_v18 }
 0x3f0   : > { %3961 = vmatmul.bf16.gmra.mxu3 %v11459_v9  ;;  %4208 = vmatmul.bf16.gmra.mxu1 %v11394_v30 }
 0x3f3   : > { %v3398_v46 = vpop.f32.mrf.mxu3  ;;  %v3583_v45 = vpop.f32.mrf.mxu0 }
 0x3f4   : > { %v3399_v50 = vadd.f32 %v3398_v46, %v3221_v54  ;;  %v3227_v39 = vpop.f32.mrf.mxu2  ;;  %v11627_v54 = vsel %vm785_vm1, %v11548_v13, %v3877_v55 }
 0x3f5   : > { %v3715_v60 = vpop.f32.mrf.mxu1 }
 0x3f6   : > { %v3601_v2 = vadd.f32 %v3581_v4, %v3399_v50 }
 0x3f9   : > { %3839 = vmatmul.bf16.gmra.mxu2 %v11491_v19 }
 0x3fb   : > { %v3400_v61 = vpop.f32.mrf.mxu3  ;;  %v3585_v56 = vpop.f32.mrf.mxu0 }
 0x3fc   : > { %v3229_v18 = vpop.f32.mrf.mxu2 }
 0x3fd   : > { %v3717_v58 = vpop.f32.mrf.mxu1 }
 0x3fe   : > { %v11613_v28 = vadd.f32 %v3717_v58, %v3601_v2  ;;  %4101 = vmatmul.bf16.gmra.mxu0 %v11558_v5 }
 0x400   : > { %3965 = vmatmul.bf16.gmra.mxu3 %v11517_v47  ;;  %4212 = vmatmul.bf16.gmra.mxu1 %v11436_v22 }
 0x403   : > { %v3402_v30 = vpop.f32.mrf.mxu3  ;;  %v3587_v59 = vpop.f32.mrf.mxu0 }
 0x404   : > { %v3403_v38 = vadd.f32 %v3402_v30, %v3225_v49  ;;  %v3231_v11 = vpop.f32.mrf.mxu2 }
 0x405   : > { %v3719_v53 = vpop.f32.mrf.mxu1 }
 0x406   : > { %v3602_v26 = vadd.f32 %v3585_v56, %v3403_v38 }
 0x409   : > { %3843 = vmatmul.bf16.gmra.mxu2 %v3741_v29 }
 0x40b   : > { %v3404_v5 = vpop.f32.mrf.mxu3  ;;  %v3589_v14 = vpop.f32.mrf.mxu0 }
 0x40c   : > { %v3233_v16 = vpop.f32.mrf.mxu2 }
 0x40d   : > { %v3721_v22 = vpop.f32.mrf.mxu1 }
 0x40e   : > { %v11622_v8 = vadd.f32 %v3721_v22, %v3602_v26  ;;  %4105 = vmatmul.bf16.gmra.mxu0 %v11568_v3  ;;  %v3879_v3 = vshrl.u32 %v3741_v29, 16 }
 0x410   : > { %3969 = vmatmul.bf16.gmra.mxu3 %v11627_v54  ;;  %4216 = vmatmul.bf16.gmra.mxu1 %v11491_v19  ;;  %v3881_v12 = vor.u32 %v3879_v3, %v3877_v55 }
 0x412   : > { %v11641_v46 = vsel %vm785_vm1, %v3881_v12, %v10400_v52 }
 0x413   : > { %v3406_v17 = vpop.f32.mrf.mxu3  ;;  %v3591_v34 = vpop.f32.mrf.mxu0 }
 0x414   : > { %v3407_v10 = vadd.f32 %v3406_v17, %v3229_v18  ;;  %v3235_v37 = vpop.f32.mrf.mxu2 }
 0x415   : > { %v3723_v15 = vpop.f32.mrf.mxu1  ;;  %v10073_v37 = vld [vmem:[%s13947_s7 + $0x50] sm:$0xff] }
 0x416   : > { %v3603_v36 = vadd.f32 %v3589_v14, %v3407_v10 }
 0x419   : > { %4326 = vmatmul.bf16.vlgmr.msra.gmra.mxu2 %v11355_v40 }
 0x41b   : > { %v3408_v13 = vpop.f32.mrf.mxu3  ;;  %v3593_v27 = vpop.f32.mrf.mxu0 }
 0x41c   : > { %v3816_v4 = vpop.f32.mrf.mxu2 }
 0x41d   : > { %v3848_v19 = vadd.f32 %v3816_v4, %v11577_v31  ;;  %v3725_v49 = vpop.f32.mrf.mxu1  ;;  %v10075_v31 = vld [vmem:[%s13947_s7 + $0x60] sm:$0xff] }
 0x41e   : > { %v11636_v32 = vadd.f32 %v3725_v49, %v3603_v36  ;;  %4109 = vmatmul.bf16.gmra.mxu0 %v10392_v48  ;;  %4526 = vmatpush.bf16.msra.mxu3 %v10075_v31 }
 0x420   : > { %3973 = vmatmul.bf16.gmra.mxu3 %v11641_v46  ;;  %4220 = vmatmul.bf16.gmra.mxu1 %v3741_v29 }
 0x422   : > { %4527 = vmatpush.bf16.msra.mxu3 %v10074_v7 }
 0x423   : > { %v3410_v40 = vpop.f32.mrf.mxu3  ;;  %v3595_v45 = vpop.f32.mrf.mxu0 }
 0x424   : > { %v3411_v50 = vadd.f32 %v3410_v40, %v3233_v16  ;;  %v3818_v39 = vpop.f32.mrf.mxu2  ;;  %v10072_v40 = vld [vmem:[%s13947_s7 + $0x48] sm:$0xff] }
 0x425   : > { %v3727_v60 = vpop.f32.mrf.mxu1 }
 0x426   : > { %v3604_v25 = vadd.f32 %v3593_v27, %v3411_v50  ;;  %4528 = vmatpush.bf16.msra.mxu3 %v10073_v37  ;;  %v10083_v37 = vld [vmem:[%s13947_s7 + $0xa0] sm:$0xff] }
 0x429   : > { %4330 = vmatmul.bf16.gmra.mxu2 %v11380_v41 }
 0x42a   : > { %4529 = vmatpush.bf16.msra.mxu3 %v10072_v40 }
 0x42b   : > { %v3412_v2 = vpop.f32.mrf.mxu3  ;;  %v4082_v61 = vpop.f32.mrf.mxu0 }
 0x42c   : > { %v3820_v56 = vpop.f32.mrf.mxu2 }
 0x42d   : > { %v3849_v18 = vadd.f32 %v3820_v56, %v11586_v35  ;;  %v3729_v58 = vpop.f32.mrf.mxu1 }
 0x42e   : > { %v11649_v30 = vadd.f32 %v3729_v58, %v3604_v25  ;;  %v10071_v58 = vld [vmem:[%s13947_s7 + $0x40] sm:$0xff] }
 0x42f   : > { %4530 = vmatpush.bf16.msra.mxu3 %v10071_v58 }
 0x430   : > { %4224 = vmatmul.bf16.gmra.mxu1 %v10212_v62 }
 0x432   : > { %4531 = vmatmul.bf16.vlgmr.msra.gmra.mxu3 %v10212_v62 }
 0x433   : > { %v3946_v59 = vpop.f32.mrf.mxu3  ;;  %v4084_v29 = vpop.f32.mrf.mxu0 }
 0x434   : > { %v3978_v38 = vadd.f32 %v3946_v59, %v3848_v19  ;;  %v3822_v11 = vpop.f32.mrf.mxu2 }
 0x435   : > { %v3731_v53 = vpop.f32.mrf.mxu1 }
 0x436   : > { %v4114_v41 = vadd.f32 %v4082_v61, %v3978_v38  ;;  %v10086_v38 = vld [vmem:[%s13947_s7 + $0xb8] sm:$0xff] }
 0x437   : > { %4883 = vmatpush.bf16.msrb.mxu1 %v10086_v38 }
 0x439   : > { %4334 = vmatmul.bf16.gmra.mxu2 %v11405_v33 }
 0x43b   : > { %v3948_v26 = vpop.f32.mrf.mxu3  ;;  %v4086_v35 = vpop.f32.mrf.mxu0 }
 0x43c   : > { %v3824_v44 = vpop.f32.mrf.mxu2  ;;  %v10069_v26 = vld [vmem:[%s13947_s7 + $0x30] sm:$0xff] }
 0x43d   : > { %v3850_v5 = vadd.f32 %v3824_v44, %v11595_v42  ;;  %v4197_v14 = vpop.f32.mrf.mxu1 }
 0x43e   : > { %v11657_v55 = vadd.f32 %v4197_v14, %v4114_v41  ;;  %v10070_v41 = vld [vmem:[%s13947_s7 + $0x38] sm:$0xff]  ;;  %v10084_v14 = vld [vmem:[%s13947_s7 + $0xa8] sm:$0xff] }
 0x43f   : > { %4700 = vmatpush.bf16.msrb.mxu0 %v10070_v41 }
 0x443   : > { %v3950_v16 = vpop.f32.mrf.mxu3  ;;  %v4088_v22 = vpop.f32.mrf.mxu0  ;;  %4701 = vmatpush.bf16.msrb.mxu0 %v10069_v26 }
 0x444   : > { %v3979_v17 = vadd.f32 %v3950_v16, %v3849_v18  ;;  %v3826_v34 = vpop.f32.mrf.mxu2  ;;  %v10094_v22 = vld [vmem:[%s13947_s7 + $0xf8] sm:$0xff] }
 0x445   : > { %v4199_v10 = vpop.f32.mrf.mxu1  ;;  %v10102_v34 = vld [vmem:[%s13947_s7 + $0x138] sm:$0xff]  ;;  %5019 = vmatpush.bf16.msrb.mxu2 %v10094_v22  ;;  %v11773_v22 = vld [vmem:[%s13946_s6] ss:$0 sm:$0xff] }
 0x446   : > { %v4115_v15 = vadd.f32 %v4086_v35, %v3979_v17  ;;  %v10068_v17 = vld [vmem:[%s13947_s7 + $0x28] sm:$0xff]  ;;  %5134 = vmatpush.bf16.msrb.mxu3 %v10102_v34 }
 0x447   : > { %4702 = vmatpush.bf16.msrb.mxu0 %v10068_v17 }
 0x449   : > { %4338 = vmatmul.bf16.gmra.mxu2 %v11459_v9 }
 0x44b   : > { %v3952_v33 = vpop.f32.mrf.mxu3  ;;  %v4090_v43 = vpop.f32.mrf.mxu0 }
 0x44c   : > { %v3828_v36 = vpop.f32.mrf.mxu2 }
 0x44d   : > { %v3851_v42 = vadd.f32 %v3828_v36, %v11604_v57  ;;  %v4201_v3 = vpop.f32.mrf.mxu1 }
 0x44e   : > { %v11664_v13 = vadd.f32 %v4201_v3, %v4115_v15  ;;  %v10067_v15 = vld [vmem:[%s13947_s7 + $0x20] sm:$0xff] }
 0x44f   : > { %4703 = vmatpush.bf16.msrb.mxu0 %v10067_v15 }
 0x453   : > { %v3954_v27 = vpop.f32.mrf.mxu3  ;;  %v4092_v12 = vpop.f32.mrf.mxu0 }
 0x454   : > { %v3980_v4 = vadd.f32 %v3954_v27, %v3850_v5  ;;  %v3830_v19 = vpop.f32.mrf.mxu2 }
 0x455   : > { %v4203_v49 = vpop.f32.mrf.mxu1  ;;  %v10065_v19 = vld [vmem:[%s13947_s7 + $0x10] sm:$0xff] }
 0x456   : > { %v4116_v45 = vadd.f32 %v4090_v43, %v3980_v4  ;;  %v10081_v4 = vld [vmem:[%s13947_s7 + $0x90] sm:$0xff] }
 0x459   : > { %4342 = vmatmul.bf16.gmra.mxu2 %v11517_v47 }
 0x45b   : > { %v3956_v9 = vpop.f32.mrf.mxu3  ;;  %v4094_v50 = vpop.f32.mrf.mxu0 }
 0x45c   : > { %v3832_v39 = vpop.f32.mrf.mxu2 }
 0x45d   : > { %v3852_v57 = vadd.f32 %v3832_v39, %v11613_v28  ;;  %v4205_v60 = vpop.f32.mrf.mxu1 }
 0x45e   : > { %v11671_v31 = vadd.f32 %v4205_v60, %v4116_v45  ;;  %v10064_v60 = vld [vmem:[%s13947_s7 + $0x8] sm:$0xff] }
 0x463   : > { %v3958_v25 = vpop.f32.mrf.mxu3  ;;  %v4096_v2 = vpop.f32.mrf.mxu0 }
 0x464   : > { %v3981_v61 = vadd.f32 %v3958_v25, %v3851_v42  ;;  %v3834_v56 = vpop.f32.mrf.mxu2  ;;  %v10082_v42 = vld [vmem:[%s13947_s7 + $0x98] sm:$0xff]  ;;  %v10092_v25 = vld [vmem:[%s13947_s7 + $0xe8] sm:$0xff]  ;;  %v10079_v2 = vld [vmem:[%s13947_s7 + $0x80] sm:$0xff] }
 0x465   : > { %v4207_v18 = vpop.f32.mrf.mxu1  ;;  %v10063_v56 = vld [vmem:[%s13947_s7] sm:$0xff] }
 0x466   : > { %v4117_v59 = vadd.f32 %v4094_v50, %v3981_v61  ;;  %v10080_v50 = vld [vmem:[%s13947_s7 + $0x88] sm:$0xff]  ;;  %v10101_v61 = vld [vmem:[%s13947_s7 + $0x130] sm:$0xff]  ;;  %v10091_v18 = vld [vmem:[%s13947_s7 + $0xe0] sm:$0xff] }
 0x467   : > { %5135 = vmatpush.bf16.msrb.mxu3 %v10101_v61 }
 0x469   : > { %4346 = vmatmul.bf16.gmra.mxu2 %v11627_v54  ;;  %v10085_v54 = vld [vmem:[%s13947_s7 + $0xb0] sm:$0xff] }
 0x46a   : > { %4884 = vmatpush.bf16.msrb.mxu1 %v10085_v54 }
 0x46b   : > { %v3960_v47 = vpop.f32.mrf.mxu3  ;;  %v4098_v28 = vpop.f32.mrf.mxu0 }
 0x46c   : > { %v3836_v29 = vpop.f32.mrf.mxu2 }
 0x46d   : > { %v3853_v11 = vadd.f32 %v3836_v29, %v11622_v8  ;;  %v4209_v53 = vpop.f32.mrf.mxu1 }
 0x46e   : > { %v11682_v7 = vadd.f32 %v4209_v53, %v4117_v59  ;;  %4885 = vmatpush.bf16.msrb.mxu1 %v10084_v14  ;;  %v10089_v53 = vld [vmem:[%s13947_s7 + $0xd0] sm:$0xff]  ;;  %v10087_v14 = vld [vmem:[%s13947_s7 + $0xc0] sm:$0xff] }
 0x472   : > { %4886 = vmatpush.bf16.msrb.mxu1 %v10083_v37 }
 0x473   : > { %v3962_v35 = vpop.f32.mrf.mxu3  ;;  %v4100_v8 = vpop.f32.mrf.mxu0 }
 0x474   : > { %v3982_v44 = vadd.f32 %v3962_v35, %v3852_v57  ;;  %v3838_v5 = vpop.f32.mrf.mxu2 }
 0x475   : > { %v4211_v16 = vpop.f32.mrf.mxu1  ;;  %v10100_v5 = vld [vmem:[%s13947_s7 + $0x128] sm:$0xff] }
 0x476   : > { %v4118_v10 = vadd.f32 %v4098_v28, %v3982_v44  ;;  %4887 = vmatpush.bf16.msrb.mxu1 %v10082_v42  ;;  %5136 = vmatpush.bf16.msrb.mxu3 %v10100_v5 }
 0x479   : > { %4350 = vmatmul.bf16.gmra.mxu2 %v11641_v46  ;;  %v10066_v46 = vld [vmem:[%s13947_s7 + $0x18] sm:$0xff] }
 0x47a   : > { %4704 = vmatpush.bf16.msrb.mxu0 %v10066_v46  ;;  %4888 = vmatpush.bf16.msrb.mxu1 %v10081_v4 }
 0x47b   : > { %v3964_v33 = vpop.f32.mrf.mxu3  ;;  %v4102_v43 = vpop.f32.mrf.mxu0 }
 0x47c   : > { %v3840_v36 = vpop.f32.mrf.mxu2 }
 0x47d   : > { %v3854_v3 = vadd.f32 %v3840_v36, %v11636_v32  ;;  %v4213_v27 = vpop.f32.mrf.mxu1  ;;  %v10093_v32 = vld [vmem:[%s13947_s7 + $0xf0] sm:$0xff] }
 0x47e   : > { %v11716_v12 = vadd.f32 %v4213_v27, %v4118_v10  ;;  %4705 = vmatpush.bf16.msrb.mxu0 %v10065_v19  ;;  %5020 = vmatpush.bf16.msrb.mxu2 %v10093_v32 }
 0x47f   : > { %4889 = vmatpush.bf16.msrb.mxu1 %v10080_v50 }
 0x482   : > { %4706 = vmatpush.bf16.msrb.mxu0 %v10064_v60  ;;  %5021 = vmatpush.bf16.msrb.mxu2 %v10092_v25 }
 0x483   : > { %v3966_v49 = vpop.f32.mrf.mxu3  ;;  %v4104_v40 = vpop.f32.mrf.mxu0  ;;  %4890 = vmatpush.bf16.msrb.mxu1 %v10079_v2 }
 0x484   : > { %v3983_v45 = vadd.f32 %v3966_v49, %v3853_v11  ;;  %v3842_v9 = vpop.f32.mrf.mxu2  ;;  %v10090_v11 = vld [vmem:[%s13947_s7 + $0xd8] sm:$0xff] }
 0x485   : > { %v4215_v39 = vpop.f32.mrf.mxu1  ;;  %v10099_v9 = vld [vmem:[%s13947_s7 + $0x120] sm:$0xff] }
 0x486   : > { %v4119_v57 = vadd.f32 %v4102_v43, %v3983_v45  ;;  %4707 = vmatpush.bf16.msrb.mxu0 %v10063_v56  ;;  %5022 = vmatpush.bf16.msrb.mxu2 %v10091_v18 }
 0x487   : > { %5137 = vmatpush.bf16.msrb.mxu3 %v10099_v9 }
 0x489   : > { %4354 = vmatmul.bf16.gmra.mxu2 %v10400_v52 }
 0x48a   : > { %5023 = vmatpush.bf16.msrb.mxu2 %v10090_v11 }
 0x48b   : > { %v3968_v58 = vpop.f32.mrf.mxu3  ;;  %v4106_v59 = vpop.f32.mrf.mxu0 }
 0x48c   : > { %v3844_v47 = vpop.f32.mrf.mxu2 }
 0x48d   : > { %v3855_v28 = vadd.f32 %v3844_v47, %v11649_v30  ;;  %v4217_v29 = vpop.f32.mrf.mxu1  ;;  %v10088_v30 = vld [vmem:[%s13947_s7 + $0xc8] sm:$0xff] }
 0x48e   : > { %v11753_v38 = vadd.f32 %v4217_v29, %v4119_v57  ;;  %5024 = vmatpush.bf16.msrb.mxu2 %v10089_v53 }
 0x492   : > { %5025 = vmatpush.bf16.msrb.mxu2 %v10088_v30 }
 0x493   : > { %v3970_v41 = vpop.f32.mrf.mxu3  ;;  %v4108_v54 = vpop.f32.mrf.mxu0 }
 0x494   : > { %v3984_v26 = vadd.f32 %v3970_v41, %v3854_v3  ;;  %v3846_v35 = vpop.f32.mrf.mxu2 }
 0x495   : > { %v4219_v8 = vpop.f32.mrf.mxu1 }
 0x496   : > { %v4120_v44 = vadd.f32 %v4106_v59, %v3984_v26  ;;  %5026 = vmatpush.bf16.msrb.mxu2 %v10087_v14 }
 0x49b   : > { %v3972_v16 = vpop.f32.mrf.mxu3  ;;  %v4110_v17 = vpop.f32.mrf.mxu0 }
 0x49c   : > { %v4327_v34 = vpop.f32.mrf.mxu2 }
 0x49d   : > { %v4359_v10 = vadd.f32 %v4327_v34, %v11657_v55  ;;  %v4221_v37 = vpop.f32.mrf.mxu1 }
 0x49e   : > { %v11776_v15 = vadd.f32 %v4221_v37, %v4120_v44  ;;  %v10098_v44 = vld [vmem:[%s13947_s7 + $0x118] sm:$0xff] }
 0x49f   : > { %v4371_v33 = vadd.f32 %v11773_v22, %v4359_v10  ;;  %5138 = vmatpush.bf16.msrb.mxu3 %v10098_v44 }
 0x4a1   : > { %v4379_v43 = vmax.f32 %v4371_v33, 0.0 }
 0x4a3   : > { %v4387_v36 = vadd.f32 %v4379_v43, %v11297_v6  ;;  %v3974_v42 = vpop.f32.mrf.mxu3  ;;  %v4112_v3 = vpop.f32.mrf.mxu0 }
 0x4a4   : > { %v3985_v27 = vadd.f32 %v3974_v42, %v3855_v28  ;;  %v4329_v46 = vpop.f32.mrf.mxu2 }
 0x4a5   : > { %v4426_v4 = vpack.c.bf16 %v4387_v36, %v10210_v20  ;;  %v11781_v19 = vpack.c.bf16 0.0, %v4387_v36  ;;  %v4223_v32 = vpop.f32.mrf.mxu1 }
 0x4a6   : > { %v4121_v49 = vadd.f32 %v4110_v17, %v3985_v27 }
 0x4a7   : > { %v4573_v40 = vshrl.u32 %v4426_v4, 16  ;;  %v4576_v55 = vshll.u32 %v4426_v4, 16  ;;  %4535 = vmatmul.bf16.gmra.mxu3 %v11781_v19  ;;  %v4767_v45 = vshll.u32 %v11781_v19, 16 }
 0x4a9   : > { %v4575_v50 = vrot.slane %v4573_v40, 3  ;;  %v4578_v39 = vrot.slane %v4576_v55, 4  ;;  %v4769_v57 = vrot.slane %v4767_v45, 1  ;;  %v10097_v40 = vld [vmem:[%s13947_s7 + $0x110] sm:$0xff] }
 0x4aa   : > { %5139 = vmatpush.bf16.msrb.mxu3 %v10097_v40 }
 0x4ab   : > { %v3976_v60 = vpop.f32.mrf.mxu3  ;;  %v4770_v25 = vsel %vm785_vm1, %v10400_v52, %v4769_v57  ;;  %v4579_v2 = vor.u32 %v4578_v39, %v4575_v50 }
 0x4ac   : > { %v4331_v61 = vpop.f32.mrf.mxu2  ;;  %4891 = vmatmul.bf16.vlgmr.msrb.gmra.mxu1 %v4770_v25 }
 0x4ad   : > { %v4360_v56 = vadd.f32 %v4331_v61, %v11664_v13  ;;  %v4225_v18 = vpop.f32.mrf.mxu1  ;;  %v4580_v58 = vsel %vm589_vm0, %v10392_v48, %v4579_v2  ;;  %v4771_v13 = vshrl.u32 %v11781_v19, 16 }
 0x4ae   : > { %v11793_v59 = vadd.f32 %v4225_v18, %v4121_v49  ;;  %4708 = vmatmul.bf16.vlgmr.msrb.gmra.mxu0 %v4580_v58 }
 0x4af   : > { %v4372_v47 = vadd.f32 %v11773_v22, %v4360_v56  ;;  %v4773_v30 = vor.u32 %v4771_v13, %v4769_v57 }
 0x4b1   : > { %v4380_v28 = vmax.f32 %v4372_v47, 0.0 }
 0x4b3   : > { %v4388_v29 = vadd.f32 %v4380_v28, %v11318_v21 }
 0x4b4   : > { %v4333_v11 = vpop.f32.mrf.mxu2 }
 0x4b5   : > { %v4427_v53 = vpack.c.bf16 %v4388_v29, %v10210_v20  ;;  %v11798_v41 = vpack.c.bf16 0.0, %v4388_v29  ;;  %v4227_v54 = vpop.f32.mrf.mxu1 }
 0x4b6   : > { %v10096_v54 = vld [vmem:[%s13947_s7 + $0x108] sm:$0xff] }
 0x4b7   : > { %4539 = vmatmul.bf16.gmra.mxu3 %v11798_v41  ;;  %v4775_v26 = vshll.u32 %v11798_v41, 16  ;;  %v4582_v35 = vshrl.u32 %v4427_v53, 16  ;;  %v4585_v8 = vshll.u32 %v4427_v53, 16  ;;  %v4779_v4 = vshrl.u32 %v11798_v41, 16 }
 0x4b8   : > { %5140 = vmatpush.bf16.msrb.mxu3 %v10096_v54  ;;  %v10126_v54 = vld [vmem:[%s13947_s7 + $0x1f8] sm:$0xff] }
 0x4b9   : > { %v4777_v5 = vrot.slane %v4775_v26, 1  ;;  %v4584_v14 = vrot.slane %v4582_v35, 3  ;;  %v4587_v16 = vrot.slane %v4585_v8, 4  ;;  %5515 = vmatpush.bf16.msra.mxu2 %v10126_v54 }
 0x4bb   : > { %v11807_v17 = vsel %vm785_vm1, %v4773_v30, %v4777_v5  ;;  %v4588_v34 = vor.u32 %v4587_v16, %v4584_v14  ;;  %v4781_v55 = vor.u32 %v4779_v4, %v4777_v5  ;;  %v10095_v4 = vld [vmem:[%s13947_s7 + $0x100] sm:$0xff] }
 0x4bc   : > { %v4335_v10 = vpop.f32.mrf.mxu2  ;;  %4895 = vmatmul.bf16.gmra.mxu1 %v11807_v17  ;;  %5141 = vmatpush.bf16.msrb.mxu3 %v10095_v4  ;;  %v10114_v4 = vld [vmem:[%s13947_s7 + $0x198] sm:$0xff] }
 0x4bd   : > { %v4361_v37 = vadd.f32 %v4335_v10, %v11671_v31  ;;  %v4589_v33 = vsel %vm589_vm0, %v4579_v2, %v4588_v34 }
 0x4be   : > { %4712 = vmatmul.bf16.gmra.mxu0 %v4589_v33  ;;  %5027 = vmatmul.bf16.vlgmr.msrb.gmra.mxu2 %v4589_v33 }
 0x4bf   : > { %v4373_v43 = vadd.f32 %v11773_v22, %v4361_v37 }
 0x4c1   : > { %v4381_v36 = vmax.f32 %v4373_v43, 0.0 }
 0x4c3   : > { %v4389_v42 = vadd.f32 %v4381_v36, %v11341_v0 }
 0x4c4   : > { %v4337_v3 = vpop.f32.mrf.mxu2 }
 0x4c5   : > { %v4428_v27 = vpack.c.bf16 %v4389_v42, %v10210_v20  ;;  %v11815_v46 = vpack.c.bf16 0.0, %v4389_v42 }
 0x4c7   : > { %4543 = vmatmul.bf16.gmra.mxu3 %v11815_v46  ;;  %v4783_v31 = vshll.u32 %v11815_v46, 16  ;;  %v4591_v32 = vshrl.u32 %v4428_v27, 16  ;;  %v4594_v49 = vshll.u32 %v4428_v27, 16 }
 0x4c9   : > { %v4785_v45 = vrot.slane %v4783_v31, 1  ;;  %v4593_v9 = vrot.slane %v4591_v32, 3  ;;  %v4596_v50 = vrot.slane %v4594_v49, 4 }
 0x4cb   : > { %v11824_v39 = vsel %vm785_vm1, %v4781_v55, %v4785_v45  ;;  %v4597_v57 = vor.u32 %v4596_v50, %v4593_v9  ;;  %v10118_v50 = vld [vmem:[%s13947_s7 + $0x1b8] sm:$0xff] }
 0x4cc   : > { %v4339_v60 = vpop.f32.mrf.mxu2  ;;  %4899 = vmatmul.bf16.gmra.mxu1 %v11824_v39 }
 0x4cd   : > { %v4362_v25 = vadd.f32 %v4339_v60, %v11682_v7  ;;  %v11829_v2 = vsel %vm589_vm0, %v4588_v34, %v4597_v57  ;;  %v4787_v7 = vshrl.u32 %v11815_v46, 16  ;;  %5400 = vmatpush.bf16.msra.mxu1 %v10118_v50 }
 0x4ce   : > { %4716 = vmatmul.bf16.gmra.mxu0 %v11829_v2  ;;  %5031 = vmatmul.bf16.gmra.mxu2 %v11829_v2 }
 0x4cf   : > { %v4374_v61 = vadd.f32 %v11773_v22, %v4362_v25  ;;  %v4789_v13 = vor.u32 %v4787_v7, %v4785_v45  ;;  %v10110_v25 = vld [vmem:[%s13947_s7 + $0x178] sm:$0xff] }
 0x4d0   : > { %5264 = vmatpush.bf16.msra.mxu0 %v10110_v25  ;;  %v10112_v25 = vld [vmem:[%s13947_s7 + $0x188] sm:$0xff] }
 0x4d1   : > { %v4382_v56 = vmax.f32 %v4374_v61, 0.0 }
 0x4d3   : > { %v4390_v18 = vadd.f32 %v4382_v56, %v11366_v23  ;;  %v10117_v56 = vld [vmem:[%s13947_s7 + $0x1b0] sm:$0xff] }
 0x4d4   : > { %v4341_v58 = vpop.f32.mrf.mxu2  ;;  %5401 = vmatpush.bf16.msra.mxu1 %v10117_v56 }
 0x4d5   : > { %v4429_v47 = vpack.c.bf16 %v4390_v18, %v10210_v20  ;;  %v11836_v28 = vpack.c.bf16 0.0, %v4390_v18  ;;  %v10109_v18 = vld [vmem:[%s13947_s7 + $0x170] sm:$0xff] }
 0x4d6   : > { %5265 = vmatpush.bf16.msra.mxu0 %v10109_v18  ;;  %v10104_v18 = vld [vmem:[%s13947_s7 + $0x148] sm:$0xff] }
 0x4d7   : > { %4547 = vmatmul.bf16.gmra.mxu3 %v11836_v28  ;;  %v4791_v29 = vshll.u32 %v11836_v28, 16  ;;  %v4600_v11 = vshrl.u32 %v4429_v47, 16  ;;  %v4603_v53 = vshll.u32 %v4429_v47, 16  ;;  %v11889_v47 = vpop.f32.mrf.mxu3 }
 0x4d9   : > { %v4793_v26 = vrot.slane %v4791_v29, 1  ;;  %v4602_v35 = vrot.slane %v4600_v11, 3  ;;  %v4605_v8 = vrot.slane %v4603_v53, 4  ;;  %v10116_v29 = vld [vmem:[%s13947_s7 + $0x1a8] sm:$0xff] }
 0x4da   : > { %5402 = vmatpush.bf16.msra.mxu1 %v10116_v29 }
 0x4db   : > { %v11845_v44 = vsel %vm785_vm1, %v4789_v13, %v4793_v26  ;;  %v4606_v30 = vor.u32 %v4605_v8, %v4602_v35  ;;  %v10108_v13 = vld [vmem:[%s13947_s7 + $0x168] sm:$0xff] }
 0x4dc   : > { %v4343_v5 = vpop.f32.mrf.mxu2  ;;  %4903 = vmatmul.bf16.gmra.mxu1 %v11845_v44  ;;  %5266 = vmatpush.bf16.msra.mxu0 %v10108_v13  ;;  %v10133_v13 = vld [vmem:[%s13947_s7 + $0x230] sm:$0xff] }
 0x4dd   : > { %v4363_v14 = vadd.f32 %v4343_v5, %v11716_v12  ;;  %v11850_v16 = vsel %vm589_vm0, %v4597_v57, %v4606_v30  ;;  %v4795_v12 = vshrl.u32 %v11836_v28, 16  ;;  %v10134_v5 = vld [vmem:[%s13947_s7 + $0x238] sm:$0xff] }
 0x4de   : > { %4720 = vmatmul.bf16.gmra.mxu0 %v11850_v16  ;;  %5035 = vmatmul.bf16.gmra.mxu2 %v11850_v16 }
 0x4df   : > { %v4375_v34 = vadd.f32 %v11773_v22, %v4363_v14  ;;  %v4797_v31 = vor.u32 %v4795_v12, %v4793_v26  ;;  %v10115_v14 = vld [vmem:[%s13947_s7 + $0x1a0] sm:$0xff]  ;;  %5645 = vmatpush.bf16.msra.mxu3 %v10134_v5 }
 0x4e0   : > { %5403 = vmatpush.bf16.msra.mxu1 %v10115_v14  ;;  %v10103_v14 = vld [vmem:[%s13947_s7 + $0x140] sm:$0xff] }
 0x4e1   : > { %v4383_v10 = vmax.f32 %v4375_v34, 0.0  ;;  %v10107_v34 = vld [vmem:[%s13947_s7 + $0x160] sm:$0xff] }
 0x4e2   : > { %5267 = vmatpush.bf16.msra.mxu0 %v10107_v34  ;;  %v10123_v34 = vld [vmem:[%s13947_s7 + $0x1e0] sm:$0xff] }
 0x4e3   : > { %v4391_v37 = vadd.f32 %v4383_v10, %v11391_v51  ;;  %5646 = vmatpush.bf16.msra.mxu3 %v10133_v13 }
 0x4e4   : > { %v4345_v33 = vpop.f32.mrf.mxu2  ;;  %5404 = vmatpush.bf16.msra.mxu1 %v10114_v4 }
 0x4e5   : > { %v4430_v43 = vpack.c.bf16 %v4391_v37, %v10210_v20  ;;  %v11857_v36 = vpack.c.bf16 0.0, %v4391_v37 }
 0x4e7   : > { %4551 = vmatmul.bf16.gmra.mxu3 %v11857_v36  ;;  %v4799_v42 = vshll.u32 %v11857_v36, 16  ;;  %v4609_v3 = vshrl.u32 %v4430_v43, 16  ;;  %v4612_v27 = vshll.u32 %v4430_v43, 16  ;;  %v4803_v26 = vshrl.u32 %v11857_v36, 16 }
 0x4e9   : > { %v4801_v32 = vrot.slane %v4799_v42, 1  ;;  %v4611_v49 = vrot.slane %v4609_v3, 3  ;;  %v4614_v40 = vrot.slane %v4612_v27, 4  ;;  %v4534_v3 = vpop.f32.mrf.mxu3 }
 0x4eb   : > { %v11866_v55 = vsel %vm785_vm1, %v4797_v31, %v4801_v32  ;;  %v4615_v45 = vor.u32 %v4614_v40, %v4611_v49  ;;  %v4805_v10 = vor.u32 %v4803_v26, %v4801_v32  ;;  %v10106_v49 = vld [vmem:[%s13947_s7 + $0x158] sm:$0xff]  ;;  %v10111_v26 = vld [vmem:[%s13947_s7 + $0x180] sm:$0xff] }
 0x4ec   : > { %v4347_v9 = vpop.f32.mrf.mxu2  ;;  %4907 = vmatmul.bf16.gmra.mxu1 %v11866_v55  ;;  %5268 = vmatpush.bf16.msra.mxu0 %v10106_v49 }
 0x4ed   : > { %v4364_v57 = vadd.f32 %v4347_v9, %v11753_v38  ;;  %v11874_v60 = vsel %vm589_vm0, %v4606_v30, %v4615_v45  ;;  %v10113_v9 = vld [vmem:[%s13947_s7 + $0x190] sm:$0xff] }
 0x4ee   : > { %4724 = vmatmul.bf16.gmra.mxu0 %v11874_v60  ;;  %5039 = vmatmul.bf16.gmra.mxu2 %v11874_v60 }
 0x4ef   : > { %v4376_v61 = vadd.f32 %v11773_v22, %v4364_v57  ;;  %5405 = vmatpush.bf16.msra.mxu1 %v10113_v9 }
 0x4f1   : > { %v4384_v38 = vmax.f32 %v4376_v61, 0.0 }
 0x4f3   : > { %v4392_v58 = vadd.f32 %v4384_v38, %v11428_v24  ;;  %5406 = vmatpush.bf16.msra.mxu1 %v10112_v25 }
 0x4f4   : > { %v4349_v7 = vpop.f32.mrf.mxu2 }
 0x4f5   : > { %v4431_v11 = vpack.c.bf16 %v4392_v58, %v10210_v20  ;;  %v11895_v53 = vpack.c.bf16 0.0, %v4392_v58  ;;  %v10124_v58 = vld [vmem:[%s13947_s7 + $0x1e8] sm:$0xff] }
 0x4f7   : > { %4555 = vmatmul.bf16.gmra.mxu3 %v11895_v53  ;;  %v4807_v35 = vshll.u32 %v11895_v53, 16  ;;  %v4618_v8 = vshrl.u32 %v4431_v11, 16  ;;  %v4621_v30 = vshll.u32 %v4431_v11, 16  ;;  %v4811_v7 = vshrl.u32 %v11895_v53, 16  ;;  %5407 = vmatpush.bf16.msra.mxu1 %v10111_v26 }
 0x4f9   : > { %v4809_v37 = vrot.slane %v4807_v35, 1  ;;  %v4620_v33 = vrot.slane %v4618_v8, 3  ;;  %v4623_v43 = vrot.slane %v4621_v30, 4 }
 0x4fb   : > { %v11916_v12 = vsel %vm785_vm1, %v4805_v10, %v4809_v37  ;;  %v4624_v42 = vor.u32 %v4623_v43, %v4620_v33  ;;  %v4813_v35 = vor.u32 %v4811_v7, %v4809_v37 }
 0x4fc   : > { %v4351_v27 = vpop.f32.mrf.mxu2  ;;  %4911 = vmatmul.bf16.gmra.mxu1 %v11916_v12 }
 0x4fd   : > { %v4365_v31 = vadd.f32 %v4351_v27, %v11776_v15  ;;  %v11924_v32 = vsel %vm589_vm0, %v4615_v45, %v4624_v42  ;;  %v10125_v15 = vld [vmem:[%s13947_s7 + $0x1f0] sm:$0xff]  ;;  %v10122_v27 = vld [vmem:[%s13947_s7 + $0x1d8] sm:$0xff] }
 0x4fe   : > { %4728 = vmatmul.bf16.gmra.mxu0 %v11924_v32  ;;  %5043 = vmatmul.bf16.gmra.mxu2 %v11924_v32  ;;  %v10105_v45 = vld [vmem:[%s13947_s7 + $0x150] sm:$0xff] }
 0x4ff   : > { %v4377_v40 = vadd.f32 %v11773_v22, %v4365_v31  ;;  %5516 = vmatpush.bf16.msra.mxu2 %v10125_v15  ;;  %5269 = vmatpush.bf16.msra.mxu0 %v10105_v45 }
 0x501   : > { %v4385_v50 = vmax.f32 %v4377_v40, 0.0 }
 0x503   : > { %v4393_v57 = vadd.f32 %v4385_v50, %v11485_v1  ;;  %5270 = vmatpush.bf16.msra.mxu0 %v10104_v18  ;;  %5517 = vmatpush.bf16.msra.mxu2 %v10124_v58 }
 0x504   : > { %v4353_v61 = vpop.f32.mrf.mxu2 }
 0x505   : > { %v4432_v56 = vpack.c.bf16 %v4393_v57, %v10210_v20  ;;  %v11946_v38 = vpack.c.bf16 0.0, %v4393_v57  ;;  %v10132_v61 = vld [vmem:[%s13947_s7 + $0x228] sm:$0xff] }
 0x506   : > { %5647 = vmatpush.bf16.msra.mxu3 %v10132_v61 }
 0x507   : > { %4559 = vmatmul.bf16.gmra.mxu3 %v11946_v38  ;;  %v4815_v29 = vshll.u32 %v11946_v38, 16  ;;  %v4627_v11 = vshrl.u32 %v4432_v56, 16  ;;  %v4630_v54 = vshll.u32 %v4432_v56, 16  ;;  %5271 = vmatpush.bf16.msra.mxu0 %v10103_v14  ;;  %v4819_v45 = vshrl.u32 %v11946_v38, 16 }
 0x508   : > { %5518 = vmatpush.bf16.msra.mxu2 %v10123_v34 }
 0x509   : > { %v4817_v8 = vrot.slane %v4815_v29, 1  ;;  %v4629_v30 = vrot.slane %v4627_v11, 3  ;;  %v4632_v5 = vrot.slane %v4630_v54, 4 }
 0x50b   : > { %v11970_v10 = vsel %vm785_vm1, %v4813_v35, %v4817_v8  ;;  %v4633_v33 = vor.u32 %v4632_v5, %v4629_v30  ;;  %v4821_v56 = vor.u32 %v4819_v45, %v4817_v8  ;;  %v10131_v8 = vld [vmem:[%s13947_s7 + $0x220] sm:$0xff] }
 0x50c   : > { %v4355_v43 = vpop.f32.mrf.mxu2  ;;  %4915 = vmatmul.bf16.gmra.mxu1 %v11970_v10  ;;  %5519 = vmatpush.bf16.msra.mxu2 %v10122_v27 }
 0x50d   : > { %v4366_v37 = vadd.f32 %v4355_v43, %v11793_v59  ;;  %v11975_v3 = vsel %vm589_vm0, %v4624_v42, %v4633_v33  ;;  %v10121_v59 = vld [vmem:[%s13947_s7 + $0x1d0] sm:$0xff]  ;;  %v4643_v26 = vsel %vm589_vm0, %v4633_v33, %v10392_v48  ;;  %5648 = vmatpush.bf16.msra.mxu3 %v10131_v8 }
 0x50e   : > { %4732 = vmatmul.bf16.gmra.mxu0 %v11975_v3  ;;  %5047 = vmatmul.bf16.gmra.mxu2 %v11975_v3 }
 0x50f   : > { %v4378_v4 = vadd.f32 %v11773_v22, %v4366_v37  ;;  %v10120_v22 = vld [vmem:[%s13947_s7 + $0x1c8] sm:$0xff] }
 0x510   : > { %5520 = vmatpush.bf16.msra.mxu2 %v10121_v59 }
 0x511   : > { %v4386_v31 = vmax.f32 %v4378_v4, 0.0 }
 0x513   : > { %v4394_v42 = vadd.f32 %v4386_v31, %v11534_v63 }
 0x514   : > { %v4357_v49 = vpop.f32.mrf.mxu2  ;;  %5521 = vmatpush.bf16.msra.mxu2 %v10120_v22 }
 0x515   : > { %v4932_v40 = vpack.c.bf16 %v4394_v42, %v10210_v20  ;;  %v4741_v9 = vpack.c.bf16 %v4394_v42, %v4394_v42  ;;  %v11988_v15 = vpack.c.bf16 0.0, %v4394_v42 }
 0x517   : > { %5142 = vmatmul.bf16.vlgmr.msrb.gmra.mxu3 %v11781_v19  ;;  %v4823_v50 = vshll.u32 %v4741_v9, 16  ;;  %v4952_v57 = vshrl.u32 %v4932_v40, 16  ;;  %v4955_v25 = vshll.u32 %v4932_v40, 16  ;;  %v5202_v20 = vshll.u32 %v11988_v15, 16  ;;  %v10119_v19 = vld [vmem:[%s13947_s7 + $0x1c0] sm:$0xff] }
 0x518   : > { %5522 = vmatpush.bf16.msra.mxu2 %v10119_v19 }
 0x519   : > { %v4825_v18 = vrot.slane %v4823_v50, 1  ;;  %v4954_v58 = vrot.slane %v4952_v57, 3  ;;  %v4957_v7 = vrot.slane %v4955_v25, 4  ;;  %v11999_v29 = vrot.slane %v5202_v20, 1  ;;  %v10129_v50 = vld [vmem:[%s13947_s7 + $0x210] sm:$0xff] }
 0x51b   : > { %v4826_v11 = vsel %vm785_vm1, %v4821_v56, %v4825_v18  ;;  %v4958_v54 = vor.u32 %v4957_v7, %v4954_v58  ;;  %v12007_v13 = vsel %vm785_vm1, %v4821_v56, %v11999_v29 }
 0x51c   : > { %4919 = vmatmul.bf16.gmra.mxu1 %v4826_v11  ;;  %v10128_v11 = vld [vmem:[%s13947_s7 + $0x208] sm:$0xff] }
 0x51d   : > { %v12012_v35 = vsel %vm589_vm0, %v4633_v33, %v4958_v54  ;;  %v12023_v33 = vsel %vm589_vm0, %v4958_v54, %v10392_v48 }
 0x51e   : > { %4736 = vmatmul.bf16.gmra.mxu0 %v4643_v26  ;;  %5051 = vmatmul.bf16.gmra.mxu2 %v12012_v35 }
 0x527   : > { %5146 = vmatmul.bf16.gmra.mxu3 %v11798_v41 }
 0x529   : > { %v4892_v30 = vpop.f32.mrf.mxu1 }
 0x52a   : > { %v4536_v5 = vpop.f32.mrf.mxu3 }
 0x52b   : > { %v4709_v14 = vpop.f32.mrf.mxu0 }
 0x52c   : > { %v4710_v34 = vadd.f32 %v4709_v14, %v11889_v47  ;;  %5408 = vmatmul.bf16.vlgmr.msra.gmra.mxu1 %v11829_v2  ;;  %v10130_v47 = vld [vmem:[%s13947_s7 + $0x218] sm:$0xff] }
 0x52d   : > { %5649 = vmatpush.bf16.msra.mxu3 %v10130_v47 }
 0x52e   : > { %5055 = vmatmul.bf16.gmra.mxu2 %v12023_v33  ;;  %5272 = vmatmul.bf16.vlgmr.msra.gmra.mxu0 %v11807_v17  ;;  %v4924_v43 = vadd.f32 %v4892_v30, %v4710_v34 }
 0x531   : > { %v4894_v37 = vpop.f32.mrf.mxu1  ;;  %5650 = vmatpush.bf16.msra.mxu3 %v10129_v50 }
 0x532   : > { %v4538_v27 = vpop.f32.mrf.mxu3 }
 0x533   : > { %v4711_v4 = vpop.f32.mrf.mxu0  ;;  %v10127_v27 = vld [vmem:[%s13947_s7 + $0x200] sm:$0xff] }
 0x535   : > { %5651 = vmatpush.bf16.msra.mxu3 %v10128_v11 }
 0x537   : > { %5150 = vmatmul.bf16.gmra.mxu3 %v11815_v46 }
 0x539   : > { %v4896_v31 = vpop.f32.mrf.mxu1  ;;  %5652 = vmatpush.bf16.msra.mxu3 %v10127_v27 }
 0x53a   : > { %v4540_v2 = vpop.f32.mrf.mxu3 }
 0x53b   : > { %v4713_v59 = vpop.f32.mrf.mxu0 }
 0x53c   : > { %v4714_v42 = vadd.f32 %v4713_v59, %v4536_v5  ;;  %5412 = vmatmul.bf16.gmra.mxu1 %v11850_v16 }
 0x53e   : > { %5276 = vmatmul.bf16.gmra.mxu0 %v11824_v39  ;;  %5523 = vmatmul.bf16.vlgmr.msra.gmra.mxu2 %v11798_v41  ;;  %v4925_v17 = vadd.f32 %v4896_v31, %v4714_v42 }
 0x541   : > { %v4898_v49 = vpop.f32.mrf.mxu1  ;;  %v5028_v40 = vpop.f32.mrf.mxu2 }
 0x542   : > { %v12034_v9 = vadd.f32 %v5028_v40, %v4924_v43  ;;  %v4542_v45 = vpop.f32.mrf.mxu3 }
 0x543   : > { %v4715_v22 = vpop.f32.mrf.mxu0 }
 0x547   : > { %5154 = vmatmul.bf16.gmra.mxu3 %v11836_v28 }
 0x549   : > { %v4900_v57 = vpop.f32.mrf.mxu1  ;;  %v5030_v25 = vpop.f32.mrf.mxu2 }
 0x54a   : > { %v4544_v16 = vpop.f32.mrf.mxu3 }
 0x54b   : > { %v4717_v61 = vpop.f32.mrf.mxu0 }
 0x54c   : > { %v4718_v20 = vadd.f32 %v4717_v61, %v4540_v2  ;;  %5416 = vmatmul.bf16.gmra.mxu1 %v11874_v60 }
 0x54e   : > { %5280 = vmatmul.bf16.gmra.mxu0 %v11845_v44  ;;  %5527 = vmatmul.bf16.gmra.mxu2 %v11815_v46  ;;  %v4926_v41 = vadd.f32 %v4900_v57, %v4718_v20 }
 0x551   : > { %v4902_v56 = vpop.f32.mrf.mxu1  ;;  %v5032_v18 = vpop.f32.mrf.mxu2 }
 0x552   : > { %v12043_v58 = vadd.f32 %v5032_v18, %v4925_v17  ;;  %v4546_v7 = vpop.f32.mrf.mxu3 }
 0x553   : > { %v4719_v19 = vpop.f32.mrf.mxu0 }
 0x557   : > { %5158 = vmatmul.bf16.gmra.mxu3 %v11857_v36 }
 0x559   : > { %v4904_v54 = vpop.f32.mrf.mxu1  ;;  %v5034_v26 = vpop.f32.mrf.mxu2 }
 0x55a   : > { %v4548_v60 = vpop.f32.mrf.mxu3 }
 0x55b   : > { %v4721_v8 = vpop.f32.mrf.mxu0 }
 0x55c   : > { %v4722_v30 = vadd.f32 %v4721_v8, %v4544_v16  ;;  %5420 = vmatmul.bf16.gmra.mxu1 %v11924_v32 }
 0x55e   : > { %5284 = vmatmul.bf16.gmra.mxu0 %v11866_v55  ;;  %5531 = vmatmul.bf16.gmra.mxu2 %v11836_v28  ;;  %v4927_v46 = vadd.f32 %v4904_v54, %v4722_v30  ;;  %v5206_v30 = vshrl.u32 %v11988_v15, 16 }
 0x561   : > { %v4906_v5 = vpop.f32.mrf.mxu1  ;;  %v5036_v14 = vpop.f32.mrf.mxu2 }
 0x562   : > { %v12052_v34 = vadd.f32 %v5036_v14, %v4926_v41  ;;  %v4550_v43 = vpop.f32.mrf.mxu3  ;;  %v5208_v14 = vor.u32 %v5206_v30, %v11999_v29  ;;  %v10164_v30 = vld [vmem:[%s13949_s9 + $0xe8] sm:$0xff] }
 0x563   : > { %v4723_v37 = vpop.f32.mrf.mxu0 }
 0x564   : > { %v12082_v27 = vsel %vm785_vm1, %v5208_v14, %v10400_v52 }
 0x567   : > { %5162 = vmatmul.bf16.gmra.mxu3 %v11895_v53 }
 0x569   : > { %v4908_v4 = vpop.f32.mrf.mxu1  ;;  %v5038_v47 = vpop.f32.mrf.mxu2 }
 0x56a   : > { %v4552_v32 = vpop.f32.mrf.mxu3 }
 0x56b   : > { %v4725_v31 = vpop.f32.mrf.mxu0 }
 0x56c   : > { %v4726_v2 = vadd.f32 %v4725_v31, %v4548_v60  ;;  %5424 = vmatmul.bf16.gmra.mxu1 %v11975_v3 }
 0x56e   : > { %5288 = vmatmul.bf16.gmra.mxu0 %v11916_v12  ;;  %5535 = vmatmul.bf16.gmra.mxu2 %v11857_v36  ;;  %v4928_v28 = vadd.f32 %v4908_v4, %v4726_v2 }
 0x571   : > { %v4910_v59 = vpop.f32.mrf.mxu1  ;;  %v5040_v42 = vpop.f32.mrf.mxu2 }
 0x572   : > { %v12061_v17 = vadd.f32 %v5040_v42, %v4927_v46  ;;  %v4554_v49 = vpop.f32.mrf.mxu3 }
 0x573   : > { %v4727_v40 = vpop.f32.mrf.mxu0  ;;  %v10150_v49 = vld [vmem:[%s13949_s9 + $0x78] sm:$0xff] }
 0x574   : > { %v10142_v40 = vld [vmem:[%s13949_s9 + $0x38] sm:$0xff]  ;;  %5907 = vmatpush.bf16.msrb.mxu0 %v10150_v49  ;;  %v10147_v49 = vld [vmem:[%s13949_s9 + $0x60] sm:$0xff] }
 0x575   : > { %5996 = vmatpush.bf16.msrb.mxu1 %v10142_v40  ;;  %v10139_v40 = vld [vmem:[%s13949_s9 + $0x20] sm:$0xff] }
 0x577   : > { %5166 = vmatmul.bf16.gmra.mxu3 %v11946_v38 }
 0x579   : > { %v4912_v45 = vpop.f32.mrf.mxu1  ;;  %v5042_v22 = vpop.f32.mrf.mxu2 }
 0x57a   : > { %v4556_v50 = vpop.f32.mrf.mxu3 }
 0x57b   : > { %v4729_v57 = vpop.f32.mrf.mxu0 }
 0x57c   : > { %v4730_v25 = vadd.f32 %v4729_v57, %v4552_v32  ;;  %5428 = vmatmul.bf16.gmra.mxu1 %v12012_v35 }
 0x57e   : > { %5292 = vmatmul.bf16.gmra.mxu0 %v11970_v10  ;;  %5539 = vmatmul.bf16.gmra.mxu2 %v11895_v53  ;;  %v4929_v36 = vadd.f32 %v4912_v45, %v4730_v25 }
 0x581   : > { %v4914_v3 = vpop.f32.mrf.mxu1  ;;  %v5044_v16 = vpop.f32.mrf.mxu2 }
 0x582   : > { %v12067_v61 = vadd.f32 %v5044_v16, %v4928_v28  ;;  %v4558_v20 = vpop.f32.mrf.mxu3  ;;  %v10165_v3 = vld [vmem:[%s13949_s9 + $0xf0] sm:$0xff] }
 0x583   : > { %v4731_v41 = vpop.f32.mrf.mxu0 }
 0x587   : > { %5170 = vmatmul.bf16.gmra.mxu3 %v11988_v15 }
 0x589   : > { %v4916_v56 = vpop.f32.mrf.mxu1  ;;  %v5046_v18 = vpop.f32.mrf.mxu2 }
 0x58a   : > { %v4560_v7 = vpop.f32.mrf.mxu3 }
 0x58b   : > { %v4733_v19 = vpop.f32.mrf.mxu0 }
 0x58c   : > { %v4734_v11 = vadd.f32 %v4733_v19, %v4556_v50  ;;  %5432 = vmatmul.bf16.gmra.mxu1 %v12023_v33  ;;  %v10141_v19 = vld [vmem:[%s13949_s9 + $0x30] sm:$0xff] }
 0x58d   : > { %5997 = vmatpush.bf16.msrb.mxu1 %v10141_v19 }
 0x58e   : > { %5296 = vmatmul.bf16.gmra.mxu0 %v12007_v13  ;;  %5543 = vmatmul.bf16.gmra.mxu2 %v11946_v38  ;;  %v4930_v53 = vadd.f32 %v4916_v56, %v4734_v11 }
 0x591   : > { %v4918_v35 = vpop.f32.mrf.mxu1  ;;  %v5048_v54 = vpop.f32.mrf.mxu2 }
 0x592   : > { %v12073_v26 = vadd.f32 %v5048_v54, %v4929_v36  ;;  %v4562_v60 = vpop.f32.mrf.mxu3  ;;  %v10157_v36 = vld [vmem:[%s13949_s9 + $0xb0] sm:$0xff] }
 0x593   : > { %v4735_v8 = vpop.f32.mrf.mxu0 }
 0x597   : > { %5653 = vmatmul.bf16.vlgmr.msra.gmra.mxu3 %v11824_v39 }
 0x599   : > { %v4920_v46 = vpop.f32.mrf.mxu1  ;;  %v5050_v5 = vpop.f32.mrf.mxu2 }
 0x59a   : > { %v5143_v33 = vpop.f32.mrf.mxu3 }
 0x59b   : > { %v5175_v43 = vadd.f32 %v5143_v33, %v12034_v9  ;;  %v4737_v37 = vpop.f32.mrf.mxu0  ;;  %v10158_v9 = vld [vmem:[%s13949_s9 + $0xb8] sm:$0xff] }
 0x59c   : > { %v4738_v38 = vadd.f32 %v4737_v37, %v4560_v7  ;;  %5436 = vmatmul.bf16.gmra.mxu1 %v10392_v48  ;;  %6103 = vmatpush.bf16.msrb.mxu2 %v10158_v9  ;;  %v10166_v48 = vld [vmem:[%s13949_s9 + $0xf8] sm:$0xff]  ;;  %v10149_v7 = vld [vmem:[%s13949_s9 + $0x70] sm:$0xff]  ;;  %v10148_v37 = vld [vmem:[%s13949_s9 + $0x68] sm:$0xff] }
 0x59d   : > { %6233 = vmatpush.bf16.msrb.mxu3 %v10166_v48  ;;  %5908 = vmatpush.bf16.msrb.mxu0 %v10149_v7  ;;  %v10163_v48 = vld [vmem:[%s13949_s9 + $0xe0] sm:$0xff]  ;;  %v10138_v7 = vld [vmem:[%s13949_s9 + $0x18] sm:$0xff] }
 0x59e   : > { %5300 = vmatmul.bf16.gmra.mxu0 %v12082_v27  ;;  %5547 = vmatmul.bf16.gmra.mxu2 %v11988_v15  ;;  %v4931_v39 = vadd.f32 %v4920_v46, %v4738_v38  ;;  %v10140_v38 = vld [vmem:[%s13949_s9 + $0x28] sm:$0xff] }
 0x59f   : > { %5998 = vmatpush.bf16.msrb.mxu1 %v10140_v38 }
 0x5a0   : > { %6104 = vmatpush.bf16.msrb.mxu2 %v10157_v36  ;;  %v10162_v36 = vld [vmem:[%s13949_s9 + $0xd8] sm:$0xff] }
 0x5a1   : > { %v4922_v4 = vpop.f32.mrf.mxu1  ;;  %v5052_v47 = vpop.f32.mrf.mxu2  ;;  %6234 = vmatpush.bf16.msrb.mxu3 %v10165_v3  ;;  %5909 = vmatpush.bf16.msrb.mxu0 %v10148_v37 }
 0x5a2   : > { %v12086_v32 = vadd.f32 %v5052_v47, %v4930_v53  ;;  %v5145_v29 = vpop.f32.mrf.mxu3 }
 0x5a3   : > { %v4739_v31 = vpop.f32.mrf.mxu0  ;;  %5999 = vmatpush.bf16.msrb.mxu1 %v10139_v40  ;;  %v10151_v40 = vld [vmem:[%s13949_s9 + $0x80] sm:$0xff] }
 0x5a5   : > { %6235 = vmatpush.bf16.msrb.mxu3 %v10164_v30  ;;  %5910 = vmatpush.bf16.msrb.mxu0 %v10147_v49 }
 0x5a7   : > { %5657 = vmatmul.bf16.gmra.mxu3 %v11845_v44  ;;  %6000 = vmatpush.bf16.msrb.mxu1 %v10138_v7 }
 0x5a9   : > { %v5054_v2 = vpop.f32.mrf.mxu2  ;;  %v5409_v15 = vpop.f32.mrf.mxu1  ;;  %6236 = vmatpush.bf16.msrb.mxu3 %v10163_v48 }
 0x5aa   : > { %v5147_v28 = vpop.f32.mrf.mxu3 }
 0x5ab   : > { %v5176_v59 = vadd.f32 %v5147_v28, %v12043_v58  ;;  %v5273_v42 = vpop.f32.mrf.mxu0 }
 0x5ac   : > { %v5305_v44 = vadd.f32 %v5273_v42, %v5175_v43 }
 0x5ad   : > { %6237 = vmatpush.bf16.msrb.mxu3 %v10162_v36 }
 0x5ae   : > { %5551 = vmatmul.bf16.gmra.mxu2 %v10212_v62  ;;  %v5441_v45 = vadd.f32 %v5409_v15, %v5305_v44 }
 0x5b1   : > { %v5056_v22 = vpop.f32.mrf.mxu2  ;;  %v5411_v50 = vpop.f32.mrf.mxu1 }
 0x5b2   : > { %v12103_v57 = vadd.f32 %v5056_v22, %v4931_v39  ;;  %v5149_v58 = vpop.f32.mrf.mxu3 }
 0x5b3   : > { %v5275_v25 = vpop.f32.mrf.mxu0 }
 0x5b7   : > { %5661 = vmatmul.bf16.gmra.mxu3 %v11866_v55 }
 0x5b9   : > { %v5058_v16 = vpop.f32.mrf.mxu2  ;;  %v5413_v20 = vpop.f32.mrf.mxu1 }
 0x5ba   : > { %v5151_v41 = vpop.f32.mrf.mxu3 }
 0x5bb   : > { %v5177_v56 = vadd.f32 %v5151_v41, %v12052_v34  ;;  %v5277_v18 = vpop.f32.mrf.mxu0  ;;  %v10156_v34 = vld [vmem:[%s13949_s9 + $0xa8] sm:$0xff] }
 0x5bc   : > { %v5306_v55 = vadd.f32 %v5277_v18, %v5176_v59  ;;  %6105 = vmatpush.bf16.msrb.mxu2 %v10156_v34  ;;  %v10146_v18 = vld [vmem:[%s13949_s9 + $0x58] sm:$0xff]  ;;  %v10161_v34 = vld [vmem:[%s13949_s9 + $0xd0] sm:$0xff] }
 0x5bd   : > { %5911 = vmatpush.bf16.msrb.mxu0 %v10146_v18  ;;  %6238 = vmatpush.bf16.msrb.mxu3 %v10161_v34 }
 0x5be   : > { %v5442_v11 = vadd.f32 %v5413_v20, %v5306_v55 }
 0x5c1   : > { %v5415_v53 = vpop.f32.mrf.mxu1  ;;  %v5524_v35 = vpop.f32.mrf.mxu2 }
 0x5c2   : > { %v12119_v54 = vadd.f32 %v5524_v35, %v5441_v45  ;;  %v5153_v60 = vpop.f32.mrf.mxu3 }
 0x5c3   : > { %v5279_v8 = vpop.f32.mrf.mxu0 }
 0x5c4   : > { %v10137_v8 = vld [vmem:[%s13949_s9 + $0x10] sm:$0xff] }
 0x5c5   : > { %6001 = vmatpush.bf16.msrb.mxu1 %v10137_v8 }
 0x5c7   : > { %5665 = vmatmul.bf16.gmra.mxu3 %v11916_v12 }
 0x5c9   : > { %v5417_v46 = vpop.f32.mrf.mxu1  ;;  %v5526_v5 = vpop.f32.mrf.mxu2 }
 0x5ca   : > { %v5155_v14 = vpop.f32.mrf.mxu3 }
 0x5cb   : > { %v5178_v33 = vadd.f32 %v5155_v14, %v12061_v17  ;;  %v5281_v43 = vpop.f32.mrf.mxu0  ;;  %v10155_v17 = vld [vmem:[%s13949_s9 + $0xa0] sm:$0xff] }
 0x5cc   : > { %v5307_v12 = vadd.f32 %v5281_v43, %v5177_v56  ;;  %6106 = vmatpush.bf16.msrb.mxu2 %v10155_v17  ;;  %v10136_v43 = vld [vmem:[%s13949_s9 + $0x8] sm:$0xff] }
 0x5cd   : > { %6002 = vmatpush.bf16.msrb.mxu1 %v10136_v43  ;;  %v10160_v17 = vld [vmem:[%s13949_s9 + $0xc8] sm:$0xff] }
 0x5ce   : > { %v5443_v39 = vadd.f32 %v5417_v46, %v5307_v12  ;;  %v10135_v12 = vld [vmem:[%s13949_s9] sm:$0xff]  ;;  %6239 = vmatpush.bf16.msrb.mxu3 %v10160_v17 }
 0x5d1   : > { %v5419_v4 = vpop.f32.mrf.mxu1  ;;  %v5528_v47 = vpop.f32.mrf.mxu2  ;;  %6003 = vmatpush.bf16.msrb.mxu1 %v10135_v12 }
 0x5d2   : > { %v12135_v29 = vadd.f32 %v5528_v47, %v5442_v11  ;;  %v5157_v31 = vpop.f32.mrf.mxu3 }
 0x5d3   : > { %v5283_v9 = vpop.f32.mrf.mxu0 }
 0x5d4   : > { %v10152_v9 = vld [vmem:[%s13949_s9 + $0x88] sm:$0xff] }
 0x5d7   : > { %5669 = vmatmul.bf16.gmra.mxu3 %v11970_v10 }
 0x5d9   : > { %v5421_v2 = vpop.f32.mrf.mxu1  ;;  %v5530_v15 = vpop.f32.mrf.mxu2 }
 0x5da   : > { %v5159_v28 = vpop.f32.mrf.mxu3 }
 0x5db   : > { %v5179_v59 = vadd.f32 %v5159_v28, %v12067_v61  ;;  %v5285_v42 = vpop.f32.mrf.mxu0  ;;  %v10154_v61 = vld [vmem:[%s13949_s9 + $0x98] sm:$0xff] }
 0x5dc   : > { %v5308_v10 = vadd.f32 %v5285_v42, %v5178_v33  ;;  %6107 = vmatpush.bf16.msrb.mxu2 %v10154_v61  ;;  %v10159_v61 = vld [vmem:[%s13949_s9 + $0xc0] sm:$0xff] }
 0x5dd   : > { %6240 = vmatpush.bf16.msrb.mxu3 %v10159_v61 }
 0x5de   : > { %v5444_v44 = vadd.f32 %v5421_v2, %v5308_v10  ;;  %v10144_v10 = vld [vmem:[%s13949_s9 + $0x48] sm:$0xff] }
 0x5e1   : > { %v5423_v45 = vpop.f32.mrf.mxu1  ;;  %v5532_v22 = vpop.f32.mrf.mxu2 }
 0x5e2   : > { %v12151_v50 = vadd.f32 %v5532_v22, %v5443_v39  ;;  %v5161_v58 = vpop.f32.mrf.mxu3 }
 0x5e3   : > { %v5287_v25 = vpop.f32.mrf.mxu0 }
 0x5e7   : > { %5673 = vmatmul.bf16.gmra.mxu3 %v12007_v13 }
 0x5e9   : > { %v5425_v3 = vpop.f32.mrf.mxu1  ;;  %v5534_v16 = vpop.f32.mrf.mxu2 }
 0x5ea   : > { %v5163_v20 = vpop.f32.mrf.mxu3 }
 0x5eb   : > { %v5180_v41 = vadd.f32 %v5163_v20, %v12073_v26  ;;  %v5289_v56 = vpop.f32.mrf.mxu0  ;;  %v10153_v26 = vld [vmem:[%s13949_s9 + $0x90] sm:$0xff] }
 0x5ec   : > { %v5309_v13 = vadd.f32 %v5289_v56, %v5179_v59  ;;  %6108 = vmatpush.bf16.msrb.mxu2 %v10153_v26 }
 0x5ee   : > { %v5445_v19 = vadd.f32 %v5425_v3, %v5309_v13  ;;  %v12216_v3 = vld [vmem:[%s13948_s8] ss:$0 sm:$0xff] }
 0x5f0   : > { %6109 = vmatpush.bf16.msrb.mxu2 %v10152_v9 }
 0x5f1   : > { %v5427_v55 = vpop.f32.mrf.mxu1  ;;  %v5536_v11 = vpop.f32.mrf.mxu2 }
 0x5f2   : > { %v12167_v53 = vadd.f32 %v5536_v11, %v5444_v44  ;;  %v5165_v35 = vpop.f32.mrf.mxu3 }
 0x5f3   : > { %v5291_v60 = vpop.f32.mrf.mxu0 }
 0x5f4   : > { %6110 = vmatpush.bf16.msrb.mxu2 %v10151_v40 }
 0x5f7   : > { %5677 = vmatmul.bf16.gmra.mxu3 %v12082_v27 }
 0x5f9   : > { %v5429_v30 = vpop.f32.mrf.mxu1  ;;  %v5538_v46 = vpop.f32.mrf.mxu2 }
 0x5fa   : > { %v5167_v5 = vpop.f32.mrf.mxu3 }
 0x5fb   : > { %v5181_v14 = vadd.f32 %v5167_v5, %v12086_v32  ;;  %v5293_v33 = vpop.f32.mrf.mxu0  ;;  %v10145_v32 = vld [vmem:[%s13949_s9 + $0x50] sm:$0xff] }
 0x5fc   : > { %v5310_v37 = vadd.f32 %v5293_v33, %v5180_v41  ;;  %5912 = vmatpush.bf16.msrb.mxu0 %v10145_v32 }
 0x5fe   : > { %v5446_v38 = vadd.f32 %v5429_v30, %v5310_v37 }
 0x600   : > { %5913 = vmatpush.bf16.msrb.mxu0 %v10144_v10 }
 0x601   : > { %v5431_v39 = vpop.f32.mrf.mxu1  ;;  %v5540_v4 = vpop.f32.mrf.mxu2 }
 0x602   : > { %v12186_v27 = vadd.f32 %v5540_v4, %v5445_v19  ;;  %v5169_v47 = vpop.f32.mrf.mxu3 }
 0x603   : > { %v5295_v31 = vpop.f32.mrf.mxu0 }
 0x607   : > { %5681 = vmatmul.bf16.gmra.mxu3 %v10400_v52 }
 0x609   : > { %v5433_v48 = vpop.f32.mrf.mxu1  ;;  %v5542_v2 = vpop.f32.mrf.mxu2 }
 0x60a   : > { %v5171_v15 = vpop.f32.mrf.mxu3 }
 0x60b   : > { %v5182_v28 = vadd.f32 %v5171_v15, %v12103_v57  ;;  %v5297_v59 = vpop.f32.mrf.mxu0  ;;  %v10143_v57 = vld [vmem:[%s13949_s9 + $0x40] sm:$0xff] }
 0x60c   : > { %v5311_v42 = vadd.f32 %v5297_v59, %v5181_v14  ;;  %5914 = vmatpush.bf16.msrb.mxu0 %v10143_v57 }
 0x60e   : > { %v5447_v49 = vadd.f32 %v5433_v48, %v5311_v42 }
 0x611   : > { %v5435_v44 = vpop.f32.mrf.mxu1  ;;  %v5544_v45 = vpop.f32.mrf.mxu2 }
 0x612   : > { %v12205_v22 = vadd.f32 %v5544_v45, %v5446_v38  ;;  %v5173_v58 = vpop.f32.mrf.mxu3 }
 0x613   : > { %v5299_v25 = vpop.f32.mrf.mxu0 }
 0x619   : > { %v5546_v36 = vpop.f32.mrf.mxu2  ;;  %v5437_v16 = vpop.f32.mrf.mxu1 }
 0x61a   : > { %v5654_v20 = vpop.f32.mrf.mxu3 }
 0x61b   : > { %v5686_v41 = vadd.f32 %v5654_v20, %v12119_v54  ;;  %v5301_v56 = vpop.f32.mrf.mxu0 }
 0x61c   : > { %v5312_v18 = vadd.f32 %v5301_v56, %v5182_v28 }
 0x61d   : > { %v5698_v7 = vadd.f32 %v12216_v3, %v5686_v41 }
 0x61e   : > { %v5448_v13 = vadd.f32 %v5437_v16, %v5312_v18 }
 0x61f   : > { %v5706_v19 = vadd.f32 %v5698_v7, %v11297_v6 }
 0x621   : > { %v5741_v55 = vpack.c.bf16 0.0, %v5706_v19  ;;  %v5548_v11 = vpop.f32.mrf.mxu2  ;;  %v5439_v35 = vpop.f32.mrf.mxu1 }
 0x622   : > { %v12221_v60 = vadd.f32 %v5548_v11, %v5447_v49  ;;  %v5656_v26 = vpop.f32.mrf.mxu3 }
 0x623   : > { %v5303_v8 = vpop.f32.mrf.mxu0  ;;  %6004 = vmatmul.bf16.vlgmr.msrb.gmra.mxu1 %v5741_v55  ;;  %v5786_v54 = vshll.u32 %v5741_v55, 16  ;;  %v5784_v12 = vshrl.u32 %v5741_v55, 16 }
 0x625   : > { %v5788_v33 = vrot.slane %v5786_v54, 1 }
 0x627   : > { %v5789_v4 = vor.u32 %v5788_v33, %v5784_v12 }
 0x629   : > { %v5550_v34 = vpop.f32.mrf.mxu2 }
 0x62a   : > { %v5658_v30 = vpop.f32.mrf.mxu3 }
 0x62b   : > { %v5687_v46 = vadd.f32 %v5658_v30, %v12135_v29 }
 0x62d   : > { %v5699_v5 = vadd.f32 %v12216_v3, %v5687_v46 }
 0x62f   : > { %v5707_v14 = vadd.f32 %v5699_v5, %v11318_v21 }
 0x631   : > { %v5742_v43 = vpack.c.bf16 0.0, %v5707_v14  ;;  %v5552_v6 = vpop.f32.mrf.mxu2 }
 0x632   : > { %v12226_v37 = vadd.f32 %v5552_v6, %v5448_v13  ;;  %v5660_v38 = vpop.f32.mrf.mxu3 }
 0x633   : > { %6008 = vmatmul.bf16.gmra.mxu1 %v5742_v43  ;;  %6111 = vmatmul.bf16.vlgmr.msrb.gmra.mxu2 %v5742_v43  ;;  %v5791_v39 = vshll.u32 %v5742_v43, 16  ;;  %v5795_v15 = vshrl.u32 %v5742_v43, 16 }
 0x635   : > { %v5793_v47 = vrot.slane %v5791_v39, 1 }
 0x637   : > { %v5794_v31 = vsel %vm785_vm1, %v5789_v4, %v5793_v47  ;;  %v5797_v59 = vor.u32 %v5795_v15, %v5793_v47 }
 0x638   : > { %5915 = vmatmul.bf16.vlgmr.msrb.gmra.mxu0 %v5794_v31 }
 0x639   : > { %v5554_v29 = vpop.f32.mrf.mxu2 }
 0x63a   : > { %v5662_v32 = vpop.f32.mrf.mxu3 }
 0x63b   : > { %v5688_v9 = vadd.f32 %v5662_v32, %v12151_v50 }
 0x63d   : > { %v5700_v21 = vadd.f32 %v12216_v3, %v5688_v9 }
 0x63f   : > { %v5708_v17 = vadd.f32 %v5700_v21, %v11341_v0 }
 0x641   : > { %v5743_v48 = vpack.c.bf16 0.0, %v5708_v17 }
 0x642   : > { %v5664_v2 = vpop.f32.mrf.mxu3 }
 0x643   : > { %6012 = vmatmul.bf16.gmra.mxu1 %v5743_v48  ;;  %6115 = vmatmul.bf16.gmra.mxu2 %v5743_v48  ;;  %v5799_v28 = vshll.u32 %v5743_v48, 16  ;;  %v5803_v58 = vshrl.u32 %v5743_v48, 16 }
 0x645   : > { %v5801_v42 = vrot.slane %v5799_v28, 1 }
 0x647   : > { %v5802_v49 = vsel %vm785_vm1, %v5797_v59, %v5801_v42  ;;  %v5805_v57 = vor.u32 %v5803_v58, %v5801_v42 }
 0x648   : > { %5919 = vmatmul.bf16.gmra.mxu0 %v5802_v49  ;;  %6241 = vmatmul.bf16.vlgmr.msrb.gmra.mxu3 %v5802_v49 }
 0x64a   : > { %v5666_v40 = vpop.f32.mrf.mxu3 }
 0x64b   : > { %v5689_v10 = vadd.f32 %v5666_v40, %v12167_v53 }
 0x64d   : > { %v5701_v50 = vadd.f32 %v12216_v3, %v5689_v10 }
 0x64f   : > { %v5709_v44 = vadd.f32 %v5701_v50, %v11366_v23 }
 0x651   : > { %v5744_v0 = vpack.c.bf16 0.0, %v5709_v44 }
 0x652   : > { %v5668_v45 = vpop.f32.mrf.mxu3 }
 0x653   : > { %6016 = vmatmul.bf16.gmra.mxu1 %v5744_v0  ;;  %6119 = vmatmul.bf16.gmra.mxu2 %v5744_v0  ;;  %v5807_v25 = vshll.u32 %v5744_v0, 16  ;;  %v5811_v18 = vshrl.u32 %v5744_v0, 16 }
 0x655   : > { %v5809_v61 = vrot.slane %v5807_v25, 1 }
 0x657   : > { %v5810_v36 = vsel %vm785_vm1, %v5805_v57, %v5809_v61  ;;  %v5813_v13 = vor.u32 %v5811_v18, %v5809_v61  ;;  %v12260_v61 = vld [vmem:[%s13950_s10] ss:$0 sm:$0xff] }
 0x658   : > { %5923 = vmatmul.bf16.gmra.mxu0 %v5810_v36  ;;  %6245 = vmatmul.bf16.gmra.mxu3 %v5810_v36 }
 0x65a   : > { %v5670_v16 = vpop.f32.mrf.mxu3 }
 0x65b   : > { %v5690_v20 = vadd.f32 %v5670_v16, %v12186_v27 }
 0x65d   : > { %v5702_v53 = vadd.f32 %v12216_v3, %v5690_v20 }
 0x65f   : > { %v5710_v41 = vadd.f32 %v5702_v53, %v11391_v51 }
 0x661   : > { %v5745_v23 = vpack.c.bf16 0.0, %v5710_v41 }
 0x662   : > { %v5672_v56 = vpop.f32.mrf.mxu3 }
 0x663   : > { %6020 = vmatmul.bf16.gmra.mxu1 %v5745_v23  ;;  %6123 = vmatmul.bf16.gmra.mxu2 %v5745_v23  ;;  %v5815_v7 = vshll.u32 %v5745_v23, 16  ;;  %v5819_v34 = vshrl.u32 %v5745_v23, 16 }
 0x665   : > { %v5817_v19 = vrot.slane %v5815_v7, 1 }
 0x667   : > { %v5818_v55 = vsel %vm785_vm1, %v5813_v13, %v5817_v19  ;;  %v5821_v46 = vor.u32 %v5819_v34, %v5817_v19 }
 0x668   : > { %5927 = vmatmul.bf16.gmra.mxu0 %v5818_v55  ;;  %6249 = vmatmul.bf16.gmra.mxu3 %v5818_v55 }
 0x66a   : > { %v5674_v11 = vpop.f32.mrf.mxu3 }
 0x66b   : > { %v5691_v35 = vadd.f32 %v5674_v11, %v12205_v22 }
 0x66d   : > { %v5703_v27 = vadd.f32 %v12216_v3, %v5691_v35 }
 0x66f   : > { %v5711_v26 = vadd.f32 %v5703_v27, %v11428_v24 }
 0x671   : > { %v5746_v51 = vpack.c.bf16 0.0, %v5711_v26 }
 0x672   : > { %v5676_v8 = vpop.f32.mrf.mxu3 }
 0x673   : > { %6024 = vmatmul.bf16.gmra.mxu1 %v5746_v51  ;;  %6127 = vmatmul.bf16.gmra.mxu2 %v5746_v51  ;;  %v5823_v30 = vshll.u32 %v5746_v51, 16  ;;  %v5827_v38 = vshrl.u32 %v5746_v51, 16 }
 0x675   : > { %v5825_v54 = vrot.slane %v5823_v30, 1 }
 0x677   : > { %v5826_v5 = vsel %vm785_vm1, %v5821_v46, %v5825_v54  ;;  %v5829_v39 = vor.u32 %v5827_v38, %v5825_v54 }
 0x678   : > { %5931 = vmatmul.bf16.gmra.mxu0 %v5826_v5  ;;  %6253 = vmatmul.bf16.gmra.mxu3 %v5826_v5 }
 0x67a   : > { %v5678_v14 = vpop.f32.mrf.mxu3 }
 0x67b   : > { %v5692_v33 = vadd.f32 %v5678_v14, %v12221_v60 }
 0x67d   : > { %v5704_v22 = vadd.f32 %v12216_v3, %v5692_v33 }
 0x67f   : > { %v5712_v43 = vadd.f32 %v5704_v22, %v11485_v1 }
 0x681   : > { %v5747_v24 = vpack.c.bf16 0.0, %v5712_v43 }
 0x682   : > { %v5680_v6 = vpop.f32.mrf.mxu3 }
 0x683   : > { %6028 = vmatmul.bf16.gmra.mxu1 %v5747_v24  ;;  %6131 = vmatmul.bf16.gmra.mxu2 %v5747_v24  ;;  %v5831_v12 = vshll.u32 %v5747_v24, 16  ;;  %v5835_v21 = vshrl.u32 %v5747_v24, 16 }
 0x685   : > { %v5833_v4 = vrot.slane %v5831_v12, 1 }
 0x687   : > { %v5834_v47 = vsel %vm785_vm1, %v5829_v39, %v5833_v4  ;;  %v5837_v48 = vor.u32 %v5835_v21, %v5833_v4 }
 0x688   : > { %5935 = vmatmul.bf16.gmra.mxu0 %v5834_v47  ;;  %6257 = vmatmul.bf16.gmra.mxu3 %v5834_v47 }
 0x68a   : > { %v5682_v31 = vpop.f32.mrf.mxu3 }
 0x68b   : > { %v5693_v29 = vadd.f32 %v5682_v31, %v12226_v37 }
 0x68d   : > { %v5705_v60 = vadd.f32 %v12216_v3, %v5693_v29 }
 0x68f   : > { %v5713_v32 = vadd.f32 %v5705_v60, %v11534_v63 }
 0x691   : > { %v5748_v1 = vpack.c.bf16 0.0, %v5713_v32 }
 0x692   : > { %v5684_v9 = vpop.f32.mrf.mxu3 }
 0x693   : > { %6032 = vmatmul.bf16.gmra.mxu1 %v5748_v1  ;;  %6135 = vmatmul.bf16.gmra.mxu2 %v5748_v1  ;;  %v5839_v17 = vshll.u32 %v5748_v1, 16  ;;  %v5843_v59 = vshrl.u32 %v5748_v1, 16 }
 0x695   : > { %v5841_v2 = vrot.slane %v5839_v17, 1 }
 0x697   : > { %v5842_v15 = vsel %vm785_vm1, %v5837_v48, %v5841_v2  ;;  %v5845_v37 = vor.u32 %v5843_v59, %v5841_v2 }
 0x698   : > { %5939 = vmatmul.bf16.gmra.mxu0 %v5842_v15  ;;  %6261 = vmatmul.bf16.gmra.mxu3 %v5842_v15 }
 0x699   : > { %v5850_v63 = vsel %vm785_vm1, %v5845_v37, %v10400_v52 }
 0x6a0   : > { %v6005_v28 = vpop.f32.mrf.mxu1 }
 0x6a3   : > { %6139 = vmatmul.bf16.gmra.mxu2 %v10212_v62 }
 0x6a8   : > { %5943 = vmatmul.bf16.gmra.mxu0 %v5850_v63  ;;  %v6007_v3 = vpop.f32.mrf.mxu1  ;;  %6265 = vmatmul.bf16.gmra.mxu3 %v5850_v63 }
 0x6b0   : > { %v6009_v42 = vpop.f32.mrf.mxu1 }
 0x6b5   : > { %v5916_v49 = vpop.f32.mrf.mxu0 }
 0x6b6   : > { %v6112_v40 = vpop.f32.mrf.mxu2  ;;  %v6006_v58 = vadd.f32 %v6005_v28, %v5916_v49 }
 0x6b8   : > { %v6011_v10 = vpop.f32.mrf.mxu1  ;;  %6269 = vmatmul.bf16.gmra.mxu3 %v10400_v52  ;;  %v6144_v57 = vadd.f32 %v6112_v40, %v6006_v58 }
 0x6bd   : > { %v5918_v50 = vpop.f32.mrf.mxu0 }
 0x6be   : > { %v6114_v44 = vpop.f32.mrf.mxu2 }
 0x6c0   : > { %v6013_v0 = vpop.f32.mrf.mxu1 }
 0x6c5   : > { %v5920_v45 = vpop.f32.mrf.mxu0 }
 0x6c6   : > { %v6116_v25 = vpop.f32.mrf.mxu2  ;;  %v6010_v55 = vadd.f32 %v6009_v42, %v5920_v45 }
 0x6c8   : > { %v6015_v62 = vpop.f32.mrf.mxu1  ;;  %v6145_v51 = vadd.f32 %v6116_v25, %v6010_v55 }
 0x6cb   : > { %v6242_v36 = vpop.f32.mrf.mxu3 }
 0x6cc   : > { %v6274_v16 = vadd.f32 %v6242_v36, %v6144_v57 }
 0x6cd   : > { %v5922_v20 = vpop.f32.mrf.mxu0 }
 0x6ce   : > { %v6286_v53 = vadd.f32 %v12260_v61, %v6274_v16  ;;  %v6118_v41 = vpop.f32.mrf.mxu2 }
 0x6d0   : > { %v6294_v52 = vmax.f32 %v6286_v53, 0.0  ;;  %v6017_v23 = vpop.f32.mrf.mxu1 }
 0x6d2   : > { %v12263_v56 = vmul.f32 0.25, %v6294_v52  ;;  %v12265_v18 = vmul.f32 0.75, %v6294_v52  ;;  %6310 = vrot.lane.b32.xlu0 %v6294_v52, %s10213_s15 }
 0x6d3   : > { %v6244_v7 = vpop.f32.mrf.mxu3 }
 0x6d4   : > { %v12270_v13 = vadd.f32 %v12265_v18, %v12263_v56 }
 0x6d5   : > { %v5924_v19 = vpop.f32.mrf.mxu0 }
 0x6d6   : > { %14072 = vst [vmem:[#allocation3_spill] sm:$0xff] %v12270_v13  ;;  %v6120_v11 = vpop.f32.mrf.mxu2  ;;  %6655 = vrot.lane.b32.xlu1 %v12270_v13, %s10214_s19  ;;  %v6430_v35 = vrot.slane %v12270_v13, 7  ;;  %v12277_v26 = vmul.f32 0.25, %v12270_v13  ;;  %v12283_v5 = vmul.f32 0.75, %v12270_v13  ;;  %v6014_v24 = vadd.f32 %v6013_v0, %v5924_v19 }
 0x6d8   : > { %v6019_v27 = vpop.f32.mrf.mxu1  ;;  %6462 = vrot.lane.b32.xlu2 %v6430_v35, %s10214_s19  ;;  %v6146_v12 = vadd.f32 %v6120_v11, %v6014_v24 }
 0x6da   : > { %6944 = vrot.lane.b32.xlu0 %v12277_v26, %s10214_s19 }
 0x6db   : > { %v6246_v8 = vpop.f32.mrf.mxu3 }
 0x6dc   : > { %v6275_v34 = vadd.f32 %v6246_v8, %v6145_v51 }
 0x6dd   : > { %v5926_v30 = vpop.f32.mrf.mxu0 }
 0x6de   : > { %v6287_v46 = vadd.f32 %v12260_v61, %v6275_v34  ;;  %v6122_v54 = vpop.f32.mrf.mxu2 }
 0x6e0   : > { %v12285_v14 = vmax.f32 %v6287_v46, 0.0  ;;  %v6021_v33 = vpop.f32.mrf.mxu1  ;;  %7104 = vrot.lane.b32.xlu2 %v12283_v5, %s10214_s19 }
 0x6e2   : > { %6312 = vrot.lane.b32.xlu0 %v12285_v14, %s10213_s15 }
 0x6e3   : > { %v6248_v22 = vpop.f32.mrf.mxu3 }
 0x6e5   : > { %v5928_v43 = vpop.f32.mrf.mxu0 }
 0x6e6   : > { %v6124_v6 = vpop.f32.mrf.mxu2  ;;  %v6018_v21 = vadd.f32 %v6017_v23, %v5928_v43 }
 0x6e8   : > { %v6023_v38 = vpop.f32.mrf.mxu1  ;;  %v6147_v2 = vadd.f32 %v6124_v6, %v6018_v21 }
 0x6eb   : > { %v6250_v39 = vpop.f32.mrf.mxu3 }
 0x6ec   : > { %v6276_v4 = vadd.f32 %v6250_v39, %v6146_v12 }
 0x6ed   : > { %v5930_v47 = vpop.f32.mrf.mxu0 }
 0x6ee   : > { %v6288_v31 = vadd.f32 %v12260_v61, %v6276_v4  ;;  %v6126_v29 = vpop.f32.mrf.mxu2 }
 0x6f0   : > { %v12292_v60 = vmax.f32 %v6288_v31, 0.0  ;;  %v6025_v32 = vpop.f32.mrf.mxu1 }
 0x6f2   : > { %6314 = vrot.lane.b32.xlu1 %v12292_v60, %s10213_s15 }
 0x6f3   : > { %v6252_v1 = vpop.f32.mrf.mxu3 }
 0x6f5   : > { %v5932_v9 = vpop.f32.mrf.mxu0 }
 0x6f6   : > { %v6128_v17 = vpop.f32.mrf.mxu2  ;;  %v6022_v10 = vadd.f32 %v6021_v33, %v5932_v9 }
 0x6f8   : > { %v6027_v48 = vpop.f32.mrf.mxu1  ;;  %v6148_v0 = vadd.f32 %v6128_v17, %v6022_v10  ;;  %v6336_v17 = vmul.f32 0.25, %v12285_v14 }
 0x6fb   : > { %v6254_v15 = vpop.f32.mrf.mxu3 }
 0x6fc   : > { %v6277_v28 = vadd.f32 %v6254_v15, %v6147_v2 }
 0x6fd   : > { %v5934_v59 = vpop.f32.mrf.mxu0 }
 0x6fe   : > { %v6289_v37 = vadd.f32 %v12260_v61, %v6277_v28  ;;  %v6130_v63 = vpop.f32.mrf.mxu2 }
 0x700   : > { %v12297_v3 = vmax.f32 %v6289_v37, 0.0  ;;  %v6029_v42 = vpop.f32.mrf.mxu1 }
 0x702   : > { %6316 = vrot.lane.b32.xlu1 %v12297_v3, %s10213_s15 }
 0x703   : > { %v6256_v49 = vpop.f32.mrf.mxu3 }
 0x705   : > { %v5936_v40 = vpop.f32.mrf.mxu0 }
 0x706   : > { %v6132_v50 = vpop.f32.mrf.mxu2  ;;  %v6026_v41 = vadd.f32 %v6025_v32, %v5936_v40 }
 0x708   : > { %v6031_v44 = vpop.f32.mrf.mxu1  ;;  %v6149_v7 = vadd.f32 %v6132_v50, %v6026_v41 }
 0x70b   : > { %v6258_v45 = vpop.f32.mrf.mxu3 }
 0x70c   : > { %v6278_v58 = vadd.f32 %v6258_v45, %v6148_v0 }
 0x70d   : > { %v5938_v25 = vpop.f32.mrf.mxu0 }
 0x70e   : > { %v6290_v62 = vadd.f32 %v12260_v61, %v6278_v58  ;;  %v6134_v57 = vpop.f32.mrf.mxu2  ;;  %v6591_v25 = vrot.slane %v12270_v13, 1 }
 0x710   : > { %v12302_v36 = vmax.f32 %v6290_v62, 0.0  ;;  %v6033_v16 = vpop.f32.mrf.mxu1 }
 0x712   : > { %6318 = vrot.lane.b32.xlu2 %v12302_v36, %s10213_s15  ;;  %v6342_v13 = vmul.f32 0.25, %v12302_v36 }
 0x713   : > { %v6260_v20 = vpop.f32.mrf.mxu3 }
 0x715   : > { %v5940_v53 = vpop.f32.mrf.mxu0 }
 0x716   : > { %v6136_v52 = vpop.f32.mrf.mxu2  ;;  %v6030_v30 = vadd.f32 %v6029_v42, %v5940_v53 }
 0x718   : > { %v6035_v23 = vpop.f32.mrf.mxu1  ;;  %v6150_v54 = vadd.f32 %v6136_v52, %v6030_v30 }
 0x719   : > { %v6338_v23 = vmul.f32 0.25, %v12292_v60 }
 0x71b   : > { %v6262_v19 = vpop.f32.mrf.mxu3 }
 0x71c   : > { %v6279_v55 = vadd.f32 %v6262_v19, %v6149_v7 }
 0x71d   : > { %v5942_v11 = vpop.f32.mrf.mxu0 }
 0x71e   : > { %v6291_v35 = vadd.f32 %v12260_v61, %v6279_v55  ;;  %v6138_v27 = vpop.f32.mrf.mxu2 }
 0x720   : > { %v12307_v51 = vmax.f32 %v6291_v35, 0.0 }
 0x722   : > { %6320 = vrot.lane.b32.xlu2 %v12307_v51, %s10213_s15 }
 0x723   : > { %v6264_v8 = vpop.f32.mrf.mxu3 }
 0x724   : > { %v6353_v8 = vmul.f32 0.75, %v12292_v60 }
 0x725   : > { %v5944_v34 = vpop.f32.mrf.mxu0 }
 0x726   : > { %v6140_v46 = vpop.f32.mrf.mxu2  ;;  %v6034_v39 = vadd.f32 %v6033_v16, %v5944_v34 }
 0x728   : > { %v6151_v4 = vadd.f32 %v6140_v46, %v6034_v39 }
 0x72b   : > { %v6266_v33 = vpop.f32.mrf.mxu3 }
 0x72c   : > { %v6280_v22 = vadd.f32 %v6266_v33, %v6150_v54 }
 0x72d   : > { %v5946_v43 = vpop.f32.mrf.mxu0 }
 0x72e   : > { %v6292_v24 = vadd.f32 %v12260_v61, %v6280_v22  ;;  %v6142_v6 = vpop.f32.mrf.mxu2 }
 0x730   : > { %v12312_v38 = vmax.f32 %v6292_v24, 0.0 }
 0x732   : > { %6322 = vrot.lane.b32.xlu0 %v12312_v38, %s10213_s15  ;;  %v12367_v10 = vpop.permute.xlu2 %6462 }
 0x733   : > { %v6268_v12 = vpop.f32.mrf.mxu3  ;;  %14073 = vst [vmem:[#allocation4_spill] sm:$0xff] %v12367_v10 }
 0x73a   : > { %v7105_v62 = vpop.permute.xlu2 %7104 }
 0x73b   : > { %v6270_v47 = vpop.f32.mrf.mxu3  ;;  %v7200_v16 = vadd.f32 %v7105_v62, %v12277_v26 }
 0x73c   : > { %v6281_v31 = vadd.f32 %v6270_v47, %v6151_v4 }
 0x73e   : > { %v6293_v29 = vadd.f32 %v12260_v61, %v6281_v31  ;;  %v6351_v61 = vmul.f32 0.75, %v12285_v14 }
 0x740   : > { %v12317_v32 = vmax.f32 %v6293_v29, 0.0 }
 0x742   : > { %6324 = vrot.lane.b32.xlu1 %v12317_v32, %s10213_s15 }
 0x743   : > { %v6272_v1 = vpop.f32.mrf.mxu3 }
 0x744   : > { %v6311_v9 = vpop.permute.xlu0 %6310 }
 0x745   : > { %v6335_v21 = vmul.f32 0.25, %v6311_v9  ;;  %v6350_v48 = vmul.f32 0.75, %v6311_v9 }
 0x747   : > { %v12323_v2 = vadd.f32 %v6350_v48, %v12263_v56  ;;  %v12326_v15 = vadd.f32 %v12265_v18, %v6335_v21  ;;  %v12328_v28 = vadd.f32 %v6350_v48, %v6336_v17  ;;  %v12337_v59 = vadd.f32 %v6351_v61, %v6335_v21 }
 0x748   : > { %v6656_v58 = vpop.permute.xlu1 %6655 }
 0x749   : > { %6657 = vrot.lane.b32.xlu2 %v12326_v15, %s10214_s19  ;;  %6659 = vrot.lane.b32.xlu0 %v12323_v2, %s10214_s19  ;;  %v6431_v56 = vrot.slane %v12326_v15, 7  ;;  %v6432_v18 = vrot.slane %v12323_v2, 7  ;;  %v6433_v37 = vrot.slane %v12328_v28, 7  ;;  %v6434_v63 = vrot.slane %v12337_v59, 7 }
 0x74a   : > { %6661 = vrot.lane.b32.xlu1 %v12328_v28, %s10214_s19  ;;  %v12348_v42 = vmul.f32 0.25, %v12326_v15  ;;  %v12355_v14 = vmul.f32 0.25, %v12323_v2  ;;  %v12358_v49 = vmul.f32 0.25, %v12328_v28  ;;  %v12361_v40 = vmul.f32 0.25, %v12337_v59 }
 0x74b   : > { %v12372_v44 = vmul.f32 0.75, %v12328_v28  ;;  %v12375_v0 = vmul.f32 0.75, %v12326_v15  ;;  %v12378_v45 = vmul.f32 0.75, %v12323_v2  ;;  %v6752_v57 = vsel %vm6751_vm2, %v6591_v25, %v6656_v58 }
 0x74c   : > { %v6945_v50 = vpop.permute.xlu0 %6944  ;;  %v12390_v20 = vmul.f32 0.75, %v12337_v59  ;;  %v7232_v53 = vmul.f32 0.25, %v6752_v57 }
 0x74d   : > { %14074 = vst [vmem:[#allocation5_spill] sm:$0xff] %v12372_v44  ;;  %v7040_v7 = vadd.f32 %v6945_v50, %v12283_v5 }
 0x751   : > { %6663 = vrot.lane.b32.xlu2 %v12337_v59, %s10214_s19  ;;  %6464 = vrot.lane.b32.xlu0 %v6431_v56, %s10214_s19  ;;  %v6355_v56 = vmul.f32 0.75, %v12297_v3 }
 0x752   : > { %6466 = vrot.lane.b32.xlu1 %v6432_v18, %s10214_s19 }
 0x754   : > { %v6313_v41 = vpop.permute.xlu0 %6312 }
 0x755   : > { %v6352_v52 = vmul.f32 0.75, %v6313_v41  ;;  %v6337_v26 = vmul.f32 0.25, %v6313_v41 }
 0x757   : > { %v12398_v19 = vadd.f32 %v6352_v52, %v6338_v23  ;;  %v12400_v55 = vadd.f32 %v6352_v52, %v6336_v17  ;;  %v12407_v11 = vadd.f32 %v6351_v61, %v6337_v26  ;;  %v12416_v34 = vadd.f32 %v6353_v8, %v6337_v26 }
 0x758   : > { %v6340_v17 = vmul.f32 0.25, %v12297_v3 }
 0x759   : > { %6468 = vrot.lane.b32.xlu2 %v6433_v37, %s10214_s19  ;;  %6470 = vrot.lane.b32.xlu0 %v6434_v63, %s10214_s19  ;;  %v6436_v35 = vrot.slane %v12400_v55, 7  ;;  %v6435_v27 = vrot.slane %v12407_v11, 7  ;;  %v12419_v30 = vmul.f32 0.25, %v12407_v11  ;;  %v6438_v46 = vrot.slane %v12416_v34, 7 }
 0x75a   : > { %6946 = vrot.lane.b32.xlu1 %v12348_v42, %s10214_s19  ;;  %v12428_v54 = vmul.f32 0.25, %v12416_v34  ;;  %v6437_v60 = vrot.slane %v12398_v19, 7  ;;  %v12432_v33 = vmul.f32 0.25, %v12398_v19  ;;  %v12442_v43 = vmul.f32 0.75, %v12400_v55 }
 0x75b   : > { %14075 = vst [vmem:[#allocation6_spill] sm:$0xff] %v12419_v30  ;;  %v12445_v24 = vmul.f32 0.25, %v12400_v55  ;;  %v12448_v12 = vmul.f32 0.75, %v12407_v11  ;;  %v12461_v29 = vmul.f32 0.75, %v12398_v19  ;;  %v12464_v1 = vmul.f32 0.75, %v12416_v34 }
 0x75c   : > { %14076 = vst [vmem:[#allocation7_spill] sm:$0xff] %v12428_v54 }
 0x75d   : > { %14077 = vst [vmem:[#allocation8_spill] sm:$0xff] %v12432_v33 }
 0x761   : > { %6948 = vrot.lane.b32.xlu2 %v12355_v14, %s10214_s19  ;;  %6950 = vrot.lane.b32.xlu0 %v12358_v49, %s10214_s19 }
 0x762   : > { %6952 = vrot.lane.b32.xlu1 %v12361_v40, %s10214_s19 }
 0x764   : > { %v6315_v6 = vpop.permute.xlu1 %6314 }
 0x765   : > { %v6354_v39 = vmul.f32 0.75, %v6315_v6  ;;  %v6339_v47 = vmul.f32 0.25, %v6315_v6 }
 0x767   : > { %v12458_v31 = vadd.f32 %v6354_v39, %v6338_v23  ;;  %v12472_v9 = vadd.f32 %v6353_v8, %v6339_v47  ;;  %v12477_v48 = vadd.f32 %v6354_v39, %v6340_v17  ;;  %v12486_v18 = vadd.f32 %v6355_v56, %v6339_v47 }
 0x769   : > { %7110 = vrot.lane.b32.xlu2 %v12372_v44, %s10214_s19  ;;  %7106 = vrot.lane.b32.xlu0 %v12375_v0, %s10214_s19  ;;  %14078 = vst [vmem:[#allocation9_spill] sm:$0xff] %v12458_v31  ;;  %v6439_v61 = vrot.slane %v12472_v9, 7  ;;  %v6442_v50 = vrot.slane %v12486_v18, 7  ;;  %v6440_v58 = vrot.slane %v12458_v31, 7  ;;  %v12503_v57 = vmul.f32 0.25, %v12477_v48 }
 0x76a   : > { %7108 = vrot.lane.b32.xlu1 %v12378_v45, %s10214_s19  ;;  %14079 = vst [vmem:[#allocation10_spill] sm:$0xff] %v12472_v9  ;;  %v12524_v26 = vmul.f32 0.25, %v12486_v18  ;;  %v12545_v6 = vmul.f32 0.75, %v12458_v31  ;;  %v12548_v39 = vmul.f32 0.75, %v12477_v48 }
 0x76b   : > { %14080 = vst [vmem:[#allocation11_spill] sm:$0xff] %v12477_v48 }
 0x76c   : > { %v12439_v22 = vpop.permute.xlu2 %6318  ;;  %14081 = vst [vmem:[#allocation12_spill] sm:$0xff] %v12486_v18 }
 0x76d   : > { %14083 = vst [vmem:[#allocation14_spill] sm:$0xff] %v12503_v57 }
 0x76e   : > { %14086 = vst [vmem:[#allocation17_spill] sm:$0xff] %v12524_v26 }
 0x76f   : > { %14091 = vst [vmem:[#allocation22_spill] sm:$0xff] %v12545_v6 }
 0x770   : > { %14092 = vst [vmem:[#allocation23_spill] sm:$0xff] %v12548_v39 }
 0x771   : > { %7584 = vrot.lane.b32.xlu2 %v7200_v16, %s10213_s15  ;;  %7112 = vrot.lane.b32.xlu0 %v12390_v20, %s10214_s19  ;;  %v12506_v16 = vmul.f32 0.25, %v12472_v9 }
 0x772   : > { %7296 = vrot.lane.b32.xlu1 %v7232_v53, %s10215_s16  ;;  %v6441_v53 = vrot.slane %v12477_v48, 7 }
 0x773   : > { %14084 = vst [vmem:[#allocation15_spill] sm:$0xff] %v12506_v16 }
 0x774   : > { %v6317_v63 = vpop.permute.xlu1 %6316 }
 0x775   : > { %v6341_v47 = vmul.f32 0.25, %v6317_v63 }
 0x779   : > { %6669 = vrot.lane.b32.xlu2 %v12398_v19, %s10214_s19  ;;  %7456 = vrot.lane.b32.xlu0 %v7040_v7, %s10215_s16  ;;  %v12521_v7 = vmul.f32 0.75, %v12472_v9 }
 0x77a   : > { %6667 = vrot.lane.b32.xlu1 %v12400_v55, %s10214_s19 }
 0x77b   : > { %14085 = vst [vmem:[#allocation16_spill] sm:$0xff] %v12521_v7 }
 0x77c   : > { %v12456_v4 = vpop.permute.xlu2 %6320 }
 0x781   : > { %6474 = vrot.lane.b32.xlu2 %v6436_v35, %s10214_s19  ;;  %6665 = vrot.lane.b32.xlu0 %v12407_v11, %s10214_s19  ;;  %v12527_v35 = vmul.f32 0.25, %v12458_v31 }
 0x782   : > { %6472 = vrot.lane.b32.xlu1 %v6435_v27, %s10214_s19 }
 0x783   : > { %14087 = vst [vmem:[#allocation18_spill] sm:$0xff] %v12527_v35 }
 0x789   : > { %6954 = vrot.lane.b32.xlu2 %v12419_v30, %s10214_s19  ;;  %6671 = vrot.lane.b32.xlu0 %v12416_v34, %s10214_s19 }
 0x78a   : > { %6478 = vrot.lane.b32.xlu1 %v6438_v46, %s10214_s19 }
 0x791   : > { %6960 = vrot.lane.b32.xlu2 %v12428_v54, %s10214_s19  ;;  %6476 = vrot.lane.b32.xlu0 %v6437_v60, %s10214_s19  ;;  %v12542_v60 = vmul.f32 0.75, %v12486_v18 }
 0x792   : > { %6958 = vrot.lane.b32.xlu1 %v12432_v33, %s10214_s19 }
 0x793   : > { %14090 = vst [vmem:[#allocation21_spill] sm:$0xff] %v12542_v60 }
 0x799   : > { %7116 = vrot.lane.b32.xlu2 %v12442_v43, %s10214_s19  ;;  %6956 = vrot.lane.b32.xlu0 %v12445_v24, %s10214_s19 }
 0x79a   : > { %7114 = vrot.lane.b32.xlu1 %v12448_v12, %s10214_s19 }
 0x7a1   : > { %6675 = vrot.lane.b32.xlu2 %v12458_v31, %s10214_s19  ;;  %7118 = vrot.lane.b32.xlu0 %v12461_v29, %s10214_s19 }
 0x7a2   : > { %7120 = vrot.lane.b32.xlu1 %v12464_v1, %s10214_s19 }
 0x7a3   : > { %v12474_v21 = vpop.permute.xlu2 %6657 }
 0x7a4   : > { %v12496_v3 = vpop.permute.xlu0 %6322 }
 0x7a9   : > { %6480 = vrot.lane.b32.xlu2 %v6439_v61, %s10214_s19  ;;  %6677 = vrot.lane.b32.xlu0 %v12477_v48, %s10214_s19  ;;  %v6356_v61 = vmul.f32 0.75, %v6317_v63 }
 0x7aa   : > { %6673 = vrot.lane.b32.xlu1 %v12472_v9, %s10214_s19 }
 0x7ab   : > { %v12488_v37 = vpop.permute.xlu2 %6663  ;;  %v12563_v10 = vadd.f32 %v6356_v61, %v6340_v17  ;;  %v6357_v17 = vmul.f32 0.75, %v12302_v36 }
 0x7ad   : > { %14095 = vst [vmem:[#allocation26_spill] sm:$0xff] %v12563_v10 }
 0x7b1   : > { %6486 = vrot.lane.b32.xlu2 %v6442_v50, %s10214_s19  ;;  %6482 = vrot.lane.b32.xlu0 %v6440_v58, %s10214_s19 }
 0x7b2   : > { %6679 = vrot.lane.b32.xlu1 %v12486_v18, %s10214_s19 }
 0x7b3   : > { %v12498_v25 = vpop.permute.xlu2 %6468 }
 0x7b4   : > { %14082 = vst [vmem:[#allocation13_spill] sm:$0xff] %v12498_v25  ;;  %v12500_v62 = vpop.permute.xlu1 %6324  ;;  %v6444_v25 = vrot.slane %v12563_v10, 7 }
 0x7b9   : > { %6966 = vrot.lane.b32.xlu2 %v12503_v57, %s10214_s19  ;;  %6962 = vrot.lane.b32.xlu0 %v12506_v16, %s10214_s19 }
 0x7ba   : > { %6484 = vrot.lane.b32.xlu1 %v6441_v53, %s10214_s19 }
 0x7bb   : > { %v12514_v41 = vpop.permute.xlu2 %6948  ;;  %v12516_v52 = vpop.permute.xlu0 %6659 }
 0x7bc   : > { %v12518_v23 = vpop.permute.xlu1 %6661 }
 0x7c1   : > { %7122 = vrot.lane.b32.xlu2 %v12521_v7, %s10214_s19  ;;  %6968 = vrot.lane.b32.xlu0 %v12524_v26, %s10214_s19  ;;  %v12612_v26 = vmul.f32 0.25, %v12563_v10 }
 0x7c2   : > { %6964 = vrot.lane.b32.xlu1 %v12527_v35, %s10214_s19 }
 0x7c3   : > { %v12535_v27 = vpop.permute.xlu2 %7110  ;;  %v12537_v8 = vpop.permute.xlu0 %6464  ;;  %14101 = vst [vmem:[#allocation32_spill] sm:$0xff] %v12612_v26 }
 0x7c4   : > { %14088 = vst [vmem:[#allocation19_spill] sm:$0xff] %v12537_v8  ;;  %v12539_v46 = vpop.permute.xlu1 %6466  ;;  %v12567_v8 = vadd.f32 %v6356_v61, %v6342_v13 }
 0x7c5   : > { %14089 = vst [vmem:[#allocation20_spill] sm:$0xff] %v12539_v46  ;;  %v12565_v46 = vadd.f32 %v6355_v56, %v6341_v47  ;;  %v12582_v56 = vadd.f32 %v6357_v17, %v6341_v47 }
 0x7c6   : > { %14097 = vst [vmem:[#allocation28_spill] sm:$0xff] %v12567_v8  ;;  %v6445_v36 = vrot.slane %v12567_v8, 7  ;;  %v12615_v7 = vmul.f32 0.25, %v12567_v8  ;;  %v12633_v18 = vmul.f32 0.75, %v12567_v8 }
 0x7c7   : > { %14096 = vst [vmem:[#allocation27_spill] sm:$0xff] %v12565_v46  ;;  %v6443_v61 = vrot.slane %v12565_v46, 7  ;;  %v6446_v47 = vrot.slane %v12582_v56, 7  ;;  %v12618_v16 = vmul.f32 0.25, %v12582_v56 }
 0x7c8   : > { %14098 = vst [vmem:[#allocation29_spill] sm:$0xff] %v12582_v56 }
 0x7c9   : > { %7128 = vrot.lane.b32.xlu2 %v12542_v60, %s10214_s19  ;;  %7124 = vrot.lane.b32.xlu0 %v12545_v6, %s10214_s19  ;;  %v12599_v60 = vmul.f32 0.25, %v12565_v46  ;;  %14102 = vst [vmem:[#allocation33_spill] sm:$0xff] %v12615_v7 }
 0x7ca   : > { %7126 = vrot.lane.b32.xlu1 %v12548_v39, %s10214_s19  ;;  %14103 = vst [vmem:[#allocation34_spill] sm:$0xff] %v12618_v16  ;;  %v12636_v39 = vmul.f32 0.75, %v12565_v46 }
 0x7cb   : > { %v12556_v50 = vpop.permute.xlu2 %7584  ;;  %v12558_v58 = vpop.permute.xlu0 %6470  ;;  %14100 = vst [vmem:[#allocation31_spill] sm:$0xff] %v12599_v60 }
 0x7cc   : > { %14093 = vst [vmem:[#allocation24_spill] sm:$0xff] %v12556_v50  ;;  %v12560_v53 = vpop.permute.xlu1 %6946 }
 0x7cd   : > { %14094 = vst [vmem:[#allocation25_spill] sm:$0xff] %v12558_v58 }
 0x7ce   : > { %14105 = vst [vmem:[#allocation36_spill] sm:$0xff] %v12633_v18 }
 0x7cf   : > { %14106 = vst [vmem:[#allocation37_spill] sm:$0xff] %v12636_v39 }
 0x7d1   : > { %6681 = vrot.lane.b32.xlu2 %v12565_v46, %s10214_s19  ;;  %6683 = vrot.lane.b32.xlu0 %v12563_v10, %s10214_s19 }
 0x7d2   : > { %6685 = vrot.lane.b32.xlu1 %v12567_v8, %s10214_s19 }
 0x7d3   : > { %v12575_v63 = vpop.permute.xlu2 %6669  ;;  %v12577_v50 = vpop.permute.xlu0 %6950 }
 0x7d4   : > { %v12579_v58 = vpop.permute.xlu1 %6952 }
 0x7d9   : > { %6687 = vrot.lane.b32.xlu2 %v12582_v56, %s10214_s19  ;;  %6488 = vrot.lane.b32.xlu0 %v6443_v61, %s10214_s19 }
 0x7da   : > { %6490 = vrot.lane.b32.xlu1 %v6444_v25, %s10214_s19 }
 0x7db   : > { %v12590_v57 = vpop.permute.xlu2 %6474  ;;  %v12592_v35 = vpop.permute.xlu0 %7106 }
 0x7dc   : > { %14099 = vst [vmem:[#allocation30_spill] sm:$0xff] %v12590_v57  ;;  %v12594_v6 = vpop.permute.xlu1 %7108 }
 0x7e1   : > { %6492 = vrot.lane.b32.xlu2 %v6445_v36, %s10214_s19  ;;  %6494 = vrot.lane.b32.xlu0 %v6446_v47, %s10214_s19 }
 0x7e2   : > { %6970 = vrot.lane.b32.xlu1 %v12599_v60, %s10214_s19 }
 0x7e3   : > { %v12605_v25 = vpop.permute.xlu2 %6954  ;;  %v12607_v61 = vpop.permute.xlu0 %7112 }
 0x7e4   : > { %v12609_v57 = vpop.permute.xlu1 %7296 }
 0x7e9   : > { %6972 = vrot.lane.b32.xlu2 %v12612_v26, %s10214_s19  ;;  %6974 = vrot.lane.b32.xlu0 %v12615_v7, %s10214_s19  ;;  %v12639_v26 = vmul.f32 0.75, %v12563_v10  ;;  %v6344_v10 = vmul.f32 0.25, %v12307_v51 }
 0x7ea   : > { %6976 = vrot.lane.b32.xlu1 %v12618_v16, %s10214_s19 }
 0x7eb   : > { %v12626_v36 = vpop.permute.xlu2 %6960  ;;  %v12628_v47 = vpop.permute.xlu0 %7456  ;;  %14107 = vst [vmem:[#allocation38_spill] sm:$0xff] %v12639_v26 }
 0x7ec   : > { %14104 = vst [vmem:[#allocation35_spill] sm:$0xff] %v12628_v47  ;;  %v12630_v60 = vpop.permute.xlu1 %6667  ;;  %v6358_v47 = vmul.f32 0.75, %v12439_v22 }
 0x7ee   : > { %v12655_v46 = vadd.f32 %v6358_v47, %v6344_v10  ;;  %v12661_v9 = vadd.f32 %v6358_v47, %v6342_v13  ;;  %v6359_v47 = vmul.f32 0.75, %v12307_v51 }
 0x7f0   : > { %14109 = vst [vmem:[#allocation40_spill] sm:$0xff] %v12655_v46  ;;  %v6448_v13 = vrot.slane %v12661_v9, 7  ;;  %v12726_v31 = vmul.f32 0.75, %v12661_v9 }
 0x7f1   : > { %7134 = vrot.lane.b32.xlu2 %v12633_v18, %s10214_s19  ;;  %7130 = vrot.lane.b32.xlu0 %v12636_v39, %s10214_s19  ;;  %v12658_v18 = vmul.f32 0.75, %v12582_v56  ;;  %v6343_v39 = vmul.f32 0.25, %v12439_v22  ;;  %14111 = vst [vmem:[#allocation42_spill] sm:$0xff] %v12661_v9 }
 0x7f2   : > { %7132 = vrot.lane.b32.xlu1 %v12639_v26, %s10214_s19  ;;  %14124 = vst [vmem:[#allocation55_spill] sm:$0xff] %v12726_v31 }
 0x7f3   : > { %v12648_v16 = vpop.permute.xlu2 %7116  ;;  %v12650_v7 = vpop.permute.xlu0 %6665  ;;  %14110 = vst [vmem:[#allocation41_spill] sm:$0xff] %v12658_v18  ;;  %v12673_v48 = vadd.f32 %v6357_v17, %v6343_v39  ;;  %v12688_v17 = vadd.f32 %v6359_v47, %v6343_v39 }
 0x7f4   : > { %v12652_v8 = vpop.permute.xlu1 %6472 }
 0x7f5   : > { %14108 = vst [vmem:[#allocation39_spill] sm:$0xff] %v12652_v8  ;;  %v6447_v22 = vrot.slane %v12673_v48, 7  ;;  %v12693_v33 = vmul.f32 0.25, %v12673_v48  ;;  %v12732_v30 = vmul.f32 0.75, %v12673_v48 }
 0x7f6   : > { %14113 = vst [vmem:[#allocation44_spill] sm:$0xff] %v12673_v48 }
 0x7f7   : > { %14117 = vst [vmem:[#allocation48_spill] sm:$0xff] %v12688_v17 }
 0x7f8   : > { %14118 = vst [vmem:[#allocation49_spill] sm:$0xff] %v12693_v33 }
 0x7f9   : > { %6693 = vrot.lane.b32.xlu2 %v12655_v46, %s10214_s19  ;;  %7136 = vrot.lane.b32.xlu0 %v12658_v18, %s10214_s19  ;;  %14126 = vst [vmem:[#allocation57_spill] sm:$0xff] %v12732_v30 }
 0x7fa   : > { %6691 = vrot.lane.b32.xlu1 %v12661_v9, %s10214_s19 }
 0x7fb   : > { %v12669_v8 = vpop.permute.xlu2 %6675  ;;  %v12671_v26 = vpop.permute.xlu0 %6671 }
 0x7fc   : > { %14112 = vst [vmem:[#allocation43_spill] sm:$0xff] %v12669_v8  ;;  %v12675_v56 = vpop.permute.xlu1 %6478  ;;  %v12712_v8 = vmul.f32 0.25, %v12655_v46 }
 0x7fd   : > { %14114 = vst [vmem:[#allocation45_spill] sm:$0xff] %v12675_v56 }
 0x7fe   : > { %14122 = vst [vmem:[#allocation53_spill] sm:$0xff] %v12712_v8 }
 0x801   : > { %6498 = vrot.lane.b32.xlu2 %v6448_v13, %s10214_s19  ;;  %6689 = vrot.lane.b32.xlu0 %v12673_v48, %s10214_s19  ;;  %v6450_v13 = vrot.slane %v12688_v17, 7  ;;  %v6345_v48 = vmul.f32 0.25, %v12456_v4 }
 0x802   : > { %6496 = vrot.lane.b32.xlu1 %v6447_v22, %s10214_s19 }
 0x803   : > { %v12684_v18 = vpop.permute.xlu2 %6480  ;;  %v12686_v54 = vpop.permute.xlu0 %6476 }
 0x804   : > { %14115 = vst [vmem:[#allocation46_spill] sm:$0xff] %v12684_v18  ;;  %v12690_v56 = vpop.permute.xlu1 %6958  ;;  %v12708_v18 = vmul.f32 0.25, %v12688_v17 }
 0x805   : > { %14116 = vst [vmem:[#allocation47_spill] sm:$0xff] %v12686_v54  ;;  %v6449_v54 = vrot.slane %v12655_v46, 7 }
 0x806   : > { %14121 = vst [vmem:[#allocation52_spill] sm:$0xff] %v12708_v18 }
 0x809   : > { %6978 = vrot.lane.b32.xlu2 %v12693_v33, %s10214_s19  ;;  %6695 = vrot.lane.b32.xlu0 %v12688_v17, %s10214_s19 }
 0x80a   : > { %6502 = vrot.lane.b32.xlu1 %v6450_v13, %s10214_s19 }
 0x80b   : > { %v12701_v51 = vpop.permute.xlu2 %6486  ;;  %v12703_v22 = vpop.permute.xlu0 %6956 }
 0x80c   : > { %14119 = vst [vmem:[#allocation50_spill] sm:$0xff] %v12701_v51  ;;  %v12705_v39 = vpop.permute.xlu1 %7114 }
 0x80d   : > { %14120 = vst [vmem:[#allocation51_spill] sm:$0xff] %v12705_v39  ;;  %v12729_v39 = vmul.f32 0.25, %v12661_v9 }
 0x80f   : > { %14125 = vst [vmem:[#allocation56_spill] sm:$0xff] %v12729_v39 }
 0x811   : > { %6984 = vrot.lane.b32.xlu2 %v12708_v18, %s10214_s19  ;;  %6500 = vrot.lane.b32.xlu0 %v6449_v54, %s10214_s19  ;;  %v6360_v54 = vmul.f32 0.75, %v12456_v4 }
 0x812   : > { %6982 = vrot.lane.b32.xlu1 %v12712_v8, %s10214_s19 }
 0x813   : > { %v12719_v13 = vpop.permute.xlu2 %6966  ;;  %v12721_v51 = vpop.permute.xlu0 %7118 }
 0x814   : > { %14123 = vst [vmem:[#allocation54_spill] sm:$0xff] %v12719_v13  ;;  %v12723_v33 = vpop.permute.xlu1 %7120  ;;  %v12748_v13 = vadd.f32 %v6360_v54, %v6344_v10 }
 0x816   : > { %14130 = vst [vmem:[#allocation61_spill] sm:$0xff] %v12748_v13 }
 0x819   : > { %7140 = vrot.lane.b32.xlu2 %v12726_v31, %s10214_s19  ;;  %6980 = vrot.lane.b32.xlu0 %v12729_v39, %s10214_s19  ;;  %v12751_v31 = vmul.f32 0.75, %v12655_v46  ;;  %v12754_v39 = vmul.f32 0.75, %v12688_v17  ;;  %v6346_v17 = vmul.f32 0.25, %v12312_v38 }
 0x81a   : > { %7138 = vrot.lane.b32.xlu1 %v12732_v30, %s10214_s19  ;;  %v12762_v30 = vadd.f32 %v6359_v47, %v6345_v48 }
 0x81b   : > { %v12741_v18 = vpop.permute.xlu2 %7122  ;;  %v12743_v8 = vpop.permute.xlu0 %6677  ;;  %14131 = vst [vmem:[#allocation62_spill] sm:$0xff] %v12751_v31 }
 0x81c   : > { %14127 = vst [vmem:[#allocation58_spill] sm:$0xff] %v12741_v18  ;;  %v12745_v9 = vpop.permute.xlu1 %6673  ;;  %v12771_v18 = vadd.f32 %v6360_v54, %v6346_v17 }
 0x81d   : > { %14128 = vst [vmem:[#allocation59_spill] sm:$0xff] %v12743_v8  ;;  %v6361_v8 = vmul.f32 0.75, %v12312_v38  ;;  %v6452_v38 = vrot.slane %v12748_v13, 7 }
 0x81e   : > { %14129 = vst [vmem:[#allocation60_spill] sm:$0xff] %v12745_v9  ;;  %v6451_v9 = vrot.slane %v12762_v30, 7 }
 0x81f   : > { %14132 = vst [vmem:[#allocation63_spill] sm:$0xff] %v12754_v39  ;;  %v12780_v47 = vadd.f32 %v6361_v8, %v6345_v48 }
 0x820   : > { %14133 = vst [vmem:[#allocation64_spill] sm:$0xff] %v12762_v30 }
 0x821   : > { %6699 = vrot.lane.b32.xlu2 %v12748_v13, %s10214_s19  ;;  %7142 = vrot.lane.b32.xlu0 %v12751_v31, %s10214_s19  ;;  %14137 = vst [vmem:[#allocation68_spill] sm:$0xff] %v12771_v18 }
 0x822   : > { %7144 = vrot.lane.b32.xlu1 %v12754_v39, %s10214_s19  ;;  %14138 = vst [vmem:[#allocation69_spill] sm:$0xff] %v12780_v47  ;;  %v6454_v39 = vrot.slane %v12780_v47, 7 }
 0x823   : > { %v12764_v4 = vpop.permute.xlu2 %7128  ;;  %v12766_v10 = vpop.permute.xlu0 %6482 }
 0x824   : > { %14134 = vst [vmem:[#allocation65_spill] sm:$0xff] %v12764_v4  ;;  %v12768_v46 = vpop.permute.xlu1 %6679  ;;  %v12801_v4 = vmul.f32 0.25, %v12762_v30 }
 0x825   : > { %14135 = vst [vmem:[#allocation66_spill] sm:$0xff] %v12766_v10 }
 0x826   : > { %14136 = vst [vmem:[#allocation67_spill] sm:$0xff] %v12768_v46  ;;  %v12825_v46 = vmul.f32 0.25, %v12748_v13 }
 0x827   : > { %14145 = vst [vmem:[#allocation76_spill] sm:$0xff] %v12801_v4 }
 0x828   : > { %14150 = vst [vmem:[#allocation81_spill] sm:$0xff] %v12825_v46 }
 0x829   : > { %6504 = vrot.lane.b32.xlu2 %v6451_v9, %s10214_s19  ;;  %6701 = vrot.lane.b32.xlu0 %v12771_v18, %s10214_s19 }
 0x82a   : > { %6697 = vrot.lane.b32.xlu1 %v12762_v30, %s10214_s19 }
 0x82b   : > { %v12782_v10 = vpop.permute.xlu2 %6681  ;;  %v12784_v31 = vpop.permute.xlu0 %6962 }
 0x82c   : > { %14139 = vst [vmem:[#allocation70_spill] sm:$0xff] %v12782_v10  ;;  %v12786_v54 = vpop.permute.xlu1 %6484 }
 0x82d   : > { %14140 = vst [vmem:[#allocation71_spill] sm:$0xff] %v12784_v31  ;;  %v6453_v31 = vrot.slane %v12771_v18, 7 }
 0x82e   : > { %14141 = vst [vmem:[#allocation72_spill] sm:$0xff] %v12786_v54  ;;  %v12804_v54 = vmul.f32 0.25, %v12771_v18 }
 0x830   : > { %14146 = vst [vmem:[#allocation77_spill] sm:$0xff] %v12804_v54 }
 0x831   : > { %6510 = vrot.lane.b32.xlu2 %v6454_v39, %s10214_s19  ;;  %6506 = vrot.lane.b32.xlu0 %v6452_v38, %s10214_s19 }
 0x832   : > { %6703 = vrot.lane.b32.xlu1 %v12780_v47, %s10214_s19 }
 0x833   : > { %v12794_v9 = vpop.permute.xlu2 %6687  ;;  %v12796_v48 = vpop.permute.xlu0 %6968 }
 0x834   : > { %14142 = vst [vmem:[#allocation73_spill] sm:$0xff] %v12794_v9  ;;  %v12798_v10 = vpop.permute.xlu1 %6964 }
 0x835   : > { %14143 = vst [vmem:[#allocation74_spill] sm:$0xff] %v12796_v48  ;;  %v12822_v48 = vmul.f32 0.75, %v12762_v30  ;;  %v12843_v30 = vmul.f32 0.75, %v12780_v47 }
 0x836   : > { %14144 = vst [vmem:[#allocation75_spill] sm:$0xff] %v12798_v10  ;;  %v12819_v10 = vmul.f32 0.25, %v12780_v47 }
 0x837   : > { %14149 = vst [vmem:[#allocation80_spill] sm:$0xff] %v12822_v48 }
 0x838   : > { %14148 = vst [vmem:[#allocation79_spill] sm:$0xff] %v12819_v10 }
 0x839   : > { %6986 = vrot.lane.b32.xlu0 %v12801_v4, %s10214_s19  ;;  %6990 = vrot.lane.b32.xlu2 %v12804_v54, %s10214_s19  ;;  %v12840_v4 = vmul.f32 0.75, %v12748_v13  ;;  %14155 = vst [vmem:[#allocation86_spill] sm:$0xff] %v12843_v30 }
 0x83a   : > { %6508 = vrot.lane.b32.xlu1 %v6453_v31, %s10214_s19 }
 0x83b   : > { %v12812_v39 = vpop.permute.xlu2 %6492  ;;  %v12814_v38 = vpop.permute.xlu0 %7124  ;;  %14154 = vst [vmem:[#allocation85_spill] sm:$0xff] %v12840_v4 }
 0x83c   : > { %14147 = vst [vmem:[#allocation78_spill] sm:$0xff] %v12812_v39  ;;  %v12816_v9 = vpop.permute.xlu1 %7126 }
 0x841   : > { %6992 = vrot.lane.b32.xlu0 %v12819_v10, %s10214_s19  ;;  %7146 = vrot.lane.b32.xlu2 %v12822_v48, %s10214_s19  ;;  %v12846_v10 = vmul.f32 0.75, %v12771_v18  ;;  %v6362_v48 = vmul.f32 0.75, %v12496_v3  ;;  %v6348_v18 = vmul.f32 0.25, %v12317_v32 }
 0x842   : > { %6988 = vrot.lane.b32.xlu1 %v12825_v46, %s10214_s19  ;;  %v6347_v46 = vmul.f32 0.25, %v12496_v3 }
 0x843   : > { %v12833_v31 = vpop.permute.xlu2 %6972  ;;  %v12835_v39 = vpop.permute.xlu0 %6683  ;;  %14156 = vst [vmem:[#allocation87_spill] sm:$0xff] %v12846_v10 }
 0x844   : > { %14151 = vst [vmem:[#allocation82_spill] sm:$0xff] %v12833_v31  ;;  %v12837_v54 = vpop.permute.xlu1 %6685 }
 0x845   : > { %14152 = vst [vmem:[#allocation83_spill] sm:$0xff] %v12835_v39 }
 0x846   : > { %14153 = vst [vmem:[#allocation84_spill] sm:$0xff] %v12837_v54  ;;  %v12863_v54 = vadd.f32 %v6362_v48, %v6346_v17 }
 0x848   : > { %14160 = vst [vmem:[#allocation91_spill] sm:$0xff] %v12863_v54 }
 0x849   : > { %7148 = vrot.lane.b32.xlu0 %v12840_v4, %s10214_s19  ;;  %7152 = vrot.lane.b32.xlu2 %v12843_v30, %s10214_s19  ;;  %v12865_v4 = vadd.f32 %v6361_v8, %v6347_v46  ;;  %v12867_v30 = vadd.f32 %v6362_v48, %v6348_v18  ;;  %v6363_v8 = vmul.f32 0.75, %v12317_v32 }
 0x84a   : > { %7150 = vrot.lane.b32.xlu1 %v12846_v10, %s10214_s19  ;;  %v6456_v10 = vrot.slane %v12863_v54, 7 }
 0x84b   : > { %v12856_v13 = vpop.permute.xlu2 %7134  ;;  %v12858_v47 = vpop.permute.xlu0 %6488  ;;  %14161 = vst [vmem:[#allocation92_spill] sm:$0xff] %v12865_v4  ;;  %v12882_v17 = vadd.f32 %v6363_v8, %v6347_v46  ;;  %v6455_v48 = vrot.slane %v12865_v4, 7  ;;  %v6457_v46 = vrot.slane %v12867_v30, 7 }
 0x84c   : > { %14157 = vst [vmem:[#allocation88_spill] sm:$0xff] %v12856_v13  ;;  %v12860_v31 = vpop.permute.xlu1 %6490 }
 0x84d   : > { %14158 = vst [vmem:[#allocation89_spill] sm:$0xff] %v12858_v47  ;;  %v6458_v32 = vrot.slane %v12882_v17, 7  ;;  %v12918_v39 = vmul.f32 0.25, %v12882_v17 }
 0x84e   : > { %14159 = vst [vmem:[#allocation90_spill] sm:$0xff] %v12860_v31 }
 0x84f   : > { %14162 = vst [vmem:[#allocation93_spill] sm:$0xff] %v12867_v30 }
 0x850   : > { %14166 = vst [vmem:[#allocation97_spill] sm:$0xff] %v12882_v17 }
 0x851   : > { %6705 = vrot.lane.b32.xlu2 %v12865_v4, %s10214_s19  ;;  %6707 = vrot.lane.b32.xlu0 %v12863_v54, %s10214_s19  ;;  %14175 = vst [vmem:[#allocation106_spill] sm:$0xff] %v12918_v39 }
 0x852   : > { %6709 = vrot.lane.b32.xlu1 %v12867_v30, %s10214_s19 }
 0x853   : > { %v12875_v3 = vpop.permute.xlu2 %6693  ;;  %v12877_v31 = vpop.permute.xlu0 %6494 }
 0x854   : > { %14163 = vst [vmem:[#allocation94_spill] sm:$0xff] %v12875_v3  ;;  %v12879_v47 = vpop.permute.xlu1 %6970 }
 0x855   : > { %14164 = vst [vmem:[#allocation95_spill] sm:$0xff] %v12877_v31 }
 0x856   : > { %14165 = vst [vmem:[#allocation96_spill] sm:$0xff] %v12879_v47  ;;  %v12899_v47 = vmul.f32 0.25, %v12865_v4 }
 0x858   : > { %14170 = vst [vmem:[#allocation101_spill] sm:$0xff] %v12899_v47 }
 0x859   : > { %6512 = vrot.lane.b32.xlu0 %v6455_v48, %s10214_s19  ;;  %6711 = vrot.lane.b32.xlu2 %v12882_v17, %s10214_s19 }
 0x85a   : > { %6514 = vrot.lane.b32.xlu1 %v6456_v10, %s10214_s19 }
 0x85b   : > { %v12890_v3 = vpop.permute.xlu2 %6498  ;;  %v12892_v31 = vpop.permute.xlu0 %6974 }
 0x85c   : > { %14167 = vst [vmem:[#allocation98_spill] sm:$0xff] %v12890_v3  ;;  %v12894_v13 = vpop.permute.xlu1 %6976 }
 0x85d   : > { %14168 = vst [vmem:[#allocation99_spill] sm:$0xff] %v12892_v31  ;;  %v12915_v31 = vmul.f32 0.25, %v12863_v54 }
 0x85e   : > { %14169 = vst [vmem:[#allocation100_spill] sm:$0xff] %v12894_v13  ;;  %v12912_v13 = vmul.f32 0.25, %v12867_v30 }
 0x85f   : > { %14174 = vst [vmem:[#allocation105_spill] sm:$0xff] %v12915_v31 }
 0x860   : > { %14173 = vst [vmem:[#allocation104_spill] sm:$0xff] %v12912_v13 }
 0x861   : > { %6518 = vrot.lane.b32.xlu0 %v6458_v32, %s10214_s19  ;;  %6516 = vrot.lane.b32.xlu2 %v6457_v46, %s10214_s19 }
 0x862   : > { %6994 = vrot.lane.b32.xlu1 %v12899_v47, %s10214_s19 }
 0x863   : > { %v12905_v10 = vpop.permute.xlu2 %6978  ;;  %v12907_v48 = vpop.permute.xlu0 %7130 }
 0x864   : > { %14171 = vst [vmem:[#allocation102_spill] sm:$0xff] %v12905_v10  ;;  %v12909_v3 = vpop.permute.xlu1 %7132  ;;  %v12933_v10 = vmul.f32 0.75, %v12865_v4 }
 0x865   : > { %14172 = vst [vmem:[#allocation103_spill] sm:$0xff] %v12909_v3  ;;  %v12936_v3 = vmul.f32 0.75, %v12867_v30 }
 0x866   : > { %14178 = vst [vmem:[#allocation109_spill] sm:$0xff] %v12933_v10 }
 0x867   : > { %14179 = vst [vmem:[#allocation110_spill] sm:$0xff] %v12936_v3 }
 0x869   : > { %6998 = vrot.lane.b32.xlu0 %v12912_v13, %s10214_s19  ;;  %6996 = vrot.lane.b32.xlu2 %v12915_v31, %s10214_s19  ;;  %v12939_v13 = vmul.f32 0.75, %v12863_v54  ;;  %v6364_v31 = vmul.f32 0.75, %v12500_v62 }
 0x86a   : > { %7000 = vrot.lane.b32.xlu1 %v12918_v39, %s10214_s19  ;;  %v6381_v39 = vmul.f32 0.25, %v12500_v62 }
 0x86b   : > { %v12926_v32 = vpop.permute.xlu2 %6984  ;;  %v12928_v46 = vpop.permute.xlu0 %7136  ;;  %14180 = vst [vmem:[#allocation111_spill] sm:$0xff] %v12939_v13 }
 0x86c   : > { %14176 = vst [vmem:[#allocation107_spill] sm:$0xff] %v12926_v32  ;;  %v12930_v47 = vpop.permute.xlu1 %6691  ;;  %v12955_v54 = vadd.f32 %v6381_v39, %v6364_v31 }
 0x86d   : > { %14177 = vst [vmem:[#allocation108_spill] sm:$0xff] %v12930_v47  ;;  %v12960_v47 = vadd.f32 %v6364_v31, %v6348_v18 }
 0x86e   : > { %14183 = vst [vmem:[#allocation114_spill] sm:$0xff] %v12955_v54 }
 0x86f   : > { %14185 = vst [vmem:[#allocation116_spill] sm:$0xff] %v12960_v47  ;;  %v6460_v18 = vrot.slane %v12960_v47, 7 }
 0x871   : > { %7154 = vrot.lane.b32.xlu0 %v12933_v10, %s10214_s19  ;;  %7158 = vrot.lane.b32.xlu2 %v12936_v3, %s10214_s19  ;;  %v12958_v10 = vmul.f32 0.75, %v12882_v17 }
 0x872   : > { %7156 = vrot.lane.b32.xlu1 %v12939_v13, %s10214_s19 }
 0x873   : > { %v12949_v4 = vpop.permute.xlu2 %7140  ;;  %v12951_v30 = vpop.permute.xlu0 %6689  ;;  %14184 = vst [vmem:[#allocation115_spill] sm:$0xff] %v12958_v10 }
 0x874   : > { %14181 = vst [vmem:[#allocation112_spill] sm:$0xff] %v12949_v4  ;;  %v12953_v32 = vpop.permute.xlu1 %6496  ;;  %v13010_v4 = vmul.f32 0.75, %v12960_v47 }
 0x875   : > { %14182 = vst [vmem:[#allocation113_spill] sm:$0xff] %v12953_v32  ;;  %v12972_v32 = vadd.f32 %v6381_v39, %v6363_v8  ;;  %v6461_v39 = vrot.slane %v12955_v54, 7 }
 0x876   : > { %14198 = vst [vmem:[#allocation129_spill] sm:$0xff] %v13010_v4 }
 0x877   : > { %14187 = vst [vmem:[#allocation118_spill] sm:$0xff] %v12972_v32  ;;  %v6459_v31 = vrot.slane %v12972_v32, 7  ;;  %v12990_v8 = vmul.f32 0.25, %v12972_v32 }
 0x879   : > { %7160 = vrot.lane.b32.xlu0 %v12958_v10, %s10214_s19  ;;  %6717 = vrot.lane.b32.xlu2 %v12955_v54, %s10214_s19  ;;  %14192 = vst [vmem:[#allocation123_spill] sm:$0xff] %v12990_v8 }
 0x87a   : > { %6715 = vrot.lane.b32.xlu1 %v12960_v47, %s10214_s19 }
 0x87b   : > { %v12968_v62 = vpop.permute.xlu2 %6699  ;;  %v12970_v3 = vpop.permute.xlu0 %6695 }
 0x87c   : > { %14186 = vst [vmem:[#allocation117_spill] sm:$0xff] %v12968_v62  ;;  %v12974_v13 = vpop.permute.xlu1 %6502 }
 0x87d   : > { %14188 = vst [vmem:[#allocation119_spill] sm:$0xff] %v12974_v13  ;;  %v12993_v13 = vmul.f32 0.25, %v12955_v54 }
 0x87f   : > { %14193 = vst [vmem:[#allocation124_spill] sm:$0xff] %v12993_v13 }
 0x881   : > { %6713 = vrot.lane.b32.xlu0 %v12972_v32, %s10214_s19  ;;  %6522 = vrot.lane.b32.xlu2 %v6460_v18, %s10214_s19 }
 0x882   : > { %6520 = vrot.lane.b32.xlu1 %v6459_v31, %s10214_s19 }
 0x883   : > { %v12982_v10 = vpop.permute.xlu2 %6504  ;;  %v12984_v17 = vpop.permute.xlu0 %6500 }
 0x884   : > { %14189 = vst [vmem:[#allocation120_spill] sm:$0xff] %v12982_v10  ;;  %v12986_v62 = vpop.permute.xlu1 %6982 }
 0x885   : > { %14190 = vst [vmem:[#allocation121_spill] sm:$0xff] %v12984_v17  ;;  %v13007_v17 = vmul.f32 0.25, %v12960_v47 }
 0x886   : > { %14191 = vst [vmem:[#allocation122_spill] sm:$0xff] %v12986_v62 }
 0x887   : > { %14197 = vst [vmem:[#allocation128_spill] sm:$0xff] %v13007_v17 }
 0x889   : > { %6524 = vrot.lane.b32.xlu0 %v6461_v39, %s10214_s19  ;;  %7002 = vrot.lane.b32.xlu2 %v12990_v8, %s10214_s19  ;;  %v13013_v39 = vmul.f32 0.75, %v12972_v32  ;;  %v6592_v8 = vrot.slane %v12326_v15, 1 }
 0x88a   : > { %7006 = vrot.lane.b32.xlu1 %v12993_v13, %s10214_s19 }
 0x88b   : > { %v13000_v18 = vpop.permute.xlu0 %6980  ;;  %v13002_v31 = vpop.permute.xlu2 %6510  ;;  %14199 = vst [vmem:[#allocation130_spill] sm:$0xff] %v13013_v39  ;;  %v6753_v32 = vsel %vm6751_vm2, %v6592_v8, %v12474_v21 }
 0x88c   : > { %14194 = vst [vmem:[#allocation125_spill] sm:$0xff] %v13000_v18  ;;  %v13004_v10 = vpop.permute.xlu1 %7138  ;;  %v13034_v18 = vmul.f32 0.75, %v12955_v54 }
 0x88d   : > { %14195 = vst [vmem:[#allocation126_spill] sm:$0xff] %v13002_v31  ;;  %v6594_v31 = vrot.slane %v12328_v28, 1 }
 0x88e   : > { %14196 = vst [vmem:[#allocation127_spill] sm:$0xff] %v13004_v10 }
 0x88f   : > { %14201 = vst [vmem:[#allocation132_spill] sm:$0xff] %v13034_v18 }
 0x891   : > { %7004 = vrot.lane.b32.xlu0 %v13007_v17, %s10214_s19  ;;  %7164 = vrot.lane.b32.xlu2 %v13010_v4, %s10214_s19  ;;  %v6755_v17 = vsel %vm6751_vm2, %v6594_v31, %v12518_v23  ;;  %v7233_v4 = vmul.f32 0.25, %v6753_v32 }
 0x892   : > { %7162 = vrot.lane.b32.xlu1 %v13013_v39, %s10214_s19  ;;  %v7235_v62 = vmul.f32 0.25, %v6755_v17  ;;  %v6595_v39 = vrot.slane %v12337_v59, 1 }
 0x893   : > { %v13023_v13 = vpop.permute.xlu0 %7142  ;;  %v13025_v47 = vpop.permute.xlu2 %6990 }
 0x894   : > { %14200 = vst [vmem:[#allocation131_spill] sm:$0xff] %v13025_v47  ;;  %v13029_v10 = vpop.permute.xlu1 %7144  ;;  %v6593_v47 = vrot.slane %v12323_v2, 1  ;;  %v6756_v23 = vsel %vm6751_vm2, %v6595_v39, %v12488_v37 }
 0x895   : > { %v7236_v31 = vmul.f32 0.25, %v6756_v23 }
 0x896   : > { %v6754_v17 = vsel %vm6751_vm2, %v6593_v47, %v12516_v52  ;;  %v7042_v52 = vadd.f32 %v12514_v41, %v12378_v45  ;;  %v7043_v47 = vadd.f32 %v12577_v50, %v12372_v44  ;;  %v7203_v41 = vadd.f32 %v12535_v27, %v12358_v49 }
 0x897   : > { %v7201_v50 = vadd.f32 %v12592_v35, %v12348_v42  ;;  %v7392_v35 = vadd.f32 %v12609_v57, %v12283_v5 }
 0x899   : > { %7166 = vrot.lane.b32.xlu0 %v13034_v18, %s10214_s19  ;;  %7298 = vrot.lane.b32.xlu2 %v7233_v4, %s10215_s16  ;;  %v7234_v4 = vmul.f32 0.25, %v6754_v17  ;;  %v7041_v18 = vadd.f32 %v12560_v53, %v12375_v0  ;;  %v7044_v53 = vadd.f32 %v12579_v58, %v12390_v20  ;;  %v7202_v58 = vadd.f32 %v12594_v6, %v12355_v14 }
 0x89a   : > { %7302 = vrot.lane.b32.xlu1 %v7235_v62, %s10215_s16  ;;  %v6598_v17 = vrot.slane %v12398_v19, 1  ;;  %v7204_v14 = vadd.f32 %v12607_v61, %v12361_v40  ;;  %v6596_v6 = vrot.slane %v12407_v11, 1 }
 0x89b   : > { %v13042_v21 = vpop.permute.xlu0 %6701  ;;  %v13044_v8 = vpop.permute.xlu2 %7146 }
 0x89c   : > { %v13050_v32 = vpop.permute.xlu1 %6697  ;;  %v6759_v49 = vsel %vm6751_vm2, %v6598_v17, %v12575_v63  ;;  %v6757_v40 = vsel %vm6751_vm2, %v6596_v6, %v12650_v7 }
 0x89d   : > { %v7239_v42 = vmul.f32 0.25, %v6759_v49 }
 0x8a1   : > { %7300 = vrot.lane.b32.xlu0 %v7234_v4, %s10215_s16  ;;  %7304 = vrot.lane.b32.xlu2 %v7236_v31, %s10215_s16 }
 0x8a2   : > { %7458 = vrot.lane.b32.xlu1 %v7041_v18, %s10215_s16 }
 0x8a3   : > { %v13057_v62 = vpop.permute.xlu0 %6506  ;;  %v13059_v54 = vpop.permute.xlu2 %7152 }
 0x8a4   : > { %14202 = vst [vmem:[#allocation133_spill] sm:$0xff] %v13057_v62  ;;  %v13061_v37 = vpop.permute.xlu1 %6703 }
 0x8a9   : > { %7462 = vrot.lane.b32.xlu0 %v7043_v47, %s10215_s16  ;;  %7460 = vrot.lane.b32.xlu2 %v7042_v52, %s10215_s16  ;;  %v6597_v52 = vrot.slane %v12400_v55, 1 }
 0x8aa   : > { %7464 = vrot.lane.b32.xlu1 %v7044_v53, %s10215_s16  ;;  %v7045_v53 = vadd.f32 %v12605_v25, %v12448_v12  ;;  %v7048_v25 = vadd.f32 %v12626_v36, %v12464_v1  ;;  %v7046_v36 = vadd.f32 %v12703_v22, %v12442_v43 }
 0x8ab   : > { %v13072_v18 = vpop.permute.xlu0 %6986  ;;  %v13074_v39 = vpop.permute.xlu2 %6705  ;;  %v6758_v57 = vsel %vm6751_vm2, %v6597_v52, %v12630_v60  ;;  %v7206_v52 = vadd.f32 %v12648_v16, %v12445_v24 }
 0x8ac   : > { %v13076_v23 = vpop.permute.xlu1 %6508 }
 0x8ad   : > { %14203 = vst [vmem:[#allocation134_spill] sm:$0xff] %v13076_v23  ;;  %v14231_v23 = vld [vmem:[#allocation16_spill] sm:$0xff] }
 0x8b1   : > { %7586 = vrot.lane.b32.xlu0 %v7201_v50, %s10213_s15  ;;  %7590 = vrot.lane.b32.xlu2 %v7203_v41, %s10213_s15  ;;  %v7237_v41 = vmul.f32 0.25, %v6757_v40  ;;  %v7238_v50 = vmul.f32 0.25, %v6758_v57  ;;  %v14208_v40 = vld [vmem:[#allocation6_spill] sm:$0xff] }
 0x8b2   : > { %7588 = vrot.lane.b32.xlu1 %v7202_v58, %s10213_s15  ;;  %v6599_v58 = vrot.slane %v12416_v34, 1 }
 0x8b3   : > { %v13088_v31 = vpop.permute.xlu0 %6992  ;;  %v13090_v4 = vpop.permute.xlu2 %6711 }
 0x8b4   : > { %v13094_v27 = vpop.permute.xlu1 %6988  ;;  %v6760_v60 = vsel %vm6751_vm2, %v6599_v58, %v12671_v26 }
 0x8b9   : > { %7592 = vrot.lane.b32.xlu0 %v7204_v14, %s10213_s15  ;;  %7310 = vrot.lane.b32.xlu2 %v7239_v42, %s10215_s16  ;;  %v7240_v42 = vmul.f32 0.25, %v6760_v60  ;;  %v7047_v14 = vadd.f32 %v12690_v56, %v12461_v29  ;;  %v14209_v56 = vld [vmem:[#allocation51_spill] sm:$0xff] }
 0x8ba   : > { %7712 = vrot.lane.b32.xlu1 %v7392_v35, %s10213_s15  ;;  %v7205_v57 = vadd.f32 %v14209_v56, %v14208_v40  ;;  %v14213_v60 = vld [vmem:[#allocation43_spill] sm:$0xff]  ;;  %v14217_v56 = vld [vmem:[#allocation10_spill] sm:$0xff] }
 0x8bb   : > { %v13105_v63 = vpop.permute.xlu0 %7148  ;;  %v13107_v47 = vpop.permute.xlu2 %6516 }
 0x8bc   : > { %14204 = vst [vmem:[#allocation135_spill] sm:$0xff] %v13107_v47  ;;  %v13111_v61 = vpop.permute.xlu1 %7150 }
 0x8c1   : > { %7306 = vrot.lane.b32.xlu0 %v7237_v41, %s10215_s16  ;;  %7466 = vrot.lane.b32.xlu2 %v7045_v53, %s10215_s16  ;;  %v14210_v53 = vld [vmem:[#allocation9_spill] sm:$0xff] }
 0x8c2   : > { %7308 = vrot.lane.b32.xlu1 %v7238_v50, %s10215_s16  ;;  %v6601_v41 = vrot.slane %v14210_v53, 1 }
 0x8c3   : > { %v13121_v17 = vpop.permute.xlu0 %6707  ;;  %v13123_v7 = vpop.permute.xlu2 %6996 }
 0x8c4   : > { %v13127_v49 = vpop.permute.xlu1 %6709  ;;  %v6762_v24 = vsel %vm6751_vm2, %v6601_v41, %v14213_v60 }
 0x8c5   : > { %v7242_v22 = vmul.f32 0.25, %v6762_v24  ;;  %v14219_v24 = vld [vmem:[#allocation59_spill] sm:$0xff] }
 0x8c9   : > { %7312 = vrot.lane.b32.xlu0 %v7240_v42, %s10215_s16  ;;  %7472 = vrot.lane.b32.xlu2 %v7048_v25, %s10215_s16  ;;  %v14214_v25 = vld [vmem:[#allocation8_spill] sm:$0xff] }
 0x8ca   : > { %7470 = vrot.lane.b32.xlu1 %v7047_v14, %s10215_s16  ;;  %v7207_v42 = vadd.f32 %v12721_v51, %v14214_v25  ;;  %v14215_v14 = vld [vmem:[#allocation7_spill] sm:$0xff] }
 0x8cb   : > { %v13136_v35 = vpop.permute.xlu0 %6512  ;;  %v13138_v6 = vpop.permute.xlu2 %7158 }
 0x8cc   : > { %14205 = vst [vmem:[#allocation136_spill] sm:$0xff] %v13136_v35  ;;  %v13140_v26 = vpop.permute.xlu1 %6514 }
 0x8cd   : > { %14206 = vst [vmem:[#allocation137_spill] sm:$0xff] %v13138_v6 }
 0x8ce   : > { %14207 = vst [vmem:[#allocation138_spill] sm:$0xff] %v13140_v26 }
 0x8d1   : > { %7468 = vrot.lane.b32.xlu0 %v7046_v36, %s10215_s16  ;;  %7596 = vrot.lane.b32.xlu2 %v7206_v52, %s10213_s15  ;;  %v7208_v52 = vadd.f32 %v12723_v33, %v14215_v14  ;;  %v14216_v36 = vld [vmem:[#allocation11_spill] sm:$0xff]  ;;  %v14221_v33 = vld [vmem:[#allocation60_spill] sm:$0xff] }
 0x8d2   : > { %7594 = vrot.lane.b32.xlu1 %v7205_v57, %s10213_s15  ;;  %v6602_v40 = vrot.slane %v14216_v36, 1  ;;  %v6600_v57 = vrot.slane %v14217_v56, 1  ;;  %v14222_v14 = vld [vmem:[#allocation23_spill] sm:$0xff] }
 0x8d3   : > { %v13152_v50 = vpop.permute.xlu0 %6518  ;;  %v13154_v58 = vpop.permute.xlu2 %6717 }
 0x8d4   : > { %14211 = vst [vmem:[#allocation6_spill] sm:$0xff] %v13152_v50  ;;  %v13158_v16 = vpop.permute.xlu1 %6994  ;;  %v6763_v51 = vsel %vm6751_vm2, %v6602_v40, %v14219_v24 }
 0x8d5   : > { %14212 = vst [vmem:[#allocation51_spill] sm:$0xff] %v13154_v58  ;;  %v7243_v50 = vmul.f32 0.25, %v6763_v51  ;;  %v14230_v51 = vld [vmem:[#allocation58_spill] sm:$0xff] }
 0x8d9   : > { %7598 = vrot.lane.b32.xlu0 %v7207_v42, %s10213_s15  ;;  %7316 = vrot.lane.b32.xlu2 %v7242_v22, %s10215_s16  ;;  %v6761_v42 = vsel %vm6751_vm2, %v6600_v57, %v14221_v33  ;;  %v14223_v22 = vld [vmem:[#allocation54_spill] sm:$0xff]  ;;  %v14228_v57 = vld [vmem:[#allocation67_spill] sm:$0xff] }
 0x8da   : > { %7600 = vrot.lane.b32.xlu1 %v7208_v52, %s10213_s15  ;;  %v7051_v26 = vadd.f32 %v14223_v22, %v14222_v14  ;;  %v7241_v35 = vmul.f32 0.25, %v6761_v42  ;;  %v14224_v52 = vld [vmem:[#allocation12_spill] sm:$0xff]  ;;  %v14229_v22 = vld [vmem:[#allocation15_spill] sm:$0xff] }
 0x8db   : > { %v13169_v41 = vpop.permute.xlu0 %6998  ;;  %v13171_v60 = vpop.permute.xlu2 %6522  ;;  %v7209_v42 = vadd.f32 %v14230_v51, %v14229_v22  ;;  %v14238_v22 = vld [vmem:[#allocation21_spill] sm:$0xff]  ;;  %v14239_v51 = vld [vmem:[#allocation74_spill] sm:$0xff]  ;;  %v14289_v14 = vld [vmem:[#allocation4_spill] sm:$0xff] }
 0x8dc   : > { %14218 = vst [vmem:[#allocation9_spill] sm:$0xff] %v13171_v60  ;;  %v13175_v25 = vpop.permute.xlu1 %7000  ;;  %v6603_v60 = vrot.slane %v14224_v52, 1 }
 0x8dd   : > { %14220 = vst [vmem:[#allocation43_spill] sm:$0xff] %v13175_v25  ;;  %v7052_v25 = vadd.f32 %v14239_v51, %v14238_v22 }
 0x8de   : > { %v6764_v33 = vsel %vm6751_vm2, %v6603_v60, %v14228_v57  ;;  %v14236_v60 = vld [vmem:[#allocation17_spill] sm:$0xff] }
 0x8df   : > { %v14237_v57 = vld [vmem:[#allocation65_spill] sm:$0xff] }
 0x8e0   : > { %v7212_v58 = vadd.f32 %v14237_v57, %v14236_v60 }
 0x8e1   : > { %7318 = vrot.lane.b32.xlu0 %v7243_v50, %s10215_s16  ;;  %7478 = vrot.lane.b32.xlu2 %v7051_v26, %s10215_s16  ;;  %v14232_v50 = vld [vmem:[#allocation71_spill] sm:$0xff]  ;;  %v7244_v26 = vmul.f32 0.25, %v6764_v33 }
 0x8e2   : > { %7314 = vrot.lane.b32.xlu1 %v7241_v35, %s10215_s16  ;;  %v7049_v62 = vadd.f32 %v14232_v50, %v14231_v23  ;;  %v14240_v50 = vld [vmem:[#allocation22_spill] sm:$0xff]  ;;  %v14241_v33 = vld [vmem:[#allocation75_spill] sm:$0xff] }
 0x8e3   : > { %v13185_v47 = vpop.permute.xlu0 %7154  ;;  %v13187_v40 = vpop.permute.xlu2 %7002 }
 0x8e4   : > { %14225 = vst [vmem:[#allocation8_spill] sm:$0xff] %v13185_v47  ;;  %v13189_v24 = vpop.permute.xlu1 %7156  ;;  %v7050_v47 = vadd.f32 %v14241_v33, %v14240_v50  ;;  %v14290_v50 = vld [vmem:[#allocation3_spill] sm:$0xff] }
 0x8e5   : > { %14226 = vst [vmem:[#allocation7_spill] sm:$0xff] %v13187_v40 }
 0x8e6   : > { %14227 = vst [vmem:[#allocation11_spill] sm:$0xff] %v13189_v24 }
 0x8e9   : > { %7474 = vrot.lane.b32.xlu0 %v7049_v62, %s10215_s16  ;;  %7602 = vrot.lane.b32.xlu2 %v7209_v42, %s10213_s15  ;;  %v14242_v62 = vld [vmem:[#allocation27_spill] sm:$0xff] }
 0x8ea   : > { %7320 = vrot.lane.b32.xlu1 %v7244_v26, %s10215_s16  ;;  %v6604_v42 = vrot.slane %v14242_v62, 1  ;;  %v14250_v62 = vld [vmem:[#allocation26_spill] sm:$0xff] }
 0x8eb   : > { %v13200_v35 = vpop.permute.xlu0 %7160  ;;  %v13202_v40 = vpop.permute.xlu2 %7164 }
 0x8ec   : > { %14233 = vst [vmem:[#allocation10_spill] sm:$0xff] %v13200_v35  ;;  %v13204_v24 = vpop.permute.xlu1 %6715  ;;  %v14247_v35 = vld [vmem:[#allocation18_spill] sm:$0xff] }
 0x8ed   : > { %14234 = vst [vmem:[#allocation59_spill] sm:$0xff] %v13202_v40  ;;  %v7210_v33 = vadd.f32 %v12814_v38, %v14247_v35  ;;  %v14254_v38 = vld [vmem:[#allocation73_spill] sm:$0xff] }
 0x8ee   : > { %14235 = vst [vmem:[#allocation60_spill] sm:$0xff] %v13204_v24  ;;  %v14245_v24 = vld [vmem:[#allocation70_spill] sm:$0xff] }
 0x8ef   : > { %v6765_v60 = vsel %vm6751_vm2, %v6604_v42, %v14245_v24  ;;  %v14251_v24 = vld [vmem:[#allocation28_spill] sm:$0xff] }
 0x8f0   : > { %v7245_v51 = vmul.f32 0.25, %v6765_v60  ;;  %v6606_v42 = vrot.slane %v14251_v24, 1  ;;  %v14272_v24 = vld [vmem:[#allocation100_spill] sm:$0xff] }
 0x8f1   : > { %7480 = vrot.lane.b32.xlu0 %v7052_v25, %s10215_s16  ;;  %7608 = vrot.lane.b32.xlu2 %v7212_v58, %s10213_s15  ;;  %v14248_v25 = vld [vmem:[#allocation14_spill] sm:$0xff] }
 0x8f2   : > { %7476 = vrot.lane.b32.xlu1 %v7050_v47, %s10215_s16  ;;  %v7211_v58 = vadd.f32 %v12816_v9, %v14248_v25  ;;  %v14249_v47 = vld [vmem:[#allocation29_spill] sm:$0xff]  ;;  %v14255_v9 = vld [vmem:[#allocation83_spill] sm:$0xff] }
 0x8f3   : > { %v13216_v26 = vpop.permute.xlu0 %6713  ;;  %v13218_v40 = vpop.permute.xlu2 %7298 }
 0x8f4   : > { %14243 = vst [vmem:[#allocation54_spill] sm:$0xff] %v13216_v26  ;;  %v13222_v57 = vpop.permute.xlu1 %6520  ;;  %v6607_v26 = vrot.slane %v14249_v47, 1 }
 0x8f5   : > { %14244 = vst [vmem:[#allocation12_spill] sm:$0xff] %v13218_v40  ;;  %v6605_v40 = vrot.slane %v14250_v62, 1 }
 0x8f6   : > { %14246 = vst [vmem:[#allocation67_spill] sm:$0xff] %v13222_v57  ;;  %v6768_v35 = vsel %vm6751_vm2, %v6607_v26, %v14254_v38 }
 0x8f7   : > { %v7248_v62 = vmul.f32 0.25, %v6768_v35 }
 0x8f9   : > { %7604 = vrot.lane.b32.xlu0 %v7210_v33, %s10213_s15  ;;  %7322 = vrot.lane.b32.xlu2 %v7245_v51, %s10215_s16  ;;  %v6766_v33 = vsel %vm6751_vm2, %v6605_v40, %v14255_v9  ;;  %v14257_v51 = vld [vmem:[#allocation84_spill] sm:$0xff]  ;;  %v14260_v40 = vld [vmem:[#allocation38_spill] sm:$0xff] }
 0x8fa   : > { %7606 = vrot.lane.b32.xlu1 %v7211_v58, %s10213_s15  ;;  %v6767_v47 = vsel %vm6751_vm2, %v6606_v42, %v14257_v51  ;;  %v7246_v6 = vmul.f32 0.25, %v6766_v33  ;;  %v14261_v9 = vld [vmem:[#allocation82_spill] sm:$0xff]  ;;  %v14263_v42 = vld [vmem:[#allocation99_spill] sm:$0xff]  ;;  %v14264_v33 = vld [vmem:[#allocation37_spill] sm:$0xff] }
 0x8fb   : > { %v13234_v57 = vpop.permute.xlu0 %6524  ;;  %v13236_v60 = vpop.permute.xlu2 %7304  ;;  %v7247_v58 = vmul.f32 0.25, %v6767_v47  ;;  %v14265_v47 = vld [vmem:[#allocation96_spill] sm:$0xff] }
 0x8fc   : > { %14252 = vst [vmem:[#allocation15_spill] sm:$0xff] %v13234_v57  ;;  %v13242_v25 = vpop.permute.xlu1 %7006  ;;  %v7053_v51 = vadd.f32 %v14265_v47, %v14264_v33  ;;  %v14280_v33 = vld [vmem:[#allocation103_spill] sm:$0xff] }
 0x8fd   : > { %14253 = vst [vmem:[#allocation58_spill] sm:$0xff] %v13236_v60  ;;  %v7054_v60 = vadd.f32 %v14261_v9, %v14260_v40  ;;  %v14270_v40 = vld [vmem:[#allocation31_spill] sm:$0xff] }
 0x8fe   : > { %14256 = vst [vmem:[#allocation16_spill] sm:$0xff] %v13242_v25  ;;  %v14262_v25 = vld [vmem:[#allocation36_spill] sm:$0xff] }
 0x8ff   : > { %v7055_v35 = vadd.f32 %v14263_v42, %v14262_v25  ;;  %v7213_v42 = vadd.f32 %v12907_v48, %v14270_v40  ;;  %v14271_v25 = vld [vmem:[#allocation41_spill] sm:$0xff]  ;;  %v14277_v48 = vld [vmem:[#allocation94_spill] sm:$0xff] }
 0x900   : > { %v7056_v47 = vadd.f32 %v14272_v24, %v14271_v25 }
 0x901   : > { %7324 = vrot.lane.b32.xlu0 %v7246_v6, %s10215_s16  ;;  %7328 = vrot.lane.b32.xlu2 %v7248_v62, %s10215_s16 }
 0x902   : > { %7326 = vrot.lane.b32.xlu1 %v7247_v58, %s10215_s16 }
 0x903   : > { %v13249_v57 = vpop.permute.xlu0 %7004  ;;  %v13251_v26 = vpop.permute.xlu2 %7460 }
 0x904   : > { %14258 = vst [vmem:[#allocation71_spill] sm:$0xff] %v13249_v57  ;;  %v13253_v38 = vpop.permute.xlu1 %7162  ;;  %v14269_v57 = vld [vmem:[#allocation88_spill] sm:$0xff] }
 0x905   : > { %14259 = vst [vmem:[#allocation17_spill] sm:$0xff] %v13253_v38  ;;  %v14268_v38 = vld [vmem:[#allocation33_spill] sm:$0xff] }
 0x906   : > { %v7215_v9 = vadd.f32 %v14269_v57, %v14268_v38 }
 0x909   : > { %7486 = vrot.lane.b32.xlu0 %v7055_v35, %s10215_s16  ;;  %7484 = vrot.lane.b32.xlu2 %v7054_v60, %s10215_s16  ;;  %v14273_v60 = vld [vmem:[#allocation40_spill] sm:$0xff] }
 0x90a   : > { %7482 = vrot.lane.b32.xlu1 %v7053_v51, %s10215_s16  ;;  %v6610_v35 = vrot.slane %v14273_v60, 1  ;;  %v14274_v51 = vld [vmem:[#allocation13_spill] sm:$0xff]  ;;  %v14279_v60 = vld [vmem:[#allocation32_spill] sm:$0xff] }
 0x90b   : > { %v13264_v6 = vpop.permute.xlu0 %7166  ;;  %v7591_v62 = vpop.permute.xlu2 %7590 }
 0x90c   : > { %14266 = vst [vmem:[#allocation65_spill] sm:$0xff] %v13264_v6  ;;  %v13266_v58 = vpop.permute.xlu1 %7302  ;;  %v6771_v24 = vsel %vm6751_vm2, %v6610_v35, %v14277_v48  ;;  %v14282_v35 = vld [vmem:[#allocation44_spill] sm:$0xff] }
 0x90d   : > { %14267 = vst [vmem:[#allocation21_spill] sm:$0xff] %v13266_v58  ;;  %v6562_v58 = vsel %vm6558_vm3, %v12328_v28, %v14274_v51  ;;  %v7251_v6 = vmul.f32 0.25, %v6771_v24  ;;  %v14281_v51 = vld [vmem:[#allocation19_spill] sm:$0xff]  ;;  %v6608_v48 = vrot.slane %v14282_v35, 1 }
 0x911   : > { %7610 = vrot.lane.b32.xlu0 %v7213_v42, %s10213_s15  ;;  %7614 = vrot.lane.b32.xlu2 %v7215_v9, %s10213_s15  ;;  %v6787_v42 = vmul.f32 0.25, %v6562_v58  ;;  %v14278_v9 = vld [vmem:[#allocation34_spill] sm:$0xff]  ;;  %v14283_v58 = vld [vmem:[#allocation20_spill] sm:$0xff] }
 0x912   : > { %7488 = vrot.lane.b32.xlu1 %v7056_v47, %s10215_s16  ;;  %v7216_v25 = vadd.f32 %v12928_v46, %v14278_v9  ;;  %v7214_v47 = vadd.f32 %v14280_v33, %v14279_v60  ;;  %v6561_v46 = vsel %vm6558_vm3, %v12323_v2, %v14283_v58  ;;  %v14284_v33 = vld [vmem:[#allocation42_spill] sm:$0xff]  ;;  %v14287_v58 = vld [vmem:[#allocation57_spill] sm:$0xff] }
 0x913   : > { %v13281_v57 = vpop.permute.xlu0 %7300  ;;  %v13283_v38 = vpop.permute.xlu2 %7310  ;;  %v6851_v28 = vadd.f32 %v12372_v44, %v6787_v42  ;;  %v6609_v60 = vrot.slane %v14284_v33, 1  ;;  %v6786_v2 = vmul.f32 0.25, %v6561_v46  ;;  %v14288_v33 = vld [vmem:[#allocation102_spill] sm:$0xff] }
 0x914   : > { %14275 = vst [vmem:[#allocation74_spill] sm:$0xff] %v13281_v57  ;;  %v7459_v40 = vpop.permute.xlu1 %7458  ;;  %v7057_v44 = vadd.f32 %v14288_v33, %v14287_v58 }
 0x915   : > { %14276 = vst [vmem:[#allocation75_spill] sm:$0xff] %v13283_v38  ;;  %v6560_v38 = vsel %vm6558_vm3, %v12326_v15, %v14281_v51  ;;  %v14285_v51 = vld [vmem:[#allocation108_spill] sm:$0xff] }
 0x916   : > { %v6785_v9 = vmul.f32 0.25, %v6560_v38  ;;  %v6850_v38 = vadd.f32 %v12378_v45, %v6786_v2  ;;  %v14296_v2 = vld [vmem:[#allocation107_spill] sm:$0xff] }
 0x919   : > { %7616 = vrot.lane.b32.xlu0 %v7216_v25, %s10213_s15  ;;  %7334 = vrot.lane.b32.xlu2 %v7251_v6, %s10215_s16  ;;  %v6769_v6 = vsel %vm6751_vm2, %v6608_v48, %v12951_v30  ;;  %v6559_v30 = vsel %vm6558_vm3, %v14290_v50, %v14289_v14 }
 0x91a   : > { %7612 = vrot.lane.b32.xlu1 %v7214_v47, %s10213_s15  ;;  %v6770_v47 = vsel %vm6751_vm2, %v6609_v60, %v14285_v51  ;;  %v7249_v57 = vmul.f32 0.25, %v6769_v6  ;;  %v14292_v60 = vld [vmem:[#allocation48_spill] sm:$0xff] }
 0x91b   : > { %v7463_v25 = vpop.permute.xlu0 %7462  ;;  %v13303_v24 = vpop.permute.xlu2 %7466  ;;  %v7250_v48 = vmul.f32 0.25, %v6770_v47  ;;  %v6611_v33 = vrot.slane %v14292_v60, 1 }
 0x91c   : > { %v7812_v42 = vsel %vm7808_vm4, %v6851_v28, %v7463_v25  ;;  %v7465_v15 = vpop.permute.xlu1 %7464  ;;  %v6849_v28 = vadd.f32 %v12375_v0, %v6785_v9  ;;  %v6784_v25 = vmul.f32 0.25, %v6559_v30 }
 0x91d   : > { %v13311_v35 = vsel %vm7841_vm5, %v7812_v42, %v7591_v62  ;;  %v14291_v62 = vld [vmem:[#allocation25_spill] sm:$0xff] }
 0x91e   : > { %14286 = vst [vmem:[#allocation70_spill] sm:$0xff] %v13311_v35  ;;  %v6563_v46 = vsel %vm6558_vm3, %v12337_v59, %v14291_v62  ;;  %v7810_v14 = vsel %vm7808_vm4, %v6849_v28, %v7459_v40  ;;  %v6848_v47 = vadd.f32 %v12283_v5, %v6784_v25  ;;  %v14295_v40 = vld [vmem:[#allocation63_spill] sm:$0xff]  ;;  %v14297_v28 = vld [vmem:[#allocation62_spill] sm:$0xff] }
 0x91f   : > { %v6788_v9 = vmul.f32 0.25, %v6563_v46  ;;  %v7060_v30 = vadd.f32 %v14296_v2, %v14295_v40 }
 0x921   : > { %7330 = vrot.lane.b32.xlu0 %v7249_v57, %s10215_s16  ;;  %7490 = vrot.lane.b32.xlu2 %v7057_v44, %s10215_s16  ;;  %v6772_v44 = vsel %vm6751_vm2, %v6611_v33, %v12970_v3  ;;  %v7811_v57 = vsel %vm7808_vm4, %v6850_v38, %v13251_v26  ;;  %v14298_v3 = vld [vmem:[#allocation122_spill] sm:$0xff]  ;;  %v6852_v26 = vadd.f32 %v12390_v20, %v6788_v9  ;;  %v14299_v38 = vld [vmem:[#allocation35_spill] sm:$0xff]  ;;  %v14302_v9 = vld [vmem:[#allocation56_spill] sm:$0xff] }
 0x922   : > { %7332 = vrot.lane.b32.xlu1 %v7250_v48, %s10215_s16  ;;  %v7252_v48 = vmul.f32 0.25, %v6772_v44  ;;  %v7059_v62 = vadd.f32 %v14298_v3, %v14297_v28  ;;  %v7809_v33 = vsel %vm7808_vm4, %v6848_v47, %v14299_v38  ;;  %v14303_v47 = vld [vmem:[#allocation112_spill] sm:$0xff]  ;;  %v14308_v38 = vld [vmem:[#allocation61_spill] sm:$0xff] }
 0x923   : > { %v7587_v50 = vpop.permute.xlu0 %7586  ;;  %v13328_v6 = vpop.permute.xlu2 %7472  ;;  %v7813_v5 = vsel %vm7808_vm4, %v6852_v26, %v7465_v15  ;;  %v7218_v2 = vadd.f32 %v14303_v47, %v14302_v9  ;;  %v14307_v15 = vld [vmem:[#allocation127_spill] sm:$0xff]  ;;  %v14310_v9 = vld [vmem:[#allocation53_spill] sm:$0xff] }
 0x924   : > { %v13335_v42 = vsel %vm7841_vm5, %v7810_v14, %v7587_v50  ;;  %v7589_v59 = vpop.permute.xlu1 %7588  ;;  %v14301_v50 = vld [vmem:[#allocation24_spill] sm:$0xff]  ;;  %v7219_v47 = vadd.f32 %v13023_v13, %v14310_v9 }
 0x925   : > { %14293 = vst [vmem:[#allocation18_spill] sm:$0xff] %v13335_v42  ;;  %v13338_v51 = vsel %vm7841_vm5, %v7811_v57, %v7589_v59  ;;  %v7842_v44 = vsel %vm7841_vm5, %v7809_v33, %v14301_v50  ;;  %v14309_v50 = vld [vmem:[#allocation117_spill] sm:$0xff]  ;;  %v14315_v13 = vld [vmem:[#allocation64_spill] sm:$0xff] }
 0x926   : > { %14294 = vst [vmem:[#allocation14_spill] sm:$0xff] %v13338_v51 }
 0x929   : > { %7336 = vrot.lane.b32.xlu0 %v7252_v48, %s10215_s16  ;;  %7496 = vrot.lane.b32.xlu2 %v7060_v30, %s10215_s16  ;;  %v14304_v30 = vld [vmem:[#allocation55_spill] sm:$0xff]  ;;  %v14305_v48 = vld [vmem:[#allocation125_spill] sm:$0xff] }
 0x92a   : > { %7494 = vrot.lane.b32.xlu1 %v7059_v62, %s10215_s16  ;;  %v7058_v3 = vadd.f32 %v14305_v48, %v14304_v30  ;;  %v14306_v62 = vld [vmem:[#allocation49_spill] sm:$0xff]  ;;  %v14311_v48 = vld [vmem:[#allocation52_spill] sm:$0xff] }
 0x92b   : > { %v7593_v46 = vpop.permute.xlu0 %7592  ;;  %v7597_v25 = vpop.permute.xlu2 %7596  ;;  %v7217_v26 = vadd.f32 %v14307_v15, %v14306_v62  ;;  %v14313_v15 = vld [vmem:[#allocation30_spill] sm:$0xff] }
 0x92c   : > { %v13359_v14 = vsel %vm7841_vm5, %v7813_v5, %v7593_v46  ;;  %v7713_v57 = vpop.permute.xlu1 %7712  ;;  %v6613_v5 = vrot.slane %v14308_v38, 1 }
 0x92d   : > { %14300 = vst [vmem:[#allocation73_spill] sm:$0xff] %v13359_v14  ;;  %v7875_v59 = vsel %vm7874_vm6, %v7842_v44, %v7713_v57 }
 0x92e   : > { %7907 = vst [vmem:[%s13355_s23] sm:$0xff] %v7875_v59  ;;  %v6774_v44 = vsel %vm6751_vm2, %v6613_v5, %v14309_v50  ;;  %v14314_v5 = vld [vmem:[#allocation39_spill] sm:$0xff] }
 0x92f   : > { %v7254_v59 = vmul.f32 0.25, %v6774_v44  ;;  %v6564_v50 = vsel %vm6558_vm3, %v12407_v11, %v14314_v5  ;;  %v6612_v44 = vrot.slane %v14315_v13, 1 }
 0x930   : > { %v6789_v35 = vmul.f32 0.25, %v6564_v50  ;;  %v14320_v50 = vld [vmem:[#allocation69_spill] sm:$0xff] }
 0x931   : > { %7492 = vrot.lane.b32.xlu0 %v7058_v3, %s10215_s16  ;;  %7620 = vrot.lane.b32.xlu2 %v7218_v2, %s10213_s15  ;;  %v7220_v2 = vadd.f32 %v13029_v10, %v14311_v48  ;;  %v14312_v3 = vld [vmem:[#allocation68_spill] sm:$0xff]  ;;  %v6773_v48 = vsel %vm6751_vm2, %v6612_v44, %v13050_v32  ;;  %v14319_v32 = vld [vmem:[#allocation45_spill] sm:$0xff]  ;;  %v6615_v44 = vrot.slane %v14320_v50, 1 }
 0x932   : > { %7618 = vrot.lane.b32.xlu1 %v7217_v26, %s10213_s15  ;;  %v6614_v62 = vrot.slane %v14312_v3, 1  ;;  %v6565_v26 = vsel %vm6558_vm3, %v12400_v55, %v14313_v15  ;;  %v14316_v55 = vld [vmem:[#allocation87_spill] sm:$0xff]  ;;  %v7253_v11 = vmul.f32 0.25, %v6773_v48  ;;  %v6853_v42 = vadd.f32 %v12448_v12, %v6789_v35 }
 0x933   : > { %v13375_v33 = vpop.permute.xlu0 %7306  ;;  %v13377_v46 = vpop.permute.xlu2 %7316  ;;  %v14317_v15 = vld [vmem:[#allocation131_spill] sm:$0xff] }
 0x934   : > { %v13381_v57 = vpop.permute.xlu1 %7308  ;;  %v7063_v51 = vadd.f32 %v14317_v15, %v14316_v55  ;;  %v14324_v55 = vld [vmem:[#allocation80_spill] sm:$0xff] }
 0x939   : > { %7622 = vrot.lane.b32.xlu0 %v7219_v47, %s10213_s15  ;;  %7340 = vrot.lane.b32.xlu2 %v7254_v59, %s10215_s16  ;;  %v6775_v59 = vsel %vm6751_vm2, %v6614_v62, %v13042_v21  ;;  %v14318_v21 = vld [vmem:[#allocation47_spill] sm:$0xff] }
 0x93a   : > { %7624 = vrot.lane.b32.xlu1 %v7220_v2, %s10213_s15  ;;  %v6790_v2 = vmul.f32 0.25, %v6565_v26  ;;  %v7255_v14 = vmul.f32 0.25, %v6775_v59  ;;  %v6566_v62 = vsel %vm6558_vm3, %v12398_v19, %v14318_v21  ;;  %v6567_v26 = vsel %vm6558_vm3, %v12416_v34, %v14319_v32  ;;  %v14323_v21 = vld [vmem:[#allocation76_spill] sm:$0xff] }
 0x93b   : > { %v13398_v9 = vpop.permute.xlu0 %7312  ;;  %v13400_v10 = vpop.permute.xlu2 %7478  ;;  %v6776_v19 = vsel %vm6751_vm2, %v6615_v44, %v13061_v37  ;;  %v6792_v34 = vmul.f32 0.25, %v6567_v26  ;;  %v7221_v32 = vadd.f32 %v13044_v8, %v14323_v21  ;;  %v14331_v21 = vld [vmem:[#allocation46_spill] sm:$0xff] }
 0x93c   : > { %v7471_v47 = vpop.permute.xlu1 %7470  ;;  %v6854_v5 = vadd.f32 %v12442_v43, %v6790_v2  ;;  %v6791_v2 = vmul.f32 0.25, %v6566_v62 }
 0x93d   : > { %v6856_v37 = vadd.f32 %v12464_v1, %v6792_v34 }
 0x93f   : > { %v7817_v8 = vsel %vm7808_vm4, %v6856_v37, %v13328_v6  ;;  %v14330_v6 = vld [vmem:[#allocation92_spill] sm:$0xff]  ;;  %v14332_v37 = vld [vmem:[#allocation81_spill] sm:$0xff] }
 0x940   : > { %v6616_v34 = vrot.slane %v14330_v6, 1  ;;  %v14373_v6 = vld [vmem:[#allocation37_spill] sm:$0xff] }
 0x941   : > { %7342 = vrot.lane.b32.xlu0 %v7255_v14, %s10215_s16  ;;  %7502 = vrot.lane.b32.xlu2 %v7063_v51, %s10215_s16  ;;  %v7814_v51 = vsel %vm7808_vm4, %v6853_v42, %v13303_v24  ;;  %v7061_v24 = vadd.f32 %v13072_v18, %v14324_v55  ;;  %v7256_v42 = vmul.f32 0.25, %v6776_v19  ;;  %v14329_v19 = vld [vmem:[#allocation85_spill] sm:$0xff] }
 0x942   : > { %7338 = vrot.lane.b32.xlu1 %v7253_v11, %s10215_s16 }
 0x943   : > { %v7469_v59 = vpop.permute.xlu0 %7468  ;;  %v7603_v14 = vpop.permute.xlu2 %7602 }
 0x944   : > { %v7815_v48 = vsel %vm7808_vm4, %v6854_v5, %v7469_v59  ;;  %v7595_v35 = vpop.permute.xlu1 %7594  ;;  %v6855_v5 = vadd.f32 %v12461_v29, %v6791_v2 }
 0x945   : > { %v13426_v15 = vsel %vm7841_vm5, %v7814_v51, %v7595_v35  ;;  %v13429_v11 = vsel %vm7841_vm5, %v7815_v48, %v7597_v25  ;;  %v14327_v51 = vld [vmem:[#allocation79_spill] sm:$0xff]  ;;  %v14328_v35 = vld [vmem:[#allocation86_spill] sm:$0xff] }
 0x946   : > { %14321 = vst [vmem:[#allocation83_spill] sm:$0xff] %v13426_v15  ;;  %v7816_v25 = vsel %vm7808_vm4, %v6855_v5, %v7471_v47  ;;  %v7224_v48 = vadd.f32 %v13059_v54, %v14327_v51  ;;  %v7064_v2 = vadd.f32 %v13088_v31, %v14328_v35  ;;  %v7062_v47 = vadd.f32 %v13094_v27, %v14329_v19 }
 0x947   : > { %14322 = vst [vmem:[#allocation84_spill] sm:$0xff] %v13429_v11  ;;  %v6777_v31 = vsel %vm6751_vm2, %v6616_v34, %v13074_v39  ;;  %v14365_v11 = vld [vmem:[#allocation27_spill] sm:$0xff] }
 0x948   : > { %v7257_v5 = vmul.f32 0.25, %v6777_v31 }
 0x949   : > { %7498 = vrot.lane.b32.xlu0 %v7061_v24, %s10215_s16  ;;  %7626 = vrot.lane.b32.xlu2 %v7221_v32, %s10213_s15  ;;  %v6568_v32 = vsel %vm6558_vm3, %v14217_v56, %v14331_v21 }
 0x94a   : > { %7344 = vrot.lane.b32.xlu1 %v7256_v42, %s10215_s16  ;;  %v6793_v42 = vmul.f32 0.25, %v6568_v32 }
 0x94b   : > { %v7599_v62 = vpop.permute.xlu0 %7598  ;;  %v7609_v26 = vpop.permute.xlu2 %7608 }
 0x94c   : > { %v13444_v18 = vsel %vm7841_vm5, %v7816_v25, %v7599_v62  ;;  %v7601_v44 = vpop.permute.xlu1 %7600  ;;  %v7222_v25 = vadd.f32 %v13105_v63, %v14332_v37  ;;  %v14333_v62 = vld [vmem:[#allocation77_spill] sm:$0xff]  ;;  %v6857_v56 = vadd.f32 %v14231_v23, %v6793_v42 }
 0x94d   : > { %14325 = vst [vmem:[#allocation82_spill] sm:$0xff] %v13444_v18  ;;  %v13447_v59 = vsel %vm7841_vm5, %v7817_v8, %v7601_v44  ;;  %v7223_v8 = vadd.f32 %v13111_v61, %v14333_v62  ;;  %v14334_v44 = vld [vmem:[#allocation97_spill] sm:$0xff] }
 0x94e   : > { %14326 = vst [vmem:[#allocation99_spill] sm:$0xff] %v13447_v59  ;;  %v6619_v51 = vrot.slane %v14334_v44, 1  ;;  %v14337_v63 = vld [vmem:[#allocation93_spill] sm:$0xff] }
 0x94f   : > { %v6618_v34 = vrot.slane %v14337_v63, 1  ;;  %v14364_v59 = vld [vmem:[#allocation89_spill] sm:$0xff] }
 0x950   : > { %v6780_v32 = vsel %vm6751_vm2, %v6619_v51, %v13090_v4 }
 0x951   : > { %7504 = vrot.lane.b32.xlu0 %v7064_v2, %s10215_s16  ;;  %7632 = vrot.lane.b32.xlu2 %v7224_v48, %s10213_s15  ;;  %v14335_v48 = vld [vmem:[#allocation91_spill] sm:$0xff]  ;;  %v14336_v2 = vld [vmem:[#allocation50_spill] sm:$0xff]  ;;  %v6779_v37 = vsel %vm6751_vm2, %v6618_v34, %v13127_v49  ;;  %v7260_v62 = vmul.f32 0.25, %v6780_v32  ;;  %v14340_v49 = vld [vmem:[#allocation72_spill] sm:$0xff] }
 0x952   : > { %7500 = vrot.lane.b32.xlu1 %v7062_v47, %s10215_s16  ;;  %v6617_v39 = vrot.slane %v14335_v48, 1  ;;  %v6571_v47 = vsel %vm6558_vm3, %v14224_v52, %v14336_v2  ;;  %v7259_v2 = vmul.f32 0.25, %v6779_v37  ;;  %v14343_v37 = vld [vmem:[#allocation110_spill] sm:$0xff] }
 0x953   : > { %v13462_v24 = vpop.permute.xlu0 %7318  ;;  %v13464_v54 = vpop.permute.xlu2 %7322 }
 0x954   : > { %v13468_v27 = vpop.permute.xlu1 %7314  ;;  %v6778_v31 = vsel %vm6751_vm2, %v6617_v39, %v13121_v17  ;;  %v14339_v17 = vld [vmem:[#allocation66_spill] sm:$0xff] }
 0x959   : > { %7628 = vrot.lane.b32.xlu0 %v7222_v25, %s10213_s15  ;;  %7346 = vrot.lane.b32.xlu2 %v7257_v5, %s10215_s16  ;;  %v6796_v25 = vmul.f32 0.25, %v6571_v47 }
 0x95a   : > { %7630 = vrot.lane.b32.xlu1 %v7223_v8, %s10213_s15  ;;  %v7258_v8 = vmul.f32 0.25, %v6778_v31 }
 0x95b   : > { %v7475_v21 = vpop.permute.xlu0 %7474  ;;  %v13484_v61 = vpop.permute.xlu2 %7328  ;;  %v6860_v4 = vadd.f32 %v14238_v22, %v6796_v25  ;;  %v7067_v25 = vadd.f32 %v13169_v41, %v14343_v37 }
 0x95c   : > { %v7818_v42 = vsel %vm7808_vm4, %v6857_v56, %v7475_v21  ;;  %v13491_v5 = vpop.permute.xlu1 %7320  ;;  %v6569_v56 = vsel %vm6558_vm3, %v14210_v53, %v14339_v17 }
 0x95d   : > { %v13496_v52 = vsel %vm7841_vm5, %v7818_v42, %v7603_v14  ;;  %v6570_v14 = vsel %vm6558_vm3, %v14216_v36, %v14340_v49  ;;  %v6794_v21 = vmul.f32 0.25, %v6569_v56  ;;  %v14342_v42 = vld [vmem:[#allocation111_spill] sm:$0xff] }
 0x95e   : > { %14338 = vst [vmem:[#allocation96_spill] sm:$0xff] %v13496_v52  ;;  %v6795_v31 = vmul.f32 0.25, %v6570_v14  ;;  %v7066_v53 = vadd.f32 %v13123_v7, %v14342_v42  ;;  %v14384_v42 = vld [vmem:[#allocation16_spill] sm:$0xff] }
 0x961   : > { %7348 = vrot.lane.b32.xlu0 %v7258_v8, %s10215_s16  ;;  %7352 = vrot.lane.b32.xlu2 %v7260_v62, %s10215_s16  ;;  %v14344_v62 = vld [vmem:[#allocation109_spill] sm:$0xff]  ;;  %v14345_v8 = vld [vmem:[#allocation22_spill] sm:$0xff] }
 0x962   : > { %7350 = vrot.lane.b32.xlu1 %v7259_v2, %s10215_s16  ;;  %v7065_v36 = vadd.f32 %v13158_v16, %v14344_v62  ;;  %v6858_v2 = vadd.f32 %v14345_v8, %v6794_v21 }
 0x963   : > { %v7481_v51 = vpop.permute.xlu0 %7480  ;;  %v13508_v39 = vpop.permute.xlu2 %7484 }
 0x964   : > { %v7821_v47 = vsel %vm7808_vm4, %v6860_v4, %v7481_v51  ;;  %v7477_v34 = vpop.permute.xlu1 %7476  ;;  %v14346_v4 = vld [vmem:[#allocation23_spill] sm:$0xff]  ;;  %v14349_v51 = vld [vmem:[#allocation104_spill] sm:$0xff] }
 0x965   : > { %v13512_v32 = vsel %vm7841_vm5, %v7821_v47, %v7609_v26  ;;  %v6859_v17 = vadd.f32 %v14346_v4, %v6795_v31  ;;  %v7819_v26 = vsel %vm7808_vm4, %v6858_v2, %v7477_v34  ;;  %v14350_v47 = vld [vmem:[#allocation137_spill] sm:$0xff]  ;;  %v14354_v34 = vld [vmem:[#allocation43_spill] sm:$0xff] }
 0x966   : > { %14341 = vst [vmem:[#allocation33_spill] sm:$0xff] %v13512_v32  ;;  %v7227_v21 = vadd.f32 %v14350_v47, %v14349_v51  ;;  %v14351_v31 = vld [vmem:[#allocation101_spill] sm:$0xff]  ;;  %v14358_v47 = vld [vmem:[#allocation51_spill] sm:$0xff]  ;;  %v14360_v32 = vld [vmem:[#allocation10_spill] sm:$0xff] }
 0x967   : > { %v7820_v41 = vsel %vm7808_vm4, %v6859_v17, %v13400_v10  ;;  %v14355_v10 = vld [vmem:[#allocation114_spill] sm:$0xff] }
 0x968   : > { %v6622_v17 = vrot.slane %v14355_v10, 1 }
 0x969   : > { %7510 = vrot.lane.b32.xlu0 %v7067_v25, %s10215_s16  ;;  %7508 = vrot.lane.b32.xlu2 %v7066_v53, %s10215_s16  ;;  %v14352_v53 = vld [vmem:[#allocation8_spill] sm:$0xff] }
 0x96a   : > { %7506 = vrot.lane.b32.xlu1 %v7065_v36, %s10215_s16  ;;  %v7225_v25 = vadd.f32 %v14352_v53, %v14351_v31  ;;  %v14353_v36 = vld [vmem:[#allocation115_spill] sm:$0xff]  ;;  %v6783_v31 = vsel %vm6751_vm2, %v6622_v17, %v14358_v47  ;;  %v6572_v17 = vsel %vm6558_vm3, %v14365_v11, %v14364_v59  ;;  %v14366_v47 = vld [vmem:[#allocation118_spill] sm:$0xff] }
 0x96b   : > { %v7605_v56 = vpop.permute.xlu0 %7604  ;;  %v7615_v7 = vpop.permute.xlu2 %7614  ;;  %v7068_v2 = vadd.f32 %v14354_v34, %v14353_v36  ;;  %v7263_v34 = vmul.f32 0.25, %v6783_v31  ;;  %v6620_v15 = vrot.slane %v14366_v47, 1  ;;  %v14371_v59 = vld [vmem:[#allocation130_spill] sm:$0xff] }
 0x96c   : > { %v13529_v49 = vsel %vm7841_vm5, %v7819_v26, %v7605_v56  ;;  %v7607_v16 = vpop.permute.xlu1 %7606  ;;  %v14356_v26 = vld [vmem:[#allocation78_spill] sm:$0xff]  ;;  %v14357_v56 = vld [vmem:[#allocation28_spill] sm:$0xff] }
 0x96d   : > { %14347 = vst [vmem:[#allocation88_spill] sm:$0xff] %v13529_v49  ;;  %v13532_v14 = vsel %vm7841_vm5, %v7820_v41, %v7607_v16  ;;  %v6574_v41 = vsel %vm6558_vm3, %v14357_v56, %v14356_v26  ;;  %v14363_v26 = vld [vmem:[#allocation36_spill] sm:$0xff] }
 0x96e   : > { %14348 = vst [vmem:[#allocation31_spill] sm:$0xff] %v13532_v14  ;;  %v14361_v14 = vld [vmem:[#allocation105_spill] sm:$0xff]  ;;  %v14369_v49 = vld [vmem:[#allocation60_spill] sm:$0xff] }
 0x971   : > { %7634 = vrot.lane.b32.xlu0 %v7225_v25, %s10213_s15  ;;  %7638 = vrot.lane.b32.xlu2 %v7227_v21, %s10213_s15  ;;  %v6799_v25 = vmul.f32 0.25, %v6574_v41  ;;  %v14359_v21 = vld [vmem:[#allocation106_spill] sm:$0xff]  ;;  %v14367_v41 = vld [vmem:[#allocation116_spill] sm:$0xff] }
 0x972   : > { %7512 = vrot.lane.b32.xlu1 %v7068_v2, %s10215_s16  ;;  %v7228_v10 = vadd.f32 %v14360_v32, %v14359_v21  ;;  %v14362_v2 = vld [vmem:[#allocation11_spill] sm:$0xff]  ;;  %v6621_v31 = vrot.slane %v14367_v41, 1 }
 0x973   : > { %v13547_v16 = vpop.permute.xlu0 %7324  ;;  %v13549_v51 = vpop.permute.xlu2 %7334  ;;  %v7226_v52 = vadd.f32 %v14362_v2, %v14361_v14  ;;  %v6863_v56 = vadd.f32 %v14363_v26, %v6799_v25  ;;  %v14368_v14 = vld [vmem:[#allocation54_spill] sm:$0xff]  ;;  %v6797_v25 = vmul.f32 0.25, %v6572_v17 }
 0x974   : > { %v13553_v53 = vpop.permute.xlu1 %7326  ;;  %v6782_v18 = vsel %vm6751_vm2, %v6621_v31, %v14369_v49  ;;  %v14376_v49 = vld [vmem:[#allocation90_spill] sm:$0xff] }
 0x975   : > { %v7262_v44 = vmul.f32 0.25, %v6782_v18  ;;  %v6861_v37 = vadd.f32 %v14373_v6, %v6797_v25  ;;  %v14379_v25 = vld [vmem:[#allocation128_spill] sm:$0xff] }
 0x979   : > { %7640 = vrot.lane.b32.xlu0 %v7228_v10, %s10213_s15  ;;  %7358 = vrot.lane.b32.xlu2 %v7263_v34, %s10215_s16  ;;  %v6781_v10 = vsel %vm6751_vm2, %v6620_v15, %v14368_v14  ;;  %v14374_v15 = vld [vmem:[#allocation95_spill] sm:$0xff] }
 0x97a   : > { %7636 = vrot.lane.b32.xlu1 %v7226_v52, %s10213_s15  ;;  %v14372_v52 = vld [vmem:[#allocation7_spill] sm:$0xff]  ;;  %v7261_v41 = vmul.f32 0.25, %v6781_v10 }
 0x97b   : > { %v7487_v32 = vpop.permute.xlu0 %7486  ;;  %v13568_v21 = vpop.permute.xlu2 %7490  ;;  %v7069_v48 = vadd.f32 %v14372_v52, %v14371_v59  ;;  %v14380_v52 = vld [vmem:[#allocation59_spill] sm:$0xff]  ;;  %v14383_v59 = vld [vmem:[#allocation132_spill] sm:$0xff] }
 0x97c   : > { %v7824_v34 = vsel %vm7808_vm4, %v6863_v56, %v7487_v32  ;;  %v7483_v2 = vpop.permute.xlu1 %7482  ;;  %v14375_v56 = vld [vmem:[#allocation29_spill] sm:$0xff] }
 0x97d   : > { %v13576_v11 = vsel %vm7841_vm5, %v7824_v34, %v7615_v7  ;;  %v6575_v17 = vsel %vm6558_vm3, %v14375_v56, %v14374_v15  ;;  %v14377_v7 = vld [vmem:[#allocation26_spill] sm:$0xff]  ;;  %v7822_v32 = vsel %vm7808_vm4, %v6861_v37, %v7483_v2  ;;  %v7230_v15 = vadd.f32 %v14380_v52, %v14379_v25  ;;  %v14381_v56 = vld [vmem:[#allocation129_spill] sm:$0xff] }
 0x97e   : > { %14370 = vst [vmem:[#allocation100_spill] sm:$0xff] %v13576_v11  ;;  %v6573_v31 = vsel %vm6558_vm3, %v14377_v7, %v14376_v49  ;;  %v7071_v49 = vadd.f32 %v14384_v42, %v14383_v59  ;;  %v14385_v7 = vld [vmem:[#allocation41_spill] sm:$0xff]  ;;  %v14386_v2 = vld [vmem:[#allocation38_spill] sm:$0xff] }
 0x97f   : > { %v6798_v34 = vmul.f32 0.25, %v6573_v31 }
 0x981   : > { %7354 = vrot.lane.b32.xlu0 %v7261_v41, %s10215_s16  ;;  %7514 = vrot.lane.b32.xlu2 %v7069_v48, %s10215_s16  ;;  %v6800_v48 = vmul.f32 0.25, %v6575_v17 }
 0x982   : > { %7356 = vrot.lane.b32.xlu1 %v7262_v44, %s10215_s16  ;;  %v14382_v44 = vld [vmem:[#allocation71_spill] sm:$0xff] }
 0x983   : > { %v7611_v14 = vpop.permute.xlu0 %7610  ;;  %v13591_v18 = vpop.permute.xlu2 %7496  ;;  %v7070_v11 = vadd.f32 %v14382_v44, %v14381_v56  ;;  %v6864_v37 = vadd.f32 %v14385_v7, %v6800_v48  ;;  %v14389_v44 = vld [vmem:[#allocation65_spill] sm:$0xff] }
 0x984   : > { %v13594_v10 = vsel %vm7841_vm5, %v7822_v32, %v7611_v14  ;;  %v7489_v41 = vpop.permute.xlu1 %7488  ;;  %v6862_v32 = vadd.f32 %v14386_v2, %v6798_v34  ;;  %v14388_v34 = vld [vmem:[#allocation124_spill] sm:$0xff] }
 0x985   : > { %14378 = vst [vmem:[#allocation13_spill] sm:$0xff] %v13594_v10  ;;  %v7825_v17 = vsel %vm7808_vm4, %v6864_v37, %v7489_v41  ;;  %v14390_v10 = vld [vmem:[#allocation123_spill] sm:$0xff]  ;;  %v14391_v41 = vld [vmem:[#allocation17_spill] sm:$0xff] }
 0x986   : > { %v7823_v25 = vsel %vm7808_vm4, %v6862_v32, %v13508_v39  ;;  %v7229_v37 = vadd.f32 %v14391_v41, %v14390_v10  ;;  %v14395_v10 = vld [vmem:[#allocation21_spill] sm:$0xff] }
 0x987   : > { %v14398_v41 = vld [vmem:[#allocation113_spill] sm:$0xff] }
 0x989   : > { %7516 = vrot.lane.b32.xlu0 %v7070_v11, %s10215_s16  ;;  %7644 = vrot.lane.b32.xlu2 %v7230_v15, %s10213_s15  ;;  %v14387_v11 = vld [vmem:[#allocation12_spill] sm:$0xff] }
 0x98a   : > { %7518 = vrot.lane.b32.xlu1 %v7071_v49, %s10215_s16  ;;  %v7393_v15 = vadd.f32 %v14387_v11, %v12375_v0  ;;  %v7231_v49 = vadd.f32 %v14389_v44, %v14388_v34  ;;  %v14392_v0 = vld [vmem:[#allocation58_spill] sm:$0xff]  ;;  %v14394_v11 = vld [vmem:[#allocation5_spill] sm:$0xff] }
 0x98b   : > { %v7617_v31 = vpop.permute.xlu0 %7616  ;;  %v7621_v14 = vpop.permute.xlu2 %7620  ;;  %v7395_v34 = vadd.f32 %v14395_v10, %v14394_v11  ;;  %v14397_v44 = vld [vmem:[#allocation42_spill] sm:$0xff] }
 0x98c   : > { %v13611_v52 = vsel %vm7841_vm5, %v7825_v17, %v7617_v31  ;;  %v7613_v42 = vpop.permute.xlu1 %7612  ;;  %v7396_v31 = vadd.f32 %v14392_v0, %v12390_v20 }
 0x98d   : > { %v13614_v48 = vsel %vm7841_vm5, %v7823_v25, %v7613_v42  ;;  %v14393_v25 = vld [vmem:[#allocation74_spill] sm:$0xff] }
 0x98e   : > { %v7394_v42 = vadd.f32 %v14393_v25, %v12378_v45 }
 0x991   : > { %7646 = vrot.lane.b32.xlu0 %v7231_v49, %s10213_s15  ;;  %7714 = vrot.lane.b32.xlu2 %v7393_v15, %s10213_s15  ;;  %v14396_v15 = vld [vmem:[#allocation98_spill] sm:$0xff] }
 0x992   : > { %7642 = vrot.lane.b32.xlu1 %v7229_v37, %s10213_s15  ;;  %v6577_v49 = vsel %vm6558_vm3, %v14397_v44, %v14396_v15  ;;  %v14399_v37 = vld [vmem:[#allocation44_spill] sm:$0xff]  ;;  %v7398_v15 = vadd.f32 %v13381_v57, %v12442_v43 }
 0x993   : > { %v13625_v39 = vpop.permute.xlu0 %7330  ;;  %v13627_v32 = vpop.permute.xlu2 %7340  ;;  %v6576_v20 = vsel %vm6558_vm3, %v14399_v37, %v14398_v41  ;;  %v6802_v11 = vmul.f32 0.25, %v6577_v49  ;;  %v14401_v37 = vld [vmem:[#allocation121_spill] sm:$0xff]  ;;  %v14402_v49 = vld [vmem:[#allocation40_spill] sm:$0xff] }
 0x994   : > { %v13629_v17 = vpop.permute.xlu1 %7332  ;;  %v6801_v10 = vmul.f32 0.25, %v6576_v20  ;;  %v6578_v20 = vsel %vm6558_vm3, %v14402_v49, %v14401_v37  ;;  %v7402_v37 = vadd.f32 %v13377_v46, %v14345_v8  ;;  %v7403_v8 = vadd.f32 %v13462_v24, %v14346_v4 }
 0x995   : > { %v6866_v44 = vadd.f32 %v14304_v30, %v6802_v11 }
 0x996   : > { %v6865_v41 = vadd.f32 %v14287_v58, %v6801_v10 }
 0x998   : > { %v7826_v57 = vsel %vm7808_vm4, %v6865_v41, %v13568_v21  ;;  %v7401_v21 = vadd.f32 %v13468_v27, %v14231_v23 }
 0x999   : > { %7716 = vrot.lane.b32.xlu0 %v7394_v42, %s10213_s15  ;;  %7720 = vrot.lane.b32.xlu2 %v7396_v31, %s10213_s15  ;;  %v14400_v42 = vld [vmem:[#allocation75_spill] sm:$0xff] }
 0x99a   : > { %7718 = vrot.lane.b32.xlu1 %v7395_v34, %s10213_s15  ;;  %v7399_v31 = vadd.f32 %v14400_v42, %v12461_v29  ;;  %v7397_v34 = vadd.f32 %v13375_v33, %v12448_v12  ;;  %v14403_v29 = vld [vmem:[#allocation119_spill] sm:$0xff] }
 0x99b   : > { %v13646_v0 = vpop.permute.xlu0 %7336  ;;  %v13648_v45 = vpop.permute.xlu2 %7502  ;;  %v6579_v12 = vsel %vm6558_vm3, %v14292_v60, %v14403_v29  ;;  %v7400_v60 = vadd.f32 %v13398_v9, %v12464_v1 }
 0x99c   : > { %v7495_v25 = vpop.permute.xlu1 %7494 }
 0x9a1   : > { %7722 = vrot.lane.b32.xlu0 %v7397_v34, %s10213_s15  ;;  %7726 = vrot.lane.b32.xlu2 %v7399_v31, %s10213_s15  ;;  %v6803_v31 = vmul.f32 0.25, %v6578_v20  ;;  %v7405_v20 = vadd.f32 %v13464_v54, %v14373_v6  ;;  %v7408_v6 = vadd.f32 %v13484_v61, %v14385_v7  ;;  %v7407_v54 = vadd.f32 %v13553_v53, %v14363_v26 }
 0x9a2   : > { %7724 = vrot.lane.b32.xlu1 %v7398_v15, %s10213_s15  ;;  %v6804_v15 = vmul.f32 0.25, %v6579_v12  ;;  %v7411_v26 = vadd.f32 %v13549_v51, %v14297_v28 }
 0x9a3   : > { %v7493_v33 = vpop.permute.xlu0 %7492  ;;  %v7627_v43 = vpop.permute.xlu2 %7626 }
 0x9a4   : > { %v7827_v42 = vsel %vm7808_vm4, %v6866_v44, %v7493_v33  ;;  %v7619_v11 = vpop.permute.xlu1 %7618  ;;  %v6867_v44 = vadd.f32 %v14297_v28, %v6803_v31  ;;  %v6868_v41 = vadd.f32 %v14295_v40, %v6804_v15  ;;  %v7410_v31 = vadd.f32 %v13629_v17, %v14304_v30  ;;  %v14406_v15 = vld [vmem:[#allocation133_spill] sm:$0xff] }
 0x9a5   : > { %v13671_v10 = vsel %vm7841_vm5, %v7826_v57, %v7619_v11  ;;  %v13674_v34 = vsel %vm7841_vm5, %v7827_v42, %v7621_v14  ;;  %v7409_v11 = vadd.f32 %v13625_v39, %v14287_v58 }
 0x9a6   : > { %v7828_v14 = vsel %vm7808_vm4, %v6867_v44, %v7495_v25  ;;  %v7829_v1 = vsel %vm7808_vm4, %v6868_v41, %v13591_v18  ;;  %v7404_v25 = vadd.f32 %v13491_v5, %v14238_v22  ;;  %v14404_v18 = vld [vmem:[#allocation120_spill] sm:$0xff]  ;;  %v7406_v22 = vadd.f32 %v13547_v16, %v14386_v2 }
 0x9a7   : > { %v6580_v29 = vsel %vm6558_vm3, %v14315_v13, %v14404_v18  ;;  %v14405_v13 = vld [vmem:[#allocation126_spill] sm:$0xff]  ;;  %v7412_v44 = vadd.f32 %v13646_v0, %v14295_v40  ;;  %v14410_v18 = vld [vmem:[#allocation67_spill] sm:$0xff] }
 0x9a8   : > { %v6805_v24 = vmul.f32 0.25, %v6580_v29  ;;  %v6583_v4 = vsel %vm6558_vm3, %v14320_v50, %v14405_v13  ;;  %v6588_v29 = vsel %vm6558_vm3, %v14366_v47, %v14410_v18  ;;  %v14421_v18 = vld [vmem:[#allocation9_spill] sm:$0xff] }
 0x9a9   : > { %7728 = vrot.lane.b32.xlu0 %v7400_v60, %s10213_s15  ;;  %7732 = vrot.lane.b32.xlu2 %v7402_v37, %s10213_s15  ;;  %v6808_v53 = vmul.f32 0.25, %v6583_v4  ;;  %v14407_v37 = vld [vmem:[#allocation134_spill] sm:$0xff]  ;;  %v14413_v4 = vld [vmem:[#allocation136_spill] sm:$0xff] }
 0x9aa   : > { %7730 = vrot.lane.b32.xlu1 %v7401_v21, %s10213_s15  ;;  %v6869_v5 = vadd.f32 %v14324_v55, %v6805_v24  ;;  %v6582_v28 = vsel %vm6558_vm3, %v14312_v3, %v14407_v37 }
 0x9ab   : > { %v7623_v49 = vpop.permute.xlu0 %7622  ;;  %v7633_v46 = vpop.permute.xlu2 %7632  ;;  %v6872_v50 = vadd.f32 %v14328_v35, %v6808_v53  ;;  %v6807_v21 = vmul.f32 0.25, %v6582_v28 }
 0x9ac   : > { %v13691_v9 = vsel %vm7841_vm5, %v7828_v14, %v7623_v49  ;;  %v7625_v23 = vpop.permute.xlu1 %7624  ;;  %v14408_v14 = vld [vmem:[#allocation87_spill] sm:$0xff] }
 0x9ad   : > { %v13694_v27 = vsel %vm7841_vm5, %v7829_v1, %v7625_v23  ;;  %v6871_v49 = vadd.f32 %v14408_v14, %v6807_v21  ;;  %v14419_v21 = vld [vmem:[#allocation91_spill] sm:$0xff] }
 0x9b1   : > { %7734 = vrot.lane.b32.xlu0 %v7403_v8, %s10213_s15  ;;  %7738 = vrot.lane.b32.xlu2 %v7405_v20, %s10213_s15 }
 0x9b2   : > { %7736 = vrot.lane.b32.xlu1 %v7404_v25, %s10213_s15 }
 0x9b3   : > { %v7343_v12 = vpop.permute.xlu0 %7342  ;;  %v7347_v33 = vpop.permute.xlu2 %7346 }
 0x9b4   : > { %v7339_v57 = vpop.permute.xlu1 %7338  ;;  %v7415_v0 = vadd.f32 %v7343_v12, %v14408_v14  ;;  %v7417_v8 = vadd.f32 %v7347_v33, %v14344_v62 }
 0x9b5   : > { %v7413_v41 = vadd.f32 %v7339_v57, %v14324_v55 }
 0x9b9   : > { %7740 = vrot.lane.b32.xlu0 %v7406_v22, %s10213_s15  ;;  %7744 = vrot.lane.b32.xlu2 %v7408_v6, %s10213_s15  ;;  %v6813_v6 = vmul.f32 0.25, %v6588_v29  ;;  %v14411_v22 = vld [vmem:[#allocation111_spill] sm:$0xff]  ;;  %v14422_v29 = vld [vmem:[#allocation116_spill] sm:$0xff] }
 0x9ba   : > { %7742 = vrot.lane.b32.xlu1 %v7407_v54, %s10213_s15 }
 0x9bb   : > { %v7499_v42 = vpop.permute.xlu0 %7498  ;;  %v7353_v61 = vpop.permute.xlu2 %7352 }
 0x9bc   : > { %v7830_v7 = vsel %vm7808_vm4, %v6869_v5, %v7499_v42  ;;  %v7345_v16 = vpop.permute.xlu1 %7344  ;;  %v14412_v5 = vld [vmem:[#allocation110_spill] sm:$0xff]  ;;  %v14414_v42 = vld [vmem:[#allocation92_spill] sm:$0xff] }
 0x9bd   : > { %v13723_v2 = vsel %vm7841_vm5, %v7830_v7, %v7627_v43  ;;  %v6581_v43 = vsel %vm6558_vm3, %v14308_v38, %v14406_v15  ;;  %v7414_v38 = vadd.f32 %v13627_v32, %v14329_v19  ;;  %v7832_v32 = vsel %vm7808_vm4, %v6871_v49, %v13648_v45  ;;  %v14409_v45 = vld [vmem:[#allocation135_spill] sm:$0xff]  ;;  %v14415_v7 = vld [vmem:[#allocation130_spill] sm:$0xff] }
 0x9be   : > { %v6806_v17 = vmul.f32 0.25, %v6581_v43  ;;  %v7416_v20 = vadd.f32 %v7345_v16, %v14328_v35  ;;  %v6586_v25 = vsel %vm6558_vm3, %v14337_v63, %v14409_v45  ;;  %v7420_v35 = vadd.f32 %v7353_v61, %v14353_v36 }
 0x9bf   : > { %v6811_v33 = vmul.f32 0.25, %v6586_v25  ;;  %v6584_v47 = vsel %vm6558_vm3, %v14414_v42, %v14413_v4  ;;  %v6877_v16 = vadd.f32 %v14415_v7, %v6813_v6  ;;  %v14424_v42 = vld [vmem:[#allocation82_spill] sm:$0xff] }
 0x9c0   : > { %v6870_v3 = vadd.f32 %v14329_v19, %v6806_v17  ;;  %v6809_v37 = vmul.f32 0.25, %v6584_v47  ;;  %v14418_v17 = vld [vmem:[#allocation138_spill] sm:$0xff] }
 0x9c1   : > { %7746 = vrot.lane.b32.xlu0 %v7409_v11, %s10213_s15  ;;  %7750 = vrot.lane.b32.xlu2 %v7411_v26, %s10213_s15  ;;  %v6875_v63 = vadd.f32 %v14412_v5, %v6811_v33  ;;  %v14416_v26 = vld [vmem:[#allocation6_spill] sm:$0xff]  ;;  %v14417_v11 = vld [vmem:[#allocation97_spill] sm:$0xff] }
 0x9c2   : > { %7748 = vrot.lane.b32.xlu1 %v7410_v31, %s10213_s15  ;;  %v6587_v31 = vsel %vm6558_vm3, %v14417_v11, %v14416_v26  ;;  %v14423_v33 = vld [vmem:[#allocation73_spill] sm:$0xff] }
 0x9c3   : > { %v7505_v58 = vpop.permute.xlu0 %7504  ;;  %v13741_v51 = vpop.permute.xlu2 %7508 }
 0x9c4   : > { %v7833_v30 = vsel %vm7808_vm4, %v6872_v50, %v7505_v58  ;;  %v7501_v39 = vpop.permute.xlu1 %7500  ;;  %v6812_v58 = vmul.f32 0.25, %v6587_v31 }
 0x9c5   : > { %v13745_v60 = vsel %vm7841_vm5, %v7833_v30, %v7633_v46  ;;  %v7831_v46 = vsel %vm7808_vm4, %v6870_v3, %v7501_v39  ;;  %v6873_v39 = vadd.f32 %v14344_v62, %v6809_v37  ;;  %v14426_v37 = vld [vmem:[#allocation14_spill] sm:$0xff] }
 0x9c9   : > { %7752 = vrot.lane.b32.xlu0 %v7412_v44, %s10213_s15  ;;  %7756 = vrot.lane.b32.xlu2 %v7414_v38, %s10213_s15  ;;  %v6585_v38 = vsel %vm6558_vm3, %v14419_v21, %v14418_v17  ;;  %v6876_v44 = vadd.f32 %v14353_v36, %v6812_v58  ;;  %v14428_v21 = vld [vmem:[#allocation70_spill] sm:$0xff] }
 0x9ca   : > { %7754 = vrot.lane.b32.xlu1 %v7413_v41, %s10213_s15  ;;  %v6810_v62 = vmul.f32 0.25, %v6585_v38 }
 0x9cb   : > { %v7629_v1 = vpop.permute.xlu0 %7628  ;;  %v7639_v23 = vpop.permute.xlu2 %7638 }
 0x9cc   : > { %v13761_v40 = vsel %vm7841_vm5, %v7831_v46, %v7629_v1  ;;  %v7631_v55 = vpop.permute.xlu1 %7630 }
 0x9cd   : > { %v13764_v19 = vsel %vm7841_vm5, %v7832_v32, %v7631_v55 }
 0x9d1   : > { %7758 = vrot.lane.b32.xlu0 %v7415_v0, %s10213_s15  ;;  %7762 = vrot.lane.b32.xlu2 %v7417_v8, %s10213_s15  ;;  %v14420_v8 = vld [vmem:[#allocation18_spill] sm:$0xff] }
 0x9d2   : > { %7760 = vrot.lane.b32.xlu1 %v7416_v20, %s10213_s15 }
 0x9d3   : > { %v7349_v57 = vpop.permute.xlu0 %7348  ;;  %v7359_v12 = vpop.permute.xlu2 %7358 }
 0x9d4   : > { %v7351_v24 = vpop.permute.xlu1 %7350  ;;  %v7418_v54 = vadd.f32 %v7349_v57, %v14411_v22  ;;  %v7423_v30 = vadd.f32 %v7359_v12, %v14383_v59  ;;  %v6589_v57 = vsel %vm6558_vm3, %v14422_v29, %v14421_v18 }
 0x9d5   : > { %v7419_v13 = vadd.f32 %v7351_v24, %v14412_v5 }
 0x9d9   : > { %7764 = vrot.lane.b32.xlu0 %v7418_v54, %s10213_s15  ;;  %7768 = vrot.lane.b32.xlu2 %v7420_v35, %s10213_s15  ;;  %v6814_v54 = vmul.f32 0.25, %v6589_v57  ;;  %v14433_v57 = vld [vmem:[#allocation31_spill] sm:$0xff] }
 0x9da   : > { %7766 = vrot.lane.b32.xlu1 %v7419_v13, %s10213_s15 }
 0x9db   : > { %v7511_v53 = vpop.permute.xlu0 %7510  ;;  %v7515_v61 = vpop.permute.xlu2 %7514  ;;  %v6878_v5 = vadd.f32 %v14381_v56, %v6814_v54 }
 0x9dc   : > { %v7836_v50 = vsel %vm7808_vm4, %v6875_v63, %v7511_v53  ;;  %v7838_v15 = vsel %vm7808_vm4, %v6877_v16, %v7515_v61  ;;  %v7507_v43 = vpop.permute.xlu1 %7506 }
 0x9dd   : > { %v13795_v28 = vsel %vm7841_vm5, %v7836_v50, %v7639_v23  ;;  %v7834_v41 = vsel %vm7808_vm4, %v6873_v39, %v7507_v43  ;;  %v6874_v23 = vadd.f32 %v14411_v22, %v6810_v62 }
 0x9df   : > { %v7835_v0 = vsel %vm7808_vm4, %v6874_v23, %v13741_v51 }
 0x9e1   : > { %7774 = vrot.lane.b32.xlu2 %v7423_v30, %s10213_s15  ;;  %v14427_v30 = vld [vmem:[#allocation13_spill] sm:$0xff] }
 0x9e3   : > { %v7635_v3 = vpop.permute.xlu0 %7634  ;;  %v7645_v14 = vpop.permute.xlu2 %7644 }
 0x9e4   : > { %v13806_v49 = vsel %vm7841_vm5, %v7834_v41, %v7635_v3  ;;  %v7513_v46 = vpop.permute.xlu1 %7512  ;;  %v14429_v41 = vld [vmem:[#allocation83_spill] sm:$0xff] }
 0x9e5   : > { %v7837_v1 = vsel %vm7808_vm4, %v6876_v44, %v7513_v46 }
 0x9eb   : > { %v7641_v32 = vpop.permute.xlu0 %7640  ;;  %v7715_v55 = vpop.permute.xlu2 %7714 }
 0x9ec   : > { %v13813_v36 = vsel %vm7841_vm5, %v7837_v1, %v7641_v32  ;;  %v7876_v20 = vsel %vm7874_vm6, %v14420_v8, %v7715_v55  ;;  %v7637_v45 = vpop.permute.xlu1 %7636  ;;  %v14430_v1 = vld [vmem:[#allocation84_spill] sm:$0xff]  ;;  %v14431_v55 = vld [vmem:[#allocation99_spill] sm:$0xff] }
 0x9ed   : > { %7908 = vst [vmem:[%s13355_s23 + $0x8] sm:$0xff] %v7876_v20  ;;  %v13819_v25 = vsel %vm7841_vm5, %v7835_v0, %v7637_v45 }
 0x9f3   : > { %v7355_v12 = vpop.permute.xlu0 %7354  ;;  %v7721_v24 = vpop.permute.xlu2 %7720 }
 0x9f4   : > { %v7421_v51 = vadd.f32 %v7355_v12, %v14415_v7  ;;  %v7879_v6 = vsel %vm7874_vm6, %v14423_v33, %v7721_v24  ;;  %v7357_v35 = vpop.permute.xlu1 %7356 }
 0x9f5   : > { %7911 = vst [vmem:[%s13355_s23 + $0x20] sm:$0xff] %v7879_v6  ;;  %v7422_v22 = vadd.f32 %v7357_v35, %v14381_v56  ;;  %v14425_v56 = vld [vmem:[#allocation88_spill] sm:$0xff] }
 0x9f6   : > { %7770 = vrot.lane.b32.xlu0 %v7421_v51, %s10213_s15 }
 0x9f7   : > { %7772 = vrot.lane.b32.xlu1 %v7422_v22, %s10213_s15 }
 0x9fb   : > { %v7517_v13 = vpop.permute.xlu0 %7516  ;;  %v7727_v63 = vpop.permute.xlu2 %7726 }
 0x9fc   : > { %v7839_v4 = vsel %vm7808_vm4, %v6878_v5, %v7517_v13  ;;  %v7882_v47 = vsel %vm7874_vm6, %v14424_v42, %v7727_v63  ;;  %v13835_v7 = vpop.permute.xlu1 %7518  ;;  %v14436_v63 = vld [vmem:[#allocation15_spill] sm:$0xff] }
 0x9fd   : > { %7914 = vst [vmem:[%s13355_s23 + $0x38] sm:$0xff] %v7882_v47  ;;  %v13839_v16 = vsel %vm7841_vm5, %v7839_v4, %v7645_v14  ;;  %v14437_v4 = vld [vmem:[#allocation114_spill] sm:$0xff] }
 0x9fe   : > { %v6590_v42 = vsel %vm6558_vm3, %v14437_v4, %v14436_v63 }
 0xa03   : > { %v13841_v53 = vpop.permute.xlu0 %7646  ;;  %v7733_v61 = vpop.permute.xlu2 %7732 }
 0xa04   : > { %v7885_v26 = vsel %vm7874_vm6, %v14425_v56, %v7733_v61  ;;  %v7643_v11 = vpop.permute.xlu1 %7642  ;;  %v6815_v56 = vmul.f32 0.25, %v6590_v42 }
 0xa05   : > { %7917 = vst [vmem:[%s13355_s23 + $0x50] sm:$0xff] %v7885_v26  ;;  %v13847_v31 = vsel %vm7841_vm5, %v7838_v15, %v7643_v11 }
 0xa0b   : > { %v7717_v50 = vpop.permute.xlu0 %7716  ;;  %v7739_v43 = vpop.permute.xlu2 %7738 }
 0xa0c   : > { %v7877_v58 = vsel %vm7874_vm6, %v14426_v37, %v7717_v50  ;;  %v7888_v39 = vsel %vm7874_vm6, %v14427_v30, %v7739_v43  ;;  %v7719_v17 = vpop.permute.xlu1 %7718  ;;  %v6879_v50 = vadd.f32 %v14383_v59, %v6815_v56 }
 0xa0d   : > { %7909 = vst [vmem:[%s13355_s23 + $0x10] sm:$0xff] %v7877_v58  ;;  %v7878_v38 = vsel %vm7874_vm6, %v14428_v21, %v7719_v17 }
 0xa0e   : > { %7920 = vst [vmem:[%s13355_s23 + $0x68] sm:$0xff] %v7888_v39  ;;  %v7840_v43 = vsel %vm7808_vm4, %v6879_v50, %v13835_v7 }
 0xa0f   : > { %7910 = vst [vmem:[%s13355_s23 + $0x18] sm:$0xff] %v7878_v38 }
 0xa13   : > { %v7723_v15 = vpop.permute.xlu0 %7722  ;;  %v7745_v44 = vpop.permute.xlu2 %7744 }
 0xa14   : > { %v7880_v3 = vsel %vm7874_vm6, %v14429_v41, %v7723_v15  ;;  %v7891_v14 = vsel %vm7874_vm6, %v13611_v52, %v7745_v44  ;;  %v7725_v46 = vpop.permute.xlu1 %7724  ;;  %v14432_v52 = vld [vmem:[#allocation96_spill] sm:$0xff] }
 0xa15   : > { %7912 = vst [vmem:[%s13355_s23 + $0x28] sm:$0xff] %v7880_v3  ;;  %v7881_v62 = vsel %vm7874_vm6, %v14430_v1, %v7725_v46 }
 0xa16   : > { %7923 = vst [vmem:[%s13355_s23 + $0x80] sm:$0xff] %v7891_v14 }
 0xa17   : > { %7913 = vst [vmem:[%s13355_s23 + $0x30] sm:$0xff] %v7881_v62 }
 0xa1b   : > { %v7729_v23 = vpop.permute.xlu0 %7728  ;;  %v7751_v32 = vpop.permute.xlu2 %7750 }
 0xa1c   : > { %v7883_v0 = vsel %vm7874_vm6, %v14431_v55, %v7729_v23  ;;  %v7894_v8 = vsel %vm7874_vm6, %v13691_v9, %v7751_v32  ;;  %v7731_v20 = vpop.permute.xlu1 %7730  ;;  %v14434_v9 = vld [vmem:[#allocation33_spill] sm:$0xff] }
 0xa1d   : > { %7915 = vst [vmem:[%s13355_s23 + $0x40] sm:$0xff] %v7883_v0  ;;  %v7884_v45 = vsel %vm7874_vm6, %v14432_v52, %v7731_v20 }
 0xa1e   : > { %7926 = vst [vmem:[%s13355_s23 + $0x98] sm:$0xff] %v7894_v8 }
 0xa1f   : > { %7916 = vst [vmem:[%s13355_s23 + $0x48] sm:$0xff] %v7884_v45 }
 0xa23   : > { %v7735_v18 = vpop.permute.xlu0 %7734  ;;  %v7757_v29 = vpop.permute.xlu2 %7756 }
 0xa24   : > { %v7886_v12 = vsel %vm7874_vm6, %v14433_v57, %v7735_v18  ;;  %v7897_v24 = vsel %vm7874_vm6, %v13761_v40, %v7757_v29  ;;  %v7737_v51 = vpop.permute.xlu1 %7736  ;;  %v14435_v40 = vld [vmem:[#allocation100_spill] sm:$0xff] }
 0xa25   : > { %7918 = vst [vmem:[%s13355_s23 + $0x58] sm:$0xff] %v7886_v12  ;;  %v7887_v33 = vsel %vm7874_vm6, %v14434_v9, %v7737_v51 }
 0xa26   : > { %7929 = vst [vmem:[%s13355_s23 + $0xb0] sm:$0xff] %v7897_v24 }
 0xa27   : > { %7919 = vst [vmem:[%s13355_s23 + $0x60] sm:$0xff] %v7887_v33 }
 0xa2b   : > { %v7741_v6 = vpop.permute.xlu0 %7740  ;;  %v7763_v35 = vpop.permute.xlu2 %7762 }
 0xa2c   : > { %v7889_v22 = vsel %vm7874_vm6, %v13614_v48, %v7741_v6  ;;  %v7900_v54 = vsel %vm7874_vm6, %v13806_v49, %v7763_v35  ;;  %v7743_v5 = vpop.permute.xlu1 %7742 }
 0xa2d   : > { %7921 = vst [vmem:[%s13355_s23 + $0x70] sm:$0xff] %v7889_v22  ;;  %v7890_v13 = vsel %vm7874_vm6, %v14435_v40, %v7743_v5 }
 0xa2e   : > { %7932 = vst [vmem:[%s13355_s23 + $0xc8] sm:$0xff] %v7900_v54 }
 0xa2f   : > { %7922 = vst [vmem:[%s13355_s23 + $0x78] sm:$0xff] %v7890_v13 }
 0xa33   : > { %v7747_v47 = vpop.permute.xlu0 %7746  ;;  %v7769_v61 = vpop.permute.xlu2 %7768 }
 0xa34   : > { %v7892_v48 = vsel %vm7874_vm6, %v13671_v10, %v7747_v47  ;;  %v7903_v49 = vsel %vm7874_vm6, %v13813_v36, %v7769_v61  ;;  %v7749_v26 = vpop.permute.xlu1 %7748  ;;  %v7873_v10 = vsel %vm7841_vm5, %v7840_v43, %v13841_v53 }
 0xa35   : > { %7924 = vst [vmem:[%s13355_s23 + $0x88] sm:$0xff] %v7892_v48  ;;  %v7893_v11 = vsel %vm7874_vm6, %v13674_v34, %v7749_v26 }
 0xa36   : > { %7935 = vst [vmem:[%s13355_s23 + $0xe0] sm:$0xff] %v7903_v49 }
 0xa37   : > { %7925 = vst [vmem:[%s13355_s23 + $0x90] sm:$0xff] %v7893_v11 }
 0xa3b   : > { %v7753_v36 = vpop.permute.xlu0 %7752  ;;  %v7775_v37 = vpop.permute.xlu2 %7774 }
 0xa3c   : > { %v7895_v58 = vsel %vm7874_vm6, %v13694_v27, %v7753_v36  ;;  %v7906_v34 = vsel %vm7874_vm6, %v7873_v10, %v7775_v37  ;;  %v7755_v30 = vpop.permute.xlu1 %7754 }
 0xa3d   : > { %7927 = vst [vmem:[%s13355_s23 + $0xa0] sm:$0xff] %v7895_v58  ;;  %v7896_v59 = vsel %vm7874_vm6, %v13723_v2, %v7755_v30 }
 0xa3e   : > { %7938 = vst [vmem:[%s13355_s23 + $0xf8] sm:$0xff] %v7906_v34 }
 0xa3f   : > { %7928 = vst [vmem:[%s13355_s23 + $0xa8] sm:$0xff] %v7896_v59 }
 0xa43   : > { %v7759_v7 = vpop.permute.xlu0 %7758 }
 0xa44   : > { %v7898_v53 = vsel %vm7874_vm6, %v13764_v19, %v7759_v7  ;;  %v7761_v39 = vpop.permute.xlu1 %7760 }
 0xa45   : > { %7930 = vst [vmem:[%s13355_s23 + $0xb8] sm:$0xff] %v7898_v53  ;;  %v7899_v27 = vsel %vm7874_vm6, %v13745_v60, %v7761_v39 }
 0xa46   : > { %7931 = vst [vmem:[%s13355_s23 + $0xc0] sm:$0xff] %v7899_v27 }
 0xa4b   : > { %v7765_v17 = vpop.permute.xlu0 %7764 }
 0xa4c   : > { %v7901_v21 = vsel %vm7874_vm6, %v13819_v25, %v7765_v17  ;;  %v7767_v38 = vpop.permute.xlu1 %7766 }
 0xa4d   : > { %7933 = vst [vmem:[%s13355_s23 + $0xd0] sm:$0xff] %v7901_v21  ;;  %v7902_v2 = vsel %vm7874_vm6, %v13795_v28, %v7767_v38 }
 0xa4e   : > { %7934 = vst [vmem:[%s13355_s23 + $0xd8] sm:$0xff] %v7902_v2 }
 0xa68   : > { %v7771_v15 = vpop.permute.xlu0 %7770 }
 0xa69   : > { %v7904_v19 = vsel %vm7874_vm6, %v13847_v31, %v7771_v15  ;;  %v7773_v44 = vpop.permute.xlu1 %7772 }
 0xa6a   : > { %7936 = vst [vmem:[%s13355_s23 + $0xe8] sm:$0xff] %v7904_v19  ;;  %v7905_v60 = vsel %vm7874_vm6, %v13839_v16, %v7773_v44 }
 0xa6b   : > { %7937 = vst [vmem:[%s13355_s23 + $0xf0] sm:$0xff] %v7905_v60 }
 0xa6c PF: > { %s21_s17 = sadd.s32 1, %s10208_s17  }
 0xa6d   : > { %p18_p4 = scmp.ge.s32.totalorder %s21_s17, 4  }
 0xa6f   :  { %20 = sbr.rel (!%p18_p4) target bundleno = 1 (0x1), region = 130 }

</bundles_post_ra>
